<compile_context>
chip_gen: v5e
topology: v5e:2x2
jax: 0.10.0
libtpu: 0.0.40
codegen_flags: <defaults>
</compile_context>

<pallas_src>
import math
import functools

import jax
import jax.numpy as jnp
from jax import lax
from jax.experimental import pallas as pl
from jax.experimental.pallas import tpu as pltpu


# 48 MiB: well above the 16/32 MiB scoped defaults, still inside v7x's 64 MiB physical.
_VMEM_LIMIT = 48 * 1024 * 1024


def _pick_tile(n, candidates):
    """Largest candidate tile that divides n and gives >= 2 grid steps."""
    for c in candidates:
        if n % c == 0 and n // c >= 2:
            return c
    return n


# ----------------------------- in_proj (tiled, fused x|z) --------------------

def _in_proj_kernel(x_ref, w_ref, xo_ref, zo_ref):
    r = jnp.dot(x_ref[...].astype(jnp.bfloat16), w_ref[...],
                preferred_element_type=jnp.float32)          # (tm, 2D) f32
    D = xo_ref.shape[1]
    xo_ref[...] = r[:, :D]
    zo_ref[...] = r[:, D:]


def in_proj(x_flat, w, tm):
    """x_flat: (M, C) f32; w: (C, 2D) bf16 -> (x_part, z), each (M, D) f32."""
    M, C = x_flat.shape
    D2 = w.shape[1]
    D = D2 // 2
    return pl.pallas_call(
        _in_proj_kernel,
        out_shape=(jax.ShapeDtypeStruct((M, D), jnp.float32),
                   jax.ShapeDtypeStruct((M, D), jnp.float32)),
        grid=(M // tm,),
        in_specs=[pl.BlockSpec((tm, C), lambda m: (m, 0)),
                  pl.BlockSpec((C, D2), lambda m: (0, 0))],
        out_specs=[pl.BlockSpec((tm, D), lambda m: (m, 0)),
                   pl.BlockSpec((tm, D), lambda m: (m, 0))],
        compiler_params=pltpu.CompilerParams(
            dimension_semantics=("parallel",), vmem_limit_bytes=_VMEM_LIMIT),
    )(x_flat, w)


# ----------------------- depthwise 3x3 conv + SiLU --------------------------

def _dwconv_silu_kernel(xp_ref, w_ref, b_ref, o_ref):
    H, W, D = o_ref.shape
    xp = xp_ref[...]                                  # load padded image once
    acc = jnp.zeros((H, W, D), jnp.float32)
    for di in range(3):
        for dj in range(3):
            acc = acc + xp[di:di + H, dj:dj + W, :] * w_ref[pl.ds(di * 3 + dj, 1), :]
    acc = acc + b_ref[...]
    o_ref[...] = acc * jax.nn.sigmoid(acc)            # SiLU fused


def dwconv_silu(x, w9, bias):
    """Depthwise 3x3 conv (padding=1) + bias + SiLU. x: (B, H, W, D) f32."""
    # TODO(synk): for very large H*W, replace the host-side jnp.pad + whole-image
    # blocks with halo row-tiling inside the kernel (v7x 64 MiB VMEM budget).
    B, H, W, D = x.shape
    xp = jnp.pad(x, ((0, 0), (1, 1), (1, 1), (0, 0)))
    return pl.pallas_call(
        _dwconv_silu_kernel,
        out_shape=jax.ShapeDtypeStruct((B, H, W, D), jnp.float32),
        grid=(B,),
        in_specs=[pl.BlockSpec((None, H + 2, W + 2, D), lambda b: (b, 0, 0, 0)),
                  pl.BlockSpec((9, D), lambda b: (0, 0)),
                  pl.BlockSpec((1, D), lambda b: (0, 0))],
        out_specs=pl.BlockSpec((None, H, W, D), lambda b: (b, 0, 0, 0)),
        compiler_params=pltpu.CompilerParams(
            dimension_semantics=("parallel",), vmem_limit_bytes=_VMEM_LIMIT),
    )(xp, w9, bias.reshape(1, D))


# ------------- fused x_proj + dt_proj: one [dt|B|C] slab per direction -------

def _xproj_kernel(u_ref, w_ref, o_ref):
    # u: (tl, D) bf16; w: (2, D, Cf) bf16 (the two flips of one orientation);
    # o: (2, tl, Cf) bf16.
    u = u_ref[...]
    for f in range(2):                                # static
        o_ref[f] = jnp.dot(u, w_ref[f],
                           preferred_element_type=jnp.float32).astype(o_ref.dtype)


def x_dt_proj(u2, w_pair, tl):
    """u2: (2, B, L, D) bf16 (two orientations); w_pair: (2, 2, D, Cf) bf16 laid out
       [flip, orientation].  Returns slab_pair: (2, 2, B, L, Cf) bf16 whose
       reshape(4, B, L, Cf) is k-major (k = 2*flip + orientation)."""
    _, Bb, L, D = u2.shape
    Cf = w_pair.shape[-1]
    nL = L // tl
    return pl.pallas_call(
        _xproj_kernel,
        out_shape=jax.ShapeDtypeStruct((2, 2, Bb, L, Cf), jnp.bfloat16),
        grid=(2, Bb, nL),
        in_specs=[
            pl.BlockSpec((None, None, tl, D), lambda r, b, m: (r, b, m, 0)),
            pl.BlockSpec((2, None, D, Cf), lambda r, b, m: (0, r, 0, 0)),
        ],
        out_specs=pl.BlockSpec((2, None, None, tl, Cf),
                               lambda r, b, m: (0, r, b, m, 0)),
        compiler_params=pltpu.CompilerParams(
            dimension_semantics=("parallel", "parallel", "parallel"),
            vmem_limit_bytes=_VMEM_LIMIT),
    )(u2, w_pair)


# --------------------------- selective scan ---------------------------------

def _scan_kernel(u_ref, slab_ref, a_ref, dv_ref, bias_ref, y_ref,
                 h_scr, expA_scr, hist_scr):
    # u_ref:    (B, TL, D)      bf16
    # slab_ref: (B, TL, D+2N)   bf16   fused [dt_raw | B | C]
    # a_ref:    (N, D) f32; dv_ref/bias_ref: (1, D) f32
    # y_ref:    (B, TL, D) f32
    # h_scr:    (B*N, D) f32            SSM state, persists across L-chunks
    # expA_scr: (TL, B*N, D) f32        hoisted exp(delta*A), time-major
    # hist_scr: (TL, B*N, D) f32        dBu before the loop; h_t after the loop
    k = pl.program_id(0)
    l = pl.program_id(1)
    Bb, TL, D = u_ref.shape
    N = a_ref.shape[0]

    @pl.when(l == 0)
    def _():
        h_scr[...] = jnp.zeros(h_scr.shape, h_scr.dtype)

    u = u_ref[...].astype(jnp.float32)                       # (B, TL, D)
    slab = slab_ref[...].astype(jnp.float32)                 # (B, TL, D+2N)
    dt_raw = slab[:, :, :D]
    Bm = slab[:, :, D:D + N]                                 # (B, TL, N)
    Cm = slab[:, :, D + N:D + 2 * N]                         # (B, TL, N)

    delta = jax.nn.softplus(dt_raw + bias_ref[...].reshape(1, 1, D))  # (B, TL, D)
    du = delta * u
    A = a_ref[...]                                           # (N, D)
    Dv = dv_ref[...]                                         # (1, D)

    # Hoist all EUP/VPU work off the serial dependence chain (bulk, pipelined).
    for b in range(Bb):                                      # static, B is small
        expA_scr[:, pl.ds(b * N, N), :] = jnp.exp(delta[b][:, None, :] * A[None, :, :])
        hist_scr[:, pl.ds(b * N, N), :] = Bm[b][:, :, None] * du[b][:, None, :]

    grp = 8 if TL % 8 == 0 else 1
    n_grp = TL // grp

    def fwd_group(g, h):
        base = pl.multiple_of(g * grp, grp)
        for j in range(grp):                                 # static unroll
            t = base + j
            h = expA_scr[t] * h + hist_scr[t]
            hist_scr[t] = h
        return h

    def rev_group(g, h):
        base = pl.multiple_of(TL - (g + 1) * grp, grp)
        for j in range(grp - 1, -1, -1):                     # static unroll
            t = base + j
            h = expA_scr[t] * h + hist_scr[t]
            hist_scr[t] = h
        return h

    # Directions 2,3 scan the sequence backwards; split at chunk level (no per-step
    # select / dynamic-direction address math on the critical path).
    @pl.when(k < 2)
    def _():
        h_scr[...] = lax.fori_loop(0, n_grp, fwd_group, h_scr[...])

    @pl.when(k >= 2)
    def _():
        h_scr[...] = lax.fori_loop(0, n_grp, rev_group, h_scr[...])

    # y[b, t, d] = sum_n C[b, t, n] * h_t[b*N + n, d] + Dv[d] * u[b, t, d]
    # (whole-chunk vectorized contraction + one dense store per batch row).
    for b in range(Bb):
        hb = hist_scr[:, pl.ds(b * N, N), :]                 # (TL, N, D)
        yb = jnp.sum(Cm[b][:, :, None] * hb, axis=1)         # (TL, D)
        y_ref[pl.ds(b, 1)] = (yb + Dv * u[b])[None, :, :]


def selective_scan(u2, slab, A_all, Dv, dt_bias, tl):
    """u2: (2, B, L, D) bf16; slab: (K, B, L, D+2N) bf16; A_all: (K, N, D) f32;
       Dv/dt_bias: (K, 1, D) f32.  Returns y: (K, B, L, D) f32 with the flipped
       directions (k=2,3) already written back at the original positions."""
    _, Bb, L, D = u2.shape
    K, N, _ = A_all.shape
    Cf = slab.shape[-1]
    nL = L // tl

    def chunk(k, l):
        return jnp.where(k < 2, l, nL - 1 - l)

    return pl.pallas_call(
        _scan_kernel,
        out_shape=jax.ShapeDtypeStruct((K, Bb, L, D), jnp.float32),
        grid=(K, nL),
        in_specs=[
            pl.BlockSpec((None, Bb, tl, D), lambda k, l: (k % 2, 0, chunk(k, l), 0)),
            pl.BlockSpec((None, Bb, tl, Cf), lambda k, l: (k, 0, chunk(k, l), 0)),
            pl.BlockSpec((None, N, D), lambda k, l: (k, 0, 0)),
            pl.BlockSpec((None, 1, D), lambda k, l: (k, 0, 0)),
            pl.BlockSpec((None, 1, D), lambda k, l: (k, 0, 0)),
        ],
        out_specs=pl.BlockSpec((None, Bb, tl, D),
                               lambda k, l: (k, 0, chunk(k, l), 0)),
        scratch_shapes=[pltpu.VMEM((Bb * N, D), jnp.float32),       # SSM state h
                        pltpu.VMEM((tl, Bb * N, D), jnp.float32),   # exp(delta*A)
                        pltpu.VMEM((tl, Bb * N, D), jnp.float32)],  # dBu -> h_t
        compiler_params=pltpu.CompilerParams(
            dimension_semantics=("parallel", "arbitrary"),
            vmem_limit_bytes=_VMEM_LIMIT),
    )(u2, slab, A_all, Dv, dt_bias)


# ----------------- fused LayerNorm + SiLU(z) gate + out_proj -----------------

def _ln_gate_proj_kernel(y_ref, z_ref, g_ref, b_ref, w_ref, o_ref):
    y = y_ref[...]
    mu = jnp.mean(y, axis=-1, keepdims=True)
    var = jnp.mean(jnp.square(y - mu), axis=-1, keepdims=True)
    yn = (y - mu) * lax.rsqrt(var + 1e-5)
    yn = yn * g_ref[...] + b_ref[...]
    z = z_ref[...]
    gated = (yn * z * jax.nn.sigmoid(z)).astype(jnp.bfloat16)    # y * SiLU(z)
    o_ref[...] = jnp.dot(gated, w_ref[...], preferred_element_type=jnp.float32)


def ln_gate_proj(y, z, gamma, beta, w_out_t, tm):
    M, D = y.shape
    dm = w_out_t.shape[1]
    return pl.pallas_call(
        _ln_gate_proj_kernel,
        out_shape=jax.ShapeDtypeStruct((M, dm), jnp.float32),
        grid=(M // tm,),
        in_specs=[pl.BlockSpec((tm, D), lambda m: (m, 0)),
                  pl.BlockSpec((tm, D), lambda m: (m, 0)),
                  pl.BlockSpec((1, D), lambda m: (0, 0)),
                  pl.BlockSpec((1, D), lambda m: (0, 0)),
                  pl.BlockSpec((D, dm), lambda m: (0, 0))],
        out_specs=pl.BlockSpec((tm, dm), lambda m: (m, 0)),
        compiler_params=pltpu.CompilerParams(
            dimension_semantics=("parallel",), vmem_limit_bytes=_VMEM_LIMIT),
    )(y, z, gamma.reshape(1, D), beta.reshape(1, D), w_out_t)


# ------------------------------- SS2D forward -------------------------------

def ss2d_forward(x, p):
    B, H, W, C = x.shape
    D = p["d_inner"]
    N = p["d_state"]
    R = p["dt_rank"]
    K = 4
    L = H * W
    M = B * L
    bf = jnp.bfloat16

    TM = _pick_tile(M, (1024, 512, 256, 128, 64, 32, 16, 8))   # rows for projections
    TLp = _pick_tile(L, (512, 256, 128, 64, 32, 16, 8))        # L tile for x/dt proj
    scan_cands = tuple(c for c in (256, 128, 64, 32, 16, 8)
                       if 2 * c * B * N * D * 4 <= 16 * 1024 * 1024) or (8,)
    TLs = _pick_tile(L, scan_cands)                            # L chunk for the scan

    # in_proj (no bias), fused x|z dot, split inside the kernel
    x_part, z = in_proj(x.reshape(M, C), p["in_proj_w_t"].astype(bf), TM)

    # depthwise conv + bias + SiLU
    xc = dwconv_silu(x_part.reshape(B, H, W, D), p["conv_w9"], p["conv_b"])

    # only the 2 base orderings are materialized (bf16); flips are folded into the scan
    x_hw = xc.reshape(B, L, D)                                  # l = h*W + w
    x_wh = xc.transpose(0, 2, 1, 3).reshape(B, L, D)            # l = w*H + h
    u2 = jnp.stack([x_hw, x_wh], axis=0).astype(bf)             # (2, B, L, D)

    # fused x_proj / dt_proj weights: one [dt | B | C] column block per direction
    Wx = p["x_proj_weight"]                                     # (K, R+2N, D)
    w_dt = jnp.einsum('kdr,krc->kcd', p["dt_projs_weight"], Wx[:, :R, :])   # (K, D, D)
    w_b = jnp.transpose(Wx[:, R:R + N, :], (0, 2, 1))                        # (K, D, N)
    w_c = jnp.transpose(Wx[:, R + N:, :], (0, 2, 1))                         # (K, D, N)
    w_all = jnp.concatenate([w_dt, w_b, w_c], axis=-1).astype(bf)            # (K, D, Cf)
    w_pair = w_all.reshape(2, 2, D, D + 2 * N)                  # [flip, orientation]

    slab = x_dt_proj(u2, w_pair, TLp).reshape(K, B, L, D + 2 * N)   # k-major, free

    A_all = (-jnp.exp(p["A_logs"])).reshape(K, D, N).transpose(0, 2, 1)  # (K, N, D)
    Dv = p["Ds"].reshape(K, 1, D)
    dt_bias = p["dt_projs_bias"].reshape(K, 1, D)

    y = selective_scan(u2, slab, A_all, Dv, dt_bias, TLs)       # (K, B, L, D) f32

    # merge the 4 directions: k=0,2 are H-major; k=1,3 are W-major (transpose back)
    y_hw = y[0] + y[2]                                          # (B, L, D)
    y_wh = (y[1] + y[3]).reshape(B, W, H, D).transpose(0, 2, 1, 3).reshape(B, L, D)
    y_sum = (y_hw + y_wh).reshape(M, D)

    # fused LayerNorm + SiLU(z) gate + out_proj (no bias); dropout=0 -> identity
    out = ln_gate_proj(y_sum, z, p["ln_gamma"], p["ln_beta"],
                       p["out_proj_w_t"].astype(bf), TM)
    return out.reshape(B, H, W, p["d_model"])


# ----------------------------- parameter init -------------------------------

def init_params(key, d_model, d_state=16, expand=2.0, dt_rank=None):
    d_inner = int(expand * d_model)
    if dt_rank is None:
        dt_rank = math.ceil(d_model / 16)
    K = 4
    c_out = dt_rank + 2 * d_state
    ks = jax.random.split(key, 8)

    dt_init_std = dt_rank ** (-0.5)
    dt_min, dt_max, dt_floor = 1e-3, 0.1, 1e-4
    dt = jnp.exp(jax.random.uniform(ks[4], (K, d_inner)) *
                 (math.log(dt_max) - math.log(dt_min)) + math.log(dt_min))
    dt = jnp.maximum(dt, dt_floor)
    inv_dt = dt + jnp.log(-jnp.expm1(-dt))

    return dict(
        d_model=d_model, d_inner=d_inner, d_state=d_state, dt_rank=dt_rank,
        in_proj_w_t=(jax.random.normal(ks[0], (d_model, 2 * d_inner))
                     * d_model ** -0.5).astype(jnp.float32),
        conv_w9=(jax.random.normal(ks[1], (9, d_inner)) * 0.2).astype(jnp.float32),
        conv_b=(jax.random.normal(ks[2], (d_inner,)) * 0.05).astype(jnp.float32),
        x_proj_weight=(jax.random.normal(ks[3], (K, c_out, d_inner))
                       * d_inner ** -0.5).astype(jnp.float32),
        dt_projs_weight=jax.random.uniform(
            ks[5], (K, d_inner, dt_rank),
            minval=-dt_init_std, maxval=dt_init_std).astype(jnp.float32),
        dt_projs_bias=inv_dt.astype(jnp.float32),
        A_logs=jnp.tile(jnp.log(jnp.arange(1, d_state + 1, dtype=jnp.float32)),
                        (K * d_inner, 1)),
        Ds=jnp.ones((K * d_inner,), jnp.float32),
        ln_gamma=jnp.ones((d_inner,), jnp.float32),
        ln_beta=jnp.zeros((d_inner,), jnp.float32),
        out_proj_w_t=(jax.random.normal(ks[6], (d_inner, d_model))
                      * d_inner ** -0.5).astype(jnp.float32),
    )


# ----------------------------------- main ------------------------------------

if __name__ == "__main__":
    key = jax.random.PRNGKey(0)
    kx, kp = jax.random.split(key)

    B, H, W, d_model = 2, 8, 8, 16        # d_inner=32, d_state=16, dt_rank=4, L=64
    x = jax.random.normal(kx, (B, H, W, d_model), dtype=jnp.float32)
    params = init_params(kp, d_model, d_state=16, expand=2.0, dt_rank=4)

    fwd = jax.jit(functools.partial(ss2d_forward, p=params))
    out = fwd(x)
    jax.block_until_ready(out)
    assert out.shape == (B, H, W, d_model) and out.dtype == jnp.float32
    print("KERNEL_OK")
</pallas_src>

<mosaic_0001>
module attributes {stable_mosaic.version = 11 : i64} {
  func.func @_dwconv_silu_kernel(%arg0: i32, %arg1: memref<1x10x10x32xf32, #tpu.memory_space<vmem>>, %arg2: memref<9x32xf32, #tpu.memory_space<vmem>>, %arg3: memref<1x32xf32, #tpu.memory_space<vmem>>, %arg4: memref<1x8x8x32xf32, #tpu.memory_space<vmem>>) attributes {dimension_semantics = [#tpu.dimension_semantics<parallel>], iteration_bounds = array<i64: 2>, scalar_prefetch = 0 : i64, scratch_operands = 0 : i64, tpu.core_type = #tpu.core_type<tc>, window_params = [{transform_indices = @transform_0, window_bounds = array<i64: 1, 10, 10, 32>}, {pipeline_mode = #tpu.pipeline_mode<synchronous>, transform_indices = @transform_1, window_bounds = array<i64: 9, 32>}, {pipeline_mode = #tpu.pipeline_mode<synchronous>, transform_indices = @transform_2, window_bounds = array<i64: 1, 32>}, {transform_indices = @transform_3, window_bounds = array<i64: 1, 8, 8, 32>}]} {
    %c0 = arith.constant 0 : index
    %c0_0 = arith.constant 0 : index
    %c0_1 = arith.constant 0 : index
    %c0_2 = arith.constant 0 : index
    %0 = vector.load %arg1[%c0, %c0_0, %c0_1, %c0_2] : memref<1x10x10x32xf32, #tpu.memory_space<vmem>>, vector<1x10x10x32xf32>
    %1 = vector.shape_cast %0 : vector<1x10x10x32xf32> to vector<10x10x32xf32>
    %cst = arith.constant 0.000000e+00 : f32
    %2 = vector.broadcast %cst : f32 to vector<8x8x32xf32>
    %3 = vector.extract_strided_slice %1 {offsets = [0, 0, 0], sizes = [8, 8, 32], strides = [1, 1, 1]} : vector<10x10x32xf32> to vector<8x8x32xf32>
    %c0_3 = arith.constant 0 : index
    %c0_4 = arith.constant 0 : index
    %4 = vector.load %arg2[%c0_3, %c0_4] : memref<9x32xf32, #tpu.memory_space<vmem>>, vector<1x32xf32>
    %5 = vector.shape_cast %4 : vector<1x32xf32> to vector<1x1x32xf32>
    %6 = vector.broadcast %5 : vector<1x1x32xf32> to vector<8x8x32xf32>
    %7 = arith.mulf %3, %6 : vector<8x8x32xf32>
    %8 = arith.addf %2, %7 : vector<8x8x32xf32>
    %9 = vector.extract_strided_slice %1 {offsets = [0, 1, 0], sizes = [8, 8, 32], strides = [1, 1, 1]} : vector<10x10x32xf32> to vector<8x8x32xf32>
    %c1 = arith.constant 1 : index
    %c0_5 = arith.constant 0 : index
    %10 = vector.load %arg2[%c1, %c0_5] : memref<9x32xf32, #tpu.memory_space<vmem>>, vector<1x32xf32>
    %11 = vector.shape_cast %10 : vector<1x32xf32> to vector<1x1x32xf32>
    %12 = vector.broadcast %11 : vector<1x1x32xf32> to vector<8x8x32xf32>
    %13 = arith.mulf %9, %12 : vector<8x8x32xf32>
    %14 = arith.addf %8, %13 : vector<8x8x32xf32>
    %15 = vector.extract_strided_slice %1 {offsets = [0, 2, 0], sizes = [8, 8, 32], strides = [1, 1, 1]} : vector<10x10x32xf32> to vector<8x8x32xf32>
    %c2 = arith.constant 2 : index
    %c0_6 = arith.constant 0 : index
    %16 = vector.load %arg2[%c2, %c0_6] : memref<9x32xf32, #tpu.memory_space<vmem>>, vector<1x32xf32>
    %17 = vector.shape_cast %16 : vector<1x32xf32> to vector<1x1x32xf32>
    %18 = vector.broadcast %17 : vector<1x1x32xf32> to vector<8x8x32xf32>
    %19 = arith.mulf %15, %18 : vector<8x8x32xf32>
    %20 = arith.addf %14, %19 : vector<8x8x32xf32>
    %21 = vector.extract_strided_slice %1 {offsets = [1, 0, 0], sizes = [8, 8, 32], strides = [1, 1, 1]} : vector<10x10x32xf32> to vector<8x8x32xf32>
    %c3 = arith.constant 3 : index
    %c0_7 = arith.constant 0 : index
    %22 = vector.load %arg2[%c3, %c0_7] : memref<9x32xf32, #tpu.memory_space<vmem>>, vector<1x32xf32>
    %23 = vector.shape_cast %22 : vector<1x32xf32> to vector<1x1x32xf32>
    %24 = vector.broadcast %23 : vector<1x1x32xf32> to vector<8x8x32xf32>
    %25 = arith.mulf %21, %24 : vector<8x8x32xf32>
    %26 = arith.addf %20, %25 : vector<8x8x32xf32>
    %27 = vector.extract_strided_slice %1 {offsets = [1, 1, 0], sizes = [8, 8, 32], strides = [1, 1, 1]} : vector<10x10x32xf32> to vector<8x8x32xf32>
    %c4 = arith.constant 4 : index
    %c0_8 = arith.constant 0 : index
    %28 = vector.load %arg2[%c4, %c0_8] : memref<9x32xf32, #tpu.memory_space<vmem>>, vector<1x32xf32>
    %29 = vector.shape_cast %28 : vector<1x32xf32> to vector<1x1x32xf32>
    %30 = vector.broadcast %29 : vector<1x1x32xf32> to vector<8x8x32xf32>
    %31 = arith.mulf %27, %30 : vector<8x8x32xf32>
    %32 = arith.addf %26, %31 : vector<8x8x32xf32>
    %33 = vector.extract_strided_slice %1 {offsets = [1, 2, 0], sizes = [8, 8, 32], strides = [1, 1, 1]} : vector<10x10x32xf32> to vector<8x8x32xf32>
    %c5 = arith.constant 5 : index
    %c0_9 = arith.constant 0 : index
    %34 = vector.load %arg2[%c5, %c0_9] : memref<9x32xf32, #tpu.memory_space<vmem>>, vector<1x32xf32>
    %35 = vector.shape_cast %34 : vector<1x32xf32> to vector<1x1x32xf32>
    %36 = vector.broadcast %35 : vector<1x1x32xf32> to vector<8x8x32xf32>
    %37 = arith.mulf %33, %36 : vector<8x8x32xf32>
    %38 = arith.addf %32, %37 : vector<8x8x32xf32>
    %39 = vector.extract_strided_slice %1 {offsets = [2, 0, 0], sizes = [8, 8, 32], strides = [1, 1, 1]} : vector<10x10x32xf32> to vector<8x8x32xf32>
    %c6 = arith.constant 6 : index
    %c0_10 = arith.constant 0 : index
    %40 = vector.load %arg2[%c6, %c0_10] : memref<9x32xf32, #tpu.memory_space<vmem>>, vector<1x32xf32>
    %41 = vector.shape_cast %40 : vector<1x32xf32> to vector<1x1x32xf32>
    %42 = vector.broadcast %41 : vector<1x1x32xf32> to vector<8x8x32xf32>
    %43 = arith.mulf %39, %42 : vector<8x8x32xf32>
    %44 = arith.addf %38, %43 : vector<8x8x32xf32>
    %45 = vector.extract_strided_slice %1 {offsets = [2, 1, 0], sizes = [8, 8, 32], strides = [1, 1, 1]} : vector<10x10x32xf32> to vector<8x8x32xf32>
    %c7 = arith.constant 7 : index
    %c0_11 = arith.constant 0 : index
    %46 = vector.load %arg2[%c7, %c0_11] : memref<9x32xf32, #tpu.memory_space<vmem>>, vector<1x32xf32>
    %47 = vector.shape_cast %46 : vector<1x32xf32> to vector<1x1x32xf32>
    %48 = vector.broadcast %47 : vector<1x1x32xf32> to vector<8x8x32xf32>
    %49 = arith.mulf %45, %48 : vector<8x8x32xf32>
    %50 = arith.addf %44, %49 : vector<8x8x32xf32>
    %51 = vector.extract_strided_slice %1 {offsets = [2, 2, 0], sizes = [8, 8, 32], strides = [1, 1, 1]} : vector<10x10x32xf32> to vector<8x8x32xf32>
    %c8 = arith.constant 8 : index
    %c0_12 = arith.constant 0 : index
    %52 = vector.load %arg2[%c8, %c0_12] : memref<9x32xf32, #tpu.memory_space<vmem>>, vector<1x32xf32>
    %53 = vector.shape_cast %52 : vector<1x32xf32> to vector<1x1x32xf32>
    %54 = vector.broadcast %53 : vector<1x1x32xf32> to vector<8x8x32xf32>
    %55 = arith.mulf %51, %54 : vector<8x8x32xf32>
    %56 = arith.addf %50, %55 : vector<8x8x32xf32>
    %c0_13 = arith.constant 0 : index
    %c0_14 = arith.constant 0 : index
    %57 = vector.load %arg3[%c0_13, %c0_14] : memref<1x32xf32, #tpu.memory_space<vmem>>, vector<1x32xf32>
    %58 = vector.shape_cast %57 : vector<1x32xf32> to vector<1x1x32xf32>
    %59 = vector.broadcast %58 : vector<1x1x32xf32> to vector<8x8x32xf32>
    %60 = arith.addf %56, %59 : vector<8x8x32xf32>
    %61 = arith.negf %60 : vector<8x8x32xf32>
    %62 = math.exp %61 : vector<8x8x32xf32>
    %cst_15 = arith.constant 1.000000e+00 : f32
    %63 = vector.broadcast %cst_15 : f32 to vector<8x8x32xf32>
    %64 = arith.addf %63, %62 : vector<8x8x32xf32>
    %65 = arith.divf %63, %64 : vector<8x8x32xf32>
    %66 = arith.mulf %60, %65 : vector<8x8x32xf32>
    %c0_16 = arith.constant 0 : index
    %c0_17 = arith.constant 0 : index
    %c0_18 = arith.constant 0 : index
    %c0_19 = arith.constant 0 : index
    %67 = vector.load %arg4[%c0_16, %c0_17, %c0_18, %c0_19] : memref<1x8x8x32xf32, #tpu.memory_space<vmem>>, vector<1x8x8x32xf32>
    %68 = vector.shape_cast %67 : vector<1x8x8x32xf32> to vector<8x8x32xf32>
    %69 = vector.shape_cast %66 : vector<8x8x32xf32> to vector<1x8x8x32xf32>
    tpu.vector_store %arg4[%c0_16, %c0_17, %c0_18, %c0_19], %69 {strides = array<i32>} : memref<1x8x8x32xf32, #tpu.memory_space<vmem>>, vector<1x8x8x32xf32>,
    return
  }
  func.func @transform_0(%arg0: i32) -> (i32, i32, i32, i32) {
    %c0_i32 = arith.constant 0 : i32
    %c0_i32_0 = arith.constant 0 : i32
    %c0_i32_1 = arith.constant 0 : i32
    %c0_i32_2 = arith.constant 0 : i32
    return %arg0, %c0_i32, %c0_i32_0, %c0_i32_1 : i32, i32, i32, i32
  }
  func.func @transform_1(%arg0: i32) -> (i32, i32) {
    %c0_i32 = arith.constant 0 : i32
    %c0_i32_0 = arith.constant 0 : i32
    %c0_i32_1 = arith.constant 0 : i32
    return %c0_i32, %c0_i32_0 : i32, i32
  }
  func.func @transform_2(%arg0: i32) -> (i32, i32) {
    %c0_i32 = arith.constant 0 : i32
    %c0_i32_0 = arith.constant 0 : i32
    %c0_i32_1 = arith.constant 0 : i32
    return %c0_i32, %c0_i32_0 : i32, i32
  }
  func.func @transform_3(%arg0: i32) -> (i32, i32, i32, i32) {
    %c0_i32 = arith.constant 0 : i32
    %c0_i32_0 = arith.constant 0 : i32
    %c0_i32_1 = arith.constant 0 : i32
    %c0_i32_2 = arith.constant 0 : i32
    return %arg0, %c0_i32, %c0_i32_0, %c0_i32_1 : i32, i32, i32, i32
  }
}

module attributes {stable_mosaic.version = 11 : i64} {
  func.func @_in_proj_kernel(%arg0: i32, %arg1: memref<64x16xf32, #tpu.memory_space<vmem>>, %arg2: memref<16x64xbf16, #tpu.memory_space<vmem>>, %arg3: memref<64x32xf32, #tpu.memory_space<vmem>>, %arg4: memref<64x32xf32, #tpu.memory_space<vmem>>) attributes {dimension_semantics = [#tpu.dimension_semantics<parallel>], iteration_bounds = array<i64: 2>, scalar_prefetch = 0 : i64, scratch_operands = 0 : i64, tpu.core_type = #tpu.core_type<tc>, window_params = [{transform_indices = @transform_0, window_bounds = array<i64: 64, 16>}, {pipeline_mode = #tpu.pipeline_mode<synchronous>, transform_indices = @transform_1, window_bounds = array<i64: 16, 64>}, {transform_indices = @transform_2, window_bounds = array<i64: 64, 32>}, {transform_indices = @transform_3, window_bounds = array<i64: 64, 32>}]} {
    %c0 = arith.constant 0 : index
    %c0_0 = arith.constant 0 : index
    %0 = vector.load %arg1[%c0, %c0_0] : memref<64x16xf32, #tpu.memory_space<vmem>>, vector<64x16xf32>
    %1 = arith.truncf %0 : vector<64x16xf32> to vector<64x16xbf16>
    %c0_1 = arith.constant 0 : index
    %c0_2 = arith.constant 0 : index
    %2 = vector.load %arg2[%c0_1, %c0_2] : memref<16x64xbf16, #tpu.memory_space<vmem>>, vector<16x64xbf16>
    %cst = arith.constant dense<0.000000e+00> : vector<64x64xf32>
    %3 = tpu.matmul %1, %2, %cst {dimension_numbers = #tpu.dot_dimension_numbers<[1], [0], [0], [1], [0, 0, 1, 1], [], []>} : vector<64x16xbf16>, vector<16x64xbf16>, vector<64x64xf32> -> vector<64x64xf32>
    %4 = vector.extract_strided_slice %3 {offsets = [0, 0], sizes = [64, 32], strides = [1, 1]} : vector<64x64xf32> to vector<64x32xf32>
    %c0_3 = arith.constant 0 : index
    %c0_4 = arith.constant 0 : index
    %5 = vector.load %arg3[%c0_3, %c0_4] : memref<64x32xf32, #tpu.memory_space<vmem>>, vector<64x32xf32>
    tpu.vector_store %arg3[%c0_3, %c0_4], %4 {strides = array<i32>} : memref<64x32xf32, #tpu.memory_space<vmem>>, vector<64x32xf32>,
    %6 = vector.extract_strided_slice %3 {offsets = [0, 32], sizes = [64, 32], strides = [1, 1]} : vector<64x64xf32> to vector<64x32xf32>
    %c0_5 = arith.constant 0 : index
    %c0_6 = arith.constant 0 : index
    %7 = vector.load %arg4[%c0_5, %c0_6] : memref<64x32xf32, #tpu.memory_space<vmem>>, vector<64x32xf32>
    tpu.vector_store %arg4[%c0_5, %c0_6], %6 {strides = array<i32>} : memref<64x32xf32, #tpu.memory_space<vmem>>, vector<64x32xf32>,
    return
  }
  func.func @transform_0(%arg0: i32) -> (i32, i32) {
    %c0_i32 = arith.constant 0 : i32
    %c0_i32_0 = arith.constant 0 : i32
    return %arg0, %c0_i32 : i32, i32
  }
  func.func @transform_1(%arg0: i32) -> (i32, i32) {
    %c0_i32 = arith.constant 0 : i32
    %c0_i32_0 = arith.constant 0 : i32
    %c0_i32_1 = arith.constant 0 : i32
    return %c0_i32, %c0_i32_0 : i32, i32
  }
  func.func @transform_2(%arg0: i32) -> (i32, i32) {
    %c0_i32 = arith.constant 0 : i32
    %c0_i32_0 = arith.constant 0 : i32
    return %arg0, %c0_i32 : i32, i32
  }
  func.func @transform_3(%arg0: i32) -> (i32, i32) {
    %c0_i32 = arith.constant 0 : i32
    %c0_i32_0 = arith.constant 0 : i32
    return %arg0, %c0_i32 : i32, i32
  }
}

module attributes {stable_mosaic.version = 11 : i64} {
  func.func @_xproj_kernel(%arg0: i32, %arg1: i32, %arg2: i32, %arg3: memref<1x1x32x32xbf16, #tpu.memory_space<vmem>>, %arg4: memref<2x1x32x64xbf16, #tpu.memory_space<vmem>>, %arg5: memref<2x1x1x32x64xbf16, #tpu.memory_space<vmem>>) attributes {dimension_semantics = [#tpu.dimension_semantics<parallel>, #tpu.dimension_semantics<parallel>, #tpu.dimension_semantics<parallel>], iteration_bounds = array<i64: 2, 2, 2>, scalar_prefetch = 0 : i64, scratch_operands = 0 : i64, tpu.core_type = #tpu.core_type<tc>, window_params = [{transform_indices = @transform_0, window_bounds = array<i64: 1, 1, 32, 32>}, {transform_indices = @transform_1, window_bounds = array<i64: 2, 1, 32, 64>}, {transform_indices = @transform_2, window_bounds = array<i64: 2, 1, 1, 32, 64>}]} {
    %c0 = arith.constant 0 : index
    %c0_0 = arith.constant 0 : index
    %c0_1 = arith.constant 0 : index
    %c0_2 = arith.constant 0 : index
    %0 = vector.load %arg3[%c0, %c0_0, %c0_1, %c0_2] : memref<1x1x32x32xbf16, #tpu.memory_space<vmem>>, vector<1x1x32x32xbf16>
    %1 = vector.shape_cast %0 : vector<1x1x32x32xbf16> to vector<32x32xbf16>
    %c0_3 = arith.constant 0 : index
    %c0_4 = arith.constant 0 : index
    %c0_5 = arith.constant 0 : index
    %c0_6 = arith.constant 0 : index
    %2 = vector.load %arg4[%c0_3, %c0_4, %c0_5, %c0_6] : memref<2x1x32x64xbf16, #tpu.memory_space<vmem>>, vector<1x1x32x64xbf16>
    %3 = vector.shape_cast %2 : vector<1x1x32x64xbf16> to vector<32x64xbf16>
    %cst = arith.constant dense<0.000000e+00> : vector<32x64xf32>
    %4 = tpu.matmul %1, %3, %cst {dimension_numbers = #tpu.dot_dimension_numbers<[1], [0], [0], [1], [0, 0, 1, 1], [], []>} : vector<32x32xbf16>, vector<32x64xbf16>, vector<32x64xf32> -> vector<32x64xf32>
    %5 = arith.truncf %4 : vector<32x64xf32> to vector<32x64xbf16>
    %c0_7 = arith.constant 0 : index
    %c0_8 = arith.constant 0 : index
    %c0_9 = arith.constant 0 : index
    %c0_10 = arith.constant 0 : index
    %c0_11 = arith.constant 0 : index
    %6 = vector.load %arg5[%c0_7, %c0_8, %c0_9, %c0_10, %c0_11] : memref<2x1x1x32x64xbf16, #tpu.memory_space<vmem>>, vector<1x1x1x32x64xbf16>
    %7 = vector.shape_cast %6 : vector<1x1x1x32x64xbf16> to vector<32x64xbf16>
    %8 = vector.shape_cast %5 : vector<32x64xbf16> to vector<1x1x1x32x64xbf16>
    tpu.vector_store %arg5[%c0_7, %c0_8, %c0_9, %c0_10, %c0_11], %8 {strides = array<i32>} : memref<2x1x1x32x64xbf16, #tpu.memory_space<vmem>>, vector<1x1x1x32x64xbf16>,
    %c1 = arith.constant 1 : index
    %c0_12 = arith.constant 0 : index
    %c0_13 = arith.constant 0 : index
    %c0_14 = arith.constant 0 : index
    %9 = vector.load %arg4[%c1, %c0_12, %c0_13, %c0_14] : memref<2x1x32x64xbf16, #tpu.memory_space<vmem>>, vector<1x1x32x64xbf16>
    %10 = vector.shape_cast %9 : vector<1x1x32x64xbf16> to vector<32x64xbf16>
    %cst_15 = arith.constant dense<0.000000e+00> : vector<32x64xf32>
    %11 = tpu.matmul %1, %10, %cst_15 {dimension_numbers = #tpu.dot_dimension_numbers<[1], [0], [0], [1], [0, 0, 1, 1], [], []>} : vector<32x32xbf16>, vector<32x64xbf16>, vector<32x64xf32> -> vector<32x64xf32>
    %12 = arith.truncf %11 : vector<32x64xf32> to vector<32x64xbf16>
    %c1_16 = arith.constant 1 : index
    %c0_17 = arith.constant 0 : index
    %c0_18 = arith.constant 0 : index
    %c0_19 = arith.constant 0 : index
    %c0_20 = arith.constant 0 : index
    %13 = vector.load %arg5[%c1_16, %c0_17, %c0_18, %c0_19, %c0_20] : memref<2x1x1x32x64xbf16, #tpu.memory_space<vmem>>, vector<1x1x1x32x64xbf16>
    %14 = vector.shape_cast %13 : vector<1x1x1x32x64xbf16> to vector<32x64xbf16>
    %15 = vector.shape_cast %12 : vector<32x64xbf16> to vector<1x1x1x32x64xbf16>
    tpu.vector_store %arg5[%c1_16, %c0_17, %c0_18, %c0_19, %c0_20], %15 {strides = array<i32>} : memref<2x1x1x32x64xbf16, #tpu.memory_space<vmem>>, vector<1x1x1x32x64xbf16>,
    return
  }
  func.func @transform_0(%arg0: i32, %arg1: i32, %arg2: i32) -> (i32, i32, i32, i32) {
    %c0_i32 = arith.constant 0 : i32
    %c0_i32_0 = arith.constant 0 : i32
    return %arg0, %arg1, %arg2, %c0_i32 : i32, i32, i32, i32
  }
  func.func @transform_1(%arg0: i32, %arg1: i32, %arg2: i32) -> (i32, i32, i32, i32) {
    %c0_i32 = arith.constant 0 : i32
    %c0_i32_0 = arith.constant 0 : i32
    %c0_i32_1 = arith.constant 0 : i32
    %c0_i32_2 = arith.constant 0 : i32
    return %c0_i32, %arg0, %c0_i32_0, %c0_i32_1 : i32, i32, i32, i32
  }
  func.func @transform_2(%arg0: i32, %arg1: i32, %arg2: i32) -> (i32, i32, i32, i32, i32) {
    %c0_i32 = arith.constant 0 : i32
    %c0_i32_0 = arith.constant 0 : i32
    %c0_i32_1 = arith.constant 0 : i32
    return %c0_i32, %arg0, %arg1, %arg2, %c0_i32_0 : i32, i32, i32, i32, i32
  }
}

module attributes {stable_mosaic.version = 11 : i64} {
  func.func @_scan_kernel(%arg0: i32, %arg1: i32, %arg2: memref<1x2x32x32xbf16, #tpu.memory_space<vmem>>, %arg3: memref<1x2x32x64xbf16, #tpu.memory_space<vmem>>, %arg4: memref<1x16x32xf32, #tpu.memory_space<vmem>>, %arg5: memref<1x1x32xf32, #tpu.memory_space<vmem>>, %arg6: memref<1x1x32xf32, #tpu.memory_space<vmem>>, %arg7: memref<1x2x32x32xf32, #tpu.memory_space<vmem>>, %arg8: memref<32x32xf32, #tpu.memory_space<vmem>>, %arg9: memref<32x32x32xf32, #tpu.memory_space<vmem>>, %arg10: memref<32x32x32xf32, #tpu.memory_space<vmem>>) attributes {dimension_semantics = [#tpu.dimension_semantics<parallel>, #tpu.dimension_semantics<arbitrary>], iteration_bounds = array<i64: 4, 2>, scalar_prefetch = 0 : i64, scratch_operands = 3 : i64, tpu.core_type = #tpu.core_type<tc>, window_params = [{transform_indices = @transform_0, window_bounds = array<i64: 1, 2, 32, 32>}, {transform_indices = @transform_1, window_bounds = array<i64: 1, 2, 32, 64>}, {transform_indices = @transform_2, window_bounds = array<i64: 1, 16, 32>}, {transform_indices = @transform_3, window_bounds = array<i64: 1, 1, 32>}, {transform_indices = @transform_4, window_bounds = array<i64: 1, 1, 32>}, {transform_indices = @transform_5, window_bounds = array<i64: 1, 2, 32, 32>}]} {
    %c0_i32 = arith.constant 0 : i32
    %0 = arith.cmpi eq, %arg1, %c0_i32 : i32
    %1 = arith.extui %0 : i1 to i32
    %c0_i32_0 = arith.constant 0 : i32
    %2 = arith.cmpi ne, %1, %c0_i32_0 : i32
    scf.if %2 {
      %cst_47 = arith.constant 0.000000e+00 : f32
      %112 = vector.broadcast %cst_47 : f32 to vector<32x32xf32>
      %c0_48 = arith.constant 0 : index
      %c0_49 = arith.constant 0 : index
      %113 = vector.load %arg8[%c0_48, %c0_49] : memref<32x32xf32, #tpu.memory_space<vmem>>, vector<32x32xf32>
      tpu.vector_store %arg8[%c0_48, %c0_49], %112 {strides = array<i32>} : memref<32x32xf32, #tpu.memory_space<vmem>>, vector<32x32xf32>,
    } else {
    }
    %c0 = arith.constant 0 : index
    %c0_1 = arith.constant 0 : index
    %c0_2 = arith.constant 0 : index
    %c0_3 = arith.constant 0 : index
    %3 = vector.load %arg2[%c0, %c0_1, %c0_2, %c0_3] : memref<1x2x32x32xbf16, #tpu.memory_space<vmem>>, vector<1x2x32x32xbf16>
    %4 = vector.shape_cast %3 : vector<1x2x32x32xbf16> to vector<2x32x32xbf16>
    %5 = arith.extf %4 : vector<2x32x32xbf16> to vector<2x32x32xf32>
    %c0_4 = arith.constant 0 : index
    %c0_5 = arith.constant 0 : index
    %c0_6 = arith.constant 0 : index
    %c0_7 = arith.constant 0 : index
    %6 = vector.load %arg3[%c0_4, %c0_5, %c0_6, %c0_7] : memref<1x2x32x64xbf16, #tpu.memory_space<vmem>>, vector<1x2x32x64xbf16>
    %7 = vector.shape_cast %6 : vector<1x2x32x64xbf16> to vector<2x32x64xbf16>
    %8 = arith.extf %7 : vector<2x32x64xbf16> to vector<2x32x64xf32>
    %9 = vector.extract_strided_slice %8 {offsets = [0, 0, 0], sizes = [2, 32, 32], strides = [1, 1, 1]} : vector<2x32x64xf32> to vector<2x32x32xf32>
    %10 = vector.extract_strided_slice %8 {offsets = [0, 0, 32], sizes = [2, 32, 16], strides = [1, 1, 1]} : vector<2x32x64xf32> to vector<2x32x16xf32>
    %11 = vector.extract_strided_slice %8 {offsets = [0, 0, 48], sizes = [2, 32, 16], strides = [1, 1, 1]} : vector<2x32x64xf32> to vector<2x32x16xf32>
    %c0_8 = arith.constant 0 : index
    %c0_9 = arith.constant 0 : index
    %c0_10 = arith.constant 0 : index
    %12 = vector.load %arg6[%c0_8, %c0_9, %c0_10] : memref<1x1x32xf32, #tpu.memory_space<vmem>>, vector<1x1x32xf32>
    %13 = vector.shape_cast %12 : vector<1x1x32xf32> to vector<1x32xf32>
    %14 = vector.shape_cast %13 : vector<1x32xf32> to vector<1x1x32xf32>
    %15 = vector.broadcast %14 : vector<1x1x32xf32> to vector<2x32x32xf32>
    %16 = arith.addf %9, %15 : vector<2x32x32xf32>
    %cst = arith.constant 0.000000e+00 : f32
    %17 = vector.broadcast %cst : f32 to vector<2x32x32xf32>
    %18 = arith.maximumf %16, %17 : vector<2x32x32xf32>
    %19 = vector.broadcast %cst : f32 to vector<2x32x32xf32>
    %20 = arith.subf %16, %19 : vector<2x32x32xf32>
    %21 = arith.cmpf one, %20, %20 : vector<2x32x32xf32>
    %22 = vector.broadcast %cst : f32 to vector<2x32x32xf32>
    %23 = arith.addf %16, %22 : vector<2x32x32xf32>
    %24 = math.absf %20 : vector<2x32x32xf32>
    %cst_11 = arith.constant 0.000000e+00 : f32
    %25 = vector.broadcast %cst_11 : f32 to vector<2x32x32xf32>
    %26 = arith.subf %25, %24 : vector<2x32x32xf32>
    %27 = math.exp %26 : vector<2x32x32xf32>
    %28 = math.log1p %27 : vector<2x32x32xf32>
    %29 = arith.addf %18, %28 : vector<2x32x32xf32>
    %30 = arith.select %21, %23, %29 : vector<2x32x32xi1>, vector<2x32x32xf32>
    %31 = arith.mulf %30, %5 : vector<2x32x32xf32>
    %c0_12 = arith.constant 0 : index
    %c0_13 = arith.constant 0 : index
    %c0_14 = arith.constant 0 : index
    %32 = vector.load %arg4[%c0_12, %c0_13, %c0_14] : memref<1x16x32xf32, #tpu.memory_space<vmem>>, vector<1x16x32xf32>
    %33 = vector.shape_cast %32 : vector<1x16x32xf32> to vector<16x32xf32>
    %c0_15 = arith.constant 0 : index
    %c0_16 = arith.constant 0 : index
    %c0_17 = arith.constant 0 : index
    %34 = vector.load %arg5[%c0_15, %c0_16, %c0_17] : memref<1x1x32xf32, #tpu.memory_space<vmem>>, vector<1x1x32xf32>
    %35 = vector.shape_cast %34 : vector<1x1x32xf32> to vector<1x32xf32>
    %36 = vector.extract_strided_slice %30 {offsets = [0, 0, 0], sizes = [1, 32, 32], strides = [1, 1, 1]} : vector<2x32x32xf32> to vector<1x32x32xf32>
    %37 = vector.shape_cast %36 : vector<1x32x32xf32> to vector<32x32xf32>
    %38 = vector.shape_cast %37 : vector<32x32xf32> to vector<32x1x32xf32>
    %39 = vector.shape_cast %33 : vector<16x32xf32> to vector<1x16x32xf32>
    %40 = vector.broadcast %38 : vector<32x1x32xf32> to vector<32x16x32xf32>
    %41 = vector.broadcast %39 : vector<1x16x32xf32> to vector<32x16x32xf32>
    %42 = arith.mulf %40, %41 : vector<32x16x32xf32>
    %43 = math.exp %42 : vector<32x16x32xf32>
    %c0_18 = arith.constant 0 : index
    %c0_19 = arith.constant 0 : index
    %c0_20 = arith.constant 0 : index
    %44 = vector.load %arg9[%c0_18, %c0_19, %c0_20] : memref<32x32x32xf32, #tpu.memory_space<vmem>>, vector<32x16x32xf32>
    tpu.vector_store %arg9[%c0_18, %c0_19, %c0_20], %43 {strides = array<i32>} : memref<32x32x32xf32, #tpu.memory_space<vmem>>, vector<32x16x32xf32>,
    %45 = vector.extract_strided_slice %10 {offsets = [0, 0, 0], sizes = [1, 32, 16], strides = [1, 1, 1]} : vector<2x32x16xf32> to vector<1x32x16xf32>
    %46 = vector.shape_cast %45 : vector<1x32x16xf32> to vector<32x16xf32>
    %47 = vector.shape_cast %46 : vector<32x16xf32> to vector<32x16x1xf32>
    %48 = vector.extract_strided_slice %31 {offsets = [0, 0, 0], sizes = [1, 32, 32], strides = [1, 1, 1]} : vector<2x32x32xf32> to vector<1x32x32xf32>
    %49 = vector.shape_cast %48 : vector<1x32x32xf32> to vector<32x32xf32>
    %50 = vector.shape_cast %49 : vector<32x32xf32> to vector<32x1x32xf32>
    %51 = vector.broadcast %47 : vector<32x16x1xf32> to vector<32x16x32xf32>
    %52 = vector.broadcast %50 : vector<32x1x32xf32> to vector<32x16x32xf32>
    %53 = arith.mulf %51, %52 : vector<32x16x32xf32>
    %c0_21 = arith.constant 0 : index
    %c0_22 = arith.constant 0 : index
    %c0_23 = arith.constant 0 : index
    %54 = vector.load %arg10[%c0_21, %c0_22, %c0_23] : memref<32x32x32xf32, #tpu.memory_space<vmem>>, vector<32x16x32xf32>
    tpu.vector_store %arg10[%c0_21, %c0_22, %c0_23], %53 {strides = array<i32>} : memref<32x32x32xf32, #tpu.memory_space<vmem>>, vector<32x16x32xf32>,
    %55 = vector.extract_strided_slice %30 {offsets = [1, 0, 0], sizes = [1, 32, 32], strides = [1, 1, 1]} : vector<2x32x32xf32> to vector<1x32x32xf32>
    %56 = vector.shape_cast %55 : vector<1x32x32xf32> to vector<32x32xf32>
    %57 = vector.shape_cast %56 : vector<32x32xf32> to vector<32x1x32xf32>
    %58 = vector.shape_cast %33 : vector<16x32xf32> to vector<1x16x32xf32>
    %59 = vector.broadcast %57 : vector<32x1x32xf32> to vector<32x16x32xf32>
    %60 = vector.broadcast %58 : vector<1x16x32xf32> to vector<32x16x32xf32>
    %61 = arith.mulf %59, %60 : vector<32x16x32xf32>
    %62 = math.exp %61 : vector<32x16x32xf32>
    %c0_24 = arith.constant 0 : index
    %c16 = arith.constant 16 : index
    %c0_25 = arith.constant 0 : index
    %63 = vector.load %arg9[%c0_24, %c16, %c0_25] : memref<32x32x32xf32, #tpu.memory_space<vmem>>, vector<32x16x32xf32>
    tpu.vector_store %arg9[%c0_24, %c16, %c0_25], %62 {strides = array<i32>} : memref<32x32x32xf32, #tpu.memory_space<vmem>>, vector<32x16x32xf32>,
    %64 = vector.extract_strided_slice %10 {offsets = [1, 0, 0], sizes = [1, 32, 16], strides = [1, 1, 1]} : vector<2x32x16xf32> to vector<1x32x16xf32>
    %65 = vector.shape_cast %64 : vector<1x32x16xf32> to vector<32x16xf32>
    %66 = vector.shape_cast %65 : vector<32x16xf32> to vector<32x16x1xf32>
    %67 = vector.extract_strided_slice %31 {offsets = [1, 0, 0], sizes = [1, 32, 32], strides = [1, 1, 1]} : vector<2x32x32xf32> to vector<1x32x32xf32>
    %68 = vector.shape_cast %67 : vector<1x32x32xf32> to vector<32x32xf32>
    %69 = vector.shape_cast %68 : vector<32x32xf32> to vector<32x1x32xf32>
    %70 = vector.broadcast %66 : vector<32x16x1xf32> to vector<32x16x32xf32>
    %71 = vector.broadcast %69 : vector<32x1x32xf32> to vector<32x16x32xf32>
    %72 = arith.mulf %70, %71 : vector<32x16x32xf32>
    %c0_26 = arith.constant 0 : index
    %c16_27 = arith.constant 16 : index
    %c0_28 = arith.constant 0 : index
    %73 = vector.load %arg10[%c0_26, %c16_27, %c0_28] : memref<32x32x32xf32, #tpu.memory_space<vmem>>, vector<32x16x32xf32>
    tpu.vector_store %arg10[%c0_26, %c16_27, %c0_28], %72 {strides = array<i32>} : memref<32x32x32xf32, #tpu.memory_space<vmem>>, vector<32x16x32xf32>,
    %c2_i32 = arith.constant 2 : i32
    %74 = arith.cmpi slt, %arg0, %c2_i32 : i32
    %75 = arith.extui %74 : i1 to i32
    %c0_i32_29 = arith.constant 0 : i32
    %76 = arith.cmpi ne, %75, %c0_i32_29 : i32
    scf.if %76 {
      %c0_47 = arith.constant 0 : index
      %c0_48 = arith.constant 0 : index
      %112 = vector.load %arg8[%c0_47, %c0_48] : memref<32x32xf32, #tpu.memory_space<vmem>>, vector<32x32xf32>
      %c0_i32_49 = arith.constant 0 : i32
      %c4_i32 = arith.constant 4 : i32
      %113 = arith.addi %c0_i32_49, %c4_i32 : i32
      %c1_i32 = arith.constant 1 : i32
      %114 = scf.for %arg11 = %c0_i32_49 to %113 step %c1_i32 iter_args(%arg12 = %112) -> (vector<32x32xf32>)  : i32 {
        %c8_i32 = arith.constant 8 : i32
        %116 = arith.muli %arg11, %c8_i32 : i32
        %117 = tpu.assume_multiple %116, 8 : i32
        %c0_i32_53 = arith.constant 0 : i32
        %118 = arith.addi %117, %c0_i32_53 : i32
        %119 = arith.index_cast %118 : i32 to index
        %c0_54 = arith.constant 0 : index
        %c0_55 = arith.constant 0 : index
        %120 = vector.load %arg9[%119, %c0_54, %c0_55] : memref<32x32x32xf32, #tpu.memory_space<vmem>>, vector<1x32x32xf32>
        %121 = vector.shape_cast %120 : vector<1x32x32xf32> to vector<32x32xf32>
        %122 = arith.mulf %121, %arg12 : vector<32x32xf32>
        %123 = arith.index_cast %118 : i32 to index
        %c0_56 = arith.constant 0 : index
        %c0_57 = arith.constant 0 : index
        %124 = vector.load %arg10[%123, %c0_56, %c0_57] : memref<32x32x32xf32, #tpu.memory_space<vmem>>, vector<1x32x32xf32>
        %125 = vector.shape_cast %124 : vector<1x32x32xf32> to vector<32x32xf32>
        %126 = arith.addf %122, %125 : vector<32x32xf32>
        %127 = arith.index_cast %118 : i32 to index
        %c0_58 = arith.constant 0 : index
        %c0_59 = arith.constant 0 : index
        %128 = vector.load %arg10[%127, %c0_58, %c0_59] : memref<32x32x32xf32, #tpu.memory_space<vmem>>, vector<1x32x32xf32>
        %129 = vector.shape_cast %128 : vector<1x32x32xf32> to vector<32x32xf32>
        %130 = vector.shape_cast %126 : vector<32x32xf32> to vector<1x32x32xf32>
        tpu.vector_store %arg10[%127, %c0_58, %c0_59], %130 {strides = array<i32>} : memref<32x32x32xf32, #tpu.memory_space<vmem>>, vector<1x32x32xf32>,
        %c1_i32_60 = arith.constant 1 : i32
        %131 = arith.addi %117, %c1_i32_60 : i32
        %132 = arith.index_cast %131 : i32 to index
        %c0_61 = arith.constant 0 : index
        %c0_62 = arith.constant 0 : index
        %133 = vector.load %arg9[%132, %c0_61, %c0_62] : memref<32x32x32xf32, #tpu.memory_space<vmem>>, vector<1x32x32xf32>
        %134 = vector.shape_cast %133 : vector<1x32x32xf32> to vector<32x32xf32>
        %135 = arith.mulf %134, %126 : vector<32x32xf32>
        %136 = arith.index_cast %131 : i32 to index
        %c0_63 = arith.constant 0 : index
        %c0_64 = arith.constant 0 : index
        %137 = vector.load %arg10[%136, %c0_63, %c0_64] : memref<32x32x32xf32, #tpu.memory_space<vmem>>, vector<1x32x32xf32>
        %138 = vector.shape_cast %137 : vector<1x32x32xf32> to vector<32x32xf32>
        %139 = arith.addf %135, %138 : vector<32x32xf32>
        %140 = arith.index_cast %131 : i32 to index
        %c0_65 = arith.constant 0 : index
        %c0_66 = arith.constant 0 : index
        %141 = vector.load %arg10[%140, %c0_65, %c0_66] : memref<32x32x32xf32, #tpu.memory_space<vmem>>, vector<1x32x32xf32>
        %142 = vector.shape_cast %141 : vector<1x32x32xf32> to vector<32x32xf32>
        %143 = vector.shape_cast %139 : vector<32x32xf32> to vector<1x32x32xf32>
        tpu.vector_store %arg10[%140, %c0_65, %c0_66], %143 {strides = array<i32>} : memref<32x32x32xf32, #tpu.memory_space<vmem>>, vector<1x32x32xf32>,
        %c2_i32_67 = arith.constant 2 : i32
        %144 = arith.addi %117, %c2_i32_67 : i32
        %145 = arith.index_cast %144 : i32 to index
        %c0_68 = arith.constant 0 : index
        %c0_69 = arith.constant 0 : index
        %146 = vector.load %arg9[%145, %c0_68, %c0_69] : memref<32x32x32xf32, #tpu.memory_space<vmem>>, vector<1x32x32xf32>
        %147 = vector.shape_cast %146 : vector<1x32x32xf32> to vector<32x32xf32>
        %148 = arith.mulf %147, %139 : vector<32x32xf32>
        %149 = arith.index_cast %144 : i32 to index
        %c0_70 = arith.constant 0 : index
        %c0_71 = arith.constant 0 : index
        %150 = vector.load %arg10[%149, %c0_70, %c0_71] : memref<32x32x32xf32, #tpu.memory_space<vmem>>, vector<1x32x32xf32>
        %151 = vector.shape_cast %150 : vector<1x32x32xf32> to vector<32x32xf32>
        %152 = arith.addf %148, %151 : vector<32x32xf32>
        %153 = arith.index_cast %144 : i32 to index
        %c0_72 = arith.constant 0 : index
        %c0_73 = arith.constant 0 : index
        %154 = vector.load %arg10[%153, %c0_72, %c0_73] : memref<32x32x32xf32, #tpu.memory_space<vmem>>, vector<1x32x32xf32>
        %155 = vector.shape_cast %154 : vector<1x32x32xf32> to vector<32x32xf32>
        %156 = vector.shape_cast %152 : vector<32x32xf32> to vector<1x32x32xf32>
        tpu.vector_store %arg10[%153, %c0_72, %c0_73], %156 {strides = array<i32>} : memref<32x32x32xf32, #tpu.memory_space<vmem>>, vector<1x32x32xf32>,
        %c3_i32 = arith.constant 3 : i32
        %157 = arith.addi %117, %c3_i32 : i32
        %158 = arith.index_cast %157 : i32 to index
        %c0_74 = arith.constant 0 : index
        %c0_75 = arith.constant 0 : index
        %159 = vector.load %arg9[%158, %c0_74, %c0_75] : memref<32x32x32xf32, #tpu.memory_space<vmem>>, vector<1x32x32xf32>
        %160 = vector.shape_cast %159 : vector<1x32x32xf32> to vector<32x32xf32>
        %161 = arith.mulf %160, %152 : vector<32x32xf32>
        %162 = arith.index_cast %157 : i32 to index
        %c0_76 = arith.constant 0 : index
        %c0_77 = arith.constant 0 : index
        %163 = vector.load %arg10[%162, %c0_76, %c0_77] : memref<32x32x32xf32, #tpu.memory_space<vmem>>, vector<1x32x32xf32>
        %164 = vector.shape_cast %163 : vector<1x32x32xf32> to vector<32x32xf32>
        %165 = arith.addf %161, %164 : vector<32x32xf32>
        %166 = arith.index_cast %157 : i32 to index
        %c0_78 = arith.constant 0 : index
        %c0_79 = arith.constant 0 : index
        %167 = vector.load %arg10[%166, %c0_78, %c0_79] : memref<32x32x32xf32, #tpu.memory_space<vmem>>, vector<1x32x32xf32>
        %168 = vector.shape_cast %167 : vector<1x32x32xf32> to vector<32x32xf32>
        %169 = vector.shape_cast %165 : vector<32x32xf32> to vector<1x32x32xf32>
        tpu.vector_store %arg10[%166, %c0_78, %c0_79], %169 {strides = array<i32>} : memref<32x32x32xf32, #tpu.memory_space<vmem>>, vector<1x32x32xf32>,
        %c4_i32_80 = arith.constant 4 : i32
        %170 = arith.addi %117, %c4_i32_80 : i32
        %171 = arith.index_cast %170 : i32 to index
        %c0_81 = arith.constant 0 : index
        %c0_82 = arith.constant 0 : index
        %172 = vector.load %arg9[%171, %c0_81, %c0_82] : memref<32x32x32xf32, #tpu.memory_space<vmem>>, vector<1x32x32xf32>
        %173 = vector.shape_cast %172 : vector<1x32x32xf32> to vector<32x32xf32>
        %174 = arith.mulf %173, %165 : vector<32x32xf32>
        %175 = arith.index_cast %170 : i32 to index
        %c0_83 = arith.constant 0 : index
        %c0_84 = arith.constant 0 : index
        %176 = vector.load %arg10[%175, %c0_83, %c0_84] : memref<32x32x32xf32, #tpu.memory_space<vmem>>, vector<1x32x32xf32>
        %177 = vector.shape_cast %176 : vector<1x32x32xf32> to vector<32x32xf32>
        %178 = arith.addf %174, %177 : vector<32x32xf32>
        %179 = arith.index_cast %170 : i32 to index
        %c0_85 = arith.constant 0 : index
        %c0_86 = arith.constant 0 : index
        %180 = vector.load %arg10[%179, %c0_85, %c0_86] : memref<32x32x32xf32, #tpu.memory_space<vmem>>, vector<1x32x32xf32>
        %181 = vector.shape_cast %180 : vector<1x32x32xf32> to vector<32x32xf32>
        %182 = vector.shape_cast %178 : vector<32x32xf32> to vector<1x32x32xf32>
        tpu.vector_store %arg10[%179, %c0_85, %c0_86], %182 {strides = array<i32>} : memref<32x32x32xf32, #tpu.memory_space<vmem>>, vector<1x32x32xf32>,
        %c5_i32 = arith.constant 5 : i32
        %183 = arith.addi %117, %c5_i32 : i32
        %184 = arith.index_cast %183 : i32 to index
        %c0_87 = arith.constant 0 : index
        %c0_88 = arith.constant 0 : index
        %185 = vector.load %arg9[%184, %c0_87, %c0_88] : memref<32x32x32xf32, #tpu.memory_space<vmem>>, vector<1x32x32xf32>
        %186 = vector.shape_cast %185 : vector<1x32x32xf32> to vector<32x32xf32>
        %187 = arith.mulf %186, %178 : vector<32x32xf32>
        %188 = arith.index_cast %183 : i32 to index
        %c0_89 = arith.constant 0 : index
        %c0_90 = arith.constant 0 : index
        %189 = vector.load %arg10[%188, %c0_89, %c0_90] : memref<32x32x32xf32, #tpu.memory_space<vmem>>, vector<1x32x32xf32>
        %190 = vector.shape_cast %189 : vector<1x32x32xf32> to vector<32x32xf32>
        %191 = arith.addf %187, %190 : vector<32x32xf32>
        %192 = arith.index_cast %183 : i32 to index
        %c0_91 = arith.constant 0 : index
        %c0_92 = arith.constant 0 : index
        %193 = vector.load %arg10[%192, %c0_91, %c0_92] : memref<32x32x32xf32, #tpu.memory_space<vmem>>, vector<1x32x32xf32>
        %194 = vector.shape_cast %193 : vector<1x32x32xf32> to vector<32x32xf32>
        %195 = vector.shape_cast %191 : vector<32x32xf32> to vector<1x32x32xf32>
        tpu.vector_store %arg10[%192, %c0_91, %c0_92], %195 {strides = array<i32>} : memref<32x32x32xf32, #tpu.memory_space<vmem>>, vector<1x32x32xf32>,
        %c6_i32 = arith.constant 6 : i32
        %196 = arith.addi %117, %c6_i32 : i32
        %197 = arith.index_cast %196 : i32 to index
        %c0_93 = arith.constant 0 : index
        %c0_94 = arith.constant 0 : index
        %198 = vector.load %arg9[%197, %c0_93, %c0_94] : memref<32x32x32xf32, #tpu.memory_space<vmem>>, vector<1x32x32xf32>
        %199 = vector.shape_cast %198 : vector<1x32x32xf32> to vector<32x32xf32>
        %200 = arith.mulf %199, %191 : vector<32x32xf32>
        %201 = arith.index_cast %196 : i32 to index
        %c0_95 = arith.constant 0 : index
        %c0_96 = arith.constant 0 : index
        %202 = vector.load %arg10[%201, %c0_95, %c0_96] : memref<32x32x32xf32, #tpu.memory_space<vmem>>, vector<1x32x32xf32>
        %203 = vector.shape_cast %202 : vector<1x32x32xf32> to vector<32x32xf32>
        %204 = arith.addf %200, %203 : vector<32x32xf32>
        %205 = arith.index_cast %196 : i32 to index
        %c0_97 = arith.constant 0 : index
        %c0_98 = arith.constant 0 : index
        %206 = vector.load %arg10[%205, %c0_97, %c0_98] : memref<32x32x32xf32, #tpu.memory_space<vmem>>, vector<1x32x32xf32>
        %207 = vector.shape_cast %206 : vector<1x32x32xf32> to vector<32x32xf32>
        %208 = vector.shape_cast %204 : vector<32x32xf32> to vector<1x32x32xf32>
        tpu.vector_store %arg10[%205, %c0_97, %c0_98], %208 {strides = array<i32>} : memref<32x32x32xf32, #tpu.memory_space<vmem>>, vector<1x32x32xf32>,
        %c7_i32 = arith.constant 7 : i32
        %209 = arith.addi %117, %c7_i32 : i32
        %210 = arith.index_cast %209 : i32 to index
        %c0_99 = arith.constant 0 : index
        %c0_100 = arith.constant 0 : index
        %211 = vector.load %arg9[%210, %c0_99, %c0_100] : memref<32x32x32xf32, #tpu.memory_space<vmem>>, vector<1x32x32xf32>
        %212 = vector.shape_cast %211 : vector<1x32x32xf32> to vector<32x32xf32>
        %213 = arith.mulf %212, %204 : vector<32x32xf32>
        %214 = arith.index_cast %209 : i32 to index
        %c0_101 = arith.constant 0 : index
        %c0_102 = arith.constant 0 : index
        %215 = vector.load %arg10[%214, %c0_101, %c0_102] : memref<32x32x32xf32, #tpu.memory_space<vmem>>, vector<1x32x32xf32>
        %216 = vector.shape_cast %215 : vector<1x32x32xf32> to vector<32x32xf32>
        %217 = arith.addf %213, %216 : vector<32x32xf32>
        %218 = arith.index_cast %209 : i32 to index
        %c0_103 = arith.constant 0 : index
        %c0_104 = arith.constant 0 : index
        %219 = vector.load %arg10[%218, %c0_103, %c0_104] : memref<32x32x32xf32, #tpu.memory_space<vmem>>, vector<1x32x32xf32>
        %220 = vector.shape_cast %219 : vector<1x32x32xf32> to vector<32x32xf32>
        %221 = vector.shape_cast %217 : vector<32x32xf32> to vector<1x32x32xf32>
        tpu.vector_store %arg10[%218, %c0_103, %c0_104], %221 {strides = array<i32>} : memref<32x32x32xf32, #tpu.memory_space<vmem>>, vector<1x32x32xf32>,
        scf.yield %217 : vector<32x32xf32>
      }
      %c4_i32_50 = arith.constant 4 : i32
      %c0_51 = arith.constant 0 : index
      %c0_52 = arith.constant 0 : index
      %115 = vector.load %arg8[%c0_51, %c0_52] : memref<32x32xf32, #tpu.memory_space<vmem>>, vector<32x32xf32>
      tpu.vector_store %arg8[%c0_51, %c0_52], %114 {strides = array<i32>} : memref<32x32xf32, #tpu.memory_space<vmem>>, vector<32x32xf32>,
    } else {
    }
    %c2_i32_30 = arith.constant 2 : i32
    %77 = arith.cmpi sge, %arg0, %c2_i32_30 : i32
    %78 = arith.extui %77 : i1 to i32
    %c0_i32_31 = arith.constant 0 : i32
    %79 = arith.cmpi ne, %78, %c0_i32_31 : i32
    scf.if %79 {
      %c0_47 = arith.constant 0 : index
      %c0_48 = arith.constant 0 : index
      %112 = vector.load %arg8[%c0_47, %c0_48] : memref<32x32xf32, #tpu.memory_space<vmem>>, vector<32x32xf32>
      %c0_i32_49 = arith.constant 0 : i32
      %c4_i32 = arith.constant 4 : i32
      %113 = arith.addi %c0_i32_49, %c4_i32 : i32
      %c1_i32 = arith.constant 1 : i32
      %114 = scf.for %arg11 = %c0_i32_49 to %113 step %c1_i32 iter_args(%arg12 = %112) -> (vector<32x32xf32>)  : i32 {
        %c1_i32_53 = arith.constant 1 : i32
        %116 = arith.addi %arg11, %c1_i32_53 : i32
        %c8_i32 = arith.constant 8 : i32
        %117 = arith.muli %116, %c8_i32 : i32
        %c32_i32 = arith.constant 32 : i32
        %118 = arith.subi %c32_i32, %117 : i32
        %119 = tpu.assume_multiple %118, 8 : i32
        %c7_i32 = arith.constant 7 : i32
        %120 = arith.addi %119, %c7_i32 : i32
        %121 = arith.index_cast %120 : i32 to index
        %c0_54 = arith.constant 0 : index
        %c0_55 = arith.constant 0 : index
        %122 = vector.load %arg9[%121, %c0_54, %c0_55] : memref<32x32x32xf32, #tpu.memory_space<vmem>>, vector<1x32x32xf32>
        %123 = vector.shape_cast %122 : vector<1x32x32xf32> to vector<32x32xf32>
        %124 = arith.mulf %123, %arg12 : vector<32x32xf32>
        %125 = arith.index_cast %120 : i32 to index
        %c0_56 = arith.constant 0 : index
        %c0_57 = arith.constant 0 : index
        %126 = vector.load %arg10[%125, %c0_56, %c0_57] : memref<32x32x32xf32, #tpu.memory_space<vmem>>, vector<1x32x32xf32>
        %127 = vector.shape_cast %126 : vector<1x32x32xf32> to vector<32x32xf32>
        %128 = arith.addf %124, %127 : vector<32x32xf32>
        %129 = arith.index_cast %120 : i32 to index
        %c0_58 = arith.constant 0 : index
        %c0_59 = arith.constant 0 : index
        %130 = vector.load %arg10[%129, %c0_58, %c0_59] : memref<32x32x32xf32, #tpu.memory_space<vmem>>, vector<1x32x32xf32>
        %131 = vector.shape_cast %130 : vector<1x32x32xf32> to vector<32x32xf32>
        %132 = vector.shape_cast %128 : vector<32x32xf32> to vector<1x32x32xf32>
        tpu.vector_store %arg10[%129, %c0_58, %c0_59], %132 {strides = array<i32>} : memref<32x32x32xf32, #tpu.memory_space<vmem>>, vector<1x32x32xf32>,
        %c6_i32 = arith.constant 6 : i32
        %133 = arith.addi %119, %c6_i32 : i32
        %134 = arith.index_cast %133 : i32 to index
        %c0_60 = arith.constant 0 : index
        %c0_61 = arith.constant 0 : index
        %135 = vector.load %arg9[%134, %c0_60, %c0_61] : memref<32x32x32xf32, #tpu.memory_space<vmem>>, vector<1x32x32xf32>
        %136 = vector.shape_cast %135 : vector<1x32x32xf32> to vector<32x32xf32>
        %137 = arith.mulf %136, %128 : vector<32x32xf32>
        %138 = arith.index_cast %133 : i32 to index
        %c0_62 = arith.constant 0 : index
        %c0_63 = arith.constant 0 : index
        %139 = vector.load %arg10[%138, %c0_62, %c0_63] : memref<32x32x32xf32, #tpu.memory_space<vmem>>, vector<1x32x32xf32>
        %140 = vector.shape_cast %139 : vector<1x32x32xf32> to vector<32x32xf32>
        %141 = arith.addf %137, %140 : vector<32x32xf32>
        %142 = arith.index_cast %133 : i32 to index
        %c0_64 = arith.constant 0 : index
        %c0_65 = arith.constant 0 : index
        %143 = vector.load %arg10[%142, %c0_64, %c0_65] : memref<32x32x32xf32, #tpu.memory_space<vmem>>, vector<1x32x32xf32>
        %144 = vector.shape_cast %143 : vector<1x32x32xf32> to vector<32x32xf32>
        %145 = vector.shape_cast %141 : vector<32x32xf32> to vector<1x32x32xf32>
        tpu.vector_store %arg10[%142, %c0_64, %c0_65], %145 {strides = array<i32>} : memref<32x32x32xf32, #tpu.memory_space<vmem>>, vector<1x32x32xf32>,
        %c5_i32 = arith.constant 5 : i32
        %146 = arith.addi %119, %c5_i32 : i32
        %147 = arith.index_cast %146 : i32 to index
        %c0_66 = arith.constant 0 : index
        %c0_67 = arith.constant 0 : index
        %148 = vector.load %arg9[%147, %c0_66, %c0_67] : memref<32x32x32xf32, #tpu.memory_space<vmem>>, vector<1x32x32xf32>
        %149 = vector.shape_cast %148 : vector<1x32x32xf32> to vector<32x32xf32>
        %150 = arith.mulf %149, %141 : vector<32x32xf32>
        %151 = arith.index_cast %146 : i32 to index
        %c0_68 = arith.constant 0 : index
        %c0_69 = arith.constant 0 : index
        %152 = vector.load %arg10[%151, %c0_68, %c0_69] : memref<32x32x32xf32, #tpu.memory_space<vmem>>, vector<1x32x32xf32>
        %153 = vector.shape_cast %152 : vector<1x32x32xf32> to vector<32x32xf32>
        %154 = arith.addf %150, %153 : vector<32x32xf32>
        %155 = arith.index_cast %146 : i32 to index
        %c0_70 = arith.constant 0 : index
        %c0_71 = arith.constant 0 : index
        %156 = vector.load %arg10[%155, %c0_70, %c0_71] : memref<32x32x32xf32, #tpu.memory_space<vmem>>, vector<1x32x32xf32>
        %157 = vector.shape_cast %156 : vector<1x32x32xf32> to vector<32x32xf32>
        %158 = vector.shape_cast %154 : vector<32x32xf32> to vector<1x32x32xf32>
        tpu.vector_store %arg10[%155, %c0_70, %c0_71], %158 {strides = array<i32>} : memref<32x32x32xf32, #tpu.memory_space<vmem>>, vector<1x32x32xf32>,
        %c4_i32_72 = arith.constant 4 : i32
        %159 = arith.addi %119, %c4_i32_72 : i32
        %160 = arith.index_cast %159 : i32 to index
        %c0_73 = arith.constant 0 : index
        %c0_74 = arith.constant 0 : index
        %161 = vector.load %arg9[%160, %c0_73, %c0_74] : memref<32x32x32xf32, #tpu.memory_space<vmem>>, vector<1x32x32xf32>
        %162 = vector.shape_cast %161 : vector<1x32x32xf32> to vector<32x32xf32>
        %163 = arith.mulf %162, %154 : vector<32x32xf32>
        %164 = arith.index_cast %159 : i32 to index
        %c0_75 = arith.constant 0 : index
        %c0_76 = arith.constant 0 : index
        %165 = vector.load %arg10[%164, %c0_75, %c0_76] : memref<32x32x32xf32, #tpu.memory_space<vmem>>, vector<1x32x32xf32>
        %166 = vector.shape_cast %165 : vector<1x32x32xf32> to vector<32x32xf32>
        %167 = arith.addf %163, %166 : vector<32x32xf32>
        %168 = arith.index_cast %159 : i32 to index
        %c0_77 = arith.constant 0 : index
        %c0_78 = arith.constant 0 : index
        %169 = vector.load %arg10[%168, %c0_77, %c0_78] : memref<32x32x32xf32, #tpu.memory_space<vmem>>, vector<1x32x32xf32>
        %170 = vector.shape_cast %169 : vector<1x32x32xf32> to vector<32x32xf32>
        %171 = vector.shape_cast %167 : vector<32x32xf32> to vector<1x32x32xf32>
        tpu.vector_store %arg10[%168, %c0_77, %c0_78], %171 {strides = array<i32>} : memref<32x32x32xf32, #tpu.memory_space<vmem>>, vector<1x32x32xf32>,
        %c3_i32 = arith.constant 3 : i32
        %172 = arith.addi %119, %c3_i32 : i32
        %173 = arith.index_cast %172 : i32 to index
        %c0_79 = arith.constant 0 : index
        %c0_80 = arith.constant 0 : index
        %174 = vector.load %arg9[%173, %c0_79, %c0_80] : memref<32x32x32xf32, #tpu.memory_space<vmem>>, vector<1x32x32xf32>
        %175 = vector.shape_cast %174 : vector<1x32x32xf32> to vector<32x32xf32>
        %176 = arith.mulf %175, %167 : vector<32x32xf32>
        %177 = arith.index_cast %172 : i32 to index
        %c0_81 = arith.constant 0 : index
        %c0_82 = arith.constant 0 : index
        %178 = vector.load %arg10[%177, %c0_81, %c0_82] : memref<32x32x32xf32, #tpu.memory_space<vmem>>, vector<1x32x32xf32>
        %179 = vector.shape_cast %178 : vector<1x32x32xf32> to vector<32x32xf32>
        %180 = arith.addf %176, %179 : vector<32x32xf32>
        %181 = arith.index_cast %172 : i32 to index
        %c0_83 = arith.constant 0 : index
        %c0_84 = arith.constant 0 : index
        %182 = vector.load %arg10[%181, %c0_83, %c0_84] : memref<32x32x32xf32, #tpu.memory_space<vmem>>, vector<1x32x32xf32>
        %183 = vector.shape_cast %182 : vector<1x32x32xf32> to vector<32x32xf32>
        %184 = vector.shape_cast %180 : vector<32x32xf32> to vector<1x32x32xf32>
        tpu.vector_store %arg10[%181, %c0_83, %c0_84], %184 {strides = array<i32>} : memref<32x32x32xf32, #tpu.memory_space<vmem>>, vector<1x32x32xf32>,
        %c2_i32_85 = arith.constant 2 : i32
        %185 = arith.addi %119, %c2_i32_85 : i32
        %186 = arith.index_cast %185 : i32 to index
        %c0_86 = arith.constant 0 : index
        %c0_87 = arith.constant 0 : index
        %187 = vector.load %arg9[%186, %c0_86, %c0_87] : memref<32x32x32xf32, #tpu.memory_space<vmem>>, vector<1x32x32xf32>
        %188 = vector.shape_cast %187 : vector<1x32x32xf32> to vector<32x32xf32>
        %189 = arith.mulf %188, %180 : vector<32x32xf32>
        %190 = arith.index_cast %185 : i32 to index
        %c0_88 = arith.constant 0 : index
        %c0_89 = arith.constant 0 : index
        %191 = vector.load %arg10[%190, %c0_88, %c0_89] : memref<32x32x32xf32, #tpu.memory_space<vmem>>, vector<1x32x32xf32>
        %192 = vector.shape_cast %191 : vector<1x32x32xf32> to vector<32x32xf32>
        %193 = arith.addf %189, %192 : vector<32x32xf32>
        %194 = arith.index_cast %185 : i32 to index
        %c0_90 = arith.constant 0 : index
        %c0_91 = arith.constant 0 : index
        %195 = vector.load %arg10[%194, %c0_90, %c0_91] : memref<32x32x32xf32, #tpu.memory_space<vmem>>, vector<1x32x32xf32>
        %196 = vector.shape_cast %195 : vector<1x32x32xf32> to vector<32x32xf32>
        %197 = vector.shape_cast %193 : vector<32x32xf32> to vector<1x32x32xf32>
        tpu.vector_store %arg10[%194, %c0_90, %c0_91], %197 {strides = array<i32>} : memref<32x32x32xf32, #tpu.memory_space<vmem>>, vector<1x32x32xf32>,
        %c1_i32_92 = arith.constant 1 : i32
        %198 = arith.addi %119, %c1_i32_92 : i32
        %199 = arith.index_cast %198 : i32 to index
        %c0_93 = arith.constant 0 : index
        %c0_94 = arith.constant 0 : index
        %200 = vector.load %arg9[%199, %c0_93, %c0_94] : memref<32x32x32xf32, #tpu.memory_space<vmem>>, vector<1x32x32xf32>
        %201 = vector.shape_cast %200 : vector<1x32x32xf32> to vector<32x32xf32>
        %202 = arith.mulf %201, %193 : vector<32x32xf32>
        %203 = arith.index_cast %198 : i32 to index
        %c0_95 = arith.constant 0 : index
        %c0_96 = arith.constant 0 : index
        %204 = vector.load %arg10[%203, %c0_95, %c0_96] : memref<32x32x32xf32, #tpu.memory_space<vmem>>, vector<1x32x32xf32>
        %205 = vector.shape_cast %204 : vector<1x32x32xf32> to vector<32x32xf32>
        %206 = arith.addf %202, %205 : vector<32x32xf32>
        %207 = arith.index_cast %198 : i32 to index
        %c0_97 = arith.constant 0 : index
        %c0_98 = arith.constant 0 : index
        %208 = vector.load %arg10[%207, %c0_97, %c0_98] : memref<32x32x32xf32, #tpu.memory_space<vmem>>, vector<1x32x32xf32>
        %209 = vector.shape_cast %208 : vector<1x32x32xf32> to vector<32x32xf32>
        %210 = vector.shape_cast %206 : vector<32x32xf32> to vector<1x32x32xf32>
        tpu.vector_store %arg10[%207, %c0_97, %c0_98], %210 {strides = array<i32>} : memref<32x32x32xf32, #tpu.memory_space<vmem>>, vector<1x32x32xf32>,
        %c0_i32_99 = arith.constant 0 : i32
        %211 = arith.addi %119, %c0_i32_99 : i32
        %212 = arith.index_cast %211 : i32 to index
        %c0_100 = arith.constant 0 : index
        %c0_101 = arith.constant 0 : index
        %213 = vector.load %arg9[%212, %c0_100, %c0_101] : memref<32x32x32xf32, #tpu.memory_space<vmem>>, vector<1x32x32xf32>
        %214 = vector.shape_cast %213 : vector<1x32x32xf32> to vector<32x32xf32>
        %215 = arith.mulf %214, %206 : vector<32x32xf32>
        %216 = arith.index_cast %211 : i32 to index
        %c0_102 = arith.constant 0 : index
        %c0_103 = arith.constant 0 : index
        %217 = vector.load %arg10[%216, %c0_102, %c0_103] : memref<32x32x32xf32, #tpu.memory_space<vmem>>, vector<1x32x32xf32>
        %218 = vector.shape_cast %217 : vector<1x32x32xf32> to vector<32x32xf32>
        %219 = arith.addf %215, %218 : vector<32x32xf32>
        %220 = arith.index_cast %211 : i32 to index
        %c0_104 = arith.constant 0 : index
        %c0_105 = arith.constant 0 : index
        %221 = vector.load %arg10[%220, %c0_104, %c0_105] : memref<32x32x32xf32, #tpu.memory_space<vmem>>, vector<1x32x32xf32>
        %222 = vector.shape_cast %221 : vector<1x32x32xf32> to vector<32x32xf32>
        %223 = vector.shape_cast %219 : vector<32x32xf32> to vector<1x32x32xf32>
        tpu.vector_store %arg10[%220, %c0_104, %c0_105], %223 {strides = array<i32>} : memref<32x32x32xf32, #tpu.memory_space<vmem>>, vector<1x32x32xf32>,
        scf.yield %219 : vector<32x32xf32>
      }
      %c4_i32_50 = arith.constant 4 : i32
      %c0_51 = arith.constant 0 : index
      %c0_52 = arith.constant 0 : index
      %115 = vector.load %arg8[%c0_51, %c0_52] : memref<32x32xf32, #tpu.memory_space<vmem>>, vector<32x32xf32>
      tpu.vector_store %arg8[%c0_51, %c0_52], %114 {strides = array<i32>} : memref<32x32xf32, #tpu.memory_space<vmem>>, vector<32x32xf32>,
    } else {
    }
    %c0_32 = arith.constant 0 : index
    %c0_33 = arith.constant 0 : index
    %c0_34 = arith.constant 0 : index
    %80 = vector.load %arg10[%c0_32, %c0_33, %c0_34] : memref<32x32x32xf32, #tpu.memory_space<vmem>>, vector<32x16x32xf32>
    %81 = vector.extract_strided_slice %11 {offsets = [0, 0, 0], sizes = [1, 32, 16], strides = [1, 1, 1]} : vector<2x32x16xf32> to vector<1x32x16xf32>
    %82 = vector.shape_cast %81 : vector<1x32x16xf32> to vector<32x16xf32>
    %83 = vector.shape_cast %82 : vector<32x16xf32> to vector<32x16x1xf32>
    %84 = vector.broadcast %83 : vector<32x16x1xf32> to vector<32x16x32xf32>
    %85 = arith.mulf %84, %80 : vector<32x16x32xf32>
    %cst_35 = arith.constant dense<0.000000e+00> : vector<32x32xf32>
    %86 = vector.multi_reduction <add>, %85, %cst_35 [1] : vector<32x16x32xf32> to vector<32x32xf32>
    %87 = vector.extract_strided_slice %5 {offsets = [0, 0, 0], sizes = [1, 32, 32], strides = [1, 1, 1]} : vector<2x32x32xf32> to vector<1x32x32xf32>
    %88 = vector.shape_cast %87 : vector<1x32x32xf32> to vector<32x32xf32>
    %89 = vector.broadcast %35 : vector<1x32xf32> to vector<32x32xf32>
    %90 = arith.mulf %89, %88 : vector<32x32xf32>
    %91 = arith.addf %86, %90 : vector<32x32xf32>
    %92 = vector.shape_cast %91 : vector<32x32xf32> to vector<1x32x32xf32>
    %c0_36 = arith.constant 0 : index
    %c0_37 = arith.constant 0 : index
    %c0_38 = arith.constant 0 : index
    %c0_39 = arith.constant 0 : index
    %93 = vector.load %arg7[%c0_36, %c0_37, %c0_38, %c0_39] : memref<1x2x32x32xf32, #tpu.memory_space<vmem>>, vector<1x1x32x32xf32>
    %94 = vector.shape_cast %93 : vector<1x1x32x32xf32> to vector<1x32x32xf32>
    %95 = vector.shape_cast %92 : vector<1x32x32xf32> to vector<1x1x32x32xf32>
    tpu.vector_store %arg7[%c0_36, %c0_37, %c0_38, %c0_39], %95 {strides = array<i32>} : memref<1x2x32x32xf32, #tpu.memory_space<vmem>>, vector<1x1x32x32xf32>,
    %c0_40 = arith.constant 0 : index
    %c16_41 = arith.constant 16 : index
    %c0_42 = arith.constant 0 : index
    %96 = vector.load %arg10[%c0_40, %c16_41, %c0_42] : memref<32x32x32xf32, #tpu.memory_space<vmem>>, vector<32x16x32xf32>
    %97 = vector.extract_strided_slice %11 {offsets = [1, 0, 0], sizes = [1, 32, 16], strides = [1, 1, 1]} : vector<2x32x16xf32> to vector<1x32x16xf32>
    %98 = vector.shape_cast %97 : vector<1x32x16xf32> to vector<32x16xf32>
    %99 = vector.shape_cast %98 : vector<32x16xf32> to vector<32x16x1xf32>
    %100 = vector.broadcast %99 : vector<32x16x1xf32> to vector<32x16x32xf32>
    %101 = arith.mulf %100, %96 : vector<32x16x32xf32>
    %cst_43 = arith.constant dense<0.000000e+00> : vector<32x32xf32>
    %102 = vector.multi_reduction <add>, %101, %cst_43 [1] : vector<32x16x32xf32> to vector<32x32xf32>
    %103 = vector.extract_strided_slice %5 {offsets = [1, 0, 0], sizes = [1, 32, 32], strides = [1, 1, 1]} : vector<2x32x32xf32> to vector<1x32x32xf32>
    %104 = vector.shape_cast %103 : vector<1x32x32xf32> to vector<32x32xf32>
    %105 = vector.broadcast %35 : vector<1x32xf32> to vector<32x32xf32>
    %106 = arith.mulf %105, %104 : vector<32x32xf32>
    %107 = arith.addf %102, %106 : vector<32x32xf32>
    %108 = vector.shape_cast %107 : vector<32x32xf32> to vector<1x32x32xf32>
    %c0_44 = arith.constant 0 : index
    %c1 = arith.constant 1 : index
    %c0_45 = arith.constant 0 : index
    %c0_46 = arith.constant 0 : index
    %109 = vector.load %arg7[%c0_44, %c1, %c0_45, %c0_46] : memref<1x2x32x32xf32, #tpu.memory_space<vmem>>, vector<1x1x32x32xf32>
    %110 = vector.shape_cast %109 : vector<1x1x32x32xf32> to vector<1x32x32xf32>
    %111 = vector.shape_cast %108 : vector<1x32x32xf32> to vector<1x1x32x32xf32>
    tpu.vector_store %arg7[%c0_44, %c1, %c0_45, %c0_46], %111 {strides = array<i32>} : memref<1x2x32x32xf32, #tpu.memory_space<vmem>>, vector<1x1x32x32xf32>,
    return
  }
  func.func @transform_0(%arg0: i32, %arg1: i32) -> (i32, i32, i32, i32) {
    %c2_i32 = arith.constant 2 : i32
    %c0_i32 = arith.constant 0 : i32
    %0 = arith.cmpi eq, %c2_i32, %c0_i32 : i32
    %c1_i32 = arith.constant 1 : i32
    %1 = arith.select %0, %c1_i32, %c2_i32 : i32
    %2 = arith.remsi %arg0, %1 : i32
    %c0_i32_0 = arith.constant 0 : i32
    %3 = arith.cmpi ne, %2, %c0_i32_0 : i32
    %c0_i32_1 = arith.constant 0 : i32
    %4 = arith.cmpi slt, %2, %c0_i32_1 : i32
    %c0_i32_2 = arith.constant 0 : i32
    %5 = arith.cmpi slt, %1, %c0_i32_2 : i32
    %6 = arith.xori %4, %5 : i1
    %7 = arith.andi %6, %3 : i1
    %8 = arith.addi %2, %1 : i32
    %9 = arith.select %7, %8, %2 : i32
    %c2_i32_3 = arith.constant 2 : i32
    %10 = arith.cmpi slt, %arg0, %c2_i32_3 : i32
    %c1_i32_4 = arith.constant 1 : i32
    %11 = arith.subi %c1_i32_4, %arg1 : i32
    %12 = arith.select %10, %arg1, %11 : i32
    %c0_i32_5 = arith.constant 0 : i32
    %c0_i32_6 = arith.constant 0 : i32
    %c0_i32_7 = arith.constant 0 : i32
    return %9, %c0_i32_5, %12, %c0_i32_6 : i32, i32, i32, i32
  }
  func.func @transform_1(%arg0: i32, %arg1: i32) -> (i32, i32, i32, i32) {
    %c2_i32 = arith.constant 2 : i32
    %0 = arith.cmpi slt, %arg0, %c2_i32 : i32
    %c1_i32 = arith.constant 1 : i32
    %1 = arith.subi %c1_i32, %arg1 : i32
    %2 = arith.select %0, %arg1, %1 : i32
    %c0_i32 = arith.constant 0 : i32
    %c0_i32_0 = arith.constant 0 : i32
    %c0_i32_1 = arith.constant 0 : i32
    return %arg0, %c0_i32, %2, %c0_i32_0 : i32, i32, i32, i32
  }
  func.func @transform_2(%arg0: i32, %arg1: i32) -> (i32, i32, i32) {
    %c0_i32 = arith.constant 0 : i32
    %c0_i32_0 = arith.constant 0 : i32
    %c0_i32_1 = arith.constant 0 : i32
    return %arg0, %c0_i32, %c0_i32_0 : i32, i32, i32
  }
  func.func @transform_3(%arg0: i32, %arg1: i32) -> (i32, i32, i32) {
    %c0_i32 = arith.constant 0 : i32
    %c0_i32_0 = arith.constant 0 : i32
    %c0_i32_1 = arith.constant 0 : i32
    return %arg0, %c0_i32, %c0_i32_0 : i32, i32, i32
  }
  func.func @transform_4(%arg0: i32, %arg1: i32) -> (i32, i32, i32) {
    %c0_i32 = arith.constant 0 : i32
    %c0_i32_0 = arith.constant 0 : i32
    %c0_i32_1 = arith.constant 0 : i32
    return %arg0, %c0_i32, %c0_i32_0 : i32, i32, i32
  }
  func.func @transform_5(%arg0: i32, %arg1: i32) -> (i32, i32, i32, i32) {
    %c2_i32 = arith.constant 2 : i32
    %0 = arith.cmpi slt, %arg0, %c2_i32 : i32
    %c1_i32 = arith.constant 1 : i32
    %1 = arith.subi %c1_i32, %arg1 : i32
    %2 = arith.select %0, %arg1, %1 : i32
    %c0_i32 = arith.constant 0 : i32
    %c0_i32_0 = arith.constant 0 : i32
    %c0_i32_1 = arith.constant 0 : i32
    return %arg0, %c0_i32, %2, %c0_i32_0 : i32, i32, i32, i32
  }
}

module attributes {stable_mosaic.version = 11 : i64} {
  func.func @_ln_gate_proj_kernel(%arg0: i32, %arg1: memref<64x32xf32, #tpu.memory_space<vmem>>, %arg2: memref<64x32xf32, #tpu.memory_space<vmem>>, %arg3: memref<1x32xf32, #tpu.memory_space<vmem>>, %arg4: memref<1x32xf32, #tpu.memory_space<vmem>>, %arg5: memref<32x16xbf16, #tpu.memory_space<vmem>>, %arg6: memref<64x16xf32, #tpu.memory_space<vmem>>) attributes {dimension_semantics = [#tpu.dimension_semantics<parallel>], iteration_bounds = array<i64: 2>, scalar_prefetch = 0 : i64, scratch_operands = 0 : i64, tpu.core_type = #tpu.core_type<tc>, window_params = [{transform_indices = @transform_0, window_bounds = array<i64: 64, 32>}, {transform_indices = @transform_1, window_bounds = array<i64: 64, 32>}, {pipeline_mode = #tpu.pipeline_mode<synchronous>, transform_indices = @transform_2, window_bounds = array<i64: 1, 32>}, {pipeline_mode = #tpu.pipeline_mode<synchronous>, transform_indices = @transform_3, window_bounds = array<i64: 1, 32>}, {pipeline_mode = #tpu.pipeline_mode<synchronous>, transform_indices = @transform_4, window_bounds = array<i64: 32, 16>}, {transform_indices = @transform_5, window_bounds = array<i64: 64, 16>}]} {
    %c0 = arith.constant 0 : index
    %c0_0 = arith.constant 0 : index
    %0 = vector.load %arg1[%c0, %c0_0] : memref<64x32xf32, #tpu.memory_space<vmem>>, vector<64x32xf32>
    %cst = arith.constant dense<0.000000e+00> : vector<64xf32>
    %1 = vector.multi_reduction <add>, %0, %cst [1] : vector<64x32xf32> to vector<64xf32>
    %2 = vector.shape_cast %1 : vector<64xf32> to vector<64x1xf32>
    %cst_1 = arith.constant 3.200000e+01 : f32
    %3 = vector.broadcast %cst_1 : f32 to vector<64x1xf32>
    %4 = arith.divf %2, %3 : vector<64x1xf32>
    %5 = vector.broadcast %4 : vector<64x1xf32> to vector<64x32xf32>
    %6 = arith.subf %0, %5 : vector<64x32xf32>
    %7 = arith.mulf %6, %6 : vector<64x32xf32>
    %cst_2 = arith.constant dense<0.000000e+00> : vector<64xf32>
    %8 = vector.multi_reduction <add>, %7, %cst_2 [1] : vector<64x32xf32> to vector<64xf32>
    %9 = vector.shape_cast %8 : vector<64xf32> to vector<64x1xf32>
    %cst_3 = arith.constant 3.200000e+01 : f32
    %10 = vector.broadcast %cst_3 : f32 to vector<64x1xf32>
    %11 = arith.divf %9, %10 : vector<64x1xf32>
    %12 = vector.broadcast %4 : vector<64x1xf32> to vector<64x32xf32>
    %13 = arith.subf %0, %12 : vector<64x32xf32>
    %cst_4 = arith.constant 9.99999974E-6 : f32
    %14 = vector.broadcast %cst_4 : f32 to vector<64x1xf32>
    %15 = arith.addf %11, %14 : vector<64x1xf32>
    %16 = math.rsqrt %15 : vector<64x1xf32>
    %17 = vector.broadcast %16 : vector<64x1xf32> to vector<64x32xf32>
    %18 = arith.mulf %13, %17 : vector<64x32xf32>
    %c0_5 = arith.constant 0 : index
    %c0_6 = arith.constant 0 : index
    %19 = vector.load %arg3[%c0_5, %c0_6] : memref<1x32xf32, #tpu.memory_space<vmem>>, vector<1x32xf32>
    %20 = vector.broadcast %19 : vector<1x32xf32> to vector<64x32xf32>
    %21 = arith.mulf %18, %20 : vector<64x32xf32>
    %c0_7 = arith.constant 0 : index
    %c0_8 = arith.constant 0 : index
    %22 = vector.load %arg4[%c0_7, %c0_8] : memref<1x32xf32, #tpu.memory_space<vmem>>, vector<1x32xf32>
    %23 = vector.broadcast %22 : vector<1x32xf32> to vector<64x32xf32>
    %24 = arith.addf %21, %23 : vector<64x32xf32>
    %c0_9 = arith.constant 0 : index
    %c0_10 = arith.constant 0 : index
    %25 = vector.load %arg2[%c0_9, %c0_10] : memref<64x32xf32, #tpu.memory_space<vmem>>, vector<64x32xf32>
    %26 = arith.mulf %24, %25 : vector<64x32xf32>
    %27 = arith.negf %25 : vector<64x32xf32>
    %28 = math.exp %27 : vector<64x32xf32>
    %cst_11 = arith.constant 1.000000e+00 : f32
    %29 = vector.broadcast %cst_11 : f32 to vector<64x32xf32>
    %30 = arith.addf %29, %28 : vector<64x32xf32>
    %31 = arith.divf %29, %30 : vector<64x32xf32>
    %32 = arith.mulf %26, %31 : vector<64x32xf32>
    %33 = arith.truncf %32 : vector<64x32xf32> to vector<64x32xbf16>
    %c0_12 = arith.constant 0 : index
    %c0_13 = arith.constant 0 : index
    %34 = vector.load %arg5[%c0_12, %c0_13] : memref<32x16xbf16, #tpu.memory_space<vmem>>, vector<32x16xbf16>
    %cst_14 = arith.constant dense<0.000000e+00> : vector<64x16xf32>
    %35 = tpu.matmul %33, %34, %cst_14 {dimension_numbers = #tpu.dot_dimension_numbers<[1], [0], [0], [1], [0, 0, 1, 1], [], []>} : vector<64x32xbf16>, vector<32x16xbf16>, vector<64x16xf32> -> vector<64x16xf32>
    %c0_15 = arith.constant 0 : index
    %c0_16 = arith.constant 0 : index
    %36 = vector.load %arg6[%c0_15, %c0_16] : memref<64x16xf32, #tpu.memory_space<vmem>>, vector<64x16xf32>
    tpu.vector_store %arg6[%c0_15, %c0_16], %35 {strides = array<i32>} : memref<64x16xf32, #tpu.memory_space<vmem>>, vector<64x16xf32>,
    return
  }
  func.func @transform_0(%arg0: i32) -> (i32, i32) {
    %c0_i32 = arith.constant 0 : i32
    %c0_i32_0 = arith.constant 0 : i32
    return %arg0, %c0_i32 : i32, i32
  }
  func.func @transform_1(%arg0: i32) -> (i32, i32) {
    %c0_i32 = arith.constant 0 : i32
    %c0_i32_0 = arith.constant 0 : i32
    return %arg0, %c0_i32 : i32, i32
  }
  func.func @transform_2(%arg0: i32) -> (i32, i32) {
    %c0_i32 = arith.constant 0 : i32
    %c0_i32_0 = arith.constant 0 : i32
    %c0_i32_1 = arith.constant 0 : i32
    return %c0_i32, %c0_i32_0 : i32, i32
  }
  func.func @transform_3(%arg0: i32) -> (i32, i32) {
    %c0_i32 = arith.constant 0 : i32
    %c0_i32_0 = arith.constant 0 : i32
    %c0_i32_1 = arith.constant 0 : i32
    return %c0_i32, %c0_i32_0 : i32, i32
  }
  func.func @transform_4(%arg0: i32) -> (i32, i32) {
    %c0_i32 = arith.constant 0 : i32
    %c0_i32_0 = arith.constant 0 : i32
    %c0_i32_1 = arith.constant 0 : i32
    return %c0_i32, %c0_i32_0 : i32, i32
  }
  func.func @transform_5(%arg0: i32) -> (i32, i32) {
    %c0_i32 = arith.constant 0 : i32
    %c0_i32_0 = arith.constant 0 : i32
    return %arg0, %c0_i32 : i32, i32
  }
}

</mosaic_0001>

<bundles_post_ra>
// kernel: ss2d_forward.5
= control target key start
LH: loop header
LB: loop body
LE: loop exit
PB: predicated region body
PF: predicated region fallthrough
CT: control target
= control target key end

     0   :  { %9 = vsyncpa [#allocation3], 0  ;;  %s697_s0 = inlined_call_operand.hbm [shape: f32[128,16], index: 0, kind: input, shape index: {}]   ;;  %s698_s1 = inlined_call_operand.vmem [shape: bf16[16,64], index: 1, kind: input, shape index: {}]   ;;  %s699_s2 = inlined_call_operand.vmem [shape: f32[128,32], index: 2, kind: output, shape index: {0}]   ;;  %s700_s3 = inlined_call_operand.vmem [shape: f32[128,32], index: 3, kind: output, shape index: {1}]  }
   0x1   :  { %11 = vsyncpa [#allocation3 + $0x1], 0  ;;  %s581_s12 = smov 0   ;;  %s583_s13 = smov 0  }
   0x2   :  { %s585_s14 = smov 0   ;;  %s587_s15 = smov 0  }
   0x3 LB: > { %s422_s16 = sadd.s32 4294967295, %s556_s15   ;;  %s601_s17 = sadd.s32 1, %s556_s15   ;;  %s556_s15 = sphi %s587_s15, %s707_s15   ;;  %s552_s14 = sphi %s585_s14, %s706_s14   ;;  %s548_s13 = sphi %s583_s13, %s705_s13   ;;  %s544_s12 = sphi %s581_s12, %s704_s12  }
   0x4   : > { %s21_s18 = ssub.s32 %s556_s15, %s601_s17  ;;  %s24_s19 = sadd.s32 1, %s552_s14 }
   0x5   : > { %p22_p0 = scmp.eq.s32.totalorder %s21_s18, 0  ;;  %p31_p1 = scmp.ne.s32.totalorder %s552_s14, %s548_s13 }
   0x6   : > { %p32_p2 = scmp.eq.s32.totalorder %s556_s15, 0  ;;  %p37_p3 = scmp.ne.s32.totalorder %s548_s13, %s544_s12 }
   0x7   : > { %s611_s20 = scalar_select %p22_p0, %s552_s14, %s24_s19  }
   0x8   : > { %p613_p4 = por %p32_p2, %p31_p1  ;;  %p38_p5 = scmp.eq.s32.totalorder %s422_s16, 0 }
   0x9   : > { %p456_p6 = scmp.lt.s32.totalorder %s556_s15, 2  ;;  %s137_s23 = sand.u32 1, %s552_s14  }
   0xa   : > { %p620_p7 = por %p38_p5, %p37_p3  ;;  %s426_s24 = sshll.u32 %s137_s23, 6 }
   0xb   : > { %s445_s25 = sshll.u32 %s556_s15, 6  ;;  %s141_s29 = scalar_lea.vmem [#allocation2], %s426_s24 }
   0xc   : > { %s146_s28 = scalar_lea.hbm %s697_s0, %s445_s25  ;;  %s149_s30 = sshll.u32 %s141_s29, 4  ;;  %s150_s30 = int_to_ptr.vmem [resolvable:$true] %s149_s30 }
   0xd   : > { %s147_s4 = sshll.u32 %s146_s28, 4  ;;  %p631_p8 = pnand %p456_p6, %p613_p4  ;;  %s148_s4 = int_to_ptr.hbm [resolvable:$true] %s147_s4 }
   0xe   : > { %p429_p9 = scmp.ge.s32.totalorder %s556_s15, 1  ;;  %s138_s6 = scalar_lea.sflag [#allocation3], %s137_s23 }
   0xf   : > { %s492_s7 = sshra.s32 %s148_s4, 4  ;;  %p496_p11 = pneg %p631_p8  ;;  %s493_s7 = int_to_ptr.hbm [resolvable:$true] %s492_s7 }
  0x10   : > { %s494_s8 = scalar_lea.hbm %s493_s7, 64  ;;  %s499_s11 = scalar_lea.hbm %s697_s0, 128 }
  0x11   : > { %p495_p10 = scmp.ne.s32.totalorder %s493_s7, %s494_s8  ;;  %p500_p0 = scmp.lt.s32.totalorder %s493_s7, %s697_s0 }
  0x12   : > { %p501_p1 = scmp.lt.s32.totalorder %s499_s11, %s494_s8 }
  0x13   : > { %p497_p12 = pnand %p496_p11, %p495_p10 }
  0x14   : > { %p502_p2 = por %p501_p1, %p500_p0 }
  0x15   : > { %p498_p13 = pneg %p497_p12 }
  0x17   : > { %p503_p3 = pnand %p502_p2, %p498_p13 }
  0x19   : > { %506 = shalt.err (!%p503_p3)
}
  0x1a   : > { %s558_s19 = smov 128   ;;  %s559_s21 = smov 8  }
  0x1b   : > { %455 = dma.hbm_to_vmem [thread:$0]  (!%p631_p8), %s148_s4, 1024, %s150_s30, %s138_s6, %s558_s19, %s558_s19, %s559_s21  }
  0x1c   : > { %p157_p4 = scmp.lt.s32.totalorder %s556_s15, 3 }
  0x1e   : > { %p158_p5 = pnand %p429_p9, %p157_p4 }
  0x1f   : > { %s163_s23 = sand.u32 (!%p158_p5), 1, %s548_s13  }
  0x20   : > { %161 = sbr.rel (%p158_p5) target bundleno = 301 (0x12d), region = 28  ;;  %s430_s24 = sshll.u32 (!%p158_p5), %s163_s23, 6 }
  0x21   : > { %s164_s25 = scalar_lea.sflag (!%p158_p5), [#allocation3], %s163_s23  ;;  %s167_s26 = scalar_lea.vmem (!%p158_p5), [#allocation2], %s430_s24 }
  0x25   : > { %539 = dma.done.wait (%p620_p7), %s164_s25, 1024  }
  0x26   : > { %541 = vsyncadd (%p620_p7), %s164_s25, 4294966272  ;;  %v446_v0 = vld [vmem:[%s698_s1] sm:$0xff]  ;;  %v211_v2 = vld [vmem:[%s167_s26 + $0x8] sm:$0xff]  ;;  %vm230_vm0 = vcmask 130048   ;;  %s431_s22 = sshll.u32 %s422_s16, 3  ;;  %vm272_vm1 = vcmask 261120  }
  0x27   : > { %v210_v1 = vld [vmem:[%s167_s26] sm:$0xff]  ;;  %v212_v4 = vld [vmem:[%s167_s26 + $0x10] sm:$0xff]  ;;  %v213_v5 = vld [vmem:[%s167_s26 + $0x18] sm:$0xff]  ;;  %250 = vmatpush.bf16.msra.mxu0 %v446_v0  ;;  %447 = vmatpush.bf16.msra.mxu1 %v446_v0  ;;  %p198_p6 = scmp.lt.s32.totalorder %s431_s22, 15  ;;  %s560_s6 = smov 96  }
  0x28   : > { %v218_v3 = vpack.c.bf16 %v211_v2, %v210_v1  ;;  %v216_v6 = vld [vmem:[%s167_s26 + $0x30] sm:$0xff]  ;;  %v219_v7 = vpack.c.bf16 %v213_v5, %v212_v4  ;;  %v217_v8 = vld [vmem:[%s167_s26 + $0x38] sm:$0xff]  ;;  %v214_v9 = vld [vmem:[%s167_s26 + $0x20] sm:$0xff]  ;;  %449 = vmatpush.bf16.msra.mxu3 %v446_v0  ;;  %448 = vmatpush.bf16.msra.mxu2 %v446_v0 }
  0x29   : > { %v215_v10 = vld [vmem:[%s167_s26 + $0x28] sm:$0xff]  ;;  %v221_v11 = vpack.c.bf16 %v217_v8, %v216_v6  ;;  %s709_s22 = smov (!%p198_p6, %s431_s22), 15 }
  0x2a   : > { %v220_v12 = vpack.c.bf16 %v215_v10, %v214_v9  ;;  %439 = vmatmul.msk.bf16.vlgmr.msra.gmra.mxu0 %vm230_vm0, %v218_v3  ;;  %440 = vmatmul.msk.bf16.vlgmr.msra.gmra.mxu1 %vm230_vm0, %v219_v7  ;;  %s432_s29 = sshll.u32 %s709_s22, 3 }
  0x2b   : > { %442 = vmatmul.msk.bf16.vlgmr.msra.gmra.mxu3 %vm230_vm0, %v221_v11  ;;  %s201_s5 = scalar_lea.vmem %s699_s2, %s432_s29  ;;  %s207_s7 = scalar_lea.vmem %s700_s3, %s432_s29 }
  0x2c   : > { %441 = vmatmul.msk.bf16.vlgmr.msra.gmra.mxu2 %vm230_vm0, %v220_v12 }
  0xa7   : > { %v252_v13 = vpop.f32.mrf.mxu0  ;;  %v257_v14 = vpop.f32.mrf.mxu1 }
  0xa8   : > { %273 = vst.msk [vmem:[%s201_s5] sm:$0xff] %vm272_vm1, %v252_v13  ;;  %293 = vrot.lane.b32.xlu1 %v257_v14, %s560_s6  ;;  %289 = vrot.lane.b32.xlu0 %v252_v13, %s560_s6 }
  0xa9   : > { %275 = vst.msk [vmem:[%s201_s5 + $0x10] sm:$0xff] %vm272_vm1, %v257_v14 }
  0xae   : > { %v267_v15 = vpop.f32.mrf.mxu3 }
  0xaf   : > { %v262_v16 = vpop.f32.mrf.mxu2  ;;  %279 = vst.msk [vmem:[%s201_s5 + $0x30] sm:$0xff] %vm272_vm1, %v267_v15  ;;  %v254_v17 = vpop.f32.mrf.mxu0 }
  0xb0   : > { %v259_v18 = vpop.f32.mrf.mxu1  ;;  %297 = vrot.lane.b32.xlu2 %v262_v16, %s560_s6  ;;  %274 = vst.msk [vmem:[%s201_s5 + $0x8] sm:$0xff] %vm272_vm1, %v254_v17  ;;  %291 = vrot.lane.b32.xlu0 %v254_v17, %s560_s6 }
  0xb1   : > { %295 = vrot.lane.b32.xlu1 %v259_v18, %s560_s6  ;;  %276 = vst.msk [vmem:[%s201_s5 + $0x18] sm:$0xff] %vm272_vm1, %v259_v18 }
  0xb2   : > { %277 = vst.msk [vmem:[%s201_s5 + $0x20] sm:$0xff] %vm272_vm1, %v262_v16 }
  0xb6   : > { %v269_v19 = vpop.f32.mrf.mxu3 }
  0xb7   : > { %v264_v20 = vpop.f32.mrf.mxu2  ;;  %280 = vst.msk [vmem:[%s201_s5 + $0x38] sm:$0xff] %vm272_vm1, %v269_v19 }
  0xb8   : > { %299 = vrot.lane.b32.xlu2 %v264_v20, %s560_s6  ;;  %301 = vrot.lane.b32.xlu0 %v267_v15, %s560_s6  ;;  %278 = vst.msk [vmem:[%s201_s5 + $0x28] sm:$0xff] %vm272_vm1, %v264_v20 }
  0xb9   : > { %303 = vrot.lane.b32.xlu1 %v269_v19, %s560_s6 }
 0x10a   : > { %v298_v21 = vpop.permute.xlu2 %297 }
 0x10b   : > { %317 = vst.msk [vmem:[%s207_s7 + $0x20] sm:$0xff] %vm272_vm1, %v298_v21 }
 0x112   : > { %v300_v22 = vpop.permute.xlu2 %299 }
 0x113   : > { %318 = vst.msk [vmem:[%s207_s7 + $0x28] sm:$0xff] %vm272_vm1, %v300_v22 }
 0x11a   : > { %v294_v23 = vpop.permute.xlu1 %293  ;;  %v290_v24 = vpop.permute.xlu0 %289 }
 0x11b   : > { %315 = vst.msk [vmem:[%s207_s7 + $0x10] sm:$0xff] %vm272_vm1, %v294_v23 }
 0x11c   : > { %313 = vst.msk [vmem:[%s207_s7] sm:$0xff] %vm272_vm1, %v290_v24 }
 0x122   : > { %v292_v26 = vpop.permute.xlu0 %291 }
 0x123   : > { %v296_v25 = vpop.permute.xlu1 %295  ;;  %314 = vst.msk [vmem:[%s207_s7 + $0x8] sm:$0xff] %vm272_vm1, %v292_v26 }
 0x124   : > { %316 = vst.msk [vmem:[%s207_s7 + $0x18] sm:$0xff] %vm272_vm1, %v296_v25 }
 0x12a   : > { %v302_v28 = vpop.permute.xlu0 %301 }
 0x12b   : > { %v304_v27 = vpop.permute.xlu1 %303  ;;  %319 = vst.msk [vmem:[%s207_s7 + $0x30] sm:$0xff] %vm272_vm1, %v302_v28 }
 0x12c   : > { %320 = vst.msk [vmem:[%s207_s7 + $0x38] sm:$0xff] %vm272_vm1, %v304_v27 }
 0x12d PF: > { %p14_p7 = scmp.ge.s32.totalorder %s601_s17, 4   ;;  %s704_s12 = smov %s548_s13 }
 0x12e   : > { %s705_s13 = smov %s552_s14  ;;  %s706_s14 = smov %s611_s20 }
 0x12f   : > { %s707_s15 = smov %s601_s17  ;;  %16 = sbr.rel (!%p14_p7) target bundleno = 3 (0x3), region = 80 }
 0x134   :  { %360 = vsyncpa [#allocation3], 1 }
 0x135   :  { %362 = vsyncpa [#allocation3 + $0x1], 1 }

// kernel: ss2d_forward.6
= control target key start
LH: loop header
LB: loop body
LE: loop exit
PB: predicated region body
PF: predicated region fallthrough
CT: control target
= control target key end

     0   :  { %s1025_s12 = smov 0   ;;  %s1514_s0 = inlined_call_operand.vmem [shape: f32[2,10,10,32], index: 0, kind: input, shape index: {}]   ;;  %s1515_s1 = inlined_call_operand.vmem [shape: f32[9,32], index: 1, kind: input, shape index: {}]   ;;  %s1516_s2 = inlined_call_operand.vmem [shape: f32[1,32], index: 2, kind: input, shape index: {}]   ;;  %s1517_s3 = inlined_call_operand.vmem [shape: f32[2,8,8,32], index: 3, kind: output, shape index: {}]  }
   0x1 LB: > { %s927_s13 = sadd.s32 4294967295, %s1003_s12   ;;  %p931_p0 = scmp.ge.s32.totalorder %s1003_s12, 1  ;;  %s1003_s12 = sphi %s1025_s12, %s13_s12  }
   0x2   : > { %p137_p1 = scmp.lt.s32.totalorder %s1003_s12, 3 }
   0x4   : > { %p138_p2 = pnand %p931_p0, %p137_p1 }
   0x5   : > { %p161_p3 = scmp.lt.s32.totalorder (!%p138_p2), %s927_s13, 1 }
   0x6   : > { %141 = sbr.rel (%p138_p2) target bundleno = 149 (0x95), region = 32 }
   0xb   : > { %s1545_s13 = smov (!%p161_p3, %s927_s13), 1  ;;  %v955_v0 = vld [vmem:[%s1515_s1] ss:$0 sm:$0xff]  ;;  %v956_v1 = vld [vmem:[%s1515_s1 + $0x1] ss:$0 sm:$0xff]  ;;  %vm243_vm0 = vcmask 1046528  }
   0xc   : > { %s946_s18 = smul.u32 160, %s1545_s13  ;;  %v957_v58 = vld [vmem:[%s1515_s1 + $0x2] ss:$0 sm:$0xff]  ;;  %vm318_vm1 = vcmask 1045504   ;;  %s945_s11 = sshll.u32 %s1545_s13, 6 }
   0xd   : > { %s1466_s15 = scalar_lea.vmem %s1517_s3, %s945_s11 }
   0xe   : > { %s1045_s21 = scalar_lea.vmem %s1514_s0, %s946_s18 }
   0xf   : > { %v1048_v2 = vld [vmem:[%s1045_s21] sm:$0xff]  ;;  %v1051_v3 = vld [vmem:[%s1045_s21 + $0x8] sm:$0x3]  ;;  %v1054_v4 = vld [vmem:[%s1045_s21 + $0x10] sm:$0xff] }
  0x10   : > { %v1057_v5 = vld [vmem:[%s1045_s21 + $0x18] sm:$0x3]  ;;  %v1060_v6 = vld [vmem:[%s1045_s21 + $0x20] sm:$0xff]  ;;  %v1063_v7 = vld [vmem:[%s1045_s21 + $0x28] sm:$0x3]  ;;  %v193_v8 = vmul.f32 %v955_v0, %v1048_v2  ;;  %v194_v9 = vmul.f32 %v955_v0, %v1054_v4  ;;  %v211_v10 = vmul.f32 %v956_v1, %v1048_v2  ;;  %v212_v11 = vmul.f32 %v956_v1, %v1051_v3 }
  0x11   : > { %v1070_v12 = vld [vmem:[%s1045_s21 + $0x30] sm:$0xff]  ;;  %v1073_v13 = vld [vmem:[%s1045_s21 + $0x38] sm:$0x3]  ;;  %v1076_v14 = vld [vmem:[%s1045_s21 + $0x40] sm:$0xff]  ;;  %v195_v15 = vmul.f32 %v955_v0, %v1060_v6  ;;  %v213_v16 = vmul.f32 %v956_v1, %v1054_v4  ;;  %v214_v17 = vmul.f32 %v956_v1, %v1057_v5  ;;  %v215_v18 = vmul.f32 %v956_v1, %v1060_v6 }
  0x12   : > { %v1083_v19 = vld [vmem:[%s1045_s21 + $0x48] sm:$0x3]  ;;  %v1086_v20 = vld [vmem:[%s1045_s21 + $0x50] sm:$0xff]  ;;  %v1089_v21 = vld [vmem:[%s1045_s21 + $0x58] sm:$0x3]  ;;  %v196_v22 = vmul.f32 %v955_v0, %v1070_v12  ;;  %v197_v23 = vmul.f32 %v955_v0, %v1076_v14  ;;  %v216_v24 = vmul.f32 %v956_v1, %v1063_v7  ;;  %v217_v25 = vmul.f32 %v956_v1, %v1070_v12 }
  0x13   : > { %v1096_v26 = vld [vmem:[%s1045_s21 + $0x60] sm:$0xff]  ;;  %v1099_v27 = vld [vmem:[%s1045_s21 + $0x68] sm:$0x3]  ;;  %v1102_v28 = vld [vmem:[%s1045_s21 + $0x70] sm:$0xff]  ;;  %v198_v29 = vmul.f32 %v955_v0, %v1086_v20  ;;  %v218_v30 = vmul.f32 %v956_v1, %v1073_v13  ;;  %v219_v31 = vmul.f32 %v956_v1, %v1076_v14  ;;  %v220_v32 = vmul.f32 %v956_v1, %v1083_v19 }
  0x14   : > { %v1109_v33 = vld [vmem:[%s1045_s21 + $0x78] sm:$0x3]  ;;  %v199_v34 = vmul.f32 %v955_v0, %v1096_v26  ;;  %v200_v35 = vmul.f32 %v955_v0, %v1102_v28  ;;  %v221_v36 = vmul.f32 %v956_v1, %v1086_v20  ;;  %v222_v37 = vmul.f32 %v956_v1, %v1089_v21 }
  0x15   : > { %v223_v38 = vmul.f32 %v956_v1, %v1096_v26  ;;  %v224_v39 = vmul.f32 %v956_v1, %v1099_v27  ;;  %v225_v40 = vmul.f32 %v956_v1, %v1102_v28  ;;  %v226_v41 = vmul.f32 %v956_v1, %v1109_v33 }
  0x16   : > { %v244_v42 = vrot.slane %v211_v10, 1  ;;  %v245_v43 = vrot.slane %v212_v11, 1  ;;  %v247_v44 = vrot.slane %v213_v16, 1  ;;  %v248_v45 = vrot.slane %v214_v17, 1 }
  0x17   : > { %v250_v46 = vrot.slane %v215_v18, 1  ;;  %v251_v47 = vrot.slane %v216_v24, 1  ;;  %v253_v48 = vrot.slane %v217_v25, 1  ;;  %v254_v49 = vrot.slane %v218_v30, 1 }
  0x18   : > { %v246_v50 = vsel %vm243_vm0, %v244_v42, %v245_v43  ;;  %v249_v51 = vsel %vm243_vm0, %v247_v44, %v248_v45  ;;  %v256_v52 = vrot.slane %v219_v31, 1  ;;  %v257_v53 = vrot.slane %v220_v32, 1 }
  0x19   : > { %v252_v54 = vsel %vm243_vm0, %v250_v46, %v251_v47  ;;  %v255_v55 = vsel %vm243_vm0, %v253_v48, %v254_v49  ;;  %v259_v56 = vrot.slane %v221_v36, 1  ;;  %v260_v57 = vrot.slane %v222_v37, 1 }
  0x1a   : > { %v258_v59 = vsel %vm243_vm0, %v256_v52, %v257_v53  ;;  %v262_v60 = vrot.slane %v223_v38, 1  ;;  %v263_v61 = vrot.slane %v224_v39, 1  ;;  %v265_v62 = vrot.slane %v225_v40, 1 }
  0x1b   : > { %v261_v63 = vsel %vm243_vm0, %v259_v56, %v260_v57  ;;  %v266_v0 = vrot.slane %v226_v41, 1  ;;  %v276_v1 = vadd.f32 %v246_v50, %v193_v8  ;;  %v277_v10 = vadd.f32 %v249_v51, %v194_v9  ;;  %v958_v57 = vld [vmem:[%s1515_s1 + $0x3] ss:$0 sm:$0xff] }
  0x1c   : > { %v264_v11 = vsel %vm243_vm0, %v262_v60, %v263_v61  ;;  %v278_v16 = vadd.f32 %v252_v54, %v195_v15  ;;  %v279_v17 = vadd.f32 %v255_v55, %v196_v22  ;;  %v280_v18 = vadd.f32 %v258_v59, %v197_v23 }
  0x1d   : > { %v267_v24 = vsel %vm243_vm0, %v265_v62, %v266_v0  ;;  %v281_v25 = vadd.f32 %v261_v63, %v198_v29  ;;  %v282_v30 = vadd.f32 %v264_v11, %v199_v34  ;;  %v286_v31 = vmul.f32 %v957_v58, %v1048_v2 }
  0x1e   : > { %v283_v32 = vadd.f32 %v267_v24, %v200_v35  ;;  %v287_v36 = vmul.f32 %v957_v58, %v1051_v3  ;;  %v288_v37 = vmul.f32 %v957_v58, %v1054_v4  ;;  %v289_v38 = vmul.f32 %v957_v58, %v1057_v5  ;;  %v1156_v24 = vld [vmem:[%s1045_s21 + $0x80] sm:$0xff] }
  0x1f   : > { %v290_v8 = vmul.f32 %v957_v58, %v1060_v6  ;;  %v291_v9 = vmul.f32 %v957_v58, %v1063_v7  ;;  %v292_v15 = vmul.f32 %v957_v58, %v1070_v12  ;;  %v293_v22 = vmul.f32 %v957_v58, %v1073_v13 }
  0x20   : > { %v294_v23 = vmul.f32 %v957_v58, %v1076_v14  ;;  %v295_v29 = vmul.f32 %v957_v58, %v1083_v19  ;;  %v296_v2 = vmul.f32 %v957_v58, %v1086_v20  ;;  %v297_v3 = vmul.f32 %v957_v58, %v1089_v21 }
  0x21   : > { %v298_v34 = vmul.f32 %v957_v58, %v1096_v26  ;;  %v299_v35 = vmul.f32 %v957_v58, %v1099_v27  ;;  %v300_v39 = vmul.f32 %v957_v58, %v1102_v28  ;;  %v301_v40 = vmul.f32 %v957_v58, %v1109_v33 }
  0x22   : > { %v319_v41 = vrot.slane %v286_v31, 2  ;;  %v320_v42 = vrot.slane %v287_v36, 2  ;;  %v322_v43 = vrot.slane %v288_v37, 2  ;;  %v323_v44 = vrot.slane %v289_v38, 2 }
  0x23   : > { %v325_v45 = vrot.slane %v290_v8, 2  ;;  %v326_v46 = vrot.slane %v291_v9, 2  ;;  %v328_v47 = vrot.slane %v292_v15, 2  ;;  %v329_v48 = vrot.slane %v293_v22, 2 }
  0x24   : > { %v321_v49 = vsel %vm318_vm1, %v319_v41, %v320_v42  ;;  %v324_v50 = vsel %vm318_vm1, %v322_v43, %v323_v44  ;;  %v331_v51 = vrot.slane %v294_v23, 2  ;;  %v332_v52 = vrot.slane %v295_v29, 2  ;;  %v1172_v42 = vld [vmem:[%s1045_s21 + $0x88] sm:$0x3] }
  0x25   : > { %v327_v53 = vsel %vm318_vm1, %v325_v45, %v326_v46  ;;  %v330_v54 = vsel %vm318_vm1, %v328_v47, %v329_v48  ;;  %v334_v55 = vrot.slane %v296_v2, 2  ;;  %v335_v56 = vrot.slane %v297_v3, 2 }
  0x26   : > { %v333_v58 = vsel %vm318_vm1, %v331_v51, %v332_v52  ;;  %v337_v59 = vrot.slane %v298_v34, 2  ;;  %v338_v60 = vrot.slane %v299_v35, 2  ;;  %v340_v61 = vrot.slane %v300_v39, 2 }
  0x27   : > { %v336_v62 = vsel %vm318_vm1, %v334_v55, %v335_v56  ;;  %v341_v63 = vrot.slane %v301_v40, 2  ;;  %v351_v0 = vadd.f32 %v321_v49, %v276_v1  ;;  %v352_v11 = vadd.f32 %v324_v50, %v277_v10 }
  0x28   : > { %v339_v31 = vsel %vm318_vm1, %v337_v59, %v338_v60  ;;  %v353_v36 = vadd.f32 %v327_v53, %v278_v16  ;;  %v354_v37 = vadd.f32 %v330_v54, %v279_v17  ;;  %v355_v38 = vadd.f32 %v333_v58, %v280_v18  ;;  %v959_v16 = vld [vmem:[%s1515_s1 + $0x4] ss:$0 sm:$0xff] }
  0x29   : > { %v342_v8 = vsel %vm318_vm1, %v340_v61, %v341_v63  ;;  %v356_v9 = vadd.f32 %v336_v62, %v281_v25  ;;  %v357_v15 = vadd.f32 %v339_v31, %v282_v30  ;;  %v361_v22 = vmul.f32 %v958_v57, %v1054_v4 }
  0x2a   : > { %v358_v23 = vadd.f32 %v342_v8, %v283_v32  ;;  %v362_v29 = vmul.f32 %v958_v57, %v1060_v6  ;;  %v363_v1 = vmul.f32 %v958_v57, %v1070_v12  ;;  %v364_v10 = vmul.f32 %v958_v57, %v1076_v14 }
  0x2b   : > { %v365_v17 = vmul.f32 %v958_v57, %v1086_v20  ;;  %v366_v18 = vmul.f32 %v958_v57, %v1096_v26  ;;  %v367_v25 = vmul.f32 %v958_v57, %v1102_v28  ;;  %v368_v30 = vmul.f32 %v958_v57, %v1156_v24 }
  0x2c   : > { %v369_v32 = vadd.f32 %v361_v22, %v351_v0  ;;  %v370_v2 = vadd.f32 %v362_v29, %v352_v11  ;;  %v371_v3 = vadd.f32 %v363_v1, %v353_v36  ;;  %v372_v34 = vadd.f32 %v364_v10, %v354_v37  ;;  %v960_v29 = vld [vmem:[%s1515_s1 + $0x5] ss:$0 sm:$0xff] }
  0x2d   : > { %v373_v35 = vadd.f32 %v365_v17, %v355_v38  ;;  %v374_v39 = vadd.f32 %v366_v18, %v356_v9  ;;  %v375_v40 = vadd.f32 %v367_v25, %v357_v15  ;;  %v376_v41 = vadd.f32 %v368_v30, %v358_v23 }
  0x2e   : > { %v379_v43 = vmul.f32 %v959_v16, %v1054_v4  ;;  %v380_v44 = vmul.f32 %v959_v16, %v1057_v5  ;;  %v381_v45 = vmul.f32 %v959_v16, %v1060_v6  ;;  %v382_v46 = vmul.f32 %v959_v16, %v1063_v7 }
  0x2f   : > { %v383_v47 = vmul.f32 %v959_v16, %v1070_v12  ;;  %v384_v48 = vmul.f32 %v959_v16, %v1073_v13  ;;  %v385_v49 = vmul.f32 %v959_v16, %v1076_v14  ;;  %v386_v50 = vmul.f32 %v959_v16, %v1083_v19 }
  0x30   : > { %v387_v51 = vmul.f32 %v959_v16, %v1086_v20  ;;  %v388_v52 = vmul.f32 %v959_v16, %v1089_v21  ;;  %v389_v53 = vmul.f32 %v959_v16, %v1096_v26  ;;  %v390_v54 = vmul.f32 %v959_v16, %v1099_v27 }
  0x31   : > { %v391_v55 = vmul.f32 %v959_v16, %v1102_v28  ;;  %v392_v56 = vmul.f32 %v959_v16, %v1109_v33  ;;  %v393_v57 = vmul.f32 %v959_v16, %v1156_v24  ;;  %v394_v58 = vmul.f32 %v959_v16, %v1172_v42 }
  0x32   : > { %v411_v59 = vrot.slane %v379_v43, 1  ;;  %v412_v60 = vrot.slane %v380_v44, 1  ;;  %v414_v61 = vrot.slane %v381_v45, 1  ;;  %v415_v62 = vrot.slane %v382_v46, 1 }
  0x33   : > { %v417_v63 = vrot.slane %v383_v47, 1  ;;  %v418_v0 = vrot.slane %v384_v48, 1  ;;  %v420_v11 = vrot.slane %v385_v49, 1  ;;  %v421_v31 = vrot.slane %v386_v50, 1 }
  0x34   : > { %v413_v36 = vsel %vm243_vm0, %v411_v59, %v412_v60  ;;  %v416_v37 = vsel %vm243_vm0, %v414_v61, %v415_v62  ;;  %v423_v38 = vrot.slane %v387_v51, 1  ;;  %v424_v8 = vrot.slane %v388_v52, 1 }
  0x35   : > { %v419_v9 = vsel %vm243_vm0, %v417_v63, %v418_v0  ;;  %v422_v15 = vsel %vm243_vm0, %v420_v11, %v421_v31  ;;  %v426_v22 = vrot.slane %v389_v53, 1  ;;  %v427_v23 = vrot.slane %v390_v54, 1 }
  0x36   : > { %v425_v1 = vsel %vm243_vm0, %v423_v38, %v424_v8  ;;  %v429_v10 = vrot.slane %v391_v55, 1  ;;  %v430_v16 = vrot.slane %v392_v56, 1  ;;  %v432_v17 = vrot.slane %v393_v57, 1 }
  0x37   : > { %v428_v18 = vsel %vm243_vm0, %v426_v22, %v427_v23  ;;  %v433_v25 = vrot.slane %v394_v58, 1  ;;  %v443_v30 = vadd.f32 %v413_v36, %v369_v32  ;;  %v444_v43 = vadd.f32 %v416_v37, %v370_v2  ;;  %v961_v23 = vld [vmem:[%s1515_s1 + $0x6] ss:$0 sm:$0xff] }
  0x38   : > { %v431_v44 = vsel %vm243_vm0, %v429_v10, %v430_v16  ;;  %v445_v45 = vadd.f32 %v419_v9, %v371_v3  ;;  %v446_v46 = vadd.f32 %v422_v15, %v372_v34  ;;  %v447_v47 = vadd.f32 %v425_v1, %v373_v35 }
  0x39   : > { %v434_v48 = vsel %vm243_vm0, %v432_v17, %v433_v25  ;;  %v448_v49 = vadd.f32 %v428_v18, %v374_v39  ;;  %v449_v50 = vadd.f32 %v431_v44, %v375_v40  ;;  %v453_v51 = vmul.f32 %v960_v29, %v1054_v4 }
  0x3a   : > { %v450_v52 = vadd.f32 %v434_v48, %v376_v41  ;;  %v454_v53 = vmul.f32 %v960_v29, %v1057_v5  ;;  %v455_v54 = vmul.f32 %v960_v29, %v1060_v6  ;;  %v456_v55 = vmul.f32 %v960_v29, %v1063_v7  ;;  %v1227_v48 = vld [vmem:[%s1045_s21 + $0x90] sm:$0xff] }
  0x3b   : > { %v457_v32 = vmul.f32 %v960_v29, %v1070_v12  ;;  %v458_v2 = vmul.f32 %v960_v29, %v1073_v13  ;;  %v459_v3 = vmul.f32 %v960_v29, %v1076_v14  ;;  %v460_v34 = vmul.f32 %v960_v29, %v1083_v19 }
  0x3c   : > { %v461_v35 = vmul.f32 %v960_v29, %v1086_v20  ;;  %v462_v39 = vmul.f32 %v960_v29, %v1089_v21  ;;  %v463_v4 = vmul.f32 %v960_v29, %v1096_v26  ;;  %v464_v5 = vmul.f32 %v960_v29, %v1099_v27 }
  0x3d   : > { %v465_v40 = vmul.f32 %v960_v29, %v1102_v28  ;;  %v466_v41 = vmul.f32 %v960_v29, %v1109_v33  ;;  %v467_v56 = vmul.f32 %v960_v29, %v1156_v24  ;;  %v468_v57 = vmul.f32 %v960_v29, %v1172_v42 }
  0x3e   : > { %v485_v58 = vrot.slane %v453_v51, 2  ;;  %v486_v59 = vrot.slane %v454_v53, 2  ;;  %v488_v60 = vrot.slane %v455_v54, 2  ;;  %v489_v61 = vrot.slane %v456_v55, 2 }
  0x3f   : > { %v491_v62 = vrot.slane %v457_v32, 2  ;;  %v492_v63 = vrot.slane %v458_v2, 2  ;;  %v494_v0 = vrot.slane %v459_v3, 2  ;;  %v495_v11 = vrot.slane %v460_v34, 2 }
  0x40   : > { %v487_v31 = vsel %vm318_vm1, %v485_v58, %v486_v59  ;;  %v490_v36 = vsel %vm318_vm1, %v488_v60, %v489_v61  ;;  %v497_v37 = vrot.slane %v461_v35, 2  ;;  %v498_v38 = vrot.slane %v462_v39, 2  ;;  %v1243_v59 = vld [vmem:[%s1045_s21 + $0x98] sm:$0x3] }
  0x41   : > { %v493_v8 = vsel %vm318_vm1, %v491_v62, %v492_v63  ;;  %v496_v9 = vsel %vm318_vm1, %v494_v0, %v495_v11  ;;  %v500_v15 = vrot.slane %v463_v4, 2  ;;  %v501_v22 = vrot.slane %v464_v5, 2 }
  0x42   : > { %v499_v29 = vsel %vm318_vm1, %v497_v37, %v498_v38  ;;  %v503_v1 = vrot.slane %v465_v40, 2  ;;  %v504_v10 = vrot.slane %v466_v41, 2  ;;  %v506_v16 = vrot.slane %v467_v56, 2 }
  0x43   : > { %v502_v17 = vsel %vm318_vm1, %v500_v15, %v501_v22  ;;  %v507_v18 = vrot.slane %v468_v57, 2  ;;  %v517_v25 = vadd.f32 %v487_v31, %v443_v30  ;;  %v518_v44 = vadd.f32 %v490_v36, %v444_v43 }
  0x44   : > { %v505_v51 = vsel %vm318_vm1, %v503_v1, %v504_v10  ;;  %v519_v53 = vadd.f32 %v493_v8, %v445_v45  ;;  %v520_v54 = vadd.f32 %v496_v9, %v446_v46  ;;  %v521_v55 = vadd.f32 %v499_v29, %v447_v47  ;;  %v962_v45 = vld [vmem:[%s1515_s1 + $0x7] ss:$0 sm:$0xff] }
  0x45   : > { %v508_v32 = vsel %vm318_vm1, %v506_v16, %v507_v18  ;;  %v522_v2 = vadd.f32 %v502_v17, %v448_v49  ;;  %v523_v3 = vadd.f32 %v505_v51, %v449_v50  ;;  %v527_v34 = vmul.f32 %v961_v23, %v1060_v6 }
  0x46   : > { %v524_v35 = vadd.f32 %v508_v32, %v450_v52  ;;  %v528_v39 = vmul.f32 %v961_v23, %v1070_v12  ;;  %v529_v30 = vmul.f32 %v961_v23, %v1076_v14  ;;  %v530_v43 = vmul.f32 %v961_v23, %v1086_v20 }
  0x47   : > { %v531_v46 = vmul.f32 %v961_v23, %v1096_v26  ;;  %v532_v47 = vmul.f32 %v961_v23, %v1102_v28  ;;  %v533_v49 = vmul.f32 %v961_v23, %v1156_v24  ;;  %v534_v50 = vmul.f32 %v961_v23, %v1227_v48 }
  0x48   : > { %v535_v52 = vadd.f32 %v527_v34, %v517_v25  ;;  %v536_v4 = vadd.f32 %v528_v39, %v518_v44  ;;  %v537_v5 = vadd.f32 %v529_v30, %v519_v53  ;;  %v538_v40 = vadd.f32 %v530_v43, %v520_v54  ;;  %v963_v39 = vld [vmem:[%s1515_s1 + $0x8] ss:$0 sm:$0xff] }
  0x49   : > { %v539_v41 = vadd.f32 %v531_v46, %v521_v55  ;;  %v540_v56 = vadd.f32 %v532_v47, %v522_v2  ;;  %v541_v57 = vadd.f32 %v533_v49, %v523_v3  ;;  %v542_v58 = vadd.f32 %v534_v50, %v524_v35 }
  0x4a   : > { %v545_v60 = vmul.f32 %v962_v45, %v1060_v6  ;;  %v546_v61 = vmul.f32 %v962_v45, %v1063_v7  ;;  %v547_v62 = vmul.f32 %v962_v45, %v1070_v12  ;;  %v548_v63 = vmul.f32 %v962_v45, %v1073_v13 }
  0x4b   : > { %v549_v0 = vmul.f32 %v962_v45, %v1076_v14  ;;  %v550_v11 = vmul.f32 %v962_v45, %v1083_v19  ;;  %v551_v31 = vmul.f32 %v962_v45, %v1086_v20  ;;  %v552_v36 = vmul.f32 %v962_v45, %v1089_v21 }
  0x4c   : > { %v553_v37 = vmul.f32 %v962_v45, %v1096_v26  ;;  %v554_v38 = vmul.f32 %v962_v45, %v1099_v27  ;;  %v555_v8 = vmul.f32 %v962_v45, %v1102_v28  ;;  %v556_v9 = vmul.f32 %v962_v45, %v1109_v33 }
  0x4d   : > { %v557_v15 = vmul.f32 %v962_v45, %v1156_v24  ;;  %v558_v22 = vmul.f32 %v962_v45, %v1172_v42  ;;  %v559_v23 = vmul.f32 %v962_v45, %v1227_v48  ;;  %v560_v29 = vmul.f32 %v962_v45, %v1243_v59 }
  0x4e   : > { %v577_v1 = vrot.slane %v545_v60, 1  ;;  %v578_v10 = vrot.slane %v546_v61, 1  ;;  %v580_v16 = vrot.slane %v547_v62, 1  ;;  %v581_v17 = vrot.slane %v548_v63, 1 }
  0x4f   : > { %v583_v18 = vrot.slane %v549_v0, 1  ;;  %v584_v25 = vrot.slane %v550_v11, 1  ;;  %v586_v44 = vrot.slane %v551_v31, 1  ;;  %v587_v51 = vrot.slane %v552_v36, 1 }
  0x50   : > { %v579_v53 = vsel %vm243_vm0, %v577_v1, %v578_v10  ;;  %v582_v54 = vsel %vm243_vm0, %v580_v16, %v581_v17  ;;  %v589_v55 = vrot.slane %v553_v37, 1  ;;  %v590_v32 = vrot.slane %v554_v38, 1  ;;  %v964_v10 = vld [vmem:[%s1516_s2] ss:$0 sm:$0xff] }
  0x51   : > { %v585_v2 = vsel %vm243_vm0, %v583_v18, %v584_v25  ;;  %v588_v3 = vsel %vm243_vm0, %v586_v44, %v587_v51  ;;  %v592_v34 = vrot.slane %v555_v8, 1  ;;  %v593_v35 = vrot.slane %v556_v9, 1 }
  0x52   : > { %v591_v30 = vsel %vm243_vm0, %v589_v55, %v590_v32  ;;  %v595_v43 = vrot.slane %v557_v15, 1  ;;  %v596_v45 = vrot.slane %v558_v22, 1  ;;  %v598_v46 = vrot.slane %v559_v23, 1 }
  0x53   : > { %v594_v47 = vsel %vm243_vm0, %v592_v34, %v593_v35  ;;  %v599_v49 = vrot.slane %v560_v29, 1  ;;  %v609_v50 = vadd.f32 %v579_v53, %v535_v52  ;;  %v610_v60 = vadd.f32 %v582_v54, %v536_v4 }
  0x54   : > { %v597_v61 = vsel %vm243_vm0, %v595_v43, %v596_v45  ;;  %v611_v62 = vadd.f32 %v585_v2, %v537_v5  ;;  %v612_v63 = vadd.f32 %v588_v3, %v538_v40  ;;  %v613_v0 = vadd.f32 %v591_v30, %v539_v41 }
  0x55   : > { %v600_v11 = vsel %vm243_vm0, %v598_v46, %v599_v49  ;;  %v614_v31 = vadd.f32 %v594_v47, %v540_v56  ;;  %v615_v36 = vadd.f32 %v597_v61, %v541_v57  ;;  %v619_v37 = vmul.f32 %v963_v39, %v1060_v6 }
  0x56   : > { %v616_v38 = vadd.f32 %v600_v11, %v542_v58  ;;  %v620_v8 = vmul.f32 %v963_v39, %v1063_v7  ;;  %v621_v9 = vmul.f32 %v963_v39, %v1070_v12  ;;  %v622_v15 = vmul.f32 %v963_v39, %v1073_v13 }
  0x57   : > { %v623_v52 = vmul.f32 %v963_v39, %v1076_v14  ;;  %v624_v4 = vmul.f32 %v963_v39, %v1083_v19  ;;  %v625_v5 = vmul.f32 %v963_v39, %v1086_v20  ;;  %v626_v40 = vmul.f32 %v963_v39, %v1089_v21 }
  0x58   : > { %v627_v41 = vmul.f32 %v963_v39, %v1096_v26  ;;  %v628_v56 = vmul.f32 %v963_v39, %v1099_v27  ;;  %v629_v6 = vmul.f32 %v963_v39, %v1102_v28  ;;  %v630_v7 = vmul.f32 %v963_v39, %v1109_v33 }
  0x59   : > { %v631_v12 = vmul.f32 %v963_v39, %v1156_v24  ;;  %v632_v13 = vmul.f32 %v963_v39, %v1172_v42  ;;  %v633_v14 = vmul.f32 %v963_v39, %v1227_v48  ;;  %v634_v19 = vmul.f32 %v963_v39, %v1243_v59 }
  0x5a   : > { %v651_v57 = vrot.slane %v619_v37, 2  ;;  %v652_v20 = vrot.slane %v620_v8, 2  ;;  %v654_v58 = vrot.slane %v621_v9, 2  ;;  %v655_v21 = vrot.slane %v622_v15, 2 }
  0x5b   : > { %v657_v22 = vrot.slane %v623_v52, 2  ;;  %v658_v26 = vrot.slane %v624_v4, 2  ;;  %v660_v23 = vrot.slane %v625_v5, 2  ;;  %v661_v27 = vrot.slane %v626_v40, 2 }
  0x5c   : > { %v653_v28 = vsel %vm318_vm1, %v651_v57, %v652_v20  ;;  %v656_v33 = vsel %vm318_vm1, %v654_v58, %v655_v21  ;;  %v663_v29 = vrot.slane %v627_v41, 2  ;;  %v664_v24 = vrot.slane %v628_v56, 2 }
  0x5d   : > { %v659_v42 = vsel %vm318_vm1, %v657_v22, %v658_v26  ;;  %v662_v48 = vsel %vm318_vm1, %v660_v23, %v661_v27  ;;  %v666_v1 = vrot.slane %v629_v6, 2  ;;  %v667_v59 = vrot.slane %v630_v7, 2 }
  0x5e   : > { %v665_v16 = vsel %vm318_vm1, %v663_v29, %v664_v24  ;;  %v669_v17 = vrot.slane %v631_v12, 2  ;;  %v670_v18 = vrot.slane %v632_v13, 2  ;;  %v672_v25 = vrot.slane %v633_v14, 2 }
  0x5f   : > { %v668_v44 = vsel %vm318_vm1, %v666_v1, %v667_v59  ;;  %v673_v51 = vrot.slane %v634_v19, 2  ;;  %v683_v53 = vadd.f32 %v653_v28, %v609_v50  ;;  %v684_v54 = vadd.f32 %v656_v33, %v610_v60 }
  0x60   : > { %v671_v55 = vsel %vm318_vm1, %v669_v17, %v670_v18  ;;  %v685_v32 = vadd.f32 %v659_v42, %v611_v62  ;;  %v686_v2 = vadd.f32 %v662_v48, %v612_v63  ;;  %v687_v3 = vadd.f32 %v665_v16, %v613_v0 }
  0x61   : > { %v674_v34 = vsel %vm318_vm1, %v672_v25, %v673_v51  ;;  %v688_v35 = vadd.f32 %v668_v44, %v614_v31  ;;  %v689_v39 = vadd.f32 %v671_v55, %v615_v36  ;;  %v1299_v30 = vadd.f32 %v964_v10, %v683_v53 }
  0x62   : > { %v690_v43 = vadd.f32 %v674_v34, %v616_v38  ;;  %v1301_v45 = vadd.f32 %v964_v10, %v684_v54  ;;  %v1303_v46 = vadd.f32 %v964_v10, %v685_v32  ;;  %v1305_v47 = vadd.f32 %v964_v10, %v686_v2 }
  0x63   : > { %v1307_v49 = vadd.f32 %v964_v10, %v687_v3  ;;  %v1309_v50 = vadd.f32 %v964_v10, %v688_v35  ;;  %v935_v60 = vmul.f32 -1.442695, %v1299_v30  ;;  %v1312_v61 = vadd.f32 %v964_v10, %v689_v39 }
  0x64   : > { %v936_v62 = vmul.f32 -1.442695, %v1301_v45  ;;  %v937_v63 = vmul.f32 -1.442695, %v1303_v46  ;;  %v938_v0 = vmul.f32 -1.442695, %v1305_v47  ;;  %v1317_v11 = vadd.f32 %v964_v10, %v690_v43 }
  0x65   : > { %965 = vpow2.f32 %v935_v60  ;;  %v939_v31 = vmul.f32 -1.442695, %v1307_v49  ;;  %v940_v36 = vmul.f32 -1.442695, %v1309_v50  ;;  %v941_v37 = vmul.f32 -1.442695, %v1312_v61 }
  0x66   : > { %967 = vpow2.f32 %v936_v62  ;;  %v942_v38 = vmul.f32 -1.442695, %v1317_v11 }
  0x67   : > { %969 = vpow2.f32 %v937_v63 }
  0x68   : > { %971 = vpow2.f32 %v938_v0 }
  0x69   : > { %973 = vpow2.f32 %v939_v31 }
  0x6a   : > { %975 = vpow2.f32 %v940_v36 }
  0x6b   : > { %v966_v8 = vpop.eup %965  ;;  %977 = vpow2.f32 %v941_v37 }
  0x6c   : > { %v968_v9 = vpop.eup %967  ;;  %v727_v15 = vadd.f32 1.0, %v966_v8  ;;  %979 = vpow2.f32 %v942_v38 }
  0x6d   : > { %v970_v52 = vpop.eup %969  ;;  %v728_v4 = vadd.f32 1.0, %v968_v9 }
  0x6e   : > { %v972_v5 = vpop.eup %971  ;;  %v1323_v40 = vadd.f32 1.0, %v970_v52  ;;  %981 = vrcp.f32 %v727_v15  ;;  %v746_v12 = vand.u32 2147483648, %v727_v15  ;;  %vm740_vm2 = vweird.f32 %v727_v15 }
  0x6f   : > { %v974_v41 = vpop.eup %973  ;;  %v1325_v56 = vadd.f32 1.0, %v972_v5  ;;  %983 = vrcp.f32 %v728_v4  ;;  %v744_v14 = vand.u32 2147483647, %v727_v15  ;;  %v761_v19 = vand.u32 2147483648, %v728_v4 }
  0x70   : > { %v976_v6 = vpop.eup %975  ;;  %v1327_v7 = vadd.f32 1.0, %v974_v41  ;;  %985 = vrcp.f32 %v1323_v40  ;;  %vm755_vm3 = vweird.f32 %v728_v4  ;;  %v759_v58 = vand.u32 2147483647, %v728_v4 }
  0x71   : > { %v978_v13 = vpop.eup %977  ;;  %v1330_v20 = vadd.f32 1.0, %v976_v6  ;;  %987 = vrcp.f32 %v1325_v56  ;;  %v1335_v22 = vor.u32 1.1754944e-38, %v746_v12  ;;  %v774_v26 = vand.u32 2147483647, %v1323_v40 }
  0x72   : > { %v980_v57 = vpop.eup %979  ;;  %v776_v23 = vand.u32 2147483648, %v1323_v40  ;;  %989 = vrcp.f32 %v1327_v7  ;;  %v1342_v28 = vadd.f32 1.0, %v978_v13  ;;  %vm770_vm4 = vweird.f32 %v1323_v40 }
  0x73   : > { %v789_v29 = vand.u32 2147483647, %v1325_v56  ;;  %v1347_v24 = vadd.f32 1.0, %v980_v57  ;;  %v762_v48 = vor.u32 1.1754944e-38, %v761_v19  ;;  %vm785_vm5 = vweird.f32 %v1325_v56 }
  0x74   : > { %v1333_v21 = vpop.eup %981  ;;  %vm1354_vm7 = vcmp.eq.f32.partialorder %v744_v14, 8.507059e+37  ;;  %vm1358_vm8 = vcmp.eq.f32.partialorder %v759_v58, 8.507059e+37  ;;  %v791_v17 = vand.u32 2147483648, %v1325_v56  ;;  %991 = vrcp.f32 %v1330_v20 }
  0x75   : > { %v1340_v27 = vpop.eup %983  ;;  %v736_v33 = vmul.f32 %v1333_v21, %v727_v15  ;;  %vm741_vm6 = vweird.f32 %v1333_v21  ;;  %vm1366_vm9 = vcmp.eq.f32.partialorder %v774_v26, 8.507059e+37  ;;  %v777_v51 = vor.u32 1.1754944e-38, %v776_v23 }
  0x76   : > { %v751_v42 = vmul.f32 %v1340_v27, %v728_v4  ;;  %v1351_v1 = vpop.eup %985  ;;  %vm800_vm10 = vweird.f32 %v1327_v7  ;;  %vm756_vm11 = vweird.f32 %v1340_v27  ;;  %vm1373_vm12 = vcmp.eq.f32.partialorder %v789_v29, 8.507059e+37  ;;  %vm1385_vm14 = vmor %vm740_vm2, %vm741_vm6 }
  0x77   : > { %v737_v59 = vsub.f32 1.0, %v736_v33  ;;  %v766_v25 = vmul.f32 %v1351_v1, %v1323_v40  ;;  %v988_v53 = vpop.eup %987  ;;  %v804_v32 = vand.u32 2147483647, %v1327_v7  ;;  %vm771_vm13 = vweird.f32 %v1351_v1  ;;  %vm1393_vm15 = vmor %vm755_vm3, %vm756_vm11 }
  0x78   : > { %v752_v18 = vsub.f32 1.0, %v751_v42  ;;  %v990_v2 = vpop.eup %989  ;;  %v781_v35 = vmul.f32 %v988_v53, %v1325_v56  ;;  %v792_v60 = vor.u32 1.1754944e-38, %v791_v17  ;;  %v806_v63 = vand.u32 2147483648, %v1327_v7  ;;  %vm1400_vm1 = vmor %vm770_vm4, %vm771_vm13 }
  0x79   : > { %v738_v54 = vmul.f32 %v1333_v21, %v737_v59  ;;  %v767_v34 = vsub.f32 1.0, %v766_v25  ;;  %v796_v62 = vmul.f32 %v990_v2, %v1327_v7  ;;  %vm786_vm0 = vweird.f32 %v988_v53 }
  0x7a   : > { %v753_v3 = vmul.f32 %v1340_v27, %v752_v18  ;;  %v782_v37 = vsub.f32 1.0, %v781_v35  ;;  %v992_v38 = vpop.eup %991  ;;  %vm801_vm2 = vweird.f32 %v990_v2  ;;  %v819_v15 = vand.u32 2147483647, %v1330_v20  ;;  %vm1420_vm4 = vmor %vm785_vm5, %vm786_vm0 }
  0x7b   : > { %v739_v39 = vadd.f32 %v1333_v21, %v738_v54  ;;  %v768_v36 = vmul.f32 %v1351_v1, %v767_v34  ;;  %v797_v9 = vsub.f32 1.0, %v796_v62  ;;  %993 = vrcp.f32 %v1342_v28  ;;  %vm1430_vm11 = vmor %vm800_vm10, %vm801_vm2 }
  0x7c   : > { %v754_v0 = vadd.f32 %v1340_v27, %v753_v3  ;;  %v783_v4 = vmul.f32 %v988_v53, %v782_v37  ;;  %vm1407_vm3 = vcmp.eq.f32.partialorder %v804_v32, 8.507059e+37  ;;  %vm815_vm6 = vweird.f32 %v1330_v20 }
  0x7d   : > { %v769_v52 = vadd.f32 %v1351_v1, %v768_v36  ;;  %v743_v40 = vsel %vm1385_vm14, %v1333_v21, %v739_v39  ;;  %v798_v12 = vmul.f32 %v990_v2, %v797_v9  ;;  %v811_v13 = vmul.f32 %v992_v38, %v1330_v20 }
  0x7e   : > { %v758_v41 = vsel %vm1393_vm15, %v1340_v27, %v754_v0  ;;  %v784_v19 = vadd.f32 %v988_v53, %v783_v4  ;;  %v807_v58 = vor.u32 1.1754944e-38, %v806_v63  ;;  %v821_v56 = vand.u32 2147483648, %v1330_v20 }
  0x7f   : > { %v773_v14 = vsel %vm1400_vm1, %v1351_v1, %v769_v52  ;;  %v799_v21 = vadd.f32 %v990_v2, %v798_v12  ;;  %v812_v26 = vsub.f32 1.0, %v811_v13  ;;  %vm816_vm5 = vweird.f32 %v992_v38 }
  0x80   : > { %vm1435_vm13 = vcmp.eq.f32.partialorder %v819_v15, 8.507059e+37  ;;  %v748_v27 = vsel %vm1354_vm7, %v1335_v22, %v743_v40  ;;  %v763_v7 = vsel %vm1358_vm8, %v762_v48, %v758_v41  ;;  %v788_v33 = vsel %vm1420_vm4, %v988_v53, %v784_v19  ;;  %vm1457_vm7 = vmor %vm815_vm6, %vm816_vm5 }
  0x81   : > { %995 = vrcp.f32 %v1347_v24  ;;  %v994_v29 = vpop.eup %993  ;;  %v778_v42 = vsel %vm1366_vm9, %v777_v51, %v773_v14  ;;  %v803_v1 = vsel %vm1430_vm11, %v990_v2, %v799_v21  ;;  %v813_v59 = vmul.f32 %v992_v38, %v812_v26 }
  0x82   : > { %vm830_vm10 = vweird.f32 %v1342_v28  ;;  %v793_v22 = vsel %vm1373_vm12, %v792_v60, %v788_v33  ;;  %v822_v10 = vor.u32 1.1754944e-38, %v821_v56  ;;  %v826_v16 = vmul.f32 %v994_v29, %v1342_v28 }
  0x83   : > { %v836_v17 = vand.u32 2147483648, %v1342_v28  ;;  %v808_v18 = vsel %vm1407_vm3, %v807_v58, %v803_v1  ;;  %v814_v25 = vadd.f32 %v992_v38, %v813_v59  ;;  %v855_v20 = vmul.f32 %v748_v27, %v1299_v30 }
  0x84   : > { %v856_v44 = vmul.f32 %v763_v7, %v1301_v45  ;;  %v827_v51 = vsub.f32 1.0, %v826_v16  ;;  %vm831_vm8 = vweird.f32 %v994_v29  ;;  %v834_v53 = vand.u32 2147483647, %v1342_v28 }
  0x85   : > { %v857_v54 = vmul.f32 %v778_v42, %v1303_v46  ;;  %v818_v55 = vsel %vm1457_vm7, %v992_v38, %v814_v25  ;;  %v858_v32 = vmul.f32 %v793_v22, %v1305_v47  ;;  %vm863_vm9 = vcmask 261120   ;;  %vm1484_vm12 = vmor %vm830_vm10, %vm831_vm8 }
  0x86   : > { %v823_v30 = vsel %vm1435_vm13, %v822_v10, %v818_v55  ;;  %v828_v3 = vmul.f32 %v994_v29, %v827_v51  ;;  %v859_v45 = vmul.f32 %v808_v18, %v1307_v49  ;;  %864 = vst.msk [vmem:[%s1466_s15] sm:$0xff] %vm863_vm9, %v855_v20  ;;  %v837_v34 = vor.u32 1.1754944e-38, %v836_v17 }
  0x87   : > { %v996_v2 = vpop.eup %995  ;;  %v860_v35 = vmul.f32 %v823_v30, %v1309_v50  ;;  %865 = vst.msk [vmem:[%s1466_s15 + $0x8] sm:$0xff] %vm863_vm9, %v856_v44  ;;  %vm835_vm14 = vcmp.eq.f32.partialorder %v834_v53, 8.507059e+37  ;;  %v851_v49 = vand.u32 2147483648, %v1347_v24  ;;  %vm845_vm15 = vweird.f32 %v1347_v24 }
  0x88   : > { %v841_v47 = vmul.f32 %v996_v2, %v1347_v24  ;;  %v829_v39 = vadd.f32 %v994_v29, %v828_v3  ;;  %866 = vst.msk [vmem:[%s1466_s15 + $0x10] sm:$0xff] %vm863_vm9, %v857_v54  ;;  %vm846_vm0 = vweird.f32 %v996_v2  ;;  %v849_v43 = vand.u32 2147483647, %v1347_v24 }
  0x89   : > { %867 = vst.msk [vmem:[%s1466_s15 + $0x18] sm:$0xff] %vm863_vm9, %v858_v32  ;;  %vm847_vm1 = vmor %vm845_vm15, %vm846_vm0  ;;  %v852_v63 = vor.u32 1.1754944e-38, %v851_v49 }
  0x8a   : > { %v842_v28 = vsub.f32 1.0, %v841_v47  ;;  %v833_v50 = vsel %vm1484_vm12, %v994_v29, %v829_v39  ;;  %868 = vst.msk [vmem:[%s1466_s15 + $0x20] sm:$0xff] %vm863_vm9, %v859_v45  ;;  %vm850_vm2 = vcmp.eq.f32.partialorder %v849_v43, 8.507059e+37 }
  0x8b   : > { %v838_v60 = vsel %vm835_vm14, %v837_v34, %v833_v50  ;;  %869 = vst.msk [vmem:[%s1466_s15 + $0x28] sm:$0xff] %vm863_vm9, %v860_v35 }
  0x8c   : > { %v843_v62 = vmul.f32 %v996_v2, %v842_v28  ;;  %v861_v0 = vmul.f32 %v838_v60, %v1312_v61 }
  0x8e   : > { %v844_v31 = vadd.f32 %v996_v2, %v843_v62  ;;  %870 = vst.msk [vmem:[%s1466_s15 + $0x30] sm:$0xff] %vm863_vm9, %v861_v0 }
  0x90   : > { %v848_v24 = vsel %vm847_vm1, %v996_v2, %v844_v31 }
  0x91   : > { %v853_v36 = vsel %vm850_vm2, %v852_v63, %v848_v24 }
  0x92   : > { %v862_v37 = vmul.f32 %v853_v36, %v1317_v11 }
  0x94   : > { %871 = vst.msk [vmem:[%s1466_s15 + $0x38] sm:$0xff] %vm863_vm9, %v862_v37 }
  0x95 PF: > { %s13_s12 = sadd.s32 1, %s1003_s12  }
  0x96   : > { %p10_p4 = scmp.ge.s32.totalorder %s13_s12, 4  }
  0x98   :  { %12 = sbr.rel (!%p10_p4) target bundleno = 1 (0x1), region = 62 }

// kernel: ss2d_forward.7
= control target key start
LH: loop header
LB: loop body
LE: loop exit
PB: predicated region body
PF: predicated region fallthrough
CT: control target
= control target key end

     0   :  { %s840_s9 = smov 0   ;;  %s842_s10 = smov 0   ;;  %s1021_s0 = inlined_call_operand.vmem [shape: bf16[2,2,64,32], index: 0, kind: input, shape index: {}]   ;;  %s1022_s1 = inlined_call_operand.vmem [shape: bf16[2,2,32,64], index: 1, kind: input, shape index: {}]   ;;  %s1023_s2 = inlined_call_operand.vmem [shape: bf16[2,2,2,64,64], index: 2, kind: output, shape index: {}]  }
   0x1   :  { %s844_s11 = smov 0   ;;  %s846_s12 = smov 0  }
   0x2   :  { %s848_s13 = smov 0   ;;  %s850_s14 = smov 0  }
   0x3   :  { %s852_s15 = smov 0   ;;  %s854_s16 = smov 0  }
   0x4   :  { %s856_s17 = smov 0   ;;  %s858_s18 = smov 0  }
   0x5   :  { %s860_s19 = smov 0  }
   0x6 LB: > { %s24_s20 = sadd.s32 1, %s811_s16  ;;  %s27_s21 = sadd.s32 1, %s815_s17  ;;  %s823_s19 = sphi %s860_s19, %s12_s19   ;;  %s819_s18 = sphi %s858_s18, %s1038_s18   ;;  %s815_s17 = sphi %s856_s17, %s1037_s17   ;;  %s811_s16 = sphi %s854_s16, %s1036_s16   ;;  %s807_s15 = sphi %s852_s15, %s1035_s15   ;;  %s803_s14 = sphi %s850_s14, %s1034_s14   ;;  %s799_s13 = sphi %s848_s13, %s1033_s13   ;;  %s795_s12 = sphi %s846_s12, %s1032_s12   ;;  %s791_s11 = sphi %s844_s11, %s1031_s11   ;;  %s787_s10 = sphi %s842_s10, %s1030_s10   ;;  %s783_s9 = sphi %s840_s9, %s1029_s9  }
   0x7   : > { %p25_p0 = scmp.ge.s32.totalorder %s24_s20, 2  ;;  %p75_p1 = scmp.ne.s32.totalorder %s795_s12, %s791_s11 }
   0x8   : > { %p76_p2 = scmp.eq.s32.totalorder %s823_s19, 0  ;;  %s31_s22 = sadd.s32 1, %s819_s18 }
   0x9   : > { %s1040_s20 = smov (%p25_p0, %s24_s20), 0  ;;  %s1042_s21 = smov (!%p25_p0, %s27_s21), %s815_s17 }
   0xa   : > { %p29_p3 = scmp.ge.s32.totalorder %s1042_s21, 2  ;;  %s581_s23 = sadd.s32 4294967295, %s823_s19  }
   0xb   : > { %p905_p4 = por %p76_p2, %p75_p1  ;;  %p108_p5 = scmp.ne.s32.totalorder %s787_s10, %s783_s9 }
   0xc   : > { %s1044_s21 = smov (%p29_p3, %s1042_s21), 0  ;;  %s1046_s22 = smov (!%p29_p3, %s31_s22), %s819_s18 }
   0xd   : > { %p33_p6 = scmp.ge.s32.totalorder %s1046_s22, 2  ;;  %p109_p7 = scmp.eq.s32.totalorder %s581_s23, 7 }
   0xe   : > { %s92_s25 = ssub.s32 %s815_s17, %s1044_s21  ;;  %s94_s26 = ssub.s32 %s811_s16, %s1040_s20 }
   0xf   : > { %s1048_s22 = smov (%p33_p6, %s1046_s22), 0  ;;  %p920_p8 = por %p109_p7, %p108_p5 }
  0x10   : > { %1026 = sst [smem:[#allocation4_spill]] %s1048_s22  ;;  %s65_s28 = ssub.s32 %s819_s18, %s1048_s22 }
  0x11   : > { %s68_s29 = sadd.s32 1, %s795_s12  ;;  %p66_p9 = scmp.eq.s32.totalorder %s65_s28, 0 }
  0x12   : > { %s93_s30 = sor.u32 %s92_s25, %s65_s28  ;;  %s98_s4 = sadd.s32 1, %s787_s10 }
  0x13   : > { %s95_s3 = sor.u32 %s94_s26, %s93_s30  ;;  %p584_p11 = scmp.ge.s32.totalorder %s823_s19, 8 }
  0x14   : > { %s929_s5 = scalar_select %p66_p9, %s795_s12, %s68_s29  }
  0x15   : > { %p96_p10 = scmp.eq.s32.totalorder %s95_s3, 0  ;;  %131 = sbr.rel (%p584_p11) target bundleno = 34 (0x22), region = 16 }
  0x17   : > { %s932_s6 = scalar_select %p96_p10, %s787_s10, %s98_s4  }
  0x1a   : > { %151 = sbr.rel (!%p905_p4) target bundleno = 34 (0x22), region = 24  ;;  %s153_s7 = sand.u32 (%p905_p4), 1, %s795_s12  }
  0x1b   : > { %s638_s8 = sshll.u32 (%p905_p4), %s819_s18, 4  ;;  %s585_s23 = sshll.u32 (%p905_p4), %s153_s7, 5 }
  0x1c   : > { %s158_s26 = scalar_lea.vmem (%p905_p4), %s1022_s1, %s638_s8  ;;  %s155_s28 = scalar_lea.vmem (%p905_p4), [#allocation2], %s585_s23 }
  0x1d   : > { %v175_v0 = vld [vmem:[%s158_s26] sm:$0xff] (%p905_p4)   ;;  %v179_v1 = vld [vmem:[%s158_s26 + $0x8] sm:$0xff] (%p905_p4)  }
  0x1e   : > { %v183_v2 = vld [vmem:[%s158_s26 + $0x20] sm:$0xff] (%p905_p4)   ;;  %176 = vst [vmem:[%s155_s28] sm:$0xff] (%p905_p4), %v175_v0   ;;  %v187_v3 = vld [vmem:[%s158_s26 + $0x28] sm:$0xff] (%p905_p4)  }
  0x1f   : > { %180 = vst [vmem:[%s155_s28 + $0x8] sm:$0xff] %v179_v1  }
  0x20   : > { %184 = vst [vmem:[%s155_s28 + $0x10] sm:$0xff] %v183_v2  }
  0x21   : > { %188 = vst [vmem:[%s155_s28 + $0x18] sm:$0xff] %v187_v3  }
  0x22 PF: > { %p588_p12 = scmp.ge.s32.totalorder %s823_s19, 1  ;;  %p229_p13 = scmp.lt.s32.totalorder %s823_s19, 9 }
  0x24   : > { %p230_p0 = pnand %p588_p12, %p229_p13 }
  0x25   : > { %s236_s22 = sand.u32 (!%p230_p0), 1, %s791_s11   ;;  %s946_s24 = sshll.u32 (!%p230_p0), %s799_s13, 2 }
  0x26   : > { %233 = sbr.rel (%p230_p0) target bundleno = 206 (0xce), region = 65  ;;  %s589_s29 = sshll.u32 (!%p230_p0), %s236_s22, 5 }
  0x27   : > { %p270_p1 = scmp.lt.s32.totalorder (!%p230_p0), %s807_s15, 1  ;;  %p272_p2 = scmp.lt.s32.totalorder (!%p230_p0), %s803_s14, 1 }
  0x28   : > { %s238_s30 = scalar_lea.vmem (!%p230_p0), [#allocation2], %s589_s29  ;;  %p274_p3 = scmp.lt.s32.totalorder (!%p230_p0), %s946_s24, 7 }
  0x29   : > { %s266_s29 = sand.u32 (!%p230_p0), 1, %s783_s9  }
  0x2b   : > { %v642_v4 = vld [vmem:[%s238_s30 + $0x8] sm:$0xff]  ;;  %v644_v5 = vld [vmem:[%s238_s30 + $0x18] sm:$0xff]  ;;  %s271_s3 = scalar_select %p270_p1, %s807_s15, 1  ;;  %v641_v6 = vld [vmem:[%s238_s30] sm:$0xff]  ;;  %vm315_vm0 = vcmask 261120   ;;  %vm345_vm1 = vcmask 519168  }
  0x2c   : > { %s273_s4 = scalar_select %p272_p2, %s803_s14, 1  ;;  %328 = vmatpush.bf16.msra.mxu0 %v642_v4  ;;  %645 = vmatpush.bf16.msra.mxu2 %v642_v4  ;;  %v643_v7 = vld [vmem:[%s238_s30 + $0x10] sm:$0xff] }
  0x2d   : > { %373 = vmatpush.bf16.msra.mxu1 %v644_v5  ;;  %647 = vmatpush.bf16.msra.mxu3 %v644_v5  ;;  %s593_s13 = sshll.u32 %s271_s3, 4  ;;  %s590_s30 = sshll.u32 %s266_s29, 5 }
  0x2e   : > { %s592_s11 = sshll.u32 %s273_s4, 3  ;;  %s958_s3 = scalar_lea.vmem [#allocation3], %s590_s30 }
  0x2f   : > { %s275_s7 = scalar_select %p274_p3, %s946_s24, 7 }
  0x30   : > { %329 = vmatpush.bf16.msra.mxu0 %v641_v6  ;;  %646 = vmatpush.bf16.msra.mxu2 %v641_v6  ;;  %s633_s9 = sshll.u32 (%p920_p8), %s803_s14, 3  ;;  %s634_s4 = sshll.u32 (%p920_p8), %s807_s15, 4 }
  0x31   : > { %s277_s8 = sadd.s32 %s592_s11, %s275_s7  ;;  %374 = vmatpush.bf16.msra.mxu1 %v643_v7  ;;  %648 = vmatpush.bf16.msra.mxu3 %v643_v7  ;;  %s404_s11 = sadd.s32 (%p920_p8), %s633_s9, %s946_s24 }
  0x32   : > { %s279_s23 = sadd.s32 %s593_s13, %s277_s8  ;;  %s406_s13 = sadd.s32 (%p920_p8), %s634_s4, %s404_s11 }
  0x33   : > { %s594_s25 = sshll.u32 %s279_s23, 2  ;;  %s635_s7 = sshll.u32 (%p920_p8), %s406_s13, 2 }
  0x34   : > { %s281_s22 = scalar_lea.vmem %s1021_s0, %s594_s25  ;;  %s408_s25 = scalar_lea.vmem (%p920_p8), %s1023_s2, %s635_s7 }
  0x35   : > { %v639_v8 = vld [vmem:[%s281_s22] sm:$0xff]  ;;  %v640_v9 = vld [vmem:[%s281_s22 + $0x8] sm:$0xff] }
  0x36   : > { %611 = vmatmul.msk.bf16.vlgmr.msra.gmra.mxu0 %vm315_vm0, %v639_v8  ;;  %612 = vmatmul.msk.bf16.vlgmr.msra.gmra.mxu2 %vm315_vm0, %v640_v9 }
  0x37   : > { %625 = vmatmul.msk.bf16.vlgmr.msra.gmra.mxu1 %vm315_vm0, %v639_v8  ;;  %626 = vmatmul.msk.bf16.vlgmr.msra.gmra.mxu3 %vm315_vm0, %v640_v9 }
  0xb3   : > { %v331_v10 = vpop.f32.mrf.mxu0 }
  0xb4   : > { %v341_v11 = vpack.c.bf16 %v331_v10, %v331_v10  ;;  %v376_v12 = vpop.f32.mrf.mxu1 }
  0xb5   : > { %v386_v13 = vpack.c.bf16 %v376_v12, %v376_v12 }
  0xb6   : > { %346 = vst.msk [vmem:[%s958_s3] sm:$0xf] %vm345_vm1, %v341_v11 }
  0xb7   : > { %627 = vst.msk [vmem:[%s958_s3 + $0x10] sm:$0xf] %vm345_vm1, %v386_v13 }
  0xb9   : > { %v336_v14 = vpop.f32.mrf.mxu2 }
  0xba   : > { %v343_v15 = vpack.c.bf16 %v336_v14, %v336_v14  ;;  %v381_v16 = vpop.f32.mrf.mxu3 }
  0xbb   : > { %v388_v17 = vpack.c.bf16 %v381_v16, %v381_v16  ;;  %v333_v18 = vpop.f32.mrf.mxu0 }
  0xbc   : > { %348 = vst.msk [vmem:[%s958_s3 + $0x8] sm:$0xf] %vm345_vm1, %v343_v15  ;;  %v342_v19 = vpack.c.bf16 %v333_v18, %v333_v18  ;;  %v378_v20 = vpop.f32.mrf.mxu1 }
  0xbd   : > { %629 = vst.msk [vmem:[%s958_s3 + $0x18] sm:$0xf] %vm345_vm1, %v388_v17  ;;  %v387_v21 = vpack.c.bf16 %v378_v20, %v378_v20 }
  0xbe   : > { %347 = vst.msk [vmem:[%s958_s3 + $0x4] sm:$0xf] %vm345_vm1, %v342_v19 }
  0xbf   : > { %628 = vst.msk [vmem:[%s958_s3 + $0x14] sm:$0xf] %vm345_vm1, %v387_v21 }
  0xc1   : > { %v338_v22 = vpop.f32.mrf.mxu2  ;;  %401 = sbr.rel (!%p920_p8) target bundleno = 206 (0xce), region = 73 }
  0xc2   : > { %v344_v23 = vpack.c.bf16 %v338_v22, %v338_v22  ;;  %v383_v24 = vpop.f32.mrf.mxu3 }
  0xc3   : > { %v389_v25 = vpack.c.bf16 %v383_v24, %v383_v24 }
  0xc4   : > { %349 = vst.msk [vmem:[%s958_s3 + $0xc] sm:$0xf] %vm345_vm1, %v344_v23 }
  0xc5   : > { %630 = vst.msk [vmem:[%s958_s3 + $0x1c] sm:$0xf] %vm345_vm1, %v389_v25  ;;  %v425_v26 = vld [vmem:[%s958_s3] sm:$0xff] (%p920_p8)  }
  0xc6   : > { %v433_v28 = vld [vmem:[%s958_s3 + $0x10] sm:$0xff]   ;;  %426 = vst [vmem:[%s408_s25] sm:$0xff] %v425_v26  }
  0xc7   : > { %434 = vst [vmem:[%s408_s25 + $0x80] sm:$0xff] %v433_v28  }
  0xcb   : > { %v429_v27 = vld [vmem:[%s958_s3 + $0x8] sm:$0xff]  }
  0xcc   : > { %v437_v29 = vld [vmem:[%s958_s3 + $0x18] sm:$0xff]   ;;  %430 = vst [vmem:[%s408_s25 + $0x8] sm:$0xff] %v429_v27  }
  0xcd   : > { %438 = vst [vmem:[%s408_s25 + $0x88] sm:$0xff] %v437_v29  }
  0xce PF: > { %s12_s19 = sadd.s32 1, %s823_s19   ;;  %s1028_s27 = sld [smem:[#allocation4_spill]] }
  0xcf   : > { %p9_p4 = scmp.ge.s32.totalorder %s12_s19, 10   ;;  %s1029_s9 = smov %s787_s10 }
  0xd0   : > { %s1030_s10 = smov %s932_s6  ;;  %s1031_s11 = smov %s795_s12 }
  0xd1   : > { %s1032_s12 = smov %s929_s5  ;;  %s1033_s13 = smov %s811_s16 }
  0xd2   : > { %s1034_s14 = smov %s815_s17  ;;  %s1035_s15 = smov %s819_s18 }
  0xd3   : > { %s1036_s16 = smov %s1040_s20  ;;  %s1037_s17 = smov %s1044_s21 }
  0xd4   : > { %s1038_s18 = smov %s1028_s27  ;;  %11 = sbr.rel (!%p9_p4) target bundleno = 6 (0x6), region = 150 }

// kernel: ss2d_forward.9
= control target key start
LH: loop header
LB: loop body
LE: loop exit
PB: predicated region body
PF: predicated region fallthrough
CT: control target
= control target key end

     0   :  { %10 = vsyncpa [#allocation3], 0  ;;  %s1573_s0 = inlined_call_operand.vmem [shape: f32[128,32], index: 0, kind: input, shape index: {}]   ;;  %s1574_s1 = inlined_call_operand.vmem [shape: f32[128,32], index: 1, kind: input, shape index: {}]   ;;  %s1575_s2 = inlined_call_operand.vmem [shape: f32[1,32], index: 2, kind: input, shape index: {}]   ;;  %s1576_s3 = inlined_call_operand.vmem [shape: f32[1,32], index: 3, kind: input, shape index: {}]   ;;  %s1577_s4 = inlined_call_operand.vmem [shape: bf16[32,16], index: 4, kind: input, shape index: {}]   ;;  %s1578_s5 = inlined_call_operand.hbm [shape: f32[128,16], index: 5, kind: output, shape index: {}]  }
   0x1   :  { %12 = vsyncpa [#allocation3 + $0x1], 0  ;;  %s1035_s18 = smov 0   ;;  %s1037_s19 = smov 0  }
   0x2   :  { %s1039_s20 = smov 0   ;;  %s1041_s21 = smov 0  }
   0x3 LB: > { %s1056_s22 = sadd.s32 4294967295, %s1000_s21   ;;  %s801_s23 = sadd.s32 4294967294, %s1000_s21   ;;  %s1000_s21 = sphi %s1041_s21, %s1606_s21   ;;  %s996_s20 = sphi %s1039_s20, %s1605_s20   ;;  %s992_s19 = sphi %s1037_s19, %s1604_s19   ;;  %s988_s18 = sphi %s1035_s18, %s1603_s18  }
   0x4   : > { %s1060_s24 = sadd.s32 1, %s1000_s21   ;;  %s140_s25 = sadd.s32 1, %s996_s20 }
   0x5   : > { %s137_s26 = ssub.s32 %s1000_s21, %s1060_s24  ;;  %p150_p0 = scmp.ne.s32.totalorder %s996_s20, %s992_s19 }
   0x6   : > { %p138_p1 = scmp.eq.s32.totalorder %s137_s26, 0  ;;  %p151_p2 = scmp.eq.s32.totalorder %s1056_s22, 1 }
   0x7   : > { %p156_p3 = scmp.ne.s32.totalorder %s992_s19, %s988_s18  ;;  %p157_p4 = scmp.eq.s32.totalorder %s801_s23, 1 }
   0x8   : > { %s1071_s27 = scalar_select %p138_p1, %s996_s20, %s140_s25  }
   0x9   : > { %p1073_p5 = por %p151_p2, %p150_p0  ;;  %p1077_p6 = por %p157_p4, %p156_p3 }
   0xa   : > { %p804_p7 = scmp.ge.s32.totalorder %s1000_s21, 1  ;;  %p202_p8 = scmp.lt.s32.totalorder %s1000_s21, 3 }
   0xc   : > { %p203_p9 = pnand %p804_p7, %p202_p8 }
   0xd   : > { %s806_s30 = sshll.u32 (!%p203_p9), %s1056_s22, 3  ;;  %s837_s8 = sshll.u32 (!%p203_p9), %s1056_s22, 6 }
   0xe   : > { %206 = sbr.rel (%p203_p9) target bundleno = 473 (0x1d9), region = 40  ;;  %p236_p10 = scmp.lt.s32.totalorder (!%p203_p9), %s806_s30, 15 }
   0xf   : > { %s723_s11 = scalar_lea.hbm (!%p203_p9), %s1578_s5, %s837_s8  ;;  %s958_s23 = scalar_lea.hbm (!%p203_p9), %s1578_s5, 128 }
  0x10   : > { %s726_s13 = sshll.u32 (!%p203_p9), %s723_s11, 4  ;;  %s727_s13 = int_to_ptr.hbm [resolvable:$true] %s726_s13 }
  0x11   : > { %s952_s15 = sshra.s32 (!%p203_p9), %s727_s13, 4  ;;  %s953_s15 = int_to_ptr.hbm [resolvable:$true] %s952_s15 }
  0x12   : > { %s954_s16 = scalar_lea.hbm (!%p203_p9), %s953_s15, 64  ;;  %p959_p0 = scmp.lt.s32.totalorder (!%p203_p9), %s953_s15, %s1578_s5 }
  0x13   : > { %s1608_s30 = smov (!%p236_p10, %s806_s30), 15  ;;  %vm257_vm0 = vcmask 261120   ;;  %v1002_v16 = vmov 32.0   ;;  %p955_p11 = scmp.ne.s32.totalorder %s953_s15, %s954_s16 }
  0x14   : > { %s807_s6 = sshll.u32 %s1608_s30, 3  ;;  %888 = vrcp.f32 %v1002_v16  ;;  %s232_s30 = sand.u32 1, %s992_s19  }
  0x15   : > { %s239_s9 = scalar_lea.vmem %s1573_s0, %s807_s6  ;;  %s1155_s12 = scalar_lea.vmem %s1574_s1, %s807_s6 }
  0x16   : > { %v255_v0 = vld [vmem:[%s239_s9 + $0x30] sm:$0xff]  ;;  %v253_v1 = vld [vmem:[%s239_s9 + $0x20] sm:$0xff]  ;;  %v256_v6 = vld [vmem:[%s239_s9 + $0x38] sm:$0xff]  ;;  %s805_s6 = sshll.u32 %s232_s30, 6  ;;  %s712_s14 = scalar_lea.sflag [#allocation3], %s232_s30 }
  0x17   : > { %v249_v2 = vld [vmem:[%s239_s9] sm:$0xff]  ;;  %v276_v3 = vsel %vm257_vm0, %v255_v0, 0.0  ;;  %v270_v4 = vsel %vm257_vm0, %v253_v1, 0.0  ;;  %v254_v7 = vld [vmem:[%s239_s9 + $0x28] sm:$0xff]  ;;  %v279_v9 = vsel %vm257_vm0, %v256_v6, 0.0  ;;  %v251_v12 = vld [vmem:[%s239_s9 + $0x10] sm:$0xff]  ;;  %p956_p12 = pnand %p955_p11, %p1073_p5  ;;  %p960_p1 = scmp.lt.s32.totalorder %s958_s23, %s954_s16 }
  0x18   : > { %v258_v5 = vsel %vm257_vm0, %v249_v2, 0.0  ;;  %277 = vadd.xlane.f32.xlu1 %v276_v3  ;;  %271 = vadd.xlane.f32.xlu0 %v270_v4  ;;  %v250_v8 = vld [vmem:[%s239_s9 + $0x8] sm:$0xff]  ;;  %v273_v10 = vsel %vm257_vm0, %v254_v7, 0.0  ;;  %v252_v13 = vld [vmem:[%s239_s9 + $0x18] sm:$0xff]  ;;  %v264_v14 = vsel %vm257_vm0, %v251_v12, 0.0  ;;  %v1158_v63 = vld [vmem:[%s1155_s12 + $0x20] sm:$0xff] }
  0x19   : > { %259 = vadd.xlane.f32.xlu2 %v258_v5  ;;  %v261_v11 = vsel %vm257_vm0, %v250_v8, 0.0  ;;  %v267_v15 = vsel %vm257_vm0, %v252_v13, 0.0  ;;  %v1166_v3 = vld [vmem:[%s1155_s12 + $0x28] sm:$0xff]  ;;  %v1169_v4 = vld [vmem:[%s1155_s12 + $0x38] sm:$0xff]  ;;  %s234_s7 = scalar_lea.vmem [#allocation2], %s805_s6  ;;  %p957_p13 = pneg %p956_p12 }
  0x1a   : > { %v889_v17 = vpop.eup %888  ;;  %p961_p2 = por %p960_p1, %p959_p0 }
  0x1b   : > { %v283_v18 = vmul.f32 32.0, %v889_v17  ;;  %vm287_vm1 = vweird.f32 %v889_v17 }
  0x1c   : > { %p962_p3 = pnand %p961_p2, %p957_p13 }
  0x1d   : > { %v284_v19 = vsub.f32 1.0, %v283_v18  ;;  %v1183_v18 = vld [vmem:[%s1155_s12] sm:$0xff] }
  0x1f   : > { %v285_v20 = vmul.f32 %v889_v17, %v284_v19 }
  0x20   : > { %280 = vadd.xlane.f32.xlu1 %v279_v9  ;;  %274 = vadd.xlane.f32.xlu0 %v273_v10 }
  0x21   : > { %262 = vadd.xlane.f32.xlu2 %v261_v11  ;;  %v286_v21 = vadd.f32 %v889_v17, %v285_v20  ;;  %v1176_v11 = vld [vmem:[%s1155_s12 + $0x8] sm:$0xff] }
  0x23   : > { %v1100_v22 = vsel %vm287_vm1, %v889_v17, %v286_v21 }
  0x28   : > { %265 = vadd.xlane.f32.xlu0 %v264_v14  ;;  %268 = vadd.xlane.f32.xlu1 %v267_v15 }
  0x8b   : > { %v278_v23 = vpop.xlane.xlu1 %277  ;;  %v272_v24 = vpop.xlane.xlu0 %271 }
  0x8c   : > { %v295_v25 = vmul.f32 %v1100_v22, %v278_v23  ;;  %v293_v26 = vmul.f32 %v1100_v22, %v272_v24  ;;  %v260_v27 = vpop.xlane.xlu2 %259  ;;  %v1193_v24 = vld [vmem:[%s1155_s12 + $0x10] sm:$0xff] }
  0x8d   : > { %v289_v36 = vmul.f32 %v1100_v22, %v260_v27 }
  0x8e   : > { %v1104_v28 = vsub.f32 %v255_v0, %v295_v25  ;;  %v1106_v29 = vsub.f32 %v253_v1, %v293_v26  ;;  %v1161_v0 = vld [vmem:[%s1155_s12 + $0x30] sm:$0xff]  ;;  %v814_v1 = vmul.f32 -1.442695, %v1158_v63  ;;  %v810_v25 = vmul.f32 -1.442695, %v1183_v18 }
  0x8f   : > { %v1124_v44 = vsub.f32 %v249_v2, %v289_v36  ;;  %v816_v2 = vmul.f32 -1.442695, %v1161_v0 }
  0x90   : > { %v311_v30 = vmul.f32 %v1104_v28, %v1104_v28  ;;  %v309_v31 = vmul.f32 %v1106_v29, %v1106_v29  ;;  %890 = vpow2.f32 %v814_v1 }
  0x91   : > { %v305_v55 = vmul.f32 %v1124_v44, %v1124_v44  ;;  %892 = vpow2.f32 %v816_v2 }
  0x92   : > { %v331_v32 = vsel %vm257_vm0, %v311_v30, 0.0  ;;  %v325_v33 = vsel %vm257_vm0, %v309_v31, 0.0  ;;  %v812_v30 = vmul.f32 -1.442695, %v1193_v24 }
  0x93   : > { %v281_v34 = vpop.xlane.xlu1 %280  ;;  %v275_v35 = vpop.xlane.xlu0 %274  ;;  %332 = vadd.xlane.f32.xlu1 %v331_v32  ;;  %326 = vadd.xlane.f32.xlu2 %v325_v33  ;;  %v313_v59 = vsel %vm257_vm0, %v305_v55, 0.0 }
  0x94   : > { %v296_v37 = vmul.f32 %v1100_v22, %v281_v34  ;;  %v294_v38 = vmul.f32 %v1100_v22, %v275_v35  ;;  %v263_v39 = vpop.xlane.xlu2 %262 }
  0x95   : > { %v290_v40 = vmul.f32 %v1100_v22, %v263_v39 }
  0x96   : > { %v1118_v41 = vsub.f32 %v256_v6, %v296_v37  ;;  %v1120_v42 = vsub.f32 %v254_v7, %v294_v38  ;;  %v891_v5 = vpop.eup %890  ;;  %v815_v6 = vmul.f32 -1.442695, %v1166_v3  ;;  %v817_v7 = vmul.f32 -1.442695, %v1169_v4 }
  0x97   : > { %v1122_v43 = vsub.f32 %v250_v8, %v290_v40  ;;  %v893_v8 = vpop.eup %892  ;;  %v509_v9 = vadd.f32 1.0, %v891_v5 }
  0x98   : > { %v310_v45 = vmul.f32 %v1120_v42, %v1120_v42  ;;  %v312_v46 = vmul.f32 %v1118_v41, %v1118_v41  ;;  %894 = vpow2.f32 %v815_v6  ;;  %v1173_v10 = vadd.f32 1.0, %v893_v8 }
  0x99   : > { %v306_v47 = vmul.f32 %v1122_v43, %v1122_v43  ;;  %896 = vrcp.f32 %v509_v9  ;;  %vm578_vm2 = vweird.f32 %v509_v9  ;;  %v584_v31 = vand.u32 2147483648, %v509_v9 }
  0x9a   : > { %v328_v48 = vsel %vm257_vm0, %v310_v45, 0.0  ;;  %v334_v49 = vsel %vm257_vm0, %v312_v46, 0.0  ;;  %898 = vpow2.f32 %v817_v7  ;;  %v582_v35 = vand.u32 2147483647, %v509_v9 }
  0x9b   : > { %329 = vadd.xlane.f32.xlu0 %v328_v48  ;;  %v266_v50 = vpop.xlane.xlu0 %265  ;;  %335 = vadd.xlane.f32.xlu2 %v334_v49  ;;  %v316_v51 = vsel %vm257_vm0, %v306_v47, 0.0  ;;  %v269_v52 = vpop.xlane.xlu1 %268  ;;  %900 = vrcp.f32 %v1173_v10  ;;  %v585_v48 = vor.u32 1.1754944e-38, %v584_v31  ;;  %vm608_vm6 = vweird.f32 %v1173_v10 }
  0x9c   : > { %v291_v53 = vmul.f32 %v1100_v22, %v266_v50  ;;  %317 = vadd.xlane.f32.xlu1 %v316_v51  ;;  %v292_v54 = vmul.f32 %v1100_v22, %v269_v52  ;;  %vm583_vm5 = vcmp.eq.f32.partialorder %v582_v35, 8.507059e+37 }
  0x9e   : > { %v1139_v56 = vsub.f32 %v251_v12, %v291_v53  ;;  %v1141_v57 = vsub.f32 %v252_v13, %v292_v54  ;;  %v811_v12 = vmul.f32 -1.442695, %v1176_v11  ;;  %v895_v13 = vpop.eup %894 }
  0x9f   : > { %v897_v14 = vpop.eup %896  ;;  %v1180_v15 = vadd.f32 1.0, %v895_v13 }
  0xa0   : > { %v307_v58 = vmul.f32 %v1139_v56, %v1139_v56  ;;  %v308_v61 = vmul.f32 %v1141_v57, %v1141_v57  ;;  %902 = vpow2.f32 %v811_v12  ;;  %v899_v16 = vpop.eup %898  ;;  %v574_v17 = vmul.f32 %v897_v14, %v509_v9 }
  0xa1   : > { %v1185_v19 = vpop.eup %900  ;;  %904 = vrcp.f32 %v1180_v15  ;;  %v1188_v20 = vadd.f32 1.0, %v899_v16  ;;  %vm579_vm3 = vweird.f32 %v897_v14  ;;  %vm593_vm8 = vweird.f32 %v1180_v15 }
  0xa2   : > { %v319_v60 = vsel %vm257_vm0, %v307_v58, 0.0  ;;  %v322_v62 = vsel %vm257_vm0, %v308_v61, 0.0  ;;  %v575_v21 = vsub.f32 1.0, %v574_v17  ;;  %v604_v23 = vmul.f32 %v1185_v19, %v1173_v10  ;;  %vm1200_vm4 = vmor %vm578_vm2, %vm579_vm3  ;;  %v836_v61 = vld [vmem:[%s1577_s4 + $0x8] sm:$0xff] }
  0xa3   : > { %320 = vadd.xlane.f32.xlu2 %v319_v60  ;;  %314 = vadd.xlane.f32.xlu0 %v313_v59  ;;  %906 = vrcp.f32 %v1188_v20  ;;  %v612_v58 = vand.u32 2147483647, %v1173_v10  ;;  %vm609_vm7 = vweird.f32 %v1185_v19  ;;  %v599_v12 = vand.u32 2147483648, %v1180_v15 }
  0xa4   : > { %v576_v26 = vmul.f32 %v897_v14, %v575_v21  ;;  %v605_v32 = vsub.f32 1.0, %v604_v23  ;;  %908 = vpow2.f32 %v810_v25  ;;  %839 = vmatpush.bf16.msra.mxu2 %v836_v61  ;;  %840 = vmatpush.bf16.msra.mxu3 %v836_v61  ;;  %v835_v23 = vld [vmem:[%s1577_s4] sm:$0xff]  ;;  %vm1257_vm11 = vmor %vm608_vm6, %vm609_vm7  ;;  %vm623_vm12 = vweird.f32 %v1188_v20 }
  0xa5   : > { %910 = vpow2.f32 %v812_v30  ;;  %vm1242_vm10 = vcmp.eq.f32.partialorder %v612_v58, 8.507059e+37  ;;  %679 = vmatpush.bf16.msra.mxu0 %v836_v61  ;;  %838 = vmatpush.bf16.msra.mxu1 %v836_v61  ;;  %v627_v38 = vand.u32 2147483647, %v1188_v20 }
  0xa6   : > { %v903_v27 = vpop.eup %902  ;;  %v577_v34 = vadd.f32 %v897_v14, %v576_v26  ;;  %v606_v50 = vmul.f32 %v1185_v19, %v605_v32  ;;  %v629_v32 = vand.u32 2147483648, %v1188_v20 }
  0xa7   : > { %v1198_v33 = vpop.eup %904  ;;  %v1206_v40 = vadd.f32 1.0, %v903_v27  ;;  %vm628_vm2 = vcmp.eq.f32.partialorder %v627_v38, 8.507059e+37 }
  0xa8   : > { %v589_v39 = vmul.f32 %v1198_v33, %v1180_v15  ;;  %v581_v54 = vsel %vm1200_vm4, %v897_v14, %v577_v34  ;;  %vm594_vm9 = vweird.f32 %v1198_v33  ;;  %v607_v5 = vadd.f32 %v1185_v19, %v606_v50  ;;  %842 = vmatpush.bf16.msra.mxu2 %v835_v23  ;;  %843 = vmatpush.bf16.msra.mxu3 %v835_v23 }
  0xa9   : > { %v1208_v45 = vpop.eup %906  ;;  %912 = vrcp.f32 %v1206_v40  ;;  %v1230_v1 = vsel %vm583_vm5, %v585_v48, %v581_v54  ;;  %vm1270_vm14 = vmor %vm593_vm8, %vm594_vm9  ;;  %680 = vmatpush.bf16.msra.mxu0 %v835_v23  ;;  %841 = vmatpush.bf16.msra.mxu1 %v835_v23  ;;  %v600_v50 = vor.u32 1.1754944e-38, %v599_v12  ;;  %v630_v54 = vor.u32 1.1754944e-38, %v629_v32 }
  0xaa   : > { %v590_v49 = vsub.f32 1.0, %v589_v39  ;;  %v619_v51 = vmul.f32 %v1208_v45, %v1188_v20  ;;  %v909_v60 = vpop.eup %908  ;;  %vm624_vm13 = vweird.f32 %v1208_v45 }
  0xab   : > { %323 = vadd.xlane.f32.xlu0 %v322_v62  ;;  %v614_v62 = vand.u32 2147483648, %v1173_v10  ;;  %v1234_v2 = vpop.eup %910  ;;  %v1246_v14 = vadd.f32 1.0, %v909_v60  ;;  %v597_v10 = vand.u32 2147483647, %v1180_v15  ;;  %vm1297_vm15 = vmor %vm623_vm12, %vm624_vm13 }
  0xac   : > { %v591_v55 = vmul.f32 %v1198_v33, %v590_v49  ;;  %v620_v59 = vsub.f32 1.0, %v619_v51 }
  0xad   : > { %v615_v31 = vor.u32 1.1754944e-38, %v614_v62  ;;  %vm1310_vm1 = vcmp.eq.f32.partialorder %v597_v10, 8.507059e+37  ;;  %v522_v30 = vand.u32 2147483647, %v1246_v14  ;;  %v524_v38 = vand.u32 2147483648, %v1246_v14 }
  0xae   : > { %v621_v6 = vmul.f32 %v1208_v45, %v620_v59  ;;  %v592_v9 = vadd.f32 %v1198_v33, %v591_v55  ;;  %vm518_vm13 = vweird.f32 %v1246_v14 }
  0xaf   : > { %v1263_v26 = vpop.eup %912 }
  0xb0   : > { %v1326_v62 = vmul.f32 %v1263_v26, %v1206_v40 }
  0xb2   : > { %v530_v48 = vsub.f32 1.0, %v1326_v62 }
 0x106   : > { %v333_v36 = vpop.xlane.xlu1 %332  ;;  %v327_v37 = vpop.xlane.xlu2 %326 }
 0x107   : > { %v343_v46 = vmul.f32 %v333_v36, %v1100_v22  ;;  %v341_v47 = vmul.f32 %v327_v37, %v1100_v22  ;;  %v622_v37 = vadd.f32 %v1208_v45, %v621_v6 }
 0x109   : > { %v1215_v52 = vadd.f32 1e-05, %v343_v46  ;;  %v1217_v53 = vadd.f32 1e-05, %v341_v47  ;;  %v611_v47 = vsel %vm1257_vm11, %v1185_v19, %v607_v5  ;;  %v596_v19 = vsel %vm1270_vm14, %v1198_v33, %v592_v9 }
 0x10a   : > { %v626_v58 = vsel %vm1297_vm15, %v1208_v45, %v622_v37  ;;  %v1322_v61 = vsel %vm1242_vm10, %v615_v31, %v611_v47  ;;  %v1336_v9 = vsel %vm1310_vm1, %v600_v50, %v596_v19  ;;  %v1361_v31 = vld [vmem:[%s1575_s2] ss:$0 sm:$0xff]  ;;  %vm533_vm1 = vweird.f32 %v1206_v40 }
 0x10b   : > { %914 = vrsqrt.f32 %v1215_v52  ;;  %vm419_vm3 = vweird.f32 %v1215_v52  ;;  %vm399_vm4 = vweird.f32 %v1217_v53  ;;  %v1338_v12 = vsel %vm628_vm2, %v630_v54, %v626_v58 }
 0x10c   : > { %916 = vrsqrt.f32 %v1217_v53 }
 0x10d   : > { %918 = vrcp.f32 %v1246_v14 }
 0x10e   : > { %v330_v7 = vpop.xlane.xlu0 %329  ;;  %v336_v8 = vpop.xlane.xlu2 %335 }
 0x10f   : > { %v342_v16 = vmul.f32 %v330_v7, %v1100_v22  ;;  %v318_v17 = vpop.xlane.xlu1 %317  ;;  %v344_v21 = vmul.f32 %v336_v8, %v1100_v22 }
 0x110   : > { %v338_v27 = vmul.f32 %v318_v17, %v1100_v22 }
 0x111   : > { %v1276_v34 = vpop.eup %914  ;;  %v1278_v35 = vadd.f32 1e-05, %v342_v16  ;;  %v1280_v36 = vadd.f32 1e-05, %v344_v21 }
 0x112   : > { %v1284_v39 = vpop.eup %916  ;;  %v414_v15 = vmul.f32 %v1276_v34, %v1215_v52  ;;  %v1288_v46 = vadd.f32 1e-05, %v338_v27  ;;  %vm420_vm5 = vweird.f32 %v1276_v34 }
 0x113   : > { %v394_v49 = vmul.f32 %v1284_v39, %v1217_v53  ;;  %920 = vrsqrt.f32 %v1278_v35  ;;  %v1331_v7 = vpop.eup %918  ;;  %vm400_vm6 = vweird.f32 %v1284_v39  ;;  %vm409_vm8 = vweird.f32 %v1278_v35  ;;  %vm421_vm10 = vmor %vm419_vm3, %vm420_vm5 }
 0x114   : > { %v415_v20 = vmul.f32 %v1276_v34, %v414_v15  ;;  %922 = vrsqrt.f32 %v1288_v46  ;;  %vm369_vm7 = vweird.f32 %v1288_v46  ;;  %vm429_vm9 = vweird.f32 %v1280_v36  ;;  %vm401_vm11 = vmor %vm399_vm4, %vm400_vm6 }
 0x115   : > { %v395_v55 = vmul.f32 %v1284_v39, %v394_v49  ;;  %924 = vrsqrt.f32 %v1280_v36  ;;  %vm519_vm15 = vweird.f32 %v1331_v7  ;;  %vm1445_vm6 = vcmp.eq.f32.partialorder %v522_v30, 8.507059e+37 }
 0x116   : > { %v416_v33 = vmul.f32 0.5, %v415_v20  ;;  %v315_v59 = vpop.xlane.xlu0 %314  ;;  %v321_v60 = vpop.xlane.xlu2 %320 }
 0x117   : > { %v396_v5 = vmul.f32 0.5, %v395_v55  ;;  %v337_v6 = vmul.f32 %v315_v59, %v1100_v22  ;;  %v339_v45 = vmul.f32 %v321_v60, %v1100_v22 }
 0x118   : > { %v417_v8 = vsub.f32 1.5, %v416_v33 }
 0x119   : > { %v1340_v13 = vpop.eup %920  ;;  %v397_v16 = vsub.f32 1.5, %v396_v5  ;;  %v1344_v17 = vadd.f32 1e-05, %v337_v6  ;;  %v1353_v27 = vadd.f32 1e-05, %v339_v45 }
 0x11a   : > { %v1346_v21 = vpop.eup %922  ;;  %v418_v23 = vmul.f32 %v1276_v34, %v417_v8  ;;  %v404_v25 = vmul.f32 %v1340_v13, %v1278_v35  ;;  %vm410_vm14 = vweird.f32 %v1340_v13 }
 0x11b   : > { %v1356_v10 = vpop.eup %924  ;;  %v398_v32 = vmul.f32 %v1284_v39, %v397_v16  ;;  %v364_v37 = vmul.f32 %v1346_v21, %v1288_v46  ;;  %926 = vrsqrt.f32 %v1344_v17  ;;  %vm370_vm12 = vweird.f32 %v1346_v21  ;;  %vm411_vm4 = vmor %vm409_vm8, %vm410_vm14 }
 0x11c   : > { %v422_v15 = vsel %vm421_vm10, %v1276_v34, %v418_v23  ;;  %v405_v47 = vmul.f32 %v1340_v13, %v404_v25  ;;  %v424_v52 = vmul.f32 %v1356_v10, %v1280_v36  ;;  %v514_v34 = vmul.f32 %v1331_v7, %v1246_v14  ;;  %vm1409_vm2 = vmor %vm369_vm7, %vm370_vm12 }
 0x11d   : > { %v439_v49 = vmul.f32 %v422_v15, %v1104_v28  ;;  %v402_v19 = vsel %vm401_vm11, %v1284_v39, %v398_v32  ;;  %v365_v50 = vmul.f32 %v1346_v21, %v364_v37  ;;  %928 = vrsqrt.f32 %v1353_v27  ;;  %v1395_v39 = vld [vmem:[%s1576_s3] ss:$0 sm:$0xff]  ;;  %vm1464_vm10 = vmor %vm518_vm13, %vm519_vm15 }
 0x11e   : > { %v437_v20 = vmul.f32 %v402_v19, %v1106_v29  ;;  %v406_v53 = vmul.f32 0.5, %v405_v47  ;;  %v425_v51 = vmul.f32 %v1356_v10, %v424_v52  ;;  %v324_v54 = vpop.xlane.xlu0 %323  ;;  %v515_v6 = vsub.f32 1.0, %v514_v34 }
 0x11f   : > { %v451_v55 = vmul.f32 %v1361_v31, %v439_v49  ;;  %v366_v58 = vmul.f32 0.5, %v365_v50  ;;  %v340_v28 = vmul.f32 %v324_v54, %v1100_v22  ;;  %vm430_vm3 = vweird.f32 %v1356_v10 }
 0x120   : > { %v449_v29 = vmul.f32 %v1361_v31, %v437_v20  ;;  %v407_v33 = vsub.f32 1.5, %v406_v53  ;;  %v426_v59 = vmul.f32 0.5, %v425_v51  ;;  %v1420_v32 = vor.u32 1.1754944e-38, %v524_v38  ;;  %vm431_vm5 = vmor %vm429_vm9, %vm430_vm3 }
 0x121   : > { %v927_v60 = vpop.eup %926  ;;  %v367_v62 = vsub.f32 1.5, %v366_v58  ;;  %v1400_v5 = vadd.f32 1e-05, %v340_v28  ;;  %v463_v25 = vadd.f32 %v1395_v39, %v451_v55  ;;  %v531_v19 = vmul.f32 %v1263_v26, %v530_v48 }
 0x122   : > { %v408_v22 = vmul.f32 %v1340_v13, %v407_v33  ;;  %v427_v8 = vsub.f32 1.5, %v426_v59  ;;  %v354_v16 = vmul.f32 %v927_v60, %v1344_v17  ;;  %v461_v52 = vadd.f32 %v1395_v39, %v449_v29 }
 0x123   : > { %v368_v23 = vmul.f32 %v1346_v21, %v367_v62  ;;  %930 = vrsqrt.f32 %v1400_v5  ;;  %v1422_v46 = vpop.eup %928  ;;  %v516_v20 = vmul.f32 %v1331_v7, %v515_v6  ;;  %v479_v36 = vmul.f32 %v1161_v0, %v463_v25 }
 0x124   : > { %v412_v37 = vsel %vm411_vm4, %v1340_v13, %v408_v22  ;;  %v428_v15 = vmul.f32 %v1356_v10, %v427_v8  ;;  %v355_v47 = vmul.f32 %v927_v60, %v354_v16  ;;  %v374_v38 = vmul.f32 %v1422_v46, %v1353_v27 }
 0x125   : > { %v438_v35 = vmul.f32 %v412_v37, %v1120_v42  ;;  %v372_v49 = vsel %vm1409_vm2, %v1346_v21, %v368_v23  ;;  %vm360_vm7 = vweird.f32 %v927_v60  ;;  %v477_v48 = vmul.f32 %v1158_v63, %v461_v52  ;;  %v1492_v37 = vld [vmem:[%s1155_s12 + $0x18] sm:$0xff]  ;;  %s724_s12 = sshll.u32 %s234_s7, 4  ;;  %s725_s12 = int_to_ptr.vmem [resolvable:$true] %s724_s12 }
 0x126   : > { %v434_v13 = vmul.f32 %v372_v49, %v1122_v43  ;;  %v432_v50 = vsel %vm431_vm5, %v1356_v10, %v428_v15  ;;  %v356_v34 = vmul.f32 0.5, %v355_v47  ;;  %v375_v21 = vmul.f32 %v1422_v46, %v374_v38 }
 0x127   : > { %v450_v42 = vmul.f32 %v1361_v31, %v438_v35  ;;  %v440_v53 = vmul.f32 %v432_v50, %v1118_v41  ;;  %vm534_vm8 = vweird.f32 %v1263_v26  ;;  %vm359_vm9 = vweird.f32 %v1344_v17 }
 0x128   : > { %v446_v43 = vmul.f32 %v1361_v31, %v434_v13  ;;  %v357_v10 = vsub.f32 1.5, %v356_v34  ;;  %v376_v55 = vmul.f32 0.5, %v375_v21  ;;  %v517_v28 = vadd.f32 %v1331_v7, %v516_v20  ;;  %vm361_vm11 = vmor %vm359_vm9, %vm360_vm7 }
 0x129   : > { %v1451_v54 = vpop.eup %930  ;;  %v452_v41 = vmul.f32 %v1361_v31, %v440_v53  ;;  %v462_v58 = vadd.f32 %v1395_v39, %v450_v42  ;;  %v639_v17 = vmul.f32 %v1322_v61, %v479_v36  ;;  %v532_v59 = vadd.f32 %v1263_v26, %v531_v19  ;;  %vm1479_vm12 = vmor %vm533_vm1, %vm534_vm8 }
 0x12a   : > { %v358_v0 = vmul.f32 %v927_v60, %v357_v10  ;;  %v384_v30 = vmul.f32 %v1451_v54, %v1400_v5  ;;  %v637_v22 = vmul.f32 %v1230_v1, %v477_v48  ;;  %v458_v14 = vadd.f32 %v1395_v39, %v446_v43 }
 0x12b   : > { %v478_v29 = vmul.f32 %v1166_v3, %v462_v58  ;;  %v464_v33 = vadd.f32 %v1395_v39, %v452_v41  ;;  %v377_v61 = vsub.f32 1.5, %v376_v55  ;;  %v521_v1 = vsel %vm1464_vm10, %v1331_v7, %v517_v28 }
 0x12c   : > { %v362_v62 = vsel %vm361_vm11, %v927_v60, %v358_v0  ;;  %v385_v6 = vmul.f32 %v1451_v54, %v384_v30  ;;  %v537_v23 = vand.u32 2147483647, %v1206_v40  ;;  %v539_v25 = vand.u32 2147483648, %v1206_v40 }
 0x12d   : > { %v433_v45 = vmul.f32 %v362_v62, %v1124_v44  ;;  %v638_v8 = vmul.f32 %v1336_v9, %v478_v29  ;;  %v480_v60 = vmul.f32 %v1169_v4, %v464_v33  ;;  %v536_v4 = vsel %vm1479_vm12, %v1263_v26, %v532_v59 }
 0x12e   : > { %v386_v16 = vmul.f32 0.5, %v385_v6  ;;  %v474_v52 = vmul.f32 %v1176_v11, %v458_v14  ;;  %vm538_vm13 = vcmp.eq.f32.partialorder %v537_v23, 8.507059e+37  ;;  %v540_v7 = vor.u32 1.1754944e-38, %v539_v25 }
 0x12f   : > { %v445_v15 = vmul.f32 %v1361_v31, %v433_v45  ;;  %v643_v47 = vpack.c.bf16 %v638_v8, %v637_v22  ;;  %v640_v44 = vmul.f32 %v1338_v12, %v480_v60  ;;  %v813_v49 = vmul.f32 -1.442695, %v1492_v37 }
 0x130   : > { %v387_v9 = vsub.f32 1.5, %v386_v16  ;;  %v507_v38 = vadd.f32 1.0, %v1234_v2  ;;  %v526_v12 = vsel %vm1445_vm6, %v1420_v32, %v521_v1  ;;  %v541_v19 = vsel %vm538_vm13, %v540_v7, %v536_v4 }
 0x131   : > { %828 = vmatmul.msk.bf16.vlgmr.msra.gmra.mxu2 %vm257_vm0, %v643_v47  ;;  %v644_v35 = vpack.c.bf16 %v640_v44, %v639_v17  ;;  %v457_v40 = vadd.f32 %v1395_v39, %v445_v15  ;;  %932 = vpow2.f32 %v813_v49  ;;  %vm379_vm14 = vweird.f32 %v1353_v27 }
 0x132   : > { %vm380_vm15 = vweird.f32 %v1422_v46  ;;  %vm390_vm1 = vweird.f32 %v1451_v54  ;;  %934 = vrcp.f32 %v507_v38  ;;  %v378_v26 = vmul.f32 %v1422_v46, %v377_v61 }
 0x133   : > { %829 = vmatmul.msk.bf16.vlgmr.msra.gmra.mxu3 %vm257_vm0, %v644_v35  ;;  %v473_v11 = vmul.f32 %v1183_v18, %v457_v40  ;;  %v388_v2 = vmul.f32 %v1451_v54, %v387_v9  ;;  %v634_v50 = vmul.f32 %v541_v19, %v474_v52  ;;  %vm381_vm2 = vmor %vm379_vm14, %vm380_vm15  ;;  %vm389_vm3 = vweird.f32 %v1400_v5 }
 0x134   : > { %vm391_vm4 = vmor %vm389_vm3, %vm390_vm1  ;;  %v382_v34 = vsel %vm381_vm2, %v1422_v46, %v378_v26  ;;  %vm548_vm5 = vweird.f32 %v507_v38  ;;  %v554_v48 = vand.u32 2147483648, %v507_v38  ;;  %v552_v41 = vand.u32 2147483647, %v507_v38 }
 0x135   : > { %v633_v13 = vmul.f32 %v526_v12, %v473_v11  ;;  %v392_v27 = vsel %vm391_vm4, %v1451_v54, %v388_v2  ;;  %v435_v21 = vmul.f32 %v382_v34, %v1139_v56  ;;  %vm702_vm13 = vcmask 130048  }
 0x136   : > { %v436_v36 = vmul.f32 %v392_v27, %v1141_v57  ;;  %v555_v28 = vor.u32 1.1754944e-38, %v554_v48  ;;  %vm553_vm10 = vcmp.eq.f32.partialorder %v552_v41, 8.507059e+37 }
 0x137   : > { %v641_v32 = vpack.c.bf16 %v634_v50, %v633_v13  ;;  %v933_v18 = vpop.eup %932  ;;  %v447_v5 = vmul.f32 %v1361_v31, %v435_v21 }
 0x138   : > { %v935_v20 = vpop.eup %934  ;;  %v508_v42 = vadd.f32 1.0, %v933_v18  ;;  %v448_v10 = vmul.f32 %v1361_v31, %v436_v36 }
 0x139   : > { %826 = vmatmul.msk.bf16.vlgmr.msra.gmra.mxu0 %vm257_vm0, %v641_v32  ;;  %v544_v53 = vmul.f32 %v935_v20, %v507_v38  ;;  %vm549_vm6 = vweird.f32 %v935_v20  ;;  %v459_v58 = vadd.f32 %v1395_v39, %v447_v5 }
 0x13a   : > { %936 = vrcp.f32 %v508_v42  ;;  %v460_v56 = vadd.f32 %v1395_v39, %v448_v10  ;;  %vm1524_vm7 = vmor %vm548_vm5, %vm549_vm6  ;;  %v569_v0 = vand.u32 2147483648, %v508_v42  ;;  %vm563_vm8 = vweird.f32 %v508_v42 }
 0x13b   : > { %v545_v51 = vsub.f32 1.0, %v544_v53  ;;  %v567_v31 = vand.u32 2147483647, %v508_v42  ;;  %v475_v39 = vmul.f32 %v1193_v24, %v459_v58 }
 0x13c   : > { %v570_v33 = vor.u32 1.1754944e-38, %v569_v0  ;;  %v476_v17 = vmul.f32 %v1492_v37, %v460_v56 }
 0x13d   : > { %v546_v43 = vmul.f32 %v935_v20, %v545_v51  ;;  %vm568_vm12 = vcmp.eq.f32.partialorder %v567_v31, 8.507059e+37 }
 0x13f   : > { %v547_v54 = vadd.f32 %v935_v20, %v546_v43 }
 0x140   : > { %v937_v46 = vpop.eup %936 }
 0x141   : > { %v559_v55 = vmul.f32 %v937_v46, %v508_v42  ;;  %vm564_vm9 = vweird.f32 %v937_v46  ;;  %v551_v63 = vsel %vm1524_vm7, %v935_v20, %v547_v54 }
 0x142   : > { %vm565_vm11 = vmor %vm563_vm8, %vm564_vm9  ;;  %v556_v62 = vsel %vm553_vm10, %v555_v28, %v551_v63 }
 0x143   : > { %v560_v30 = vsub.f32 1.0, %v559_v55  ;;  %v635_v14 = vmul.f32 %v556_v62, %v475_v39 }
 0x145   : > { %v561_v29 = vmul.f32 %v937_v46, %v560_v30 }
 0x147   : > { %v562_v59 = vadd.f32 %v937_v46, %v561_v29 }
 0x149   : > { %v566_v6 = vsel %vm565_vm11, %v937_v46, %v562_v59 }
 0x14a   : > { %v571_v22 = vsel %vm568_vm12, %v570_v33, %v566_v6 }
 0x14b   : > { %v636_v3 = vmul.f32 %v571_v22, %v476_v17 }
 0x14d   : > { %v642_v45 = vpack.c.bf16 %v636_v3, %v635_v14 }
 0x14f   : > { %827 = vmatmul.msk.bf16.vlgmr.msra.gmra.mxu1 %vm257_vm0, %v642_v45 }
 0x1b4   : > { %v692_v61 = vpop.f32.mrf.mxu2 }
 0x1b5   : > { %707 = vst.msk [vmem:[%s234_s7 + $0x20] sm:$0xff] %vm702_vm13, %v692_v61 }
 0x1b6   : > { %v697_v24 = vpop.f32.mrf.mxu3  ;;  %v682_v8 = vpop.f32.mrf.mxu0 }
 0x1b7   : > { %709 = vst.msk [vmem:[%s234_s7 + $0x30] sm:$0xff] %vm702_vm13, %v697_v24 }
 0x1b8   : > { %703 = vst.msk [vmem:[%s234_s7] sm:$0xff] %vm702_vm13, %v682_v8 }
 0x1bc   : > { %v694_v60 = vpop.f32.mrf.mxu2 }
 0x1bd   : > { %708 = vst.msk [vmem:[%s234_s7 + $0x28] sm:$0xff] %vm702_vm13, %v694_v60 }
 0x1be   : > { %v699_v16 = vpop.f32.mrf.mxu3  ;;  %v684_v1 = vpop.f32.mrf.mxu0 }
 0x1bf   : > { %710 = vst.msk [vmem:[%s234_s7 + $0x38] sm:$0xff] %vm702_vm13, %v699_v16 }
 0x1c0   : > { %704 = vst.msk [vmem:[%s234_s7 + $0x8] sm:$0xff] %vm702_vm13, %v684_v1 }
 0x1cc   : > { %v687_v23 = vpop.f32.mrf.mxu1 }
 0x1cd   : > { %705 = vst.msk [vmem:[%s234_s7 + $0x10] sm:$0xff] %vm702_vm13, %v687_v23 }
 0x1d4   : > { %v689_v25 = vpop.f32.mrf.mxu1 }
 0x1d5   : > { %706 = vst.msk [vmem:[%s234_s7 + $0x18] sm:$0xff] %vm702_vm13, %v689_v25 }
 0x1d6   : > { %965 = shalt.err (!%p962_p3)
}
 0x1d7   : > { %s1003_s30 = smov 128   ;;  %s1004_s6 = smov 8  }
 0x1d8   : > { %844 = dma.vmem_to_hbm [thread:$0]  (%p1073_p5), %s725_s12, 1024, %s727_s13, %s712_s14, %s1003_s30, %s1003_s30, %s1004_s6  }
 0x1d9 PF: > { %p850_p4 = scmp.ge.s32.totalorder %s1000_s21, 2  ;;  %s741_s7 = sand.u32 1, %s988_s18  }
 0x1da   : > { %s742_s8 = scalar_lea.sflag [#allocation3], %s741_s7 }
 0x1db   : > { %p847_p7 = pnand %p850_p4, %p1077_p6 }
 0x1dd   : > { %p848_p8 = pneg %p847_p7 }
 0x1df   : > { %983 = dma.done.wait (%p848_p8), %s742_s8, 1024  }
 0x1e0   : > { %985 = vsyncadd (%p848_p8), %s742_s8, 4294966272  ;;  %p15_p9 = scmp.ge.s32.totalorder %s1060_s24, 4   ;;  %s1603_s18 = smov %s992_s19 }
 0x1e1   : > { %s1604_s19 = smov %s996_s20  ;;  %s1605_s20 = smov %s1071_s27 }
 0x1e2   : > { %s1606_s21 = smov %s1060_s24  ;;  %17 = sbr.rel (!%p15_p9) target bundleno = 3 (0x3), region = 78 }
 0x1e7   :  { %748 = vsyncpa [#allocation3], 1 }
 0x1e8   :  { %750 = vsyncpa [#allocation3 + $0x1], 1 }

// kernel: ss2d_forward.8
= control target key start
LH: loop header
LB: loop body
LE: loop exit
PB: predicated region body
PF: predicated region fallthrough
CT: control target
= control target key end

     0   :  { %s9285_s0 = inlined_call_operand.vmem [shape: bf16[2,2,64,32], index: 0, kind: input, shape index: {}]   ;;  %s9286_s1 = inlined_call_operand.vmem [shape: bf16[4,2,64,64], index: 1, kind: input, shape index: {}]   ;;  %s9287_s2 = inlined_call_operand.vmem [shape: f32[4,16,32], index: 2, kind: input, shape index: {}]   ;;  %s9288_s3 = inlined_call_operand.vmem [shape: f32[4,1,32], index: 3, kind: input, shape index: {}]   ;;  %s9289_s4 = inlined_call_operand.vmem [shape: f32[4,1,32], index: 4, kind: input, shape index: {}]   ;;  %s9290_s5 = inlined_call_operand.vmem [shape: f32[4,2,64,32], index: 5, kind: output, shape index: {}]  }
   0x1   :  { %9414 = sst [smem:[#allocation67_spill]] %s9285_s0 }
   0x2   :  { %9415 = sst [smem:[#allocation68_spill]] %s9286_s1 }
   0x3   :  { %s6848_s18 = smov 0   ;;  %s6850_s19 = smov 0  }
   0x4   :  { %s6852_s20 = smov 0   ;;  %s6854_s21 = smov 0  }
   0x5   :  { %s6856_s22 = smov 0   ;;  %s6858_s23 = smov 0  }
   0x6   :  { %s6860_s24 = smov 0   ;;  %s6862_s25 = smov 0  }
   0x7   :  { %s6864_s26 = smov 0  }
   0x8 LB: > { %s24_s28 = sadd.s32 1, %s6767_s24  ;;  %s27_s29 = sadd.s32 1, %s6771_s25  ;;  %s6775_s26 = sphi %s6864_s26, %s15_s26   ;;  %s6771_s25 = sphi %s6862_s25, %s9588_s25   ;;  %s6767_s24 = sphi %s6860_s24, %s9587_s24   ;;  %s6763_s23 = sphi %s6858_s23, %s9586_s23   ;;  %s6759_s22 = sphi %s6856_s22, %s9585_s22   ;;  %s6755_s21 = sphi %s6854_s21, %s9584_s21   ;;  %s6751_s20 = sphi %s6852_s20, %s9583_s20   ;;  %s6747_s19 = sphi %s6850_s19, %s9582_s19   ;;  %s6743_s18 = sphi %s6848_s18, %s9581_s18  }
   0x9   : > { %p25_p0 = scmp.ge.s32.totalorder %s24_s28, 2  ;;  %s32_s30 = ssub.s32 0, %s6771_s25 }
   0xa   : > { %s5506_s6 = smin.u32 %s6771_s25, %s32_s30  ;;  %p43_p1 = scmp.lt.s32.totalorder %s6771_s25, 2 }
   0xb   : > { %s9590_s28 = smov (%p25_p0, %s24_s28), 0  ;;  %s9592_s29 = smov (!%p25_p0, %s27_s29), %s6771_s25 }
   0xc   : > { %9416 = sst [smem:[#allocation8_spill]] %s9590_s28  ;;  %p29_p2 = scmp.ge.s32.totalorder %s9592_s29, 4 }
   0xd   : > { %s34_s7 = sand.u32 1, %s5506_s6   ;;  %s44_s8 = ssub.s32 1, %s6767_s24 }
   0xe   : > { %s9594_s29 = smov (%p29_p2, %s9592_s29), 0  ;;  %p5508_p3 = scmp.lt.s32.totalorder %s34_s7, 0 }
   0xf   : > { %9417 = sst [smem:[#allocation9_spill]] %s9594_s29  ;;  %s41_s10 = sadd.s32 2, %s34_s7 }
  0x10   : > { %s6906_s9 = scalar_select %p43_p1, %s6767_s24, %s44_s8 }
  0x11   : > { %s47_s11 = ssub.s32 0, %s9594_s29  ;;  %s9596_s10 = smov (!%p5508_p3, %s41_s10), %s34_s7 }
  0x12   : > { %s5509_s12 = smin.u32 %s47_s11, %s9594_s29  ;;  %p58_p4 = scmp.lt.s32.totalorder %s9594_s29, 2 }
  0x13   : > { %s49_s13 = sand.u32 1, %s5509_s12   ;;  %s59_s14 = ssub.s32 1, %s9590_s28 }
  0x14   : > { %s66_s15 = sadd.s32 1, %s6755_s21  ;;  %p5511_p5 = scmp.lt.s32.totalorder %s49_s13, 0 }
  0x15   : > { %s60_s16 = scalar_select %p58_p4, %s9590_s28, %s59_s14 }
  0x16   : > { %s56_s17 = sadd.s32 2, %s49_s13  ;;  %p73_p6 = scmp.ne.s32.totalorder %s6755_s21, %s6751_s20 }
  0x17   : > { %s62_s30 = ssub.s32 %s6906_s9, %s60_s16  ;;  %s9598_s17 = smov (!%p5511_p5, %s56_s17), %s49_s13 }
  0x18   : > { %p74_p7 = scmp.eq.s32.totalorder %s6775_s26, 0  ;;  %s95_s6 = ssub.s32 %s6771_s25, %s9594_s29 }
  0x19   : > { %s61_s7 = ssub.s32 %s9596_s10, %s9598_s17  ;;  %s97_s8 = sor.u32 %s95_s6, %s62_s30 }
  0x1a   : > { %s63_s11 = sor.u32 %s62_s30, %s61_s7  ;;  %p75_p8 = por %p74_p7, %p73_p6 }
  0x1b   : > { %p64_p9 = scmp.eq.s32.totalorder %s63_s11, 0  ;;  %p98_p10 = scmp.eq.s32.totalorder %s97_s8, 0 }
  0x1c   : > { %s100_s12 = sadd.s32 1, %s6747_s19  ;;  %p107_p11 = scmp.ne.s32.totalorder %s6747_s19, %s6743_s18 }
  0x1d   : > { %s6927_s27 = scalar_select %p64_p9, %s6755_s21, %s66_s15  }
  0x1e   : > { %s6930_s14 = scalar_select %p98_p10, %s6747_s19, %s100_s12  }
  0x1f   : > { %p6932_p12 = por %p107_p11, %p74_p7  ;;  %s9419_s16 = sadd.s32 4294967295, %s6775_s26  }
  0x20   : > { %p223_p13 = scmp.eq.s32.totalorder %s9419_s16, 7  ;;  %p5513_p1 = scmp.ge.s32.totalorder %s6775_s26, 8 }
  0x22   : > { %p6938_p0 = por %p223_p13, %p107_p11  ;;  %245 = sbr.rel (%p5513_p1) target bundleno = 67 (0x43), region = 16 }
  0x27   : > { %248 = sbr.rel (!%p75_p8) target bundleno = 53 (0x35), region = 20  ;;  %s250_s15 = sand.u32 (%p75_p8), 1, %s6755_s21  }
  0x28   : > { %s5518_s17 = sshll.u32 (%p75_p8), %s6906_s9, 2  ;;  %s5514_s30 = sshll.u32 (%p75_p8), %s250_s15, 5 }
  0x29   : > { %s5519_s6 = sshll.u32 (%p75_p8), %s9596_s10, 4  ;;  %s9421_s0 = sld [smem:[#allocation67_spill]] (%p75_p8) }
  0x2a   : > { %s270_s7 = sadd.s32 (%p75_p8), %s5519_s6, %s5518_s17  ;;  %s252_s29 = scalar_lea.vmem (%p75_p8), [#allocation5], %s5514_s30 }
  0x2b   : > { %s5520_s8 = sshll.u32 (%p75_p8), %s270_s7, 2 }
  0x2f   : > { %s272_s16 = scalar_lea.vmem %s9421_s0, %s5520_s8 }
  0x30   : > { %v289_v0 = vld [vmem:[%s272_s16] sm:$0xff]   ;;  %v293_v1 = vld [vmem:[%s272_s16 + $0x8] sm:$0xff]  }
  0x31   : > { %v297_v2 = vld [vmem:[%s272_s16 + $0x20] sm:$0xff]   ;;  %290 = vst [vmem:[%s252_s29] sm:$0xff] %v289_v0   ;;  %v301_v3 = vld [vmem:[%s272_s16 + $0x28] sm:$0xff]  }
  0x32   : > { %294 = vst [vmem:[%s252_s29 + $0x8] sm:$0xff] %v293_v1  }
  0x33   : > { %298 = vst [vmem:[%s252_s29 + $0x10] sm:$0xff] %v297_v2  }
  0x34   : > { %302 = vst [vmem:[%s252_s29 + $0x18] sm:$0xff] %v301_v3  }
  0x35 PF: > { %344 = sbr.rel (!%p6932_p12) target bundleno = 67 (0x43), region = 61  ;;  %s346_s10 = sand.u32 (%p6932_p12), 1, %s6747_s19  }
  0x36   : > { %s5522_s15 = sshll.u32 (%p6932_p12), %s6906_s9, 2  ;;  %s5521_s17 = sshll.u32 (%p6932_p12), %s346_s10, 5 }
  0x37   : > { %s5523_s6 = sshll.u32 (%p6932_p12), %s6771_s25, 4  ;;  %s9422_s1 = sld [smem:[#allocation68_spill]] (%p6932_p12) }
  0x38   : > { %s354_s7 = sadd.s32 (%p6932_p12), %s5523_s6, %s5522_s15  ;;  %s348_s29 = scalar_lea.vmem (%p6932_p12), [#allocation6], %s5521_s17 }
  0x39   : > { %s5524_s8 = sshll.u32 (%p6932_p12), %s354_s7, 2 }
  0x3d   : > { %s356_s12 = scalar_lea.vmem %s9422_s1, %s5524_s8 }
  0x3e   : > { %v373_v4 = vld [vmem:[%s356_s12] sm:$0xff]   ;;  %v377_v5 = vld [vmem:[%s356_s12 + $0x8] sm:$0xff]  }
  0x3f   : > { %v381_v6 = vld [vmem:[%s356_s12 + $0x20] sm:$0xff]   ;;  %374 = vst [vmem:[%s348_s29] sm:$0xff] %v373_v4   ;;  %v385_v7 = vld [vmem:[%s356_s12 + $0x28] sm:$0xff]  }
  0x40   : > { %378 = vst [vmem:[%s348_s29 + $0x8] sm:$0xff] %v377_v5  }
  0x41   : > { %382 = vst [vmem:[%s348_s29 + $0x10] sm:$0xff] %v381_v6  }
  0x42   : > { %386 = vst [vmem:[%s348_s29 + $0x18] sm:$0xff] %v385_v7  }
  0x43 PF: > { %p5525_p2 = scmp.ge.s32.totalorder %s6775_s26, 1  ;;  %p447_p3 = scmp.lt.s32.totalorder %s6775_s26, 9 }
  0x45   : > { %p448_p4 = pnand %p5525_p2, %p447_p3 }
  0x47   : > { %451 = sbr.rel (%p448_p4) target bundleno = 1441 (0x5a1), region = 114 }
  0x4c   : > { %s454_s28 = sand.u32 1, %s6751_s20   ;;  %s461_s9 = sand.u32 1, %s6743_s18  }
  0x4d   : > { %s5526_s16 = sshll.u32 %s454_s28, 5  ;;  %s5527_s10 = sshll.u32 %s461_s9, 5 }
  0x4e   : > { %s5528_s15 = sshll.u32 %s461_s9, 6  ;;  %p522_p5 = scmp.lt.s32.totalorder %s6763_s23, 3 }
  0x4f   : > { %s6981_s9 = scalar_lea.vmem [#allocation5], %s5526_s16  ;;  %s6983_s0 = scalar_lea.vmem [#allocation6], %s5527_s10 }
  0x50   : > { %s6963_s17 = scalar_select %p522_p5, %s6763_s23, 3 }
  0x51   : > { %s6985_s1 = scalar_lea.vmem [#allocation7], %s5528_s15  ;;  %p5531_p6 = scmp.ne.s32.totalorder %s6759_s22, 0 }
  0x52   : > { %s5758_s6 = sshll.u32 %s6963_s17, 4  ;;  %s529_s11 = scalar_lea.vmem %s9288_s3, %s6963_s17 }
  0x53   : > { %s6973_s29 = scalar_lea.vmem %s9287_s2, %s5758_s6  ;;  %s6979_s28 = scalar_lea.vmem %s9289_s4, %s6963_s17 }
  0x54   : > { %540 = sbr.rel (%p5531_p6) target bundleno = 94 (0x5e), region = 126 }
  0x59   : > { %vm541_vm0 = vcmask 261120   ;;  %v6817_v8 = vmov 0.0  }
  0x5a   : > { %542 = vst.msk [vmem:[#allocation2] sm:$0xff] %vm541_vm0, %v6817_v8 }
  0x5b   : > { %543 = vst.msk [vmem:[#allocation2 + $0x8] sm:$0xff] %vm541_vm0, %v6817_v8 }
  0x5c   : > { %544 = vst.msk [vmem:[#allocation2 + $0x10] sm:$0xff] %vm541_vm0, %v6817_v8 }
  0x5d   : > { %545 = vst.msk [vmem:[#allocation2 + $0x18] sm:$0xff] %vm541_vm0, %v6817_v8 }
  0x5e PF: > { %v1099_v9 = vlaneseq  ;;  %v5793_v10 = vld [vmem:[%s6983_s0] sm:$0xff]   ;;  %v7076_v41 = vld [vmem:[%s6983_s0 + $0x8] sm:$0xff]   ;;  %vm1033_vm3 = vcmask 261120   ;;  %p5532_p7 = scmp.ge.s32.totalorder %s6763_s23, 2 }
  0x5f   : > { %v6991_v12 = vunpack.c.l.bf16 %v5793_v10  ;;  %v7029_v24 = vunpack.c.h.bf16 %v5793_v10  ;;  %v7062_v34 = vld [vmem:[%s6979_s28] ss:$0 sm:$0xff]  ;;  %v7081_v43 = vunpack.c.l.bf16 %v7076_v41  ;;  %v7112_v2 = vld [vmem:[%s6973_s29 + $0x8] sm:$0xff]  ;;  %s8366_s10 = smov (!%p5532_p7), 0  }
  0x60   : > { %v6989_v11 = vshrl.u32 %v1099_v9, 7  ;;  %v7102_v61 = vld [vmem:[%s6973_s29] sm:$0xff] }
  0x61   : > { %v6998_v14 = vperm.slane %v6991_v12, 2  ;;  %v7001_v15 = vperm.slane %v6991_v12, 3  ;;  %v7005_v16 = vperm.slane %v6991_v12, 4  ;;  %v7008_v17 = vperm.slane %v6991_v12, 5 }
  0x62   : > { %v6994_v13 = vadd.s32 32, %v6989_v11  ;;  %v7016_v20 = vadd.s32 40, %v6989_v11  ;;  %v7021_v21 = vperm.slane %v6991_v12, 6  ;;  %v7024_v22 = vperm.slane %v6991_v12, 7 }
  0x63   : > { %v5974_v18 = vpack.i.bf16 %v7001_v15, %v6998_v14  ;;  %v5986_v19 = vpack.i.bf16 %v7008_v17, %v7005_v16  ;;  %v7033_v25 = vperm.slane %v7029_v24, 2  ;;  %v7036_v26 = vperm.slane %v7029_v24, 3 }
  0x64   : > { %5973 = vset.pattern.permute.xlu1 %v6994_v13  ;;  %5985 = vset.pattern.permute.xlu2 %v6994_v13  ;;  %9423 = vst [vmem:[#allocation10_spill] sm:$0xff] %v7021_v21  ;;  %v6003_v23 = vpack.i.bf16 %v7024_v22, %v7021_v21  ;;  %v7042_v28 = vperm.slane %v7029_v24, 0  ;;  %v7045_v29 = vperm.slane %v7029_v24, 1  ;;  %v7048_v30 = vperm.slane %v7029_v24, 4 }
  0x65   : > { %5967 = vset.pattern.permute.xlu0 %v6994_v13  ;;  %9424 = vst [vmem:[#allocation11_spill] sm:$0xff] %v7024_v22  ;;  %v6020_v27 = vpack.i.bf16 %v7036_v26, %v7033_v25  ;;  %v7051_v31 = vperm.slane %v7029_v24, 5  ;;  %v582_v35 = vadd.f32 %v7062_v34, %v6991_v12  ;;  %v7070_v39 = vperm.slane %v7029_v24, 6 }
  0x66   : > { %9425 = vst [vmem:[#allocation12_spill] sm:$0xff] %v7033_v25  ;;  %v7055_v32 = vpack.i.bf16 %v7045_v29, %v7042_v28  ;;  %v7073_v40 = vperm.slane %v7029_v24, 7  ;;  %v7085_v46 = vperm.slane %v7081_v43, 0  ;;  %v7088_v47 = vperm.slane %v7081_v43, 1 }
  0x67   : > { %9426 = vst [vmem:[#allocation13_spill] sm:$0xff] %v7036_v26  ;;  %v7059_v33 = vpack.i.bf16 %v7051_v31, %v7048_v30  ;;  %v614_v36 = vand.u32 2147483647, %v582_v35  ;;  %v590_v55 = vmax.f32 %v582_v35, 0.0  ;;  %vm598_vm2 = vcmp.ne.f32.partialorder %v582_v35, %v582_v35 }
  0x68   : > { %9427 = vst [vmem:[#allocation14_spill] sm:$0xff] %v7042_v28  ;;  %v6042_v42 = vpack.i.bf16 %v7073_v40, %v7070_v39  ;;  %v6052_v48 = vpack.i.bf16 %v7088_v47, %v7085_v46  ;;  %v7094_v58 = vperm.slane %v7081_v43, 4  ;;  %v7097_v59 = vperm.slane %v7081_v43, 5 }
  0x69   : > { %9428 = vst [vmem:[#allocation15_spill] sm:$0xff] %v7048_v30  ;;  %v622_v37 = vsub.f32 0.0, %v614_v36  ;;  %v7117_v7 = vperm.slane %v7081_v43, 2 }
  0x6a   : > { %9429 = vst [vmem:[#allocation16_spill] sm:$0xff] %v7051_v31  ;;  %v7109_v1 = vpack.i.bf16 %v7097_v59, %v7094_v58 }
  0x6b   : > { %v630_v38 = vmul.f32 1.442695, %v622_v37  ;;  %9430 = vst [vmem:[#allocation17_spill] sm:$0xff] %v7073_v40 }
  0x6c   : > { %5975 = vperm.xlu1 %5973, %v5974_v18   ;;  %5987 = vperm.xlu2 %5985, %v5986_v19   ;;  %9431 = vst [vmem:[#allocation18_spill] sm:$0xff] %v7085_v46 }
  0x6d   : > { %6317 = vpow2.f32 %v630_v38  ;;  %9432 = vst [vmem:[#allocation19_spill] sm:$0xff] %v7088_v47 }
  0x6e   : > { %9433 = vst [vmem:[#allocation20_spill] sm:$0xff] %v7094_v58 }
  0x6f   : > { %9434 = vst [vmem:[#allocation21_spill] sm:$0xff] %v7097_v59 }
  0x70   : > { %9435 = vst [vmem:[#allocation22_spill] sm:$0xff] %v7117_v7 }
  0x73   : > { %v6318_v44 = vpop.eup %6317 }
  0x74   : > { %5979 = vset.pattern.permute.xlu1 %v7016_v20  ;;  %5991 = vset.pattern.permute.xlu2 %v7016_v20  ;;  %v646_v45 = vadd.f32 1.0, %v6318_v44  ;;  %v649_v49 = vmul.f32 -0.5, %v6318_v44  ;;  %v652_v52 = vand.u32 2147483647, %v6318_v44 }
  0x76   : > { %6319 = vlog2.f32 %v646_v45  ;;  %v650_v50 = vadd.f32 1.0, %v649_v49  ;;  %vm653_vm1 = vcmp.lt.f32.partialorder %v652_v52, 0.0004427343 }
  0x78   : > { %v651_v54 = vmul.f32 %v6318_v44, %v650_v50  ;;  %v7133_v44 = vld [vmem:[%s6981_s9] sm:$0xff]  }
  0x79   : > { %9436 = vst [vmem:[#allocation23_spill] sm:$0xff] %v7133_v44 }
  0x7c   : > { %5981 = vperm.xlu1 %5979, %v5974_v18   ;;  %5993 = vperm.xlu2 %5991, %v5986_v19   ;;  %v6320_v51 = vpop.eup %6319  ;;  %v7122_v18 = vperm.slane %v7081_v43, 3 }
  0x7d   : > { %v648_v53 = vmul.f32 0.6931472, %v6320_v51 }
  0x7f   : > { %v654_v56 = vsel %vm653_vm1, %v651_v54, %v648_v53  ;;  %v7140_v54 = vpack.i.bf16 %v7122_v18, %v7117_v7 }
  0x80   : > { %v718_v57 = vadd.f32 %v654_v56, %v590_v55 }
  0x82   : > { %v7099_v60 = vsel %vm598_vm2, %v582_v35, %v718_v57 }
  0x83   : > { %v749_v62 = vrot.slane %v7099_v60, 1  ;;  %v750_v63 = vrot.slane %v7099_v60, 2  ;;  %v751_v0 = vrot.slane %v7099_v60, 3  ;;  %v752_v3 = vrot.slane %v7099_v60, 4 }
  0x84   : > { %5997 = vset.pattern.permute.xlu1 %v6994_v13  ;;  %6004 = vperm.xlu2 %5991, %v6003_v23   ;;  %v777_v4 = vperm.slane %v7099_v60, 0  ;;  %v753_v8 = vrot.slane %v7099_v60, 5  ;;  %v754_v35 = vrot.slane %v7099_v60, 6  ;;  %v755_v45 = vrot.slane %v7099_v60, 7 }
  0x85   : > { %v778_v5 = vperm.slane %v749_v62, 0  ;;  %v779_v6 = vperm.slane %v750_v63, 0  ;;  %v780_v9 = vperm.slane %v751_v0, 0  ;;  %v781_v36 = vperm.slane %v752_v3, 0 }
  0x86   : > { %v841_v10 = vmul.f32 %v777_v4, %v7102_v61  ;;  %v842_v19 = vmul.f32 %v777_v4, %v7112_v2  ;;  %v783_v55 = vperm.slane %v754_v35, 0  ;;  %v9293_v62 = vunpack.c.l.bf16 %v7133_v44 }
  0x87   : > { %v845_v37 = vmul.f32 %v779_v6, %v7102_v61  ;;  %v847_v49 = vmul.f32 %v780_v9, %v7102_v61  ;;  %v848_v50 = vmul.f32 %v780_v9, %v7112_v2  ;;  %v849_v56 = vmul.f32 %v781_v36, %v7102_v61 }
  0x88   : > { %v905_v38 = vmul.f32 1.442695, %v841_v10  ;;  %v907_v51 = vmul.f32 1.442695, %v842_v19  ;;  %v850_v63 = vmul.f32 %v781_v36, %v7112_v2  ;;  %v784_v3 = vperm.slane %v755_v45, 0 }
  0x89   : > { %v913_v57 = vmul.f32 1.442695, %v845_v37  ;;  %v853_v9 = vmul.f32 %v783_v55, %v7102_v61  ;;  %v921_v10 = vmul.f32 1.442695, %v849_v56  ;;  %v7150_v19 = vperm.slane %v7081_v43, 6 }
  0x8a   : > { %6321 = vpow2.f32 %v905_v38  ;;  %v854_v35 = vmul.f32 %v783_v55, %v7112_v2  ;;  %v923_v36 = vmul.f32 1.442695, %v850_v63  ;;  %v7156_v37 = vperm.slane %v7081_v43, 7 }
  0x8b   : > { %6323 = vpow2.f32 %v907_v51  ;;  %9437 = vst [vmem:[#allocation24_spill] sm:$0xff] %v7150_v19  ;;  %v855_v38 = vmul.f32 %v784_v3, %v7102_v61  ;;  %v7177_v63 = vperm.slane %v6991_v12, 1 }
  0x8c   : > { %5999 = vperm.xlu1 %5997, %v6003_v23   ;;  %6019 = vset.pattern.permute.xlu2 %v6994_v13  ;;  %v843_v23 = vmul.f32 %v778_v5, %v7102_v61  ;;  %9438 = vst [vmem:[#allocation25_spill] sm:$0xff] %v7156_v37  ;;  %v931_v56 = vmul.f32 1.442695, %v854_v35 }
  0x8e   : > { %v909_v52 = vmul.f32 1.442695, %v843_v23 }
  0x90   : > { %6325 = vpow2.f32 %v909_v52  ;;  %v7168_v52 = vmul.f32 %v9293_v62, %v7099_v60  ;;  %v933_v60 = vmul.f32 1.442695, %v855_v38 }
  0x94   : > { %6013 = vset.pattern.permute.xlu1 %v7016_v20  ;;  %6021 = vperm.xlu2 %6019, %v6020_v27  }
  0x9c   : > { %6015 = vperm.xlu1 %6013, %v7055_v32   ;;  %6031 = vperm.xlu2 %6019, %v7059_v33  }
  0xa4   : > { %6026 = vperm.xlu1 %6013, %v6020_v27   ;;  %6041 = vset.pattern.permute.xlu2 %v7016_v20  ;;  %v844_v27 = vmul.f32 %v778_v5, %v7112_v2  ;;  %v917_v5 = vmul.f32 1.442695, %v847_v49 }
  0xa6   : > { %v911_v53 = vmul.f32 1.442695, %v844_v27  ;;  %v6322_v27 = vpop.eup %6321 }
  0xa7   : > { %1034 = vst.msk [vmem:[#allocation3] sm:$0xff] %vm1033_vm3, %v6322_v27  ;;  %v6324_v45 = vpop.eup %6323 }
  0xa8   : > { %6327 = vpow2.f32 %v911_v53  ;;  %v6326_v51 = vpop.eup %6325  ;;  %v929_v53 = vmul.f32 1.442695, %v853_v9  ;;  %1035 = vst.msk [vmem:[#allocation3 + $0x8] sm:$0xff] %vm1033_vm3, %v6324_v45 }
  0xa9   : > { %6329 = vpow2.f32 %v913_v57  ;;  %1036 = vst.msk [vmem:[#allocation3 + $0x20] sm:$0xff] %vm1033_vm3, %v6326_v51  ;;  %v7174_v57 = vperm.slane %v6991_v12, 0 }
  0xab   : > { %v7188_v12 = vpack.i.bf16 %v7177_v63, %v7174_v57 }
  0xac   : > { %6035 = vset.pattern.permute.xlu1 %v6994_v13  ;;  %6043 = vperm.xlu2 %6041, %v6042_v42  }
  0xad   : > { %5969 = vperm.xlu0 %5967, %v7188_v12  }
  0xae   : > { %v6328_v55 = vpop.eup %6327 }
  0xaf   : > { %1037 = vst.msk [vmem:[#allocation3 + $0x28] sm:$0xff] %vm1033_vm3, %v6328_v55 }
  0xb4   : > { %6037 = vperm.xlu1 %6035, %v6042_v42   ;;  %6053 = vperm.xlu2 %6041, %v6052_v48   ;;  %v846_v42 = vmul.f32 %v779_v6, %v7112_v2 }
  0xb5   : > { %6009 = vperm.xlu0 %5967, %v7055_v32  }
  0xb6   : > { %v915_v0 = vmul.f32 1.442695, %v846_v42 }
  0xb8   : > { %6331 = vpow2.f32 %v915_v0  ;;  %v6330_v0 = vpop.eup %6329 }
  0xb9   : > { %6333 = vpow2.f32 %v917_v5  ;;  %1038 = vst.msk [vmem:[#allocation3 + $0x40] sm:$0xff] %vm1033_vm3, %v6330_v0  ;;  %v1523_v0 = vrot.slane %v7168_v52, 6 }
  0xbc   : > { %6048 = vperm.xlu1 %6035, %v6052_v48   ;;  %6068 = vset.pattern.permute.xlu2 %v6994_v13  ;;  %v782_v48 = vperm.slane %v753_v8, 0  ;;  %v919_v8 = vmul.f32 1.442695, %v848_v50  ;;  %v7163_v50 = vpack.i.bf16 %v7156_v37, %v7150_v19 }
  0xbd   : > { %6058 = vperm.xlu0 %5967, %v7140_v54  }
  0xbe   : > { %v851_v4 = vmul.f32 %v782_v48, %v7102_v61  ;;  %v852_v6 = vmul.f32 %v782_v48, %v7112_v2  ;;  %v856_v48 = vmul.f32 %v784_v3, %v7112_v2  ;;  %6335 = vpow2.f32 %v919_v8 }
  0xbf   : > { %6337 = vpow2.f32 %v921_v10  ;;  %v7182_v3 = vadd.f32 %v7062_v34, %v7029_v24  ;;  %v1522_v24 = vrot.slane %v7168_v52, 5 }
  0xc0   : > { %v925_v42 = vmul.f32 1.442695, %v851_v4  ;;  %v927_v49 = vmul.f32 1.442695, %v852_v6  ;;  %6339 = vpow2.f32 %v923_v36  ;;  %v6332_v4 = vpop.eup %6331  ;;  %v935_v5 = vmul.f32 1.442695, %v856_v48 }
  0xc1   : > { %v1521_v6 = vrot.slane %v7168_v52, 4  ;;  %v6334_v8 = vpop.eup %6333  ;;  %1039 = vst.msk [vmem:[#allocation3 + $0x48] sm:$0xff] %vm1033_vm3, %v6332_v4  ;;  %v615_v10 = vand.u32 2147483647, %v7182_v3  ;;  %v1519_v48 = vrot.slane %v7168_v52, 2  ;;  %v1551_v51 = vperm.slane %v1522_v24, 0 }
  0xc2   : > { %6341 = vpow2.f32 %v925_v42  ;;  %1040 = vst.msk [vmem:[#allocation3 + $0x60] sm:$0xff] %vm1033_vm3, %v6334_v8  ;;  %vm599_vm5 = vcmp.ne.f32.partialorder %v7182_v3, %v7182_v3 }
  0xc3   : > { %6343 = vpow2.f32 %v927_v49  ;;  %v1550_v42 = vperm.slane %v1521_v6, 0 }
  0xc4   : > { %6062 = vset.pattern.permute.xlu1 %v7016_v20  ;;  %6070 = vperm.xlu2 %6068, %v7109_v1   ;;  %6345 = vpow2.f32 %v929_v53  ;;  %v6336_v9 = vpop.eup %6335  ;;  %v623_v53 = vsub.f32 0.0, %v615_v10 }
  0xc5   : > { %6347 = vpow2.f32 %v931_v56  ;;  %v6338_v27 = vpop.eup %6337  ;;  %1041 = vst.msk [vmem:[#allocation3 + $0x68] sm:$0xff] %vm1033_vm3, %v6336_v9  ;;  %v1520_v56 = vrot.slane %v7168_v52, 3 }
  0xc6   : > { %v7152_v23 = vpop.permute.xlu2 %5987  ;;  %6349 = vpow2.f32 %v933_v60  ;;  %v6340_v36 = vpop.eup %6339  ;;  %1042 = vst.msk [vmem:[#allocation3 + $0x80] sm:$0xff] %vm1033_vm3, %v6338_v27  ;;  %v632_v6 = vmul.f32 1.442695, %v623_v53  ;;  %v1548_v27 = vperm.slane %v1519_v48, 0 }
  0xc7   : > { %6351 = vpow2.f32 %v935_v5  ;;  %v5989_v38 = vunpack.i.l.bf16 %v7152_v23  ;;  %1043 = vst.msk [vmem:[#allocation3 + $0x88] sm:$0xff] %vm1033_vm3, %v6340_v36  ;;  %v5990_v49 = vunpack.i.h.bf16 %v7152_v23  ;;  %v1524_v5 = vrot.slane %v7168_v52, 7 }
  0xc8   : > { %v6342_v45 = vpop.eup %6341  ;;  %6353 = vpow2.f32 %v632_v6 }
  0xc9   : > { %v6344_v55 = vpop.eup %6343  ;;  %1044 = vst.msk [vmem:[#allocation3 + $0xa0] sm:$0xff] %vm1033_vm3, %v6342_v45  ;;  %v1618_v9 = vmul.f32 %v5989_v38, %v1550_v42  ;;  %v1549_v45 = vperm.slane %v1520_v56, 0  ;;  %v7227_v48 = vperm.slane %v1524_v5, 0 }
  0xca   : > { %v6346_v60 = vpop.eup %6345  ;;  %1045 = vst.msk [vmem:[#allocation3 + $0xa8] sm:$0xff] %vm1033_vm3, %v6344_v55 }
  0xcb   : > { %v6348_v23 = vpop.eup %6347  ;;  %1046 = vst.msk [vmem:[#allocation3 + $0xc0] sm:$0xff] %vm1033_vm3, %v6346_v60  ;;  %v7223_v60 = vperm.slane %v1523_v0, 0 }
  0xcc   : > { %6064 = vperm.xlu1 %6062, %v7140_v54   ;;  %6080 = vperm.xlu2 %6068, %v7163_v50   ;;  %v6350_v10 = vpop.eup %6349  ;;  %1047 = vst.msk [vmem:[#allocation3 + $0xc8] sm:$0xff] %vm1033_vm3, %v6348_v23 }
  0xcd   : > { %v6352_v36 = vpop.eup %6351  ;;  %1048 = vst.msk [vmem:[#allocation3 + $0xe0] sm:$0xff] %vm1033_vm3, %v6350_v10 }
  0xce   : > { %1049 = vst.msk [vmem:[#allocation3 + $0xe8] sm:$0xff] %vm1033_vm3, %v6352_v36  ;;  %v6354_v10 = vpop.eup %6353 }
  0xcf   : > { %1682 = vst.msk [vmem:[#allocation4 + $0x80] sm:$0xff] %vm1033_vm3, %v1618_v9  ;;  %v655_v9 = vadd.f32 1.0, %v6354_v10 }
  0xd1   : > { %6355 = vlog2.f32 %v655_v9 }
  0xd4   : > { %6075 = vperm.xlu1 %6062, %v7109_v1   ;;  %v7199_v1 = vunpack.c.h.bf16 %v7076_v41  ;;  %6090 = vset.pattern.permute.xlu2 %v7016_v20 }
  0xd6   : > { %v5994_v35 = vpop.permute.xlu2 %5993  ;;  %v7213_v8 = vperm.slane %v7199_v1, 0  ;;  %v7216_v24 = vperm.slane %v7199_v1, 1  ;;  %v7240_v5 = vperm.slane %v7199_v1, 3 }
  0xd7   : > { %v5995_v41 = vunpack.i.l.bf16 %v5994_v35  ;;  %v5996_v4 = vunpack.i.h.bf16 %v5994_v35  ;;  %v1620_v35 = vmul.f32 %v5990_v49, %v1551_v51 }
  0xd8   : > { %9439 = vst [vmem:[#allocation26_spill] sm:$0xff] %v7216_v24  ;;  %v6091_v55 = vpack.i.bf16 %v7216_v24, %v7213_v8 }
  0xd9   : > { %v1619_v53 = vmul.f32 %v5995_v41, %v1550_v42  ;;  %v1621_v62 = vmul.f32 %v5996_v4, %v1551_v51  ;;  %1684 = vst.msk [vmem:[#allocation4 + $0xa0] sm:$0xff] %vm1033_vm3, %v1620_v35  ;;  %v7234_v51 = vperm.slane %v7199_v1, 2  ;;  %v658_v35 = vmul.f32 -0.5, %v6354_v10 }
  0xda   : > { %9441 = vst [vmem:[#allocation28_spill] sm:$0xff] %v7240_v5 }
  0xdb   : > { %1683 = vst.msk [vmem:[#allocation4 + $0x88] sm:$0xff] %vm1033_vm3, %v1619_v53  ;;  %v6101_v36 = vpack.i.bf16 %v7240_v5, %v7234_v51  ;;  %v661_v53 = vand.u32 2147483647, %v6354_v10  ;;  %v7292_v5 = vadd.f32 %v7062_v34, %v7081_v43 }
  0xdc   : > { %6084 = vset.pattern.permute.xlu1 %v6994_v13  ;;  %6092 = vperm.xlu2 %6090, %v6091_v55   ;;  %9440 = vst [vmem:[#allocation27_spill] sm:$0xff] %v7234_v51 }
  0xdd   : > { %1685 = vst.msk [vmem:[#allocation4 + $0xa8] sm:$0xff] %vm1033_vm3, %v1621_v62  ;;  %v659_v62 = vadd.f32 1.0, %v658_v35  ;;  %vm662_vm4 = vcmp.lt.f32.partialorder %v661_v53, 0.0004427343  ;;  %v7261_v35 = vperm.slane %v7199_v1, 6  ;;  %vm600_vm7 = vcmp.ne.f32.partialorder %v7292_v5, %v7292_v5 }
  0xde   : > { %v5976_v38 = vpop.permute.xlu1 %5975  ;;  %v6005_v23 = vpop.permute.xlu2 %6004 }
  0xdf   : > { %v5978_v49 = vunpack.i.h.bf16 %v5976_v38  ;;  %v5977_v6 = vunpack.i.l.bf16 %v5976_v38  ;;  %v6007_v56 = vunpack.i.h.bf16 %v6005_v23  ;;  %v6006_v42 = vunpack.i.l.bf16 %v6005_v23  ;;  %9444 = vst [vmem:[#allocation31_spill] sm:$0xff] %v7261_v35 }
  0xe0   : > { %v7249_v38 = vperm.slane %v7199_v1, 4  ;;  %v7252_v23 = vperm.slane %v7199_v1, 5 }
  0xe1   : > { %v1614_v41 = vmul.f32 %v5977_v6, %v1548_v27  ;;  %v1616_v0 = vmul.f32 %v5978_v49, %v1549_v45  ;;  %v1623_v32 = vmul.f32 %v6006_v42, %v7223_v60  ;;  %v1625_v4 = vmul.f32 %v6007_v56, %v7227_v48  ;;  %v6356_v49 = vpop.eup %6355 }
  0xe2   : > { %9442 = vst [vmem:[#allocation29_spill] sm:$0xff] %v7249_v38  ;;  %v591_v6 = vmax.f32 %v7182_v3, 0.0  ;;  %v657_v56 = vmul.f32 0.6931472, %v6356_v49  ;;  %v6106_v54 = vpack.i.bf16 %v7252_v23, %v7249_v38 }
  0xe3   : > { %1678 = vst.msk [vmem:[#allocation4 + $0x40] sm:$0xff] %vm1033_vm3, %v1614_v41 }
  0xe4   : > { %1680 = vst.msk [vmem:[#allocation4 + $0x60] sm:$0xff] %vm1033_vm3, %v1616_v0  ;;  %6086 = vperm.xlu1 %6084, %v6091_v55   ;;  %6102 = vperm.xlu2 %6090, %v6101_v36   ;;  %v660_v55 = vmul.f32 %v6354_v10, %v659_v62  ;;  %v7267_v62 = vperm.slane %v7199_v1, 7 }
  0xe5   : > { %1687 = vst.msk [vmem:[#allocation4 + $0xc8] sm:$0xff] %vm1033_vm3, %v1623_v32  ;;  %6107 = vperm.xlu0 %5967, %v6106_v54  }
  0xe6   : > { %1689 = vst.msk [vmem:[#allocation4 + $0xe8] sm:$0xff] %vm1033_vm3, %v1625_v4  ;;  %v663_v41 = vsel %vm662_vm4, %v660_v55, %v657_v56  ;;  %v7279_v56 = vpack.i.bf16 %v7267_v62, %v7261_v35 }
  0xe7   : > { %9443 = vst [vmem:[#allocation30_spill] sm:$0xff] %v7252_v23  ;;  %v719_v4 = vadd.f32 %v663_v41, %v591_v6 }
  0xe8   : > { %9445 = vst [vmem:[#allocation32_spill] sm:$0xff] %v7267_v62 }
  0xec   : > { %6097 = vperm.xlu1 %6084, %v6101_v36   ;;  %6117 = vset.pattern.permute.xlu2 %v6994_v13  ;;  %v7264_v36 = vsel %vm599_vm5, %v7182_v3, %v719_v4 }
  0xed   : > { %v756_v53 = vrot.slane %v7264_v36, 1  ;;  %v757_v55 = vrot.slane %v7264_v36, 2  ;;  %v758_v49 = vrot.slane %v7264_v36, 3  ;;  %v761_v41 = vrot.slane %v7264_v36, 6 }
  0xee   : > { %v5982_v42 = vpop.permute.xlu1 %5981 }
  0xef   : > { %v5984_v0 = vunpack.i.h.bf16 %v5982_v42  ;;  %v5983_v32 = vunpack.i.l.bf16 %v5982_v42  ;;  %v786_v3 = vperm.slane %v756_v53, 0  ;;  %v787_v6 = vperm.slane %v757_v55, 0 }
  0xf0   : > { %v760_v42 = vrot.slane %v7264_v36, 5  ;;  %v762_v55 = vrot.slane %v7264_v36, 7  ;;  %v791_v24 = vperm.slane %v761_v41, 0 }
  0xf1   : > { %v1615_v9 = vmul.f32 %v5983_v32, %v1548_v27  ;;  %v1617_v10 = vmul.f32 %v5984_v0, %v1549_v45  ;;  %v759_v27 = vrot.slane %v7264_v36, 4  ;;  %v785_v45 = vperm.slane %v7264_v36, 0 }
  0xf2   : > { %v788_v0 = vperm.slane %v758_v49, 0  ;;  %v861_v53 = vmul.f32 %v787_v6, %v7102_v61  ;;  %v862_v35 = vmul.f32 %v787_v6, %v7112_v2  ;;  %v790_v49 = vperm.slane %v760_v42, 0 }
  0xf3   : > { %1679 = vst.msk [vmem:[#allocation4 + $0x48] sm:$0xff] %vm1033_vm3, %v1615_v9  ;;  %v857_v32 = vmul.f32 %v785_v45, %v7102_v61  ;;  %v858_v4 = vmul.f32 %v785_v45, %v7112_v2  ;;  %v859_v9 = vmul.f32 %v786_v3, %v7102_v61  ;;  %v789_v38 = vperm.slane %v759_v27, 0 }
  0xf4   : > { %1681 = vst.msk [vmem:[#allocation4 + $0x68] sm:$0xff] %vm1033_vm3, %v1617_v10  ;;  %6111 = vset.pattern.permute.xlu1 %v7016_v20  ;;  %v860_v10 = vmul.f32 %v786_v3, %v7112_v2  ;;  %v863_v37 = vmul.f32 %v788_v0, %v7102_v61  ;;  %6119 = vperm.xlu2 %6117, %v7279_v56   ;;  %v945_v6 = vmul.f32 1.442695, %v861_v53  ;;  %v792_v34 = vperm.slane %v762_v55, 0 }
  0xf5   : > { %v937_v45 = vmul.f32 1.442695, %v857_v32  ;;  %v864_v3 = vmul.f32 %v788_v0, %v7112_v2  ;;  %v939_v27 = vmul.f32 1.442695, %v858_v4  ;;  %v941_v19 = vmul.f32 1.442695, %v859_v9 }
  0xf6   : > { %v943_v58 = vmul.f32 1.442695, %v860_v10  ;;  %v865_v7 = vmul.f32 %v789_v38, %v7102_v61  ;;  %v866_v43 = vmul.f32 %v789_v38, %v7112_v2  ;;  %v947_v42 = vmul.f32 1.442695, %v862_v35  ;;  %v7304_v38 = vpop.permute.xlu2 %6021 }
  0xf7   : > { %6357 = vpow2.f32 %v937_v45  ;;  %v867_v41 = vmul.f32 %v790_v49, %v7102_v61  ;;  %v949_v32 = vmul.f32 1.442695, %v863_v37  ;;  %v616_v0 = vand.u32 2147483647, %v7292_v5 }
  0xf8   : > { %6359 = vpow2.f32 %v939_v27  ;;  %v868_v9 = vmul.f32 %v790_v49, %v7112_v2  ;;  %v869_v10 = vmul.f32 %v791_v24, %v7102_v61  ;;  %v951_v53 = vmul.f32 1.442695, %v864_v3 }
  0xf9   : > { %6361 = vpow2.f32 %v941_v19  ;;  %v953_v55 = vmul.f32 1.442695, %v865_v7  ;;  %v870_v35 = vmul.f32 %v791_v24, %v7112_v2  ;;  %v871_v19 = vmul.f32 %v792_v34, %v7102_v61 }
  0xfa   : > { %6363 = vpow2.f32 %v943_v58  ;;  %v955_v37 = vmul.f32 1.442695, %v866_v43  ;;  %v957_v58 = vmul.f32 1.442695, %v867_v41  ;;  %v959_v7 = vmul.f32 1.442695, %v868_v9 }
  0xfb   : > { %6365 = vpow2.f32 %v945_v6  ;;  %v872_v6 = vmul.f32 %v792_v34, %v7112_v2  ;;  %v961_v43 = vmul.f32 1.442695, %v869_v10  ;;  %v963_v34 = vmul.f32 1.442695, %v870_v35  ;;  %v5813_v10 = vld [vmem:[%s6983_s0 + $0x18] sm:$0xff]  }
  0xfc   : > { %6113 = vperm.xlu1 %6111, %v6106_v54   ;;  %6367 = vpow2.f32 %v947_v42  ;;  %v7392_v46 = vunpack.c.h.bf16 %v5813_v10 }
  0xfd   : > { %v6358_v27 = vpop.eup %6357  ;;  %6369 = vpow2.f32 %v949_v32  ;;  %v965_v32 = vmul.f32 1.442695, %v871_v19 }
  0xfe   : > { %v6000_v4 = vpop.permute.xlu1 %5999  ;;  %v6360_v3 = vpop.eup %6359  ;;  %6371 = vpow2.f32 %v951_v53  ;;  %1050 = vst.msk [vmem:[#allocation3 + $0x100] sm:$0xff] %vm1033_vm3, %v6358_v27  ;;  %v624_v53 = vsub.f32 0.0, %v616_v0 }
  0xff   : > { %v6002_v45 = vunpack.i.h.bf16 %v6000_v4  ;;  %v6001_v54 = vunpack.i.l.bf16 %v6000_v4  ;;  %v7313_v4 = vld [vmem:[%s6983_s0 + $0x10] sm:$0xff]   ;;  %v6362_v24 = vpop.eup %6361  ;;  %6373 = vpow2.f32 %v953_v55  ;;  %1051 = vst.msk [vmem:[#allocation3 + $0x108] sm:$0xff] %vm1033_vm3, %v6360_v3 }
 0x100   : > { %v6364_v42 = vpop.eup %6363  ;;  %6375 = vpow2.f32 %v955_v37  ;;  %v7325_v9 = vunpack.c.l.bf16 %v7313_v4  ;;  %1052 = vst.msk [vmem:[#allocation3 + $0x120] sm:$0xff] %vm1033_vm3, %v6362_v24  ;;  %v7344_v37 = vunpack.c.l.bf16 %v5813_v10 }
 0x101   : > { %v1622_v49 = vmul.f32 %v6001_v54, %v7223_v60  ;;  %v1624_v62 = vmul.f32 %v6002_v45, %v7227_v48  ;;  %v9446_v60 = vunpack.c.h.bf16 %v7133_v44  ;;  %v6366_v41 = vpop.eup %6365  ;;  %6377 = vpow2.f32 %v957_v58  ;;  %1053 = vst.msk [vmem:[#allocation3 + $0x128] sm:$0xff] %vm1033_vm3, %v6364_v42  ;;  %v6032_v58 = vpop.permute.xlu2 %6031 }
 0x102   : > { %v6368_v45 = vpop.eup %6367  ;;  %6379 = vpow2.f32 %v959_v7  ;;  %v7332_v54 = vperm.slane %v7325_v9, 0  ;;  %v7335_v55 = vperm.slane %v7325_v9, 1  ;;  %1054 = vst.msk [vmem:[#allocation3 + $0x140] sm:$0xff] %vm1033_vm3, %v6366_v41  ;;  %v7339_v0 = vperm.slane %v7325_v9, 6 }
 0x103   : > { %1686 = vst.msk [vmem:[#allocation4 + $0xc0] sm:$0xff] %vm1033_vm3, %v1622_v49  ;;  %v7319_v48 = vmul.f32 %v9446_v60, %v7264_v36  ;;  %v967_v36 = vmul.f32 1.442695, %v872_v6  ;;  %6381 = vpow2.f32 %v961_v43  ;;  %v7342_v19 = vperm.slane %v7325_v9, 7 }
 0x104   : > { %1688 = vst.msk [vmem:[#allocation4 + $0xe0] sm:$0xff] %vm1033_vm3, %v1624_v62  ;;  %6124 = vperm.xlu1 %6111, %v7279_v56   ;;  %v6370_v62 = vpop.eup %6369  ;;  %6383 = vpow2.f32 %v963_v34  ;;  %v7350_v3 = vpack.i.bf16 %v7335_v55, %v7332_v54  ;;  %v634_v6 = vmul.f32 1.442695, %v624_v53  ;;  %v6023_v42 = vunpack.i.l.bf16 %v7304_v38 }
 0x105   : > { %v1526_v56 = vrot.slane %v7319_v48, 2  ;;  %9447 = vst [vmem:[#allocation33_spill] sm:$0xff] %v7332_v54  ;;  %v6372_v35 = vpop.eup %6371  ;;  %6385 = vpow2.f32 %v965_v32  ;;  %v1527_v49 = vrot.slane %v7319_v48, 3  ;;  %v1528_v24 = vrot.slane %v7319_v48, 4 }
 0x106   : > { %9448 = vst [vmem:[#allocation34_spill] sm:$0xff] %v7335_v55  ;;  %v6374_v27 = vpop.eup %6373  ;;  %6387 = vpow2.f32 %v967_v36  ;;  %v7356_v43 = vpack.i.bf16 %v7342_v19, %v7339_v0  ;;  %v1529_v41 = vrot.slane %v7319_v48, 5  ;;  %6129 = vperm.xlu2 %6117, %v7350_v3   ;;  %v7367_v53 = vperm.slane %v7325_v9, 2 }
 0x107   : > { %9449 = vst [vmem:[#allocation35_spill] sm:$0xff] %v7339_v0  ;;  %v6376_v7 = vpop.eup %6375  ;;  %v7360_v34 = vperm.slane %v1526_v56, 0  ;;  %v7374_v36 = vperm.slane %v7344_v37, 0  ;;  %v1525_v0 = vrot.slane %v7319_v48, 1  ;;  %6389 = vpow2.f32 %v634_v6 }
 0x108   : > { %9450 = vst [vmem:[#allocation36_spill] sm:$0xff] %v7342_v19  ;;  %v6378_v60 = vpop.eup %6377  ;;  %6156 = vperm.xlu0 %5967, %v7356_v43   ;;  %v6033_v54 = vunpack.i.l.bf16 %v6032_v58  ;;  %v7385_v44 = vperm.slane %v1528_v24, 0  ;;  %v1530_v51 = vrot.slane %v7319_v48, 6  ;;  %v7474_v19 = vld [vmem:[%s6981_s9 + $0x8] sm:$0xff]  }
 0x109   : > { %1055 = vst.msk [vmem:[#allocation3 + $0x148] sm:$0xff] %vm1033_vm3, %v6368_v45  ;;  %v6380_v32 = vpop.eup %6379  ;;  %v7370_v45 = vperm.slane %v7325_v9, 3  ;;  %v7404_v10 = vperm.slane %v1525_v0, 0  ;;  %v7418_v0 = vperm.slane %v7325_v9, 5 }
 0x10a   : > { %1056 = vst.msk [vmem:[#allocation3 + $0x160] sm:$0xff] %vm1033_vm3, %v6370_v62  ;;  %v7377_v62 = vperm.slane %v7344_v37, 1  ;;  %v6382_v56 = vpop.eup %6381 }
 0x10b   : > { %1057 = vst.msk [vmem:[#allocation3 + $0x168] sm:$0xff] %vm1033_vm3, %v6372_v35  ;;  %v6024_v35 = vunpack.i.h.bf16 %v7304_v38  ;;  %v6384_v55 = vpop.eup %6383  ;;  %v6034_v38 = vunpack.i.h.bf16 %v6032_v58  ;;  %v6134_v40 = vpack.i.bf16 %v7370_v45, %v7367_v53 }
 0x10c   : > { %1058 = vst.msk [vmem:[#allocation3 + $0x180] sm:$0xff] %vm1033_vm3, %v6374_v27  ;;  %6133 = vset.pattern.permute.xlu1 %v6994_v13  ;;  %v7381_v27 = vperm.slane %v1527_v49, 0  ;;  %v6386_v59 = vpop.eup %6385  ;;  %v7390_v49 = vperm.slane %v1529_v41, 0  ;;  %v7400_v31 = vpack.i.bf16 %v7377_v62, %v7374_v36  ;;  %v6044_v41 = vpop.permute.xlu2 %6043 }
 0x10d   : > { %9451 = vst [vmem:[#allocation37_spill] sm:$0xff] %v7367_v53  ;;  %v6388_v6 = vpop.eup %6387  ;;  %v6045_v24 = vunpack.i.l.bf16 %v6044_v41  ;;  %v6046_v26 = vunpack.i.h.bf16 %v6044_v41 }
 0x10e   : > { %9452 = vst [vmem:[#allocation38_spill] sm:$0xff] %v7370_v45  ;;  %v6016_v47 = vpop.permute.xlu1 %6015  ;;  %v1632_v58 = vmul.f32 %v6024_v35, %v7381_v27  ;;  %v7409_v45 = vperm.slane %v1530_v51, 0  ;;  %v6390_v30 = vpop.eup %6389  ;;  %6139 = vset.pattern.permute.xlu2 %v7016_v20  ;;  %v9458_v51 = vperm.slane %v7319_v48, 0  ;;  %v7428_v35 = vperm.slane %v7392_v46, 3 }
 0x10f   : > { %9453 = vst [vmem:[#allocation39_spill] sm:$0xff] %v7374_v36  ;;  %v670_v41 = vand.u32 2147483647, %v6390_v30 }
 0x110   : > { %9454 = vst [vmem:[#allocation40_spill] sm:$0xff] %v7377_v62  ;;  %6205 = vperm.xlu0 %5967, %v7400_v31  }
 0x111   : > { %1059 = vst.msk [vmem:[#allocation3 + $0x188] sm:$0xff] %vm1033_vm3, %v6376_v7  ;;  %v1630_v7 = vmul.f32 %v6023_v42, %v7360_v34  ;;  %v6018_v42 = vunpack.i.h.bf16 %v6016_v47  ;;  %vm671_vm6 = vcmp.lt.f32.partialorder %v670_v41, 0.0004427343 }
 0x112   : > { %1060 = vst.msk [vmem:[#allocation3 + $0x1a0] sm:$0xff] %vm1033_vm3, %v6378_v60  ;;  %v6017_v60 = vunpack.i.l.bf16 %v6016_v47  ;;  %v7415_v47 = vperm.slane %v7325_v9, 4 }
 0x113   : > { %1061 = vst.msk [vmem:[#allocation3 + $0x1a8] sm:$0xff] %vm1033_vm3, %v6380_v32  ;;  %v1531_v32 = vrot.slane %v7319_v48, 7  ;;  %v1629_v36 = vmul.f32 %v6018_v42, %v7404_v10 }
 0x114   : > { %1062 = vst.msk [vmem:[#allocation3 + $0x1c0] sm:$0xff] %vm1033_vm3, %v6382_v56  ;;  %v1634_v56 = vmul.f32 %v6033_v54, %v7385_v44  ;;  %v1627_v54 = vmul.f32 %v6017_v60, %v9458_v51  ;;  %6135 = vperm.xlu1 %6133, %v6134_v40   ;;  %v1639_v60 = vmul.f32 %v6045_v24, %v7409_v45 }
 0x115   : > { %1063 = vst.msk [vmem:[#allocation3 + $0x1c8] sm:$0xff] %vm1033_vm3, %v6384_v55  ;;  %v1636_v55 = vmul.f32 %v6034_v38, %v7390_v49  ;;  %v664_v38 = vadd.f32 1.0, %v6390_v30  ;;  %v7432_v25 = vperm.slane %v1531_v32, 0 }
 0x116   : > { %1064 = vst.msk [vmem:[#allocation3 + $0x1e0] sm:$0xff] %vm1033_vm3, %v6386_v59  ;;  %v7421_v59 = vperm.slane %v7392_v46, 2  ;;  %6141 = vperm.xlu2 %6139, %v6134_v40  }
 0x117   : > { %1065 = vst.msk [vmem:[#allocation3 + $0x1e8] sm:$0xff] %vm1033_vm3, %v6388_v6  ;;  %v667_v6 = vmul.f32 -0.5, %v6390_v30  ;;  %6391 = vlog2.f32 %v664_v38 }
 0x118   : > { %9455 = vst [vmem:[#allocation41_spill] sm:$0xff] %v7415_v47  ;;  %v7444_v42 = vpack.i.bf16 %v7428_v35, %v7421_v59 }
 0x119   : > { %9456 = vst [vmem:[#allocation42_spill] sm:$0xff] %v7418_v0  ;;  %v668_v28 = vadd.f32 1.0, %v667_v6 }
 0x11a   : > { %9457 = vst [vmem:[#allocation43_spill] sm:$0xff] %v7421_v59  ;;  %6254 = vperm.xlu0 %5967, %v7444_v42  }
 0x11b   : > { %1694 = vst.msk [vmem:[#allocation4 + $0x140] sm:$0xff] %vm1033_vm3, %v1630_v7  ;;  %v6027_v7 = vpop.permute.xlu1 %6026 }
 0x11c   : > { %9459 = vst [vmem:[#allocation44_spill] sm:$0xff] %v7428_v35  ;;  %v6029_v51 = vunpack.i.h.bf16 %v6027_v7  ;;  %v6028_v62 = vunpack.i.l.bf16 %v6027_v7  ;;  %v7471_v35 = vpop.permute.xlu2 %6053 }
 0x11d   : > { %1696 = vst.msk [vmem:[#allocation4 + $0x160] sm:$0xff] %vm1033_vm3, %v1632_v58  ;;  %v7440_v58 = vpack.i.bf16 %v7418_v0, %v7415_v47 }
 0x11e   : > { %1698 = vst.msk [vmem:[#allocation4 + $0x180] sm:$0xff] %vm1033_vm3, %v1634_v56  ;;  %v1631_v24 = vmul.f32 %v6028_v62, %v7360_v34  ;;  %v1633_v32 = vmul.f32 %v6029_v51, %v7381_v27  ;;  %v1641_v56 = vmul.f32 %v6046_v26, %v7432_v25 }
 0x11f   : > { %1700 = vst.msk [vmem:[#allocation4 + $0x1a0] sm:$0xff] %vm1033_vm3, %v1636_v55  ;;  %v669_v55 = vmul.f32 %v6390_v30, %v668_v28  ;;  %6146 = vperm.xlu1 %6133, %v7440_v58   ;;  %6151 = vperm.xlu2 %6139, %v7440_v58  }
 0x120   : > { %1691 = vst.msk [vmem:[#allocation4 + $0x108] sm:$0xff] %vm1033_vm3, %v1627_v54  ;;  %v6392_v54 = vpop.eup %6391 }
 0x121   : > { %1693 = vst.msk [vmem:[#allocation4 + $0x128] sm:$0xff] %vm1033_vm3, %v1629_v36  ;;  %v592_v36 = vmax.f32 %v7292_v5, 0.0  ;;  %v666_v34 = vmul.f32 0.6931472, %v6392_v54 }
 0x122   : > { %1703 = vst.msk [vmem:[#allocation4 + $0x1c8] sm:$0xff] %vm1033_vm3, %v1639_v60  ;;  %6258 = vset.pattern.permute.xlu0 %v7016_v20 }
 0x123   : > { %1695 = vst.msk [vmem:[#allocation4 + $0x148] sm:$0xff] %vm1033_vm3, %v1631_v24  ;;  %v672_v26 = vsel %vm671_vm6, %v669_v55, %v666_v34 }
 0x124   : > { %1697 = vst.msk [vmem:[#allocation4 + $0x168] sm:$0xff] %vm1033_vm3, %v1633_v32  ;;  %v720_v62 = vadd.f32 %v672_v26, %v592_v36 }
 0x125   : > { %1705 = vst.msk [vmem:[#allocation4 + $0x1e8] sm:$0xff] %vm1033_vm3, %v1641_v56 }
 0x126   : > { %v728_v28 = vsel %vm600_vm7, %v7292_v5, %v720_v62  ;;  %9460 = vst [vmem:[#allocation45_spill] sm:$0xff] %v7474_v19 }
 0x127   : > { %v763_v30 = vrot.slane %v728_v28, 1  ;;  %v764_v40 = vrot.slane %v728_v28, 2  ;;  %v765_v27 = vrot.slane %v728_v28, 3  ;;  %6160 = vset.pattern.permute.xlu1 %v7016_v20  ;;  %v766_v38 = vrot.slane %v728_v28, 4  ;;  %6166 = vset.pattern.permute.xlu2 %v6994_v13 }
 0x128   : > { %v793_v6 = vperm.slane %v728_v28, 0  ;;  %v767_v51 = vrot.slane %v728_v28, 5  ;;  %v768_v55 = vrot.slane %v728_v28, 6  ;;  %v769_v26 = vrot.slane %v728_v28, 7 }
 0x129   : > { %v794_v7 = vperm.slane %v763_v30, 0  ;;  %v795_v60 = vperm.slane %v764_v40, 0  ;;  %v796_v41 = vperm.slane %v765_v27, 0  ;;  %v797_v54 = vperm.slane %v766_v38, 0 }
 0x12a   : > { %v873_v24 = vmul.f32 %v793_v6, %v7102_v61  ;;  %v874_v32 = vmul.f32 %v793_v6, %v7112_v2  ;;  %v798_v62 = vperm.slane %v767_v51, 0  ;;  %v799_v47 = vperm.slane %v768_v55, 0  ;;  %6260 = vperm.xlu0 %6258, %v7188_v12  }
 0x12b   : > { %v875_v56 = vmul.f32 %v794_v7, %v7102_v61  ;;  %v876_v5 = vmul.f32 %v794_v7, %v7112_v2  ;;  %v877_v36 = vmul.f32 %v795_v60, %v7102_v61  ;;  %v878_v34 = vmul.f32 %v795_v60, %v7112_v2  ;;  %v7476_v60 = vpop.permute.xlu1 %6037 }
 0x12c   : > { %v879_v30 = vmul.f32 %v796_v41, %v7102_v61  ;;  %v969_v40 = vmul.f32 1.442695, %v873_v24  ;;  %v880_v27 = vmul.f32 %v796_v41, %v7112_v2  ;;  %v971_v59 = vmul.f32 1.442695, %v874_v32 }
 0x12d   : > { %v973_v6 = vmul.f32 1.442695, %v875_v56  ;;  %v975_v0 = vmul.f32 1.442695, %v876_v5  ;;  %v881_v7 = vmul.f32 %v797_v54, %v7102_v61  ;;  %v977_v38 = vmul.f32 1.442695, %v877_v36 }
 0x12e   : > { %6393 = vpow2.f32 %v969_v40  ;;  %v882_v51 = vmul.f32 %v797_v54, %v7112_v2  ;;  %v979_v24 = vmul.f32 1.442695, %v878_v34  ;;  %v800_v22 = vperm.slane %v769_v26, 0 }
 0x12f   : > { %6395 = vpow2.f32 %v971_v59  ;;  %v883_v41 = vmul.f32 %v798_v62, %v7102_v61  ;;  %v981_v32 = vmul.f32 1.442695, %v879_v30  ;;  %v884_v56 = vmul.f32 %v798_v62, %v7112_v2  ;;  %6162 = vperm.xlu1 %6160, %v7356_v43  }
 0x130   : > { %6397 = vpow2.f32 %v973_v6  ;;  %v983_v5 = vmul.f32 1.442695, %v880_v27  ;;  %v9360_v55 = vunpack.c.l.bf16 %v7474_v19  ;;  %v885_v36 = vmul.f32 %v799_v47, %v7102_v61 }
 0x131   : > { %6399 = vpow2.f32 %v975_v0  ;;  %v886_v40 = vmul.f32 %v799_v47, %v7112_v2  ;;  %v985_v53 = vmul.f32 1.442695, %v881_v7  ;;  %v987_v59 = vmul.f32 1.442695, %v882_v51 }
 0x132   : > { %6401 = vpow2.f32 %v977_v38  ;;  %v887_v34 = vmul.f32 %v800_v22, %v7102_v61  ;;  %v989_v26 = vmul.f32 1.442695, %v883_v41  ;;  %v888_v62 = vmul.f32 %v800_v22, %v7112_v2  ;;  %v7497_v22 = vpop.permute.xlu2 %6070  ;;  %6265 = vperm.xlu0 %6258, %v7059_v33  }
 0x133   : > { %6403 = vpow2.f32 %v979_v24  ;;  %v991_v0 = vmul.f32 1.442695, %v884_v56  ;;  %v7489_v27 = vmul.f32 %v9360_v55, %v728_v28  ;;  %v993_v61 = vmul.f32 1.442695, %v885_v36  ;;  %v7501_v43 = vpop.permute.xlu1 %6048 }
 0x134   : > { %v6394_v54 = vpop.eup %6393  ;;  %6405 = vpow2.f32 %v981_v32  ;;  %v7495_v6 = vunpack.c.h.bf16 %v7313_v4  ;;  %v995_v7 = vmul.f32 1.442695, %v886_v40  ;;  %v997_v58 = vmul.f32 1.442695, %v887_v34 }
 0x135   : > { %v6396_v30 = vpop.eup %6395  ;;  %6407 = vpow2.f32 %v983_v5  ;;  %1066 = vst.msk [vmem:[#allocation3 + $0x200] sm:$0xff] %vm1033_vm3, %v6394_v54  ;;  %v999_v51 = vmul.f32 1.442695, %v888_v62  ;;  %v1532_v24 = vrot.slane %v7489_v27, 1  ;;  %v6055_v12 = vunpack.i.l.bf16 %v7471_v35 }
 0x136   : > { %v6398_v47 = vpop.eup %6397  ;;  %6409 = vpow2.f32 %v985_v53  ;;  %1067 = vst.msk [vmem:[#allocation3 + $0x208] sm:$0xff] %vm1033_vm3, %v6396_v30  ;;  %v7504_v53 = vperm.slane %v7495_v6, 0  ;;  %v7507_v4 = vperm.slane %v7495_v6, 1  ;;  %v1562_v5 = vperm.slane %v7489_v27, 0 }
 0x137   : > { %v6400_v2 = vpop.eup %6399  ;;  %6411 = vpow2.f32 %v987_v59  ;;  %1068 = vst.msk [vmem:[#allocation3 + $0x220] sm:$0xff] %vm1033_vm3, %v6398_v47  ;;  %v6040_v40 = vunpack.i.h.bf16 %v7476_v60  ;;  %v6039_v59 = vunpack.i.l.bf16 %v7476_v60  ;;  %v6056_v34 = vunpack.i.h.bf16 %v7471_v35 }
 0x138   : > { %v6402_v28 = vpop.eup %6401  ;;  %6413 = vpow2.f32 %v989_v26  ;;  %1069 = vst.msk [vmem:[#allocation3 + $0x228] sm:$0xff] %vm1033_vm3, %v6400_v2  ;;  %v6172_v32 = vpack.i.bf16 %v7507_v4, %v7504_v53  ;;  %v1563_v26 = vperm.slane %v1532_v24, 0  ;;  %v6050_v30 = vunpack.i.l.bf16 %v7501_v43 }
 0x139   : > { %9461 = vst [vmem:[#allocation46_spill] sm:$0xff] %v7504_v53  ;;  %v6404_v38 = vpop.eup %6403  ;;  %6415 = vpow2.f32 %v991_v0  ;;  %v1643_v47 = vmul.f32 %v6055_v12, %v1562_v5  ;;  %v1535_v60 = vrot.slane %v7489_v27, 4  ;;  %v1638_v35 = vmul.f32 %v6039_v59, %v7409_v45 }
 0x13a   : > { %9462 = vst [vmem:[#allocation47_spill] sm:$0xff] %v7507_v4  ;;  %v6406_v41 = vpop.eup %6405  ;;  %6417 = vpow2.f32 %v993_v61  ;;  %6173 = vperm.xlu1 %6160, %v6172_v32   ;;  %v1536_v61 = vrot.slane %v7489_v27, 5  ;;  %v6073_v12 = vunpack.i.h.bf16 %v7497_v22  ;;  %v1538_v45 = vrot.slane %v7489_v27, 7  ;;  %6168 = vperm.xlu2 %6166, %v6172_v32  }
 0x13b   : > { %1070 = vst.msk [vmem:[#allocation3 + $0x240] sm:$0xff] %vm1033_vm3, %v6402_v28  ;;  %v6408_v56 = vpop.eup %6407  ;;  %6419 = vpow2.f32 %v995_v7  ;;  %v1640_v7 = vmul.f32 %v6040_v40, %v7432_v25  ;;  %v6051_v28 = vunpack.i.h.bf16 %v7501_v43  ;;  %v6072_v25 = vunpack.i.l.bf16 %v7497_v22  ;;  %v7541_v43 = vld [vmem:[%s6979_s28] ss:$0 sm:$0xff]  ;;  %6270 = vperm.xlu0 %6258, %v7163_v50  }
 0x13c   : > { %1071 = vst.msk [vmem:[#allocation3 + $0x248] sm:$0xff] %vm1033_vm3, %v6404_v38  ;;  %v6410_v36 = vpop.eup %6409  ;;  %6421 = vpow2.f32 %v997_v58  ;;  %v6081_v58 = vpop.permute.xlu2 %6080  ;;  %v1537_v38 = vrot.slane %v7489_v27, 6  ;;  %v7545_v33 = vadd.f32 %v7541_v43, %v7199_v1  ;;  %v1566_v59 = vperm.slane %v1535_v60, 0 }
 0x13d   : > { %1072 = vst.msk [vmem:[#allocation3 + $0x260] sm:$0xff] %vm1033_vm3, %v6406_v41  ;;  %v6412_v54 = vpop.eup %6411  ;;  %6423 = vpow2.f32 %v999_v51  ;;  %v1645_v41 = vmul.f32 %v6056_v34, %v1563_v26  ;;  %v1533_v34 = vrot.slane %v7489_v27, 2  ;;  %v1534_v22 = vrot.slane %v7489_v27, 3 }
 0x13e   : > { %1073 = vst.msk [vmem:[#allocation3 + $0x268] sm:$0xff] %vm1033_vm3, %v6408_v56  ;;  %v6414_v62 = vpop.eup %6413  ;;  %v6065_v51 = vpop.permute.xlu1 %6064  ;;  %v1642_v56 = vmul.f32 %v6050_v30, %v1562_v5  ;;  %v1567_v5 = vperm.slane %v1536_v61, 0  ;;  %v7550_v30 = vperm.slane %v1537_v38, 0  ;;  %v7557_v1 = vperm.slane %v7495_v6, 2 }
 0x13f   : > { %1074 = vst.msk [vmem:[#allocation3 + $0x280] sm:$0xff] %vm1033_vm3, %v6410_v36  ;;  %v6416_v0 = vpop.eup %6415  ;;  %v7563_v60 = vperm.slane %v7495_v6, 4  ;;  %v7566_v61 = vperm.slane %v7495_v6, 5  ;;  %v1644_v27 = vmul.f32 %v6051_v28, %v1563_v26  ;;  %v1650_v38 = vmul.f32 %v6072_v25, %v1566_v59 }
 0x140   : > { %1075 = vst.msk [vmem:[#allocation3 + $0x288] sm:$0xff] %vm1033_vm3, %v6412_v54  ;;  %v6418_v2 = vpop.eup %6417  ;;  %v6082_v54 = vunpack.i.l.bf16 %v6081_v58  ;;  %v6067_v55 = vunpack.i.h.bf16 %v6065_v51  ;;  %v7575_v53 = vperm.slane %v1534_v22, 0  ;;  %vm601_vm9 = vcmp.ne.f32.partialorder %v7545_v33, %v7545_v33 }
 0x141   : > { %1076 = vst.msk [vmem:[#allocation3 + $0x2a0] sm:$0xff] %vm1033_vm3, %v6414_v62  ;;  %v6420_v24 = vpop.eup %6419  ;;  %v617_v62 = vand.u32 2147483647, %v7545_v33 }
 0x142   : > { %1077 = vst.msk [vmem:[#allocation3 + $0x2a8] sm:$0xff] %vm1033_vm3, %v6416_v0  ;;  %v6422_v36 = vpop.eup %6421  ;;  %6182 = vset.pattern.permute.xlu1 %v6994_v13  ;;  %v7560_v0 = vperm.slane %v7495_v6, 3  ;;  %v1654_v28 = vmul.f32 %v6082_v54, %v7550_v30  ;;  %v7595_v54 = vperm.slane %v7495_v6, 7 }
 0x143   : > { %1078 = vst.msk [vmem:[#allocation3 + $0x2c0] sm:$0xff] %vm1033_vm3, %v6418_v2  ;;  %v6424_v40 = vpop.eup %6423  ;;  %v6083_v2 = vunpack.i.h.bf16 %v6081_v58  ;;  %v625_v32 = vsub.f32 0.0, %v617_v62  ;;  %v6183_v58 = vpack.i.bf16 %v7566_v61, %v7563_v60  ;;  %6275 = vperm.xlu0 %6258, %v7350_v3   ;;  %v7611_v3 = vadd.f32 %v7541_v43, %v7325_v9 }
 0x144   : > { %1079 = vst.msk [vmem:[#allocation3 + $0x2c8] sm:$0xff] %vm1033_vm3, %v6420_v24  ;;  %v6066_v24 = vunpack.i.l.bf16 %v6065_v51 }
 0x145   : > { %1080 = vst.msk [vmem:[#allocation3 + $0x2e0] sm:$0xff] %vm1033_vm3, %v6422_v36  ;;  %v7572_v36 = vperm.slane %v1533_v34, 0  ;;  %v636_v26 = vmul.f32 1.442695, %v625_v32  ;;  %vm602_vm11 = vcmp.ne.f32.partialorder %v7611_v3, %v7611_v3 }
 0x146   : > { %1081 = vst.msk [vmem:[#allocation3 + $0x2e8] sm:$0xff] %vm1033_vm3, %v6424_v40  ;;  %v1652_v40 = vmul.f32 %v6073_v12, %v1567_v5 }
 0x147   : > { %1707 = vst.msk [vmem:[#allocation4 + $0x208] sm:$0xff] %vm1033_vm3, %v1643_v47  ;;  %v7569_v47 = vperm.slane %v1538_v45, 0  ;;  %6425 = vpow2.f32 %v636_v26  ;;  %v1647_v50 = vmul.f32 %v6066_v24, %v7572_v36  ;;  %v7592_v45 = vperm.slane %v7495_v6, 6 }
 0x148   : > { %9463 = vst [vmem:[#allocation48_spill] sm:$0xff] %v7557_v1 }
 0x149   : > { %9464 = vst [vmem:[#allocation49_spill] sm:$0xff] %v7560_v0 }
 0x14a   : > { %9465 = vst [vmem:[#allocation50_spill] sm:$0xff] %v7563_v60  ;;  %6184 = vperm.xlu1 %6182, %v6183_v58  }
 0x14b   : > { %9466 = vst [vmem:[#allocation51_spill] sm:$0xff] %v7566_v61 }
 0x14c   : > { %1709 = vst.msk [vmem:[#allocation4 + $0x228] sm:$0xff] %vm1033_vm3, %v1645_v41  ;;  %v6076_v41 = vpop.permute.xlu1 %6075 }
 0x14d   : > { %1702 = vst.msk [vmem:[#allocation4 + $0x1c0] sm:$0xff] %vm1033_vm3, %v1638_v35  ;;  %v6177_v35 = vpack.i.bf16 %v7560_v0, %v7557_v1  ;;  %v6077_v25 = vunpack.i.l.bf16 %v6076_v41  ;;  %v6078_v51 = vunpack.i.h.bf16 %v6076_v41  ;;  %v6426_v22 = vpop.eup %6425 }
 0x14e   : > { %1704 = vst.msk [vmem:[#allocation4 + $0x1e0] sm:$0xff] %vm1033_vm3, %v1640_v7  ;;  %v1656_v7 = vmul.f32 %v6083_v2, %v7569_v47  ;;  %v676_v62 = vmul.f32 -0.5, %v6426_v22 }
 0x14f   : > { %1706 = vst.msk [vmem:[#allocation4 + $0x200] sm:$0xff] %vm1033_vm3, %v1642_v56  ;;  %v1649_v56 = vmul.f32 %v6067_v55, %v7575_v53  ;;  %6178 = vperm.xlu2 %6166, %v6177_v35   ;;  %v1651_v12 = vmul.f32 %v6077_v25, %v1566_v59  ;;  %v1653_v34 = vmul.f32 %v6078_v51, %v1567_v5  ;;  %v673_v59 = vadd.f32 1.0, %v6426_v22 }
 0x150   : > { %1708 = vst.msk [vmem:[#allocation4 + $0x220] sm:$0xff] %vm1033_vm3, %v1644_v27  ;;  %v7604_v55 = vpack.i.bf16 %v7595_v54, %v7592_v45  ;;  %v677_v27 = vadd.f32 1.0, %v676_v62  ;;  %v679_v5 = vand.u32 2147483647, %v6426_v22  ;;  %6280 = vperm.xlu0 %6258, %v6177_v35   ;;  %v7632_v62 = vld [vmem:[%s6973_s29 + $0x8] sm:$0xff] }
 0x151   : > { %1714 = vst.msk [vmem:[#allocation4 + $0x280] sm:$0xff] %vm1033_vm3, %v1650_v38  ;;  %6427 = vlog2.f32 %v673_v59  ;;  %v593_v38 = vmax.f32 %v7545_v33, 0.0  ;;  %v7628_v59 = vld [vmem:[%s6973_s29] sm:$0xff] }
 0x152   : > { %1716 = vst.msk [vmem:[#allocation4 + $0x2a0] sm:$0xff] %vm1033_vm3, %v1652_v40  ;;  %6195 = vperm.xlu1 %6182, %v7604_v55   ;;  %v678_v2 = vmul.f32 %v6426_v22, %v677_v27  ;;  %vm680_vm8 = vcmp.lt.f32.partialorder %v679_v5, 0.0004427343  ;;  %v618_v40 = vand.u32 2147483647, %v7611_v3 }
 0x153   : > { %1718 = vst.msk [vmem:[#allocation4 + $0x2c0] sm:$0xff] %vm1033_vm3, %v1654_v28 }
 0x154   : > { %9467 = vst [vmem:[#allocation52_spill] sm:$0xff] %v7592_v45  ;;  %v626_v9 = vsub.f32 0.0, %v618_v40 }
 0x155   : > { %9468 = vst [vmem:[#allocation53_spill] sm:$0xff] %v7595_v54 }
 0x156   : > { %1720 = vst.msk [vmem:[#allocation4 + $0x2e0] sm:$0xff] %vm1033_vm3, %v1656_v7 }
 0x157   : > { %1711 = vst.msk [vmem:[#allocation4 + $0x248] sm:$0xff] %vm1033_vm3, %v1647_v50  ;;  %6188 = vset.pattern.permute.xlu2 %v7016_v20  ;;  %v6428_v32 = vpop.eup %6427 }
 0x158   : > { %1713 = vst.msk [vmem:[#allocation4 + $0x268] sm:$0xff] %vm1033_vm3, %v1649_v56  ;;  %v675_v24 = vmul.f32 0.6931472, %v6428_v32 }
 0x159   : > { %1715 = vst.msk [vmem:[#allocation4 + $0x288] sm:$0xff] %vm1033_vm3, %v1651_v12 }
 0x15a   : > { %1717 = vst.msk [vmem:[#allocation4 + $0x2a8] sm:$0xff] %vm1033_vm3, %v1653_v34  ;;  %v681_v41 = vsel %vm680_vm8, %v678_v2, %v675_v24  ;;  %6209 = vset.pattern.permute.xlu1 %v7016_v20 }
 0x15b   : > { %v721_v26 = vadd.f32 %v681_v41, %v593_v38 }
 0x15d   : > { %v7619_v28 = vsel %vm601_vm9, %v7545_v33, %v721_v26 }
 0x15e   : > { %v770_v25 = vrot.slane %v7619_v28, 1  ;;  %v771_v35 = vrot.slane %v7619_v28, 2  ;;  %v772_v7 = vrot.slane %v7619_v28, 3  ;;  %v773_v51 = vrot.slane %v7619_v28, 4 }
 0x15f   : > { %6190 = vperm.xlu2 %6188, %v6183_v58   ;;  %v801_v50 = vperm.slane %v7619_v28, 0  ;;  %v638_v58 = vmul.f32 1.442695, %v626_v9  ;;  %v774_v34 = vrot.slane %v7619_v28, 5  ;;  %v775_v32 = vrot.slane %v7619_v28, 6 }
 0x160   : > { %v802_v56 = vperm.slane %v770_v25, 0  ;;  %v803_v12 = vperm.slane %v771_v35, 0  ;;  %v804_v22 = vperm.slane %v772_v7, 0  ;;  %v805_v38 = vperm.slane %v773_v51, 0 }
 0x161   : > { %v889_v33 = vmul.f32 %v7628_v59, %v801_v50  ;;  %v890_v27 = vmul.f32 %v7632_v62, %v801_v50  ;;  %6429 = vpow2.f32 %v638_v58  ;;  %v776_v41 = vrot.slane %v7619_v28, 7 }
 0x162   : > { %v891_v5 = vmul.f32 %v7628_v59, %v802_v56  ;;  %v892_v2 = vmul.f32 %v7632_v62, %v802_v56  ;;  %v893_v24 = vmul.f32 %v7628_v59, %v803_v12  ;;  %v894_v40 = vmul.f32 %v7632_v62, %v803_v12  ;;  %6211 = vperm.xlu1 %6209, %v7400_v31  }
 0x163   : > { %v806_v26 = vperm.slane %v774_v34, 0  ;;  %v895_v9 = vmul.f32 %v7628_v59, %v804_v22  ;;  %v1001_v25 = vmul.f32 1.442695, %v889_v33  ;;  %v896_v35 = vmul.f32 %v7632_v62, %v804_v22 }
 0x164   : > { %v1003_v7 = vmul.f32 1.442695, %v890_v27  ;;  %v1005_v50 = vmul.f32 1.442695, %v891_v5  ;;  %v1007_v54 = vmul.f32 1.442695, %v892_v2  ;;  %v897_v61 = vmul.f32 %v7628_v59, %v805_v38  ;;  %v7649_v5 = vpop.permute.xlu2 %6092 }
 0x165   : > { %v807_v56 = vperm.slane %v775_v32, 0  ;;  %6431 = vpow2.f32 %v1001_v25  ;;  %v1009_v51 = vmul.f32 1.442695, %v893_v24  ;;  %v898_v0 = vmul.f32 %v7632_v62, %v805_v38 }
 0x166   : > { %6433 = vpow2.f32 %v1003_v7  ;;  %v1011_v12 = vmul.f32 1.442695, %v894_v40  ;;  %v808_v58 = vperm.slane %v776_v41, 0  ;;  %v899_v34 = vmul.f32 %v7628_v59, %v806_v26  ;;  %v7657_v7 = vpop.permute.xlu1 %6086 }
 0x167   : > { %6435 = vpow2.f32 %v1005_v50  ;;  %v1013_v1 = vmul.f32 1.442695, %v895_v9  ;;  %v7646_v33 = vpop.eup %6429  ;;  %v900_v22 = vmul.f32 %v7632_v62, %v806_v26  ;;  %v1015_v27 = vmul.f32 1.442695, %v896_v35  ;;  %6200 = vperm.xlu2 %6188, %v7604_v55  }
 0x168   : > { %6437 = vpow2.f32 %v1007_v54  ;;  %v9371_v2 = vunpack.c.h.bf16 %v7474_v19  ;;  %v901_v32 = vmul.f32 %v7628_v59, %v807_v56  ;;  %v902_v38 = vmul.f32 %v7632_v62, %v807_v56 }
 0x169   : > { %6439 = vpow2.f32 %v1009_v51  ;;  %v1017_v24 = vmul.f32 1.442695, %v897_v61  ;;  %v1019_v40 = vmul.f32 1.442695, %v898_v0  ;;  %v903_v9 = vmul.f32 %v7628_v59, %v808_v58 }
 0x16a   : > { %6441 = vpow2.f32 %v1011_v12  ;;  %v1021_v25 = vmul.f32 1.442695, %v899_v34  ;;  %v904_v54 = vmul.f32 %v7632_v62, %v808_v58  ;;  %v1023_v35 = vmul.f32 1.442695, %v900_v22 }
 0x16b   : > { %v6432_v41 = vpop.eup %6431  ;;  %6443 = vpow2.f32 %v1013_v1  ;;  %v7662_v0 = vperm.slane %v7344_v37, 4  ;;  %v1025_v1 = vmul.f32 1.442695, %v901_v32  ;;  %v7668_v50 = vmul.f32 %v9371_v2, %v7619_v28 }
 0x16c   : > { %v6434_v26 = vpop.eup %6433  ;;  %6445 = vpow2.f32 %v1015_v27  ;;  %1082 = vst.msk [vmem:[#allocation3 + $0x300] sm:$0xff] %vm1033_vm3, %v6432_v41  ;;  %v1027_v51 = vmul.f32 1.442695, %v902_v38  ;;  %v7672_v31 = vperm.slane %v7344_v37, 5  ;;  %v1029_v12 = vmul.f32 1.442695, %v903_v9  ;;  %v6103_v41 = vpop.permute.xlu2 %6102 }
 0x16d   : > { %9469 = vst [vmem:[#allocation54_spill] sm:$0xff] %v7662_v0  ;;  %v6436_v61 = vpop.eup %6435  ;;  %6447 = vpow2.f32 %v1017_v24  ;;  %v7676_v58 = vperm.slane %v7344_v37, 2  ;;  %v7679_v34 = vperm.slane %v7344_v37, 3  ;;  %v1031_v22 = vmul.f32 1.442695, %v904_v54 }
 0x16e   : > { %1083 = vst.msk [vmem:[#allocation3 + $0x308] sm:$0xff] %vm1033_vm3, %v6434_v26  ;;  %v6438_v56 = vpop.eup %6437  ;;  %6449 = vpow2.f32 %v1019_v40  ;;  %v7684_v27 = vpack.i.bf16 %v7672_v31, %v7662_v0  ;;  %v1539_v38 = vrot.slane %v7668_v50, 1  ;;  %v1540_v9 = vrot.slane %v7668_v50, 2 }
 0x16f   : > { %1084 = vst.msk [vmem:[#allocation3 + $0x320] sm:$0xff] %vm1033_vm3, %v6436_v61  ;;  %v6440_v55 = vpop.eup %6439  ;;  %6451 = vpow2.f32 %v1021_v25  ;;  %v7690_v24 = vpack.i.bf16 %v7679_v34, %v7676_v58  ;;  %v7696_v25 = vperm.slane %v7392_v46, 6  ;;  %v7699_v26 = vperm.slane %v7392_v46, 7  ;;  %6215 = vset.pattern.permute.xlu2 %v6994_v13 }
 0x170   : > { %9470 = vst [vmem:[#allocation55_spill] sm:$0xff] %v7672_v31  ;;  %v6442_v28 = vpop.eup %6441  ;;  %6453 = vpow2.f32 %v1023_v35  ;;  %6285 = vperm.xlu0 %6258, %v7684_v27   ;;  %v1541_v35 = vrot.slane %v7668_v50, 3  ;;  %v682_v31 = vadd.f32 1.0, %v7646_v33 }
 0x171   : > { %1085 = vst.msk [vmem:[#allocation3 + $0x328] sm:$0xff] %vm1033_vm3, %v6438_v56  ;;  %v6444_v32 = vpop.eup %6443  ;;  %6455 = vpow2.f32 %v1025_v1  ;;  %v6094_v1 = vunpack.i.l.bf16 %v7649_v5  ;;  %v1570_v56 = vperm.slane %v7668_v50, 0  ;;  %6222 = vperm.xlu1 %6209, %v7690_v24   ;;  %v7713_v2 = vpack.i.bf16 %v7699_v26, %v7696_v25 }
 0x172   : > { %9471 = vst [vmem:[#allocation56_spill] sm:$0xff] %v7676_v58  ;;  %v6446_v40 = vpop.eup %6445  ;;  %6457 = vpow2.f32 %v1027_v51  ;;  %v685_v58 = vmul.f32 -0.5, %v7646_v33 }
 0x173   : > { %9472 = vst [vmem:[#allocation57_spill] sm:$0xff] %v7679_v34  ;;  %v6448_v54 = vpop.eup %6447  ;;  %6459 = vpow2.f32 %v1029_v12  ;;  %v1571_v12 = vperm.slane %v1539_v38, 0  ;;  %v6088_v38 = vunpack.i.l.bf16 %v7657_v7 }
 0x174   : > { %1086 = vst.msk [vmem:[#allocation3 + $0x340] sm:$0xff] %vm1033_vm3, %v6440_v55  ;;  %v6450_v61 = vpop.eup %6449  ;;  %6461 = vpow2.f32 %v1031_v22  ;;  %v6095_v55 = vunpack.i.h.bf16 %v7649_v5  ;;  %v6104_v22 = vunpack.i.l.bf16 %v6103_v41  ;;  %v6089_v5 = vunpack.i.h.bf16 %v7657_v7  ;;  %v6120_v45 = vpop.permute.xlu2 %6119 }
 0x175   : > { %1087 = vst.msk [vmem:[#allocation3 + $0x348] sm:$0xff] %vm1033_vm3, %v6442_v28  ;;  %v6452_v51 = vpop.eup %6451  ;;  %v6105_v28 = vunpack.i.h.bf16 %v6103_v41  ;;  %v1659_v41 = vmul.f32 %v6094_v1, %v1570_v56  ;;  %6463 = vlog2.f32 %v682_v31 }
 0x176   : > { %1088 = vst.msk [vmem:[#allocation3 + $0x360] sm:$0xff] %vm1033_vm3, %v6444_v32  ;;  %v6454_v32 = vpop.eup %6453  ;;  %v1660_v4 = vmul.f32 %v6089_v5, %v1571_v12  ;;  %v594_v5 = vmax.f32 %v7611_v3, 0.0 }
 0x177   : > { %9473 = vst [vmem:[#allocation58_spill] sm:$0xff] %v7696_v25  ;;  %v6456_v0 = vpop.eup %6455  ;;  %v1661_v25 = vmul.f32 %v6095_v55, %v1571_v12  ;;  %v1658_v55 = vmul.f32 %v6088_v38, %v1570_v56  ;;  %6217 = vperm.xlu2 %6215, %v7690_v24   ;;  %v9394_v12 = vperm.slane %v7168_v52, 0  ;;  %v1542_v38 = vrot.slane %v7668_v50, 4 }
 0x178   : > { %9474 = vst [vmem:[#allocation59_spill] sm:$0xff] %v7699_v26  ;;  %6312 = vperm.xlu0 %6258, %v7713_v2  }
 0x179   : > { %1089 = vst.msk [vmem:[#allocation3 + $0x368] sm:$0xff] %vm1033_vm3, %v6446_v40  ;;  %v1572_v40 = vperm.slane %v1540_v9, 0  ;;  %v1544_v9 = vrot.slane %v7668_v50, 6  ;;  %6231 = vset.pattern.permute.xlu1 %v6994_v13 }
 0x17a   : > { %1090 = vst.msk [vmem:[#allocation3 + $0x380] sm:$0xff] %vm1033_vm3, %v6448_v54  ;;  %v6098_v54 = vpop.permute.xlu1 %6097 }
 0x17b   : > { %1091 = vst.msk [vmem:[#allocation3 + $0x388] sm:$0xff] %vm1033_vm3, %v6450_v61  ;;  %v1573_v61 = vperm.slane %v1541_v35, 0  ;;  %v6099_v19 = vunpack.i.l.bf16 %v6098_v54  ;;  %v1545_v35 = vrot.slane %v7668_v50, 7  ;;  %v1663_v7 = vmul.f32 %v6104_v22, %v1572_v40  ;;  %v5970_v22 = vpop.permute.xlu0 %5969 }
 0x17c   : > { %1092 = vst.msk [vmem:[#allocation3 + $0x3a0] sm:$0xff] %vm1033_vm3, %v6452_v51  ;;  %v6458_v51 = vpop.eup %6457  ;;  %v6100_v31 = vunpack.i.h.bf16 %v6098_v54  ;;  %v7730_v60 = vperm.slane %v1544_v9, 0  ;;  %v5971_v56 = vunpack.i.l.bf16 %v5970_v22 }
 0x17d   : > { %1093 = vst.msk [vmem:[#allocation3 + $0x3a8] sm:$0xff] %vm1033_vm3, %v6454_v32  ;;  %v6460_v26 = vpop.eup %6459  ;;  %v686_v32 = vadd.f32 1.0, %v685_v58  ;;  %v1665_v1 = vmul.f32 %v6105_v28, %v1573_v61  ;;  %v6121_v58 = vunpack.i.l.bf16 %v6120_v45  ;;  %v7735_v28 = vperm.slane %v1545_v35, 0 }
 0x17e   : > { %1094 = vst.msk [vmem:[#allocation3 + $0x3c0] sm:$0xff] %vm1033_vm3, %v6456_v0  ;;  %v6462_v34 = vpop.eup %6461  ;;  %v688_v0 = vand.u32 2147483647, %v7646_v33 }
 0x17f   : > { %1095 = vst.msk [vmem:[#allocation3 + $0x3c8] sm:$0xff] %vm1033_vm3, %v6458_v51  ;;  %v1518_v51 = vrot.slane %v7168_v52, 1  ;;  %v687_v54 = vmul.f32 %v7646_v33, %v686_v32  ;;  %v6464_v23 = vpop.eup %6463  ;;  %v1670_v33 = vmul.f32 %v6121_v58, %v7730_v60  ;;  %6227 = vperm.xlu2 %6215, %v7684_v27  }
 0x180   : > { %1096 = vst.msk [vmem:[#allocation3 + $0x3e0] sm:$0xff] %vm1033_vm3, %v6460_v26  ;;  %v1662_v26 = vmul.f32 %v6099_v19, %v1572_v40  ;;  %vm7741_vm10 = vcmp.lt.f32.partialorder %v688_v0, 0.0004427343  ;;  %v1664_v19 = vmul.f32 %v6100_v31, %v1573_v61  ;;  %v684_v40 = vmul.f32 0.6931472, %v6464_v23 }
 0x181   : > { %1097 = vst.msk [vmem:[#allocation3 + $0x3e8] sm:$0xff] %vm1033_vm3, %v6462_v34  ;;  %v6122_v34 = vunpack.i.h.bf16 %v6120_v45  ;;  %v5972_v45 = vunpack.i.h.bf16 %v5970_v22  ;;  %v1610_v23 = vmul.f32 %v5971_v56, %v9394_v12  ;;  %v1543_v22 = vrot.slane %v7668_v50, 5 }
 0x182   : > { %1723 = vst.msk [vmem:[#allocation4 + $0x308] sm:$0xff] %vm1033_vm3, %v1659_v41  ;;  %v690_v61 = vsel %vm7741_vm10, %v687_v54, %v684_v40  ;;  %v7757_v9 = vpop.permute.xlu1 %6113 }
 0x183   : > { %1725 = vst.msk [vmem:[#allocation4 + $0x328] sm:$0xff] %vm1033_vm3, %v1661_v25  ;;  %v7746_v25 = vperm.slane %v1518_v51, 0  ;;  %v1672_v41 = vmul.f32 %v6122_v34, %v7735_v28  ;;  %v722_v35 = vadd.f32 %v690_v61, %v594_v5  ;;  %v6115_v32 = vunpack.i.l.bf16 %v7757_v9 }
 0x184   : > { %1727 = vst.msk [vmem:[#allocation4 + $0x348] sm:$0xff] %vm1033_vm3, %v1663_v7  ;;  %v7763_v7 = vperm.slane %v1542_v38, 0  ;;  %v7791_v61 = vperm.slane %v1543_v22, 0  ;;  %v7803_v22 = vpop.permute.xlu0 %6009 }
 0x185   : > { %1729 = vst.msk [vmem:[#allocation4 + $0x368] sm:$0xff] %vm1033_vm3, %v1665_v1  ;;  %v7769_v0 = vsel %vm602_vm11, %v7611_v3, %v722_v35 }
 0x186   : > { %1722 = vst.msk [vmem:[#allocation4 + $0x300] sm:$0xff] %vm1033_vm3, %v1658_v55  ;;  %v1667_v1 = vmul.f32 %v6115_v32, %v7763_v7  ;;  %v1742_v31 = vrot.slane %v7769_v0, 1  ;;  %v1743_v51 = vrot.slane %v7769_v0, 2  ;;  %v1744_v55 = vrot.slane %v7769_v0, 3 }
 0x187   : > { %1724 = vst.msk [vmem:[#allocation4 + $0x320] sm:$0xff] %vm1033_vm3, %v1660_v4  ;;  %v1612_v4 = vmul.f32 %v5972_v45, %v7746_v25  ;;  %v1745_v58 = vrot.slane %v7769_v0, 4  ;;  %v1746_v54 = vrot.slane %v7769_v0, 5  ;;  %v1747_v40 = vrot.slane %v7769_v0, 6  ;;  %6237 = vset.pattern.permute.xlu2 %v7016_v20 }
 0x188   : > { %1726 = vst.msk [vmem:[#allocation4 + $0x340] sm:$0xff] %vm1033_vm3, %v1662_v26  ;;  %v1770_v26 = vperm.slane %v7769_v0, 0  ;;  %v1771_v3 = vperm.slane %v1742_v31, 0  ;;  %v1772_v34 = vperm.slane %v1743_v51, 0  ;;  %v1773_v56 = vperm.slane %v1744_v55, 0 }
 0x189   : > { %1728 = vst.msk [vmem:[#allocation4 + $0x360] sm:$0xff] %vm1033_vm3, %v1664_v19  ;;  %v1748_v35 = vrot.slane %v7769_v0, 7  ;;  %v1775_v32 = vperm.slane %v1746_v54, 0 }
 0x18a   : > { %1734 = vst.msk [vmem:[#allocation4 + $0x3c0] sm:$0xff] %vm1033_vm3, %v1670_v33  ;;  %v1834_v5 = vmul.f32 %v7628_v59, %v1770_v26  ;;  %v1835_v24 = vmul.f32 %v7632_v62, %v1770_v26  ;;  %v1836_v19 = vmul.f32 %v7628_v59, %v1771_v3  ;;  %v1837_v45 = vmul.f32 %v7632_v62, %v1771_v3 }
 0x18b   : > { %1736 = vst.msk [vmem:[#allocation4 + $0x3e0] sm:$0xff] %vm1033_vm3, %v1672_v41  ;;  %v1774_v33 = vperm.slane %v1745_v58, 0  ;;  %v1838_v38 = vmul.f32 %v7628_v59, %v1772_v34  ;;  %v1839_v50 = vmul.f32 %v7632_v62, %v1772_v34  ;;  %v6116_v41 = vunpack.i.h.bf16 %v7757_v9  ;;  %v7801_v34 = vld [vmem:[%s6981_s9 + $0x10] sm:$0xff]  }
 0x18c   : > { %1674 = vst.msk [vmem:[#allocation4] sm:$0xff] %vm1033_vm3, %v1610_v23  ;;  %v7794_v23 = vperm.slane %v7344_v37, 6  ;;  %v1841_v31 = vmul.f32 %v7632_v62, %v1773_v56  ;;  %v1900_v51 = vmul.f32 1.442695, %v1835_v24  ;;  %v1902_v55 = vmul.f32 1.442695, %v1836_v19 }
 0x18d   : > { %1676 = vst.msk [vmem:[#allocation4 + $0x20] sm:$0xff] %vm1033_vm3, %v1612_v4  ;;  %v1840_v4 = vmul.f32 %v7628_v59, %v1773_v56  ;;  %v1904_v58 = vmul.f32 1.442695, %v1837_v45  ;;  %v1776_v26 = vperm.slane %v1747_v40, 0  ;;  %v1842_v3 = vmul.f32 %v7628_v59, %v1774_v33 }
 0x18e   : > { %1731 = vst.msk [vmem:[#allocation4 + $0x388] sm:$0xff] %vm1033_vm3, %v1667_v1  ;;  %v1898_v1 = vmul.f32 1.442695, %v1834_v5  ;;  %v1906_v9 = vmul.f32 1.442695, %v1838_v38  ;;  %v1843_v12 = vmul.f32 %v7632_v62, %v1774_v33  ;;  %v7807_v5 = vperm.slane %v7344_v37, 7 }
 0x18f   : > { %9477 = vst [vmem:[#allocation60_spill] sm:$0xff] %v7794_v23  ;;  %v1908_v54 = vmul.f32 1.442695, %v1839_v50  ;;  %v1777_v56 = vperm.slane %v1748_v35, 0  ;;  %v1844_v24 = vmul.f32 %v7628_v59, %v1775_v32  ;;  %v1910_v19 = vmul.f32 1.442695, %v1840_v4 }
 0x190   : > { %6465 = vpow2.f32 %v1898_v1  ;;  %9478 = vst [vmem:[#allocation61_spill] sm:$0xff] %v7807_v5  ;;  %v1845_v45 = vmul.f32 %v7632_v62, %v1775_v32  ;;  %v1912_v40 = vmul.f32 1.442695, %v1841_v31  ;;  %v9397_v38 = vunpack.c.l.bf16 %v7801_v34 }
 0x191   : > { %6467 = vpow2.f32 %v1900_v51  ;;  %v1846_v1 = vmul.f32 %v7628_v59, %v1776_v26  ;;  %v1914_v33 = vmul.f32 1.442695, %v1842_v3  ;;  %v7813_v51 = vpop.permute.xlu2 %6129  ;;  %v1669_v50 = vmul.f32 %v6116_v41, %v7791_v61 }
 0x192   : > { %6469 = vpow2.f32 %v1902_v55  ;;  %v1847_v35 = vmul.f32 %v7632_v62, %v1776_v26  ;;  %v1916_v21 = vmul.f32 1.442695, %v1843_v12  ;;  %v1848_v4 = vmul.f32 %v7628_v59, %v1777_v56 }
 0x193   : > { %6471 = vpow2.f32 %v1904_v58  ;;  %v1918_v32 = vmul.f32 1.442695, %v1844_v24  ;;  %1733 = vst.msk [vmem:[#allocation4 + $0x3a8] sm:$0xff] %vm1033_vm3, %v1669_v50  ;;  %v7821_v31 = vpack.i.bf16 %v7807_v5, %v7794_v23  ;;  %v1849_v3 = vmul.f32 %v7632_v62, %v1777_v56  ;;  %v6125_v50 = vpop.permute.xlu1 %6124 }
 0x194   : > { %6473 = vpow2.f32 %v1906_v9  ;;  %v1920_v41 = vmul.f32 1.442695, %v1845_v45  ;;  %v1922_v26 = vmul.f32 1.442695, %v1846_v1  ;;  %v7830_v9 = vmul.f32 %v9397_v38, %v7769_v0  ;;  %v7838_v45 = vpop.permute.xlu0 %6058 }
 0x195   : > { %6475 = vpow2.f32 %v1908_v54  ;;  %6233 = vperm.xlu1 %6231, %v7821_v31   ;;  %v1924_v56 = vmul.f32 1.442695, %v1847_v35  ;;  %v7835_v24 = vperm.slane %v7392_v46, 0  ;;  %v7841_v0 = vperm.slane %v7392_v46, 1  ;;  %6239 = vperm.xlu2 %6237, %v7821_v31  }
 0x196   : > { %v6466_v55 = vpop.eup %6465  ;;  %6477 = vpow2.f32 %v1910_v19  ;;  %v1926_v19 = vmul.f32 1.442695, %v1848_v4  ;;  %v1928_v1 = vmul.f32 1.442695, %v1849_v3  ;;  %v9400_v3 = vperm.slane %v7830_v9, 0 }
 0x197   : > { %v6468_v58 = vpop.eup %6467  ;;  %6479 = vpow2.f32 %v1912_v40  ;;  %2026 = vst.msk [vmem:[#allocation3 + $0x10] sm:$0xff] %vm1033_vm3, %v6466_v55  ;;  %v7848_v35 = vpack.i.bf16 %v7841_v0, %v7835_v24  ;;  %v7907_v31 = vadd.f32 %v7541_v43, %v7392_v46 }
 0x198   : > { %v6470_v12 = vpop.eup %6469  ;;  %6481 = vpow2.f32 %v1914_v33  ;;  %2027 = vst.msk [vmem:[#allocation3 + $0x18] sm:$0xff] %vm1033_vm3, %v6468_v58  ;;  %v2510_v33 = vrot.slane %v7830_v9, 1  ;;  %v6131_v58 = vunpack.i.l.bf16 %v7813_v51 }
 0x199   : > { %v6472_v54 = vpop.eup %6471  ;;  %6483 = vpow2.f32 %v1916_v21  ;;  %2028 = vst.msk [vmem:[#allocation3 + $0x30] sm:$0xff] %vm1033_vm3, %v6470_v12  ;;  %v7850_v55 = vpop.permute.xlu2 %6141  ;;  %vm605_vm1 = vcmp.ne.f32.partialorder %v7907_v31, %v7907_v31 }
 0x19a   : > { %9479 = vst [vmem:[#allocation62_spill] sm:$0xff] %v7835_v24  ;;  %v6474_v27 = vpop.eup %6473  ;;  %6485 = vpow2.f32 %v1918_v32 }
 0x19b   : > { %2029 = vst.msk [vmem:[#allocation3 + $0x38] sm:$0xff] %vm1033_vm3, %v6472_v54  ;;  %v6476_v40 = vpop.eup %6475  ;;  %6487 = vpow2.f32 %v1920_v41  ;;  %v7860_v54 = vperm.slane %v2510_v33, 0  ;;  %v2512_v33 = vrot.slane %v7830_v9, 3 }
 0x19c   : > { %9480 = vst [vmem:[#allocation63_spill] sm:$0xff] %v7841_v0  ;;  %v6478_v21 = vpop.eup %6477  ;;  %6489 = vpow2.f32 %v1922_v26  ;;  %v6132_v26 = vunpack.i.h.bf16 %v7813_v51  ;;  %v6127_v51 = vunpack.i.h.bf16 %v6125_v50 }
 0x19d   : > { %2030 = vst.msk [vmem:[#allocation3 + $0x50] sm:$0xff] %vm1033_vm3, %v6474_v27  ;;  %v6480_v4 = vpop.eup %6479  ;;  %6491 = vpow2.f32 %v1924_v56  ;;  %v6011_v56 = vunpack.i.l.bf16 %v7803_v22  ;;  %6244 = vperm.xlu1 %6231, %v7848_v35   ;;  %6249 = vperm.xlu2 %6237, %v7848_v35  }
 0x19e   : > { %2031 = vst.msk [vmem:[#allocation3 + $0x58] sm:$0xff] %vm1033_vm3, %v6476_v40  ;;  %v6482_v32 = vpop.eup %6481  ;;  %6493 = vpow2.f32 %v1926_v19  ;;  %v6012_v19 = vunpack.i.h.bf16 %v7803_v22  ;;  %v2511_v40 = vrot.slane %v7830_v9, 2  ;;  %v2604_v38 = vmul.f32 %v6132_v26, %v7860_v54 }
 0x19f   : > { %2032 = vst.msk [vmem:[#allocation3 + $0x70] sm:$0xff] %vm1033_vm3, %v6478_v21  ;;  %v6484_v41 = vpop.eup %6483  ;;  %6495 = vpow2.f32 %v1928_v1  ;;  %v2602_v21 = vmul.f32 %v6131_v58, %v9400_v3  ;;  %v6108_v58 = vpop.permute.xlu0 %6107  ;;  %v6144_v26 = vunpack.i.h.bf16 %v7850_v55 }
 0x1a0   : > { %2033 = vst.msk [vmem:[#allocation3 + $0x78] sm:$0xff] %vm1033_vm3, %v6480_v4  ;;  %v6486_v12 = vpop.eup %6485  ;;  %v7878_v3 = vpop.permute.xlu1 %6135  ;;  %v2540_v24 = vperm.slane %v2511_v40, 0 }
 0x1a1   : > { %2034 = vst.msk [vmem:[#allocation3 + $0x90] sm:$0xff] %vm1033_vm3, %v6482_v32  ;;  %v6488_v27 = vpop.eup %6487  ;;  %v6126_v32 = vunpack.i.l.bf16 %v6125_v50  ;;  %v1628_v50 = vmul.f32 %v6012_v19, %v7404_v10 }
 0x1a2   : > { %2035 = vst.msk [vmem:[#allocation3 + $0x98] sm:$0xff] %vm1033_vm3, %v6484_v41  ;;  %v6490_v1 = vpop.eup %6489  ;;  %v6061_v41 = vunpack.i.h.bf16 %v7838_v45 }
 0x1a3   : > { %2036 = vst.msk [vmem:[#allocation3 + $0xb0] sm:$0xff] %vm1033_vm3, %v6486_v12  ;;  %v6492_v4 = vpop.eup %6491  ;;  %v6060_v12 = vunpack.i.l.bf16 %v7838_v45  ;;  %v7885_v45 = vadd.f32 %v7541_v43, %v7344_v37  ;;  %v1671_v10 = vmul.f32 %v6126_v32, %v7730_v60  ;;  %v2514_v37 = vrot.slane %v7830_v9, 5 }
 0x1a4   : > { %2037 = vst.msk [vmem:[#allocation3 + $0xb8] sm:$0xff] %vm1033_vm3, %v6488_v27  ;;  %v6494_v22 = vpop.eup %6493  ;;  %v9481_v27 = vperm.slane %v7319_v48, 0  ;;  %v1673_v48 = vmul.f32 %v6127_v51, %v7735_v28  ;;  %v1648_v40 = vmul.f32 %v6061_v41, %v7575_v53  ;;  %v6110_v28 = vunpack.i.h.bf16 %v6108_v58 }
 0x1a5   : > { %2038 = vst.msk [vmem:[#allocation3 + $0xd0] sm:$0xff] %vm1033_vm3, %v6490_v1  ;;  %v6496_v5 = vpop.eup %6495  ;;  %v6143_v1 = vunpack.i.l.bf16 %v7850_v55  ;;  %v1646_v19 = vmul.f32 %v6060_v12, %v7572_v36  ;;  %6289 = vset.pattern.permute.xlu1 %v7016_v20  ;;  %v620_v55 = vand.u32 2147483647, %v7885_v45  ;;  %v2515_v32 = vrot.slane %v7830_v9, 6  ;;  %6295 = vset.pattern.permute.xlu2 %v6994_v13 }
 0x1a6   : > { %2039 = vst.msk [vmem:[#allocation3 + $0xd8] sm:$0xff] %vm1033_vm3, %v6492_v4  ;;  %v1626_v0 = vmul.f32 %v6011_v56, %v9481_v27  ;;  %v2541_v56 = vperm.slane %v2512_v33, 0  ;;  %v6152_v4 = vpop.permute.xlu2 %6151  ;;  %v2513_v27 = vrot.slane %v7830_v9, 4  ;;  %v2516_v41 = vrot.slane %v7830_v9, 7 }
 0x1a7   : > { %2040 = vst.msk [vmem:[#allocation3 + $0xf0] sm:$0xff] %vm1033_vm3, %v6494_v22  ;;  %v2607_v60 = vmul.f32 %v6143_v1, %v2540_v24  ;;  %v6154_v53 = vunpack.i.h.bf16 %v6152_v4  ;;  %v6153_v36 = vunpack.i.l.bf16 %v6152_v4  ;;  %v628_v20 = vsub.f32 0.0, %v620_v55  ;;  %v6157_v4 = vpop.permute.xlu0 %6156 }
 0x1a8   : > { %2041 = vst.msk [vmem:[#allocation3 + $0xf8] sm:$0xff] %vm1033_vm3, %v6496_v5  ;;  %v6109_v5 = vunpack.i.l.bf16 %v6108_v58  ;;  %v2542_v51 = vperm.slane %v2513_v27, 0  ;;  %v6137_v58 = vunpack.i.l.bf16 %v7878_v3  ;;  %v1668_v1 = vmul.f32 %v6110_v28, %v7791_v61  ;;  %v6147_v27 = vpop.permute.xlu1 %6146 }
 0x1a9   : > { %2666 = vst.msk [vmem:[#allocation4 + $0x10] sm:$0xff] %vm1033_vm3, %v2602_v21  ;;  %v7902_v21 = vadd.f32 %v7541_v43, %v7495_v6  ;;  %v2543_v6 = vperm.slane %v2514_v37, 0  ;;  %v642_v43 = vmul.f32 1.442695, %v628_v20  ;;  %v6159_v37 = vunpack.i.h.bf16 %v6157_v4 }
 0x1aa   : > { %2668 = vst.msk [vmem:[#allocation4 + $0x30] sm:$0xff] %vm1033_vm3, %v2604_v38  ;;  %v2609_v38 = vmul.f32 %v6144_v26, %v2541_v56  ;;  %v1666_v22 = vmul.f32 %v6109_v5, %v7763_v7  ;;  %v6138_v26 = vunpack.i.h.bf16 %v7878_v3  ;;  %v7923_v55 = vperm.slane %v2515_v32, 0 }
 0x1ab   : > { %1690 = vst.msk [vmem:[#allocation4 + $0x100] sm:$0xff] %vm1033_vm3, %v1626_v0  ;;  %v619_v33 = vand.u32 2147483647, %v7902_v21  ;;  %v621_v0 = vand.u32 2147483647, %v7907_v31  ;;  %6497 = vpow2.f32 %v642_v43  ;;  %v2613_v7 = vmul.f32 %v6154_v53, %v2543_v6 }
 0x1ac   : > { %1692 = vst.msk [vmem:[#allocation4 + $0x120] sm:$0xff] %vm1033_vm3, %v1628_v50  ;;  %v2606_v3 = vmul.f32 %v6137_v58, %v2540_v24  ;;  %v6148_v28 = vunpack.i.l.bf16 %v6147_v27  ;;  %v2608_v5 = vmul.f32 %v6138_v26, %v2541_v56  ;;  %v596_v58 = vmax.f32 %v7885_v45, 0.0 }
 0x1ad   : > { %1735 = vst.msk [vmem:[#allocation4 + $0x3c8] sm:$0xff] %vm1033_vm3, %v1671_v10  ;;  %v627_v12 = vsub.f32 0.0, %v619_v33  ;;  %v629_v50 = vsub.f32 0.0, %v621_v0  ;;  %v2611_v10 = vmul.f32 %v6153_v36, %v2542_v51  ;;  %6291 = vperm.xlu1 %6289, %v7444_v42   ;;  %vm604_vm13 = vcmp.ne.f32.partialorder %v7885_v45, %v7885_v45 }
 0x1ae   : > { %1737 = vst.msk [vmem:[#allocation4 + $0x3e8] sm:$0xff] %vm1033_vm3, %v1673_v48  ;;  %v2610_v42 = vmul.f32 %v6148_v28, %v2542_v51  ;;  %v7946_v51 = vperm.slane %v7392_v46, 4  ;;  %vm603_vm15 = vcmp.ne.f32.partialorder %v7902_v21, %v7902_v21 }
 0x1af   : > { %1710 = vst.msk [vmem:[#allocation4 + $0x240] sm:$0xff] %vm1033_vm3, %v1646_v19  ;;  %v640_v48 = vmul.f32 1.442695, %v627_v12  ;;  %v6158_v19 = vunpack.i.l.bf16 %v6157_v4  ;;  %v644_v61 = vmul.f32 1.442695, %v629_v50 }
 0x1b0   : > { %1712 = vst.msk [vmem:[#allocation4 + $0x260] sm:$0xff] %vm1033_vm3, %v1648_v40  ;;  %v7927_v40 = vperm.slane %v2516_v41, 0 }
 0x1b1   : > { %2671 = vst.msk [vmem:[#allocation4 + $0x58] sm:$0xff] %vm1033_vm3, %v2607_v60  ;;  %6499 = vpow2.f32 %v640_v48  ;;  %v6149_v60 = vunpack.i.h.bf16 %v6147_v27  ;;  %v2614_v35 = vmul.f32 %v6158_v19, %v7923_v55  ;;  %v6498_v36 = vpop.eup %6497 }
 0x1b2   : > { %2673 = vst.msk [vmem:[#allocation4 + $0x78] sm:$0xff] %vm1033_vm3, %v2609_v38  ;;  %v2616_v53 = vmul.f32 %v6159_v37, %v7927_v40  ;;  %6501 = vpow2.f32 %v644_v61  ;;  %v700_v38 = vadd.f32 1.0, %v6498_v36  ;;  %v703_v24 = vmul.f32 -0.5, %v6498_v36 }
 0x1b3   : > { %1730 = vst.msk [vmem:[#allocation4 + $0x380] sm:$0xff] %vm1033_vm3, %v1666_v22  ;;  %v2612_v56 = vmul.f32 %v6149_v60, %v2543_v6  ;;  %v706_v0 = vand.u32 2147483647, %v6498_v36  ;;  %v7949_v6 = vperm.slane %v7392_v46, 5 }
 0x1b4   : > { %1732 = vst.msk [vmem:[#allocation4 + $0x3a0] sm:$0xff] %vm1033_vm3, %v1668_v1  ;;  %6503 = vlog2.f32 %v700_v38  ;;  %v704_v32 = vadd.f32 1.0, %v703_v24  ;;  %v595_v38 = vmax.f32 %v7902_v21, 0.0 }
 0x1b5   : > { %2675 = vst.msk [vmem:[#allocation4 + $0x98] sm:$0xff] %vm1033_vm3, %v2611_v10  ;;  %v7953_v12 = vpack.i.bf16 %v7949_v6, %v7946_v51  ;;  %vm707_vm12 = vcmp.lt.f32.partialorder %v706_v0, 0.0004427343  ;;  %v7961_v10 = vld [vmem:[%s6981_s9 + $0x18] sm:$0xff]   ;;  %v7980_v0 = vpop.permute.xlu0 %6205 }
 0x1b6   : > { %2677 = vst.msk [vmem:[#allocation4 + $0xb8] sm:$0xff] %vm1033_vm3, %v2613_v7  ;;  %v705_v13 = vmul.f32 %v6498_v36, %v704_v32 }
 0x1b7   : > { %2670 = vst.msk [vmem:[#allocation4 + $0x50] sm:$0xff] %vm1033_vm3, %v2606_v3  ;;  %v6500_v20 = vpop.eup %6499  ;;  %6302 = vperm.xlu1 %6289, %v7953_v12   ;;  %6297 = vperm.xlu2 %6295, %v7953_v12   ;;  %v9407_v12 = vunpack.c.h.bf16 %v7961_v10 }
 0x1b8   : > { %2672 = vst.msk [vmem:[#allocation4 + $0x70] sm:$0xff] %vm1033_vm3, %v2608_v5  ;;  %v691_v33 = vadd.f32 1.0, %v6500_v20  ;;  %v7942_v41 = vpop.eup %6501  ;;  %v694_v43 = vmul.f32 -0.5, %v6500_v20  ;;  %v697_v27 = vand.u32 2147483647, %v6500_v20 }
 0x1b9   : > { %2678 = vst.msk [vmem:[#allocation4 + $0xd0] sm:$0xff] %vm1033_vm3, %v2614_v35  ;;  %v709_v50 = vadd.f32 1.0, %v7942_v41  ;;  %v712_v37 = vmul.f32 -0.5, %v7942_v41 }
 0x1ba   : > { %2680 = vst.msk [vmem:[#allocation4 + $0xf0] sm:$0xff] %vm1033_vm3, %v2616_v53  ;;  %6505 = vlog2.f32 %v691_v33  ;;  %v6504_v22 = vpop.eup %6503  ;;  %v695_v26 = vadd.f32 1.0, %v694_v43  ;;  %vm7970_vm14 = vcmp.lt.f32.partialorder %v697_v27, 0.0004427343  ;;  %v9405_v53 = vunpack.c.l.bf16 %v7961_v10 }
 0x1bb   : > { %2674 = vst.msk [vmem:[#allocation4 + $0x90] sm:$0xff] %vm1033_vm3, %v2610_v42  ;;  %v702_v1 = vmul.f32 0.6931472, %v6504_v22  ;;  %6507 = vlog2.f32 %v709_v50  ;;  %v713_v24 = vadd.f32 1.0, %v712_v37 }
 0x1bc   : > { %2676 = vst.msk [vmem:[#allocation4 + $0xb0] sm:$0xff] %vm1033_vm3, %v2612_v56  ;;  %v696_v61 = vmul.f32 %v6500_v20, %v695_v26 }
 0x1bd   : > { %9482 = vst [vmem:[#allocation64_spill] sm:$0xff] %v7946_v51  ;;  %v708_v4 = vsel %vm707_vm12, %v705_v13, %v702_v1 }
 0x1be   : > { %9483 = vst [vmem:[#allocation65_spill] sm:$0xff] %v7949_v6  ;;  %v724_v48 = vadd.f32 %v708_v4, %v596_v58  ;;  %v6207_v4 = vunpack.i.l.bf16 %v7980_v0 }
 0x1bf   : > { %9484 = vst [vmem:[#allocation66_spill] sm:$0xff] %v7961_v10  ;;  %6307 = vperm.xlu2 %6295, %v7713_v2  }
 0x1c0   : > { %v6506_v46 = vpop.eup %6505  ;;  %v7965_v19 = vsel %vm604_vm13, %v7885_v45, %v724_v48 }
 0x1c1   : > { %v693_v7 = vmul.f32 0.6931472, %v6506_v46  ;;  %v1756_v3 = vrot.slane %v7965_v19, 1  ;;  %v1757_v28 = vrot.slane %v7965_v19, 2  ;;  %v1758_v5 = vrot.slane %v7965_v19, 3  ;;  %v6508_v20 = vpop.eup %6507 }
 0x1c2   : > { %v1759_v35 = vrot.slane %v7965_v19, 4  ;;  %v1786_v36 = vperm.slane %v7965_v19, 0  ;;  %v1760_v56 = vrot.slane %v7965_v19, 5  ;;  %v1761_v1 = vrot.slane %v7965_v19, 6 }
 0x1c3   : > { %v1787_v45 = vperm.slane %v1756_v3, 0  ;;  %v1788_v42 = vperm.slane %v1757_v28, 0  ;;  %v1789_v33 = vperm.slane %v1758_v5, 0  ;;  %v699_v43 = vsel %vm7970_vm14, %v696_v61, %v693_v7 }
 0x1c4   : > { %v1866_v32 = vmul.f32 %v7628_v59, %v1786_v36  ;;  %v1867_v13 = vmul.f32 %v7632_v62, %v1786_v36  ;;  %v1790_v26 = vperm.slane %v1759_v35, 0  ;;  %v723_v48 = vadd.f32 %v699_v43, %v595_v38 }
 0x1c5   : > { %v1868_v22 = vmul.f32 %v7628_v59, %v1787_v45  ;;  %v1869_v58 = vmul.f32 %v7632_v62, %v1787_v45  ;;  %v1870_v46 = vmul.f32 %v7628_v59, %v1788_v42  ;;  %v1871_v27 = vmul.f32 %v7632_v62, %v1788_v42 }
 0x1c6   : > { %v7992_v37 = vmul.f32 0.6931472, %v6508_v20  ;;  %v7995_v7 = vmul.f32 %v7942_v41, %v713_v24  ;;  %v1762_v61 = vrot.slane %v7965_v19, 7  ;;  %v1791_v3 = vperm.slane %v1760_v56, 0 }
 0x1c7   : > { %v1872_v28 = vmul.f32 %v7628_v59, %v1789_v33  ;;  %v1962_v5 = vmul.f32 1.442695, %v1866_v32  ;;  %v1873_v60 = vmul.f32 %v7632_v62, %v1789_v33  ;;  %v1964_v35 = vmul.f32 1.442695, %v1867_v13 }
 0x1c8   : > { %v1966_v36 = vmul.f32 1.442695, %v1868_v22  ;;  %v1968_v45 = vmul.f32 1.442695, %v1869_v58  ;;  %v1792_v50 = vperm.slane %v1761_v1, 0  ;;  %v1874_v42 = vmul.f32 %v7628_v59, %v1790_v26 }
 0x1c9   : > { %6509 = vpow2.f32 %v1962_v5  ;;  %v1970_v38 = vmul.f32 1.442695, %v1870_v46  ;;  %v1875_v20 = vmul.f32 %v7632_v62, %v1790_v26  ;;  %v1972_v24 = vmul.f32 1.442695, %v1871_v27 }
 0x1ca   : > { %6511 = vpow2.f32 %v1964_v35  ;;  %v1793_v56 = vperm.slane %v1762_v61, 0  ;;  %v1876_v32 = vmul.f32 %v7628_v59, %v1791_v3  ;;  %v1974_v33 = vmul.f32 1.442695, %v1872_v28 }
 0x1cb   : > { %6513 = vpow2.f32 %v1966_v36  ;;  %v1877_v43 = vmul.f32 %v7632_v62, %v1791_v3  ;;  %v1976_v13 = vmul.f32 1.442695, %v1873_v60  ;;  %v1878_v58 = vmul.f32 %v7628_v59, %v1792_v50 }
 0x1cc   : > { %6515 = vpow2.f32 %v1968_v45  ;;  %v1978_v1 = vmul.f32 1.442695, %v1874_v42  ;;  %v8009_v26 = vsel %vm603_vm15, %v7902_v21, %v723_v48  ;;  %v1879_v46 = vmul.f32 %v7632_v62, %v1792_v50 }
 0x1cd   : > { %6517 = vpow2.f32 %v1970_v38  ;;  %v1980_v27 = vmul.f32 1.442695, %v1875_v20  ;;  %v1749_v61 = vrot.slane %v8009_v26, 1  ;;  %v1880_v3 = vmul.f32 %v7628_v59, %v1793_v56 }
 0x1ce   : > { %6519 = vpow2.f32 %v1972_v24  ;;  %v1982_v5 = vmul.f32 1.442695, %v1876_v32  ;;  %v1750_v60 = vrot.slane %v8009_v26, 2  ;;  %v1881_v36 = vmul.f32 %v7632_v62, %v1793_v56 }
 0x1cf   : > { %v6510_v28 = vpop.eup %6509  ;;  %6521 = vpow2.f32 %v1974_v33  ;;  %v1984_v45 = vmul.f32 1.442695, %v1877_v43  ;;  %v8020_v21 = vmul.f32 %v9405_v53, %v7965_v19  ;;  %v1986_v48 = vmul.f32 1.442695, %v1878_v58 }
 0x1d0   : > { %v6512_v35 = vpop.eup %6511  ;;  %6523 = vpow2.f32 %v1976_v13  ;;  %2058 = vst.msk [vmem:[#allocation3 + $0x210] sm:$0xff] %vm1033_vm3, %v6510_v28  ;;  %v1751_v59 = vrot.slane %v8009_v26, 3  ;;  %v1778_v42 = vperm.slane %v8009_v26, 0  ;;  %v1988_v62 = vmul.f32 1.442695, %v1879_v46 }
 0x1d1   : > { %v6514_v50 = vpop.eup %6513  ;;  %6525 = vpow2.f32 %v1978_v1  ;;  %2059 = vst.msk [vmem:[#allocation3 + $0x218] sm:$0xff] %vm1033_vm3, %v6512_v35  ;;  %v1779_v20 = vperm.slane %v1749_v61, 0  ;;  %v1990_v19 = vmul.f32 1.442695, %v1880_v3  ;;  %v1752_v32 = vrot.slane %v8009_v26, 4  ;;  %v8034_v61 = vld [vmem:[%s6973_s29] sm:$0xff] }
 0x1d2   : > { %v6516_v38 = vpop.eup %6515  ;;  %6527 = vpow2.f32 %v1980_v27  ;;  %2060 = vst.msk [vmem:[#allocation3 + $0x230] sm:$0xff] %vm1033_vm3, %v6514_v50  ;;  %v1780_v33 = vperm.slane %v1750_v60, 0  ;;  %v1992_v13 = vmul.f32 1.442695, %v1881_v36  ;;  %v2524_v58 = vrot.slane %v8020_v21, 1  ;;  %v8038_v3 = vld [vmem:[%s6973_s29 + $0x8] sm:$0xff] }
 0x1d3   : > { %v6518_v56 = vpop.eup %6517  ;;  %6529 = vpow2.f32 %v1982_v5  ;;  %2061 = vst.msk [vmem:[#allocation3 + $0x238] sm:$0xff] %vm1033_vm3, %v6516_v38  ;;  %v1753_v1 = vrot.slane %v8009_v26, 5  ;;  %v1781_v27 = vperm.slane %v1751_v59, 0  ;;  %v1850_v28 = vmul.f32 %v8034_v61, %v1778_v42 }
 0x1d4   : > { %v6520_v43 = vpop.eup %6519  ;;  %6531 = vpow2.f32 %v1984_v45  ;;  %2062 = vst.msk [vmem:[#allocation3 + $0x250] sm:$0xff] %vm1033_vm3, %v6518_v56  ;;  %v1851_v5 = vmul.f32 %v8038_v3, %v1778_v42  ;;  %v9406_v35 = vperm.slane %v8020_v21, 0  ;;  %v1852_v36 = vmul.f32 %v8034_v61, %v1779_v20 }
 0x1d5   : > { %v6522_v46 = vpop.eup %6521  ;;  %6533 = vpow2.f32 %v1986_v48  ;;  %2063 = vst.msk [vmem:[#allocation3 + $0x258] sm:$0xff] %vm1033_vm3, %v6520_v43  ;;  %v1853_v45 = vmul.f32 %v8038_v3, %v1779_v20  ;;  %v1754_v48 = vrot.slane %v8009_v26, 6  ;;  %v1782_v59 = vperm.slane %v1752_v32, 0 }
 0x1d6   : > { %v6524_v60 = vpop.eup %6523  ;;  %6535 = vpow2.f32 %v1988_v62  ;;  %2064 = vst.msk [vmem:[#allocation3 + $0x270] sm:$0xff] %vm1033_vm3, %v6522_v46  ;;  %v1854_v38 = vmul.f32 %v8034_v61, %v1780_v33  ;;  %v8049_v62 = vperm.slane %v2524_v58, 0  ;;  %v1755_v56 = vrot.slane %v8009_v26, 7 }
 0x1d7   : > { %v6526_v50 = vpop.eup %6525  ;;  %6537 = vpow2.f32 %v1990_v19  ;;  %2065 = vst.msk [vmem:[#allocation3 + $0x278] sm:$0xff] %vm1033_vm3, %v6524_v60  ;;  %v1855_v43 = vmul.f32 %v8038_v3, %v1780_v33  ;;  %v1783_v19 = vperm.slane %v1753_v1, 0  ;;  %v1856_v46 = vmul.f32 %v8034_v61, %v1781_v27 }
 0x1d8   : > { %v6528_v42 = vpop.eup %6527  ;;  %6539 = vpow2.f32 %v1992_v13  ;;  %2066 = vst.msk [vmem:[#allocation3 + $0x290] sm:$0xff] %vm1033_vm3, %v6526_v50  ;;  %v1930_v60 = vmul.f32 1.442695, %v1850_v28  ;;  %v1932_v32 = vmul.f32 1.442695, %v1851_v5  ;;  %v2634_v13 = vmul.f32 %v6207_v4, %v9406_v35 }
 0x1d9   : > { %v6530_v20 = vpop.eup %6529  ;;  %2067 = vst.msk [vmem:[#allocation3 + $0x298] sm:$0xff] %vm1033_vm3, %v6528_v42  ;;  %v1857_v58 = vmul.f32 %v8038_v3, %v1781_v27  ;;  %v1934_v50 = vmul.f32 1.442695, %v1852_v36  ;;  %v1936_v33 = vmul.f32 1.442695, %v1853_v45  ;;  %v1784_v1 = vperm.slane %v1754_v48, 0 }
 0x1da   : > { %v6532_v53 = vpop.eup %6531  ;;  %2068 = vst.msk [vmem:[#allocation3 + $0x2b0] sm:$0xff] %vm1033_vm3, %v6530_v20  ;;  %v1858_v42 = vmul.f32 %v8034_v61, %v1782_v59  ;;  %6541 = vpow2.f32 %v1930_v60  ;;  %v1938_v28 = vmul.f32 1.442695, %v1854_v38  ;;  %v1785_v20 = vperm.slane %v1755_v56, 0 }
 0x1db   : > { %v6534_v22 = vpop.eup %6533  ;;  %2069 = vst.msk [vmem:[#allocation3 + $0x2b8] sm:$0xff] %vm1033_vm3, %v6532_v53  ;;  %v1859_v24 = vmul.f32 %v8038_v3, %v1782_v59  ;;  %6543 = vpow2.f32 %v1932_v32  ;;  %v1940_v4 = vmul.f32 1.442695, %v1855_v43  ;;  %v9487_v27 = vunpack.i.h.bf16 %v7980_v0 }
 0x1dc   : > { %v6536_v5 = vpop.eup %6535  ;;  %2070 = vst.msk [vmem:[#allocation3 + $0x2d0] sm:$0xff] %vm1033_vm3, %v6534_v22  ;;  %v1860_v36 = vmul.f32 %v8034_v61, %v1783_v19  ;;  %6545 = vpow2.f32 %v1934_v50  ;;  %v1942_v45 = vmul.f32 1.442695, %v1856_v46  ;;  %v1861_v22 = vmul.f32 %v8038_v3, %v1783_v19 }
 0x1dd   : > { %v6538_v35 = vpop.eup %6537  ;;  %2071 = vst.msk [vmem:[#allocation3 + $0x2d8] sm:$0xff] %vm1033_vm3, %v6536_v5  ;;  %v2636_v53 = vmul.f32 %v9487_v27, %v8049_v62  ;;  %6547 = vpow2.f32 %v1936_v33  ;;  %v1944_v59 = vmul.f32 1.442695, %v1857_v58  ;;  %v597_v38 = vmax.f32 %v7907_v31, 0.0  ;;  %v6169_v27 = vpop.permute.xlu2 %6168 }
 0x1de   : > { %v6540_v48 = vpop.eup %6539  ;;  %2072 = vst.msk [vmem:[#allocation3 + $0x2f0] sm:$0xff] %vm1033_vm3, %v6538_v35  ;;  %v1862_v56 = vmul.f32 %v8034_v61, %v1784_v1  ;;  %v1863_v0 = vmul.f32 %v8038_v3, %v1784_v1  ;;  %6549 = vpow2.f32 %v1938_v28  ;;  %v1946_v43 = vmul.f32 1.442695, %v1858_v42 }
 0x1df   : > { %2073 = vst.msk [vmem:[#allocation3 + $0x2f8] sm:$0xff] %vm1033_vm3, %v6540_v48  ;;  %v1864_v46 = vmul.f32 %v8034_v61, %v1785_v20  ;;  %v1865_v35 = vmul.f32 %v8038_v3, %v1785_v20  ;;  %6551 = vpow2.f32 %v1940_v4  ;;  %v1948_v19 = vmul.f32 1.442695, %v1859_v24 }
 0x1e0   : > { %2698 = vst.msk [vmem:[#allocation4 + $0x210] sm:$0xff] %vm1033_vm3, %v2634_v13  ;;  %v6542_v60 = vpop.eup %6541  ;;  %6553 = vpow2.f32 %v1942_v45  ;;  %v1950_v32 = vmul.f32 1.442695, %v1860_v36  ;;  %v9488_v58 = vunpack.c.h.bf16 %v7801_v34  ;;  %v9489_v33 = vand.u32 2147483647, %v7942_v41 }
 0x1e1   : > { %2700 = vst.msk [vmem:[#allocation4 + $0x230] sm:$0xff] %vm1033_vm3, %v2636_v53  ;;  %v6544_v13 = vpop.eup %6543  ;;  %6555 = vpow2.f32 %v1944_v59  ;;  %v1952_v1 = vmul.f32 1.442695, %v1861_v22  ;;  %v1954_v28 = vmul.f32 1.442695, %v1862_v56 }
 0x1e2   : > { %v8083_v50 = vmul.f32 %v9488_v58, %v8009_v26  ;;  %vm716_vm0 = vcmp.lt.f32.partialorder %v9489_v33, 0.0004427343  ;;  %2042 = vst.msk [vmem:[#allocation3 + $0x110] sm:$0xff] %vm1033_vm3, %v6542_v60  ;;  %v6546_v42 = vpop.eup %6545  ;;  %6557 = vpow2.f32 %v1946_v43  ;;  %v1956_v41 = vmul.f32 1.442695, %v1863_v0 }
 0x1e3   : > { %v717_v24 = vsel %vm716_vm0, %v7995_v7, %v7992_v37  ;;  %2043 = vst.msk [vmem:[#allocation3 + $0x118] sm:$0xff] %vm1033_vm3, %v6544_v13  ;;  %v6548_v5 = vpop.eup %6547  ;;  %6559 = vpow2.f32 %v1948_v19  ;;  %v1958_v4 = vmul.f32 1.442695, %v1864_v46  ;;  %v1960_v36 = vmul.f32 1.442695, %v1865_v35 }
 0x1e4   : > { %v725_v26 = vadd.f32 %v717_v24, %v597_v38  ;;  %2044 = vst.msk [vmem:[#allocation3 + $0x130] sm:$0xff] %vm1033_vm3, %v6546_v42  ;;  %v6550_v20 = vpop.eup %6549  ;;  %6561 = vpow2.f32 %v1950_v32  ;;  %v2517_v53 = vrot.slane %v8083_v50, 1  ;;  %v8107_v38 = vpop.permute.xlu0 %6254  ;;  %v2546_v35 = vperm.slane %v8083_v50, 0 }
 0x1e5   : > { %2045 = vst.msk [vmem:[#allocation3 + $0x138] sm:$0xff] %vm1033_vm3, %v6548_v5  ;;  %v6552_v7 = vpop.eup %6551  ;;  %6563 = vpow2.f32 %v1952_v1  ;;  %v6171_v58 = vunpack.i.h.bf16 %v6169_v27 }
 0x1e6   : > { %v8100_v37 = vsel %vm605_vm1, %v7907_v31, %v725_v26  ;;  %2046 = vst.msk [vmem:[#allocation3 + $0x150] sm:$0xff] %vm1033_vm3, %v6550_v20  ;;  %v6554_v22 = vpop.eup %6553  ;;  %6565 = vpow2.f32 %v1954_v28  ;;  %v6170_v31 = vunpack.i.l.bf16 %v6169_v27  ;;  %v8115_v33 = vperm.slane %v2517_v53, 0  ;;  %v8121_v26 = vpop.permute.xlu1 %6162 }
 0x1e7   : > { %v1763_v45 = vrot.slane %v8100_v37, 1  ;;  %v1764_v48 = vrot.slane %v8100_v37, 2  ;;  %2047 = vst.msk [vmem:[#allocation3 + $0x158] sm:$0xff] %vm1033_vm3, %v6552_v7  ;;  %v1765_v59 = vrot.slane %v8100_v37, 3  ;;  %v6556_v56 = vpop.eup %6555  ;;  %6567 = vpow2.f32 %v1956_v41 }
 0x1e8   : > { %2048 = vst.msk [vmem:[#allocation3 + $0x170] sm:$0xff] %vm1033_vm3, %v6554_v22  ;;  %v1794_v0 = vperm.slane %v8100_v37, 0  ;;  %v6558_v46 = vpop.eup %6557  ;;  %6569 = vpow2.f32 %v1958_v4  ;;  %v1766_v19 = vrot.slane %v8100_v37, 4  ;;  %v1767_v13 = vrot.slane %v8100_v37, 5 }
 0x1e9   : > { %v1795_v43 = vperm.slane %v1763_v45, 0  ;;  %2049 = vst.msk [vmem:[#allocation3 + $0x178] sm:$0xff] %vm1033_vm3, %v6556_v56  ;;  %v1796_v60 = vperm.slane %v1764_v48, 0  ;;  %v6560_v32 = vpop.eup %6559  ;;  %6571 = vpow2.f32 %v1960_v36  ;;  %v1797_v24 = vperm.slane %v1765_v59, 0 }
 0x1ea   : > { %2050 = vst.msk [vmem:[#allocation3 + $0x190] sm:$0xff] %vm1033_vm3, %v6558_v46  ;;  %v6562_v1 = vpop.eup %6561  ;;  %v1882_v42 = vmul.f32 %v8034_v61, %v1794_v0  ;;  %v1883_v28 = vmul.f32 %v8038_v3, %v1794_v0  ;;  %v2618_v27 = vmul.f32 %v6170_v31, %v2546_v35  ;;  %v1768_v53 = vrot.slane %v8100_v37, 6 }
 0x1eb   : > { %2051 = vst.msk [vmem:[#allocation3 + $0x198] sm:$0xff] %vm1033_vm3, %v6560_v32  ;;  %v6564_v5 = vpop.eup %6563  ;;  %v1884_v41 = vmul.f32 %v8034_v61, %v1795_v43  ;;  %v1885_v20 = vmul.f32 %v8038_v3, %v1795_v43  ;;  %v1798_v7 = vperm.slane %v1766_v19, 0  ;;  %v1886_v36 = vmul.f32 %v8034_v61, %v1796_v60  ;;  %v8137_v19 = vpop.permute.xlu2 %6178 }
 0x1ec   : > { %2052 = vst.msk [vmem:[#allocation3 + $0x1b0] sm:$0xff] %vm1033_vm3, %v6562_v1  ;;  %v6566_v4 = vpop.eup %6565  ;;  %v2620_v48 = vmul.f32 %v6171_v58, %v8115_v33  ;;  %v1769_v22 = vrot.slane %v8100_v37, 7  ;;  %v1799_v59 = vperm.slane %v1767_v13, 0  ;;  %v1887_v56 = vmul.f32 %v8038_v3, %v1796_v60  ;;  %v8139_v32 = vpop.permute.xlu0 %6260 }
 0x1ed   : > { %2053 = vst.msk [vmem:[#allocation3 + $0x1b8] sm:$0xff] %vm1033_vm3, %v6564_v5  ;;  %v6568_v45 = vpop.eup %6567  ;;  %v1888_v31 = vmul.f32 %v8034_v61, %v1797_v24  ;;  %v1994_v43 = vmul.f32 1.442695, %v1882_v42  ;;  %v1996_v46 = vmul.f32 1.442695, %v1883_v28  ;;  %v1889_v58 = vmul.f32 %v8038_v3, %v1797_v24 }
 0x1ee   : > { %2054 = vst.msk [vmem:[#allocation3 + $0x1d0] sm:$0xff] %vm1033_vm3, %v6566_v4  ;;  %v6570_v0 = vpop.eup %6569  ;;  %v1998_v5 = vmul.f32 1.442695, %v1884_v41  ;;  %v2000_v13 = vmul.f32 1.442695, %v1885_v20  ;;  %v1800_v60 = vperm.slane %v1768_v53, 0  ;;  %v1890_v4 = vmul.f32 %v8034_v61, %v1798_v7  ;;  %v8150_v53 = vpop.permute.xlu1 %6173 }
 0x1ef   : > { %2055 = vst.msk [vmem:[#allocation3 + $0x1d8] sm:$0xff] %vm1033_vm3, %v6568_v45  ;;  %v6572_v1 = vpop.eup %6571  ;;  %6573 = vpow2.f32 %v1994_v43  ;;  %v2002_v45 = vmul.f32 1.442695, %v1886_v36  ;;  %v1891_v42 = vmul.f32 %v8038_v3, %v1798_v7  ;;  %v2004_v28 = vmul.f32 1.442695, %v1887_v56 }
 0x1f0   : > { %2056 = vst.msk [vmem:[#allocation3 + $0x1f0] sm:$0xff] %vm1033_vm3, %v6570_v0  ;;  %6575 = vpow2.f32 %v1996_v46  ;;  %v1801_v24 = vperm.slane %v1769_v22, 0  ;;  %v1892_v41 = vmul.f32 %v8034_v61, %v1799_v59  ;;  %v2006_v20 = vmul.f32 1.442695, %v1888_v31 }
 0x1f1   : > { %2057 = vst.msk [vmem:[#allocation3 + $0x1f8] sm:$0xff] %vm1033_vm3, %v6572_v1  ;;  %6577 = vpow2.f32 %v1998_v5  ;;  %v1893_v0 = vmul.f32 %v8038_v3, %v1799_v59  ;;  %v2008_v36 = vmul.f32 1.442695, %v1889_v58  ;;  %v2010_v7 = vmul.f32 1.442695, %v1890_v4 }
 0x1f2   : > { %2682 = vst.msk [vmem:[#allocation4 + $0x110] sm:$0xff] %vm1033_vm3, %v2618_v27  ;;  %6579 = vpow2.f32 %v2000_v13  ;;  %v1894_v27 = vmul.f32 %v8034_v61, %v1800_v60  ;;  %v1895_v56 = vmul.f32 %v8038_v3, %v1800_v60  ;;  %v1896_v43 = vmul.f32 %v8034_v61, %v1801_v24 }
 0x1f3   : > { %2684 = vst.msk [vmem:[#allocation4 + $0x130] sm:$0xff] %vm1033_vm3, %v2620_v48  ;;  %6581 = vpow2.f32 %v2002_v45  ;;  %v2012_v48 = vmul.f32 1.442695, %v1891_v42  ;;  %v1897_v31 = vmul.f32 %v8038_v3, %v1801_v24  ;;  %v2014_v46 = vmul.f32 1.442695, %v1892_v41  ;;  %v8158_v59 = vpop.permute.xlu2 %6190 }
 0x1f4   : > { %6583 = vpow2.f32 %v2004_v28  ;;  %v8160_v1 = vpop.permute.xlu0 %6265  ;;  %v2016_v5 = vmul.f32 1.442695, %v1893_v0  ;;  %v8166_v13 = vmul.f32 %v9407_v12, %v8100_v37  ;;  %v2018_v61 = vmul.f32 1.442695, %v1894_v27 }
 0x1f5   : > { %v6574_v22 = vpop.eup %6573  ;;  %6585 = vpow2.f32 %v2006_v20  ;;  %v2020_v4 = vmul.f32 1.442695, %v1895_v56  ;;  %v2022_v42 = vmul.f32 1.442695, %v1896_v43  ;;  %v2024_v24 = vmul.f32 1.442695, %v1897_v31 }
 0x1f6   : > { %v6576_v58 = vpop.eup %6575  ;;  %6587 = vpow2.f32 %v2008_v36  ;;  %2074 = vst.msk [vmem:[#allocation3 + $0x310] sm:$0xff] %vm1033_vm3, %v6574_v22  ;;  %v8172_v28 = vpop.permute.xlu1 %6184  ;;  %v2532_v41 = vrot.slane %v8166_v13, 2  ;;  %v2533_v2 = vrot.slane %v8166_v13, 3  ;;  %v2518_v36 = vrot.slane %v8083_v50, 2 }
 0x1f7   : > { %v6578_v60 = vpop.eup %6577  ;;  %6589 = vpow2.f32 %v2010_v7  ;;  %2075 = vst.msk [vmem:[#allocation3 + $0x318] sm:$0xff] %vm1033_vm3, %v6576_v58  ;;  %v2519_v7 = vrot.slane %v8083_v50, 3  ;;  %v6256_v22 = vunpack.i.l.bf16 %v8107_v38 }
 0x1f8   : > { %v6580_v3 = vpop.eup %6579  ;;  %6591 = vpow2.f32 %v2012_v48  ;;  %2076 = vst.msk [vmem:[#allocation3 + $0x330] sm:$0xff] %vm1033_vm3, %v6578_v60  ;;  %v8186_v43 = vperm.slane %v2532_v41, 0  ;;  %v8190_v58 = vperm.slane %v2533_v2, 0  ;;  %v6165_v2 = vunpack.i.h.bf16 %v8121_v26 }
 0x1f9   : > { %v6582_v45 = vpop.eup %6581  ;;  %6593 = vpow2.f32 %v2014_v46  ;;  %2077 = vst.msk [vmem:[#allocation3 + $0x338] sm:$0xff] %vm1033_vm3, %v6580_v3  ;;  %v6257_v46 = vunpack.i.h.bf16 %v8107_v38  ;;  %v8196_v3 = vperm.slane %v2518_v36, 0 }
 0x1fa   : > { %v6584_v37 = vpop.eup %6583  ;;  %6595 = vpow2.f32 %v2016_v5  ;;  %2078 = vst.msk [vmem:[#allocation3 + $0x350] sm:$0xff] %vm1033_vm3, %v6582_v45  ;;  %v6181_v45 = vunpack.i.h.bf16 %v8137_v19  ;;  %v2654_v38 = vmul.f32 %v6256_v22, %v8186_v43  ;;  %v6176_v22 = vunpack.i.h.bf16 %v8150_v53 }
 0x1fb   : > { %v6586_v20 = vpop.eup %6585  ;;  %6597 = vpow2.f32 %v2018_v61  ;;  %2079 = vst.msk [vmem:[#allocation3 + $0x358] sm:$0xff] %vm1033_vm3, %v6584_v37  ;;  %v8192_v5 = vpop.permute.xlu2 %6200  ;;  %v6180_v61 = vunpack.i.l.bf16 %v8137_v19 }
 0x1fc   : > { %v6588_v0 = vpop.eup %6587  ;;  %6599 = vpow2.f32 %v2020_v4  ;;  %2080 = vst.msk [vmem:[#allocation3 + $0x370] sm:$0xff] %vm1033_vm3, %v6586_v20  ;;  %v8182_v56 = vpop.permute.xlu0 %6270  ;;  %v2656_v20 = vmul.f32 %v6257_v46, %v8190_v58 }
 0x1fd   : > { %v6590_v27 = vpop.eup %6589  ;;  %6601 = vpow2.f32 %v2022_v42  ;;  %2081 = vst.msk [vmem:[#allocation3 + $0x378] sm:$0xff] %vm1033_vm3, %v6588_v0  ;;  %v8200_v42 = vperm.slane %v2519_v7, 0  ;;  %v2622_v19 = vmul.f32 %v6180_v61, %v8196_v3  ;;  %v2520_v7 = vrot.slane %v8083_v50, 4 }
 0x1fe   : > { %v6592_v48 = vpop.eup %6591  ;;  %6603 = vpow2.f32 %v2024_v24  ;;  %2082 = vst.msk [vmem:[#allocation3 + $0x390] sm:$0xff] %vm1033_vm3, %v6590_v27  ;;  %v6164_v24 = vunpack.i.l.bf16 %v8121_v26  ;;  %v8208_v0 = vpop.permute.xlu1 %6195  ;;  %v6175_v27 = vunpack.i.l.bf16 %v8150_v53  ;;  %v2617_v61 = vmul.f32 %v6165_v2, %v7927_v40 }
 0x1ff   : > { %v6594_v31 = vpop.eup %6593  ;;  %2083 = vst.msk [vmem:[#allocation3 + $0x398] sm:$0xff] %vm1033_vm3, %v6592_v48  ;;  %v2624_v48 = vmul.f32 %v6181_v45, %v8200_v42  ;;  %v6192_v45 = vunpack.i.l.bf16 %v8158_v59  ;;  %v6193_v40 = vunpack.i.h.bf16 %v8158_v59 }
 0x200   : > { %v6596_v60 = vpop.eup %6595  ;;  %2084 = vst.msk [vmem:[#allocation3 + $0x3b0] sm:$0xff] %vm1033_vm3, %v6594_v31  ;;  %v2521_v31 = vrot.slane %v8083_v50, 5  ;;  %v2615_v46 = vmul.f32 %v6164_v24, %v7923_v55  ;;  %v2619_v53 = vmul.f32 %v6175_v27, %v2546_v35  ;;  %v2522_v55 = vrot.slane %v8083_v50, 6 }
 0x201   : > { %v6598_v4 = vpop.eup %6597  ;;  %2085 = vst.msk [vmem:[#allocation3 + $0x3b8] sm:$0xff] %vm1033_vm3, %v6596_v60  ;;  %v6262_v60 = vunpack.i.l.bf16 %v8139_v32  ;;  %v2621_v24 = vmul.f32 %v6176_v22, %v8115_v33  ;;  %v6267_v35 = vunpack.i.l.bf16 %v8160_v1 }
 0x202   : > { %v6600_v37 = vpop.eup %6599  ;;  %2086 = vst.msk [vmem:[#allocation3 + $0x3d0] sm:$0xff] %vm1033_vm3, %v6598_v4  ;;  %v6263_v4 = vunpack.i.h.bf16 %v8139_v32  ;;  %v2523_v32 = vrot.slane %v8083_v50, 7  ;;  %v6202_v50 = vunpack.i.l.bf16 %v8192_v5  ;;  %v2552_v59 = vperm.slane %v2522_v55, 0 }
 0x203   : > { %v6602_v41 = vpop.eup %6601  ;;  %2087 = vst.msk [vmem:[#allocation3 + $0x3d8] sm:$0xff] %vm1033_vm3, %v6600_v37  ;;  %v8226_v37 = vpop.permute.xlu2 %6217  ;;  %v6198_v55 = vunpack.i.h.bf16 %v8208_v0 }
 0x204   : > { %v6604_v36 = vpop.eup %6603  ;;  %2088 = vst.msk [vmem:[#allocation3 + $0x3f0] sm:$0xff] %vm1033_vm3, %v6602_v41  ;;  %v8218_v26 = vpop.permute.xlu0 %6275  ;;  %v2551_v41 = vperm.slane %v2521_v31, 0 }
 0x205   : > { %2089 = vst.msk [vmem:[#allocation3 + $0x3f8] sm:$0xff] %vm1033_vm3, %v6604_v36  ;;  %v1613_v36 = vmul.f32 %v6263_v4, %v7746_v25  ;;  %v1635_v25 = vmul.f32 %v6267_v35, %v7385_v44  ;;  %v6273_v4 = vunpack.i.h.bf16 %v8182_v56 }
 0x206   : > { %2718 = vst.msk [vmem:[#allocation4 + $0x350] sm:$0xff] %vm1033_vm3, %v2654_v38  ;;  %v2550_v38 = vperm.slane %v2520_v7, 0  ;;  %v8244_v27 = vpop.permute.xlu1 %6211  ;;  %v6203_v7 = vunpack.i.h.bf16 %v8192_v5 }
 0x207   : > { %2720 = vst.msk [vmem:[#allocation4 + $0x370] sm:$0xff] %vm1033_vm3, %v2656_v20  ;;  %v9490_v20 = vperm.slane %v7168_v52, 0  ;;  %v2629_v52 = vmul.f32 %v6193_v40, %v2551_v41 }
 0x208   : > { %2686 = vst.msk [vmem:[#allocation4 + $0x150] sm:$0xff] %vm1033_vm3, %v2622_v19  ;;  %v6268_v19 = vunpack.i.h.bf16 %v8160_v1  ;;  %v2627_v33 = vmul.f32 %v6192_v45, %v2550_v38  ;;  %v6186_v1 = vunpack.i.l.bf16 %v8172_v28  ;;  %v6197_v45 = vunpack.i.l.bf16 %v8208_v0 }
 0x209   : > { %2688 = vst.msk [vmem:[#allocation4 + $0x170] sm:$0xff] %vm1033_vm3, %v2624_v48  ;;  %v1611_v2 = vmul.f32 %v6262_v60, %v9490_v20  ;;  %v2553_v48 = vperm.slane %v2523_v32, 0  ;;  %v2631_v60 = vmul.f32 %v6202_v50, %v2552_v59  ;;  %v6278_v32 = vunpack.i.h.bf16 %v8218_v26 }
 0x20a   : > { %2679 = vst.msk [vmem:[#allocation4 + $0xd8] sm:$0xff] %vm1033_vm3, %v2615_v46  ;;  %v1637_v31 = vmul.f32 %v6268_v19, %v7390_v49  ;;  %v6187_v46 = vunpack.i.h.bf16 %v8172_v28  ;;  %v2626_v44 = vmul.f32 %v6186_v1, %v2550_v38  ;;  %v2525_v49 = vrot.slane %v8020_v21, 2 }
 0x20b   : > { %2681 = vst.msk [vmem:[#allocation4 + $0xf8] sm:$0xff] %vm1033_vm3, %v2617_v61  ;;  %v6272_v61 = vunpack.i.l.bf16 %v8182_v56  ;;  %v2633_v5 = vmul.f32 %v6203_v7, %v2553_v48  ;;  %v6277_v56 = vunpack.i.l.bf16 %v8218_v26  ;;  %v1657_v38 = vmul.f32 %v6273_v4, %v7569_v47 }
 0x20c   : > { %2683 = vst.msk [vmem:[#allocation4 + $0x118] sm:$0xff] %vm1033_vm3, %v2619_v53  ;;  %v6281_v22 = vpop.permute.xlu0 %6280  ;;  %v6228_v53 = vpop.permute.xlu2 %6227  ;;  %v2628_v28 = vmul.f32 %v6187_v46, %v2551_v41  ;;  %v2630_v0 = vmul.f32 %v6197_v45, %v2552_v59  ;;  %v6219_v41 = vunpack.i.l.bf16 %v8226_v37  ;;  %v2556_v35 = vperm.slane %v2525_v49, 0 }
 0x20d   : > { %2685 = vst.msk [vmem:[#allocation4 + $0x138] sm:$0xff] %vm1033_vm3, %v2621_v24  ;;  %v2526_v24 = vrot.slane %v8020_v21, 3  ;;  %v1655_v40 = vmul.f32 %v6272_v61, %v7550_v30  ;;  %v2632_v30 = vmul.f32 %v6198_v55, %v2553_v48  ;;  %v6220_v19 = vunpack.i.h.bf16 %v8226_v37 }
 0x20e   : > { %1675 = vst.msk [vmem:[#allocation4 + $0x8] sm:$0xff] %vm1033_vm3, %v1611_v2  ;;  %v8272_v2 = vpop.permute.xlu1 %6222  ;;  %v2528_v47 = vrot.slane %v8020_v21, 5  ;;  %v9491_v26 = vperm.slane %v7830_v9, 0  ;;  %v2605_v59 = vmul.f32 %v6278_v32, %v7860_v54  ;;  %v6283_v7 = vunpack.i.h.bf16 %v6281_v22 }
 0x20f   : > { %1677 = vst.msk [vmem:[#allocation4 + $0x28] sm:$0xff] %vm1033_vm3, %v1613_v36  ;;  %v2527_v36 = vrot.slane %v8020_v21, 4  ;;  %v2638_v48 = vmul.f32 %v6219_v41, %v2556_v35  ;;  %v6229_v37 = vunpack.i.l.bf16 %v6228_v53  ;;  %v6230_v46 = vunpack.i.h.bf16 %v6228_v53 }
 0x210   : > { %2691 = vst.msk [vmem:[#allocation4 + $0x198] sm:$0xff] %vm1033_vm3, %v2627_v33  ;;  %v2557_v33 = vperm.slane %v2526_v24, 0  ;;  %v2603_v50 = vmul.f32 %v6277_v56, %v9491_v26  ;;  %v6213_v61 = vunpack.i.l.bf16 %v8244_v27  ;;  %v2625_v54 = vmul.f32 %v6283_v7, %v8200_v42 }
 0x211   : > { %2693 = vst.msk [vmem:[#allocation4 + $0x1b8] sm:$0xff] %vm1033_vm3, %v2629_v52  ;;  %v6282_v52 = vunpack.i.l.bf16 %v6281_v22  ;;  %v2558_v1 = vperm.slane %v2527_v36, 0  ;;  %v6214_v22 = vunpack.i.h.bf16 %v8244_v27  ;;  %v2536_v53 = vrot.slane %v8166_v13, 6 }
 0x212   : > { %1699 = vst.msk [vmem:[#allocation4 + $0x188] sm:$0xff] %vm1033_vm3, %v1635_v25  ;;  %v9492_v42 = vperm.slane %v8020_v21, 0  ;;  %v6224_v27 = vunpack.i.l.bf16 %v8272_v2  ;;  %v2529_v24 = vrot.slane %v8020_v21, 6  ;;  %v6225_v56 = vunpack.i.h.bf16 %v8272_v2 }
 0x213   : > { %1701 = vst.msk [vmem:[#allocation4 + $0x1a8] sm:$0xff] %vm1033_vm3, %v1637_v31  ;;  %v2640_v31 = vmul.f32 %v6220_v19, %v2557_v33  ;;  %v2623_v9 = vmul.f32 %v6282_v52, %v8196_v3  ;;  %v2642_v4 = vmul.f32 %v6229_v37, %v2558_v1 }
 0x214   : > { %2695 = vst.msk [vmem:[#allocation4 + $0x1d8] sm:$0xff] %vm1033_vm3, %v2631_v60  ;;  %v6286_v20 = vpop.permute.xlu0 %6285  ;;  %v8285_v25 = vpop.permute.xlu2 %6239  ;;  %v2559_v60 = vperm.slane %v2528_v47, 0  ;;  %v2635_v55 = vmul.f32 %v6213_v61, %v9492_v42  ;;  %v2531_v47 = vrot.slane %v8166_v13, 1  ;;  %v2560_v2 = vperm.slane %v2529_v24, 0 }
 0x215   : > { %2697 = vst.msk [vmem:[#allocation4 + $0x1f8] sm:$0xff] %vm1033_vm3, %v2633_v5  ;;  %v6288_v49 = vunpack.i.h.bf16 %v6286_v20  ;;  %v2641_v26 = vmul.f32 %v6225_v56, %v2557_v33  ;;  %v2535_v24 = vrot.slane %v8166_v13, 5 }
 0x216   : > { %2690 = vst.msk [vmem:[#allocation4 + $0x190] sm:$0xff] %vm1033_vm3, %v2626_v44  ;;  %v6234_v5 = vpop.permute.xlu1 %6233  ;;  %v6287_v44 = vunpack.i.l.bf16 %v6286_v20  ;;  %v2644_v45 = vmul.f32 %v6230_v46, %v2559_v60 }
 0x217   : > { %2692 = vst.msk [vmem:[#allocation4 + $0x1b0] sm:$0xff] %vm1033_vm3, %v2628_v28  ;;  %v2537_v28 = vrot.slane %v8166_v13, 7  ;;  %v2645_v41 = vmul.f32 %v6288_v49, %v2559_v60  ;;  %v6235_v46 = vunpack.i.l.bf16 %v6234_v5  ;;  %v6236_v60 = vunpack.i.h.bf16 %v6234_v5  ;;  %v8341_v49 = vld [vmem:[%s529_s11] sm:$0x1] }
 0x218   : > { %1719 = vst.msk [vmem:[#allocation4 + $0x2c8] sm:$0xff] %vm1033_vm3, %v1655_v40  ;;  %v2637_v40 = vmul.f32 %v6214_v22, %v8049_v62  ;;  %v2643_v32 = vmul.f32 %v6287_v44, %v2558_v1  ;;  %v2639_v62 = vmul.f32 %v6224_v27, %v2556_v35  ;;  %v2563_v1 = vperm.slane %v2531_v47, 0 }
 0x219   : > { %1721 = vst.msk [vmem:[#allocation4 + $0x2e8] sm:$0xff] %vm1033_vm3, %v1657_v38  ;;  %v2530_v38 = vrot.slane %v8020_v21, 7  ;;  %v6241_v21 = vunpack.i.l.bf16 %v8285_v25  ;;  %v2534_v27 = vrot.slane %v8166_v13, 4 }
 0x21a   : > { %2694 = vst.msk [vmem:[#allocation4 + $0x1d0] sm:$0xff] %vm1033_vm3, %v2630_v0  ;;  %v8309_v0 = vperm.slane %v2536_v53, 0 }
 0x21b   : > { %2696 = vst.msk [vmem:[#allocation4 + $0x1f0] sm:$0xff] %vm1033_vm3, %v2632_v30  ;;  %v8312_v30 = vperm.slane %v2537_v28, 0  ;;  %v2561_v52 = vperm.slane %v2530_v38, 0  ;;  %v2647_v33 = vmul.f32 %v6241_v21, %v2560_v2  ;;  %v2566_v56 = vperm.slane %v2534_v27, 0 }
 0x21c   : > { %2667 = vst.msk [vmem:[#allocation4 + $0x18] sm:$0xff] %vm1033_vm3, %v2603_v50  ;;  %v6313_v3 = vpop.permute.xlu0 %6312  ;;  %v6250_v19 = vpop.permute.xlu2 %6249  ;;  %v6242_v50 = vunpack.i.h.bf16 %v8285_v25  ;;  %v2567_v38 = vperm.slane %v2535_v24, 0 }
 0x21d   : > { %2669 = vst.msk [vmem:[#allocation4 + $0x38] sm:$0xff] %vm1033_vm3, %v2605_v59  ;;  %v6314_v20 = vunpack.i.l.bf16 %v6313_v3  ;;  %v6315_v36 = vunpack.i.h.bf16 %v6313_v3  ;;  %v6251_v7 = vunpack.i.l.bf16 %v6250_v19  ;;  %v6252_v37 = vunpack.i.h.bf16 %v6250_v19 }
 0x21e   : > { %2702 = vst.msk [vmem:[#allocation4 + $0x250] sm:$0xff] %vm1033_vm3, %v2638_v48  ;;  %v2562_v48 = vperm.slane %v8166_v13, 0  ;;  %v2649_v25 = vmul.f32 %v6242_v50, %v2561_v52  ;;  %v2648_v44 = vmul.f32 %v6236_v60, %v2561_v52 }
 0x21f   : > { %2704 = vst.msk [vmem:[#allocation4 + $0x270] sm:$0xff] %vm1033_vm3, %v2640_v31  ;;  %v2663_v59 = vmul.f32 %v6314_v20, %v8309_v0  ;;  %v2665_v35 = vmul.f32 %v6315_v36, %v8312_v30  ;;  %v6245_v31 = vpop.permute.xlu1 %6244 }
 0x220   : > { %2687 = vst.msk [vmem:[#allocation4 + $0x158] sm:$0xff] %vm1033_vm3, %v2623_v9  ;;  %v2651_v9 = vmul.f32 %v6251_v7, %v2562_v48  ;;  %v6246_v61 = vunpack.i.l.bf16 %v6245_v31  ;;  %v6247_v22 = vunpack.i.h.bf16 %v6245_v31 }
 0x221   : > { %2689 = vst.msk [vmem:[#allocation4 + $0x178] sm:$0xff] %vm1033_vm3, %v2625_v54  ;;  %v2653_v54 = vmul.f32 %v6252_v37, %v2563_v1 }
 0x222   : > { %2706 = vst.msk [vmem:[#allocation4 + $0x290] sm:$0xff] %vm1033_vm3, %v2642_v4  ;;  %v2646_v4 = vmul.f32 %v6235_v46, %v2560_v2  ;;  %v2650_v53 = vmul.f32 %v6246_v61, %v2562_v48  ;;  %v2652_v5 = vmul.f32 %v6247_v22, %v2563_v1 }
 0x223   : > { %2708 = vst.msk [vmem:[#allocation4 + $0x2b0] sm:$0xff] %vm1033_vm3, %v2644_v45 }
 0x224   : > { %2699 = vst.msk [vmem:[#allocation4 + $0x218] sm:$0xff] %vm1033_vm3, %v2635_v55 }
 0x225   : > { %2701 = vst.msk [vmem:[#allocation4 + $0x238] sm:$0xff] %vm1033_vm3, %v2637_v40 }
 0x226   : > { %2707 = vst.msk [vmem:[#allocation4 + $0x298] sm:$0xff] %vm1033_vm3, %v2643_v32 }
 0x227   : > { %2709 = vst.msk [vmem:[#allocation4 + $0x2b8] sm:$0xff] %vm1033_vm3, %v2645_v41  ;;  %v6292_v45 = vpop.permute.xlu1 %6291 }
 0x228   : > { %2703 = vst.msk [vmem:[#allocation4 + $0x258] sm:$0xff] %vm1033_vm3, %v2639_v62  ;;  %v6294_v3 = vunpack.i.h.bf16 %v6292_v45  ;;  %v6293_v28 = vunpack.i.l.bf16 %v6292_v45 }
 0x229   : > { %2705 = vst.msk [vmem:[#allocation4 + $0x278] sm:$0xff] %vm1033_vm3, %v2641_v26 }
 0x22a   : > { %2727 = vst.msk [vmem:[#allocation4 + $0x3d8] sm:$0xff] %vm1033_vm3, %v2663_v59  ;;  %v2655_v42 = vmul.f32 %v6293_v28, %v8186_v43  ;;  %v2657_v55 = vmul.f32 %v6294_v3, %v8190_v58  ;;  %v6298_v43 = vpop.permute.xlu2 %6297 }
 0x22b   : > { %2729 = vst.msk [vmem:[#allocation4 + $0x3f8] sm:$0xff] %vm1033_vm3, %v2665_v35  ;;  %v6300_v58 = vunpack.i.h.bf16 %v6298_v43  ;;  %v6299_v19 = vunpack.i.l.bf16 %v6298_v43 }
 0x22c   : > { %2711 = vst.msk [vmem:[#allocation4 + $0x2d8] sm:$0xff] %vm1033_vm3, %v2647_v33 }
 0x22d   : > { %2713 = vst.msk [vmem:[#allocation4 + $0x2f8] sm:$0xff] %vm1033_vm3, %v2649_v25  ;;  %v2658_v47 = vmul.f32 %v6299_v19, %v2566_v56  ;;  %v2660_v13 = vmul.f32 %v6300_v58, %v2567_v38 }
 0x22e   : > { %2715 = vst.msk [vmem:[#allocation4 + $0x318] sm:$0xff] %vm1033_vm3, %v2651_v9 }
 0x22f   : > { %2717 = vst.msk [vmem:[#allocation4 + $0x338] sm:$0xff] %vm1033_vm3, %v2653_v54  ;;  %v6303_v40 = vpop.permute.xlu1 %6302 }
 0x230   : > { %2710 = vst.msk [vmem:[#allocation4 + $0x2d0] sm:$0xff] %vm1033_vm3, %v2646_v4  ;;  %v6305_v32 = vunpack.i.h.bf16 %v6303_v40  ;;  %v6304_v20 = vunpack.i.l.bf16 %v6303_v40 }
 0x231   : > { %2712 = vst.msk [vmem:[#allocation4 + $0x2f0] sm:$0xff] %vm1033_vm3, %v2648_v44 }
 0x232   : > { %2714 = vst.msk [vmem:[#allocation4 + $0x310] sm:$0xff] %vm1033_vm3, %v2650_v53  ;;  %v2659_v41 = vmul.f32 %v6304_v20, %v2566_v56  ;;  %v2661_v36 = vmul.f32 %v6305_v32, %v2567_v38  ;;  %v6308_v62 = vpop.permute.xlu2 %6307 }
 0x233   : > { %2716 = vst.msk [vmem:[#allocation4 + $0x330] sm:$0xff] %vm1033_vm3, %v2652_v5  ;;  %v6310_v21 = vunpack.i.h.bf16 %v6308_v62  ;;  %v6309_v2 = vunpack.i.l.bf16 %v6308_v62 }
 0x234   : > { %2719 = vst.msk [vmem:[#allocation4 + $0x358] sm:$0xff] %vm1033_vm3, %v2655_v42 }
 0x235   : > { %2721 = vst.msk [vmem:[#allocation4 + $0x378] sm:$0xff] %vm1033_vm3, %v2657_v55  ;;  %v2662_v26 = vmul.f32 %v6309_v2, %v8309_v0  ;;  %v2664_v50 = vmul.f32 %v6310_v21, %v8312_v30 }
 0x236   : > { %2723 = vst.msk [vmem:[#allocation4 + $0x398] sm:$0xff] %vm1033_vm3, %v2659_v41 }
 0x237   : > { %2725 = vst.msk [vmem:[#allocation4 + $0x3b8] sm:$0xff] %vm1033_vm3, %v2661_v36  ;;  %2733 = sbr.rel (%p5532_p7) target bundleno = 617 (0x269), region = 130 }
 0x238   : > { %2722 = vst.msk [vmem:[#allocation4 + $0x390] sm:$0xff] %vm1033_vm3, %v2658_v47 }
 0x239   : > { %2724 = vst.msk [vmem:[#allocation4 + $0x3b0] sm:$0xff] %vm1033_vm3, %v2660_v13 }
 0x23a   : > { %2726 = vst.msk [vmem:[#allocation4 + $0x3d0] sm:$0xff] %vm1033_vm3, %v2662_v26 }
 0x23b   : > { %2728 = vst.msk [vmem:[#allocation4 + $0x3f0] sm:$0xff] %vm1033_vm3, %v2664_v50 }
 0x23c   : > { %v2734_v52 = vld [vmem:[#allocation2] sm:$0xff]   ;;  %v2735_v59 = vld [vmem:[#allocation2 + $0x8] sm:$0xff]   ;;  %v2736_v7 = vld [vmem:[#allocation2 + $0x10] sm:$0xff]  }
 0x23d   : > { %v2737_v48 = vld [vmem:[#allocation2 + $0x18] sm:$0xff]  }
 0x23e LB: >> { %s5759_s15 = sshll.u32 %s6795_s10, 8  ;;  %s2743_s10 = sadd.s32 1, %s6795_s10   ;;  %s6795_s10 = sphi %s8366_s10, %s2743_s10   ;;  %v6791_v52 = vphi %v2734_v52, %v9496_v52   ;;  %v6787_v59 = vphi %v2735_v59, %v9495_v59   ;;  %v6783_v7 = vphi %v2736_v7, %v9494_v7   ;;  %v6779_v48 = vphi %v2737_v48, %v9493_v48  }
 0x23f   : >> { %s8376_s17 = scalar_lea.vmem [#allocation3], %s5759_s15  ;;  %s8379_s6 = scalar_lea.vmem [#allocation4], %s5759_s15 }
 0x240   : >> { %v2751_v0 = vld [vmem:[%s8376_s17] sm:$0xff]  ;;  %v2752_v35 = vld [vmem:[%s8376_s17 + $0x8] sm:$0xff]  ;;  %v2753_v33 = vld [vmem:[%s8376_s17 + $0x10] sm:$0xff]  ;;  %p2740_p8 = scmp.ge.s32.totalorder %s2743_s10, 4  }
 0x241   : >> { %v2755_v37 = vmul.f32 %v6791_v52, %v2751_v0  ;;  %v2756_v1 = vmul.f32 %v6787_v59, %v2752_v35  ;;  %v2757_v25 = vmul.f32 %v6783_v7, %v2753_v33  ;;  %v2754_v60 = vld [vmem:[%s8376_s17 + $0x18] sm:$0xff]  ;;  %v5537_v61 = vld [vmem:[%s8376_s17 + $0x20] sm:$0xff]  ;;  %v5538_v53 = vld [vmem:[%s8376_s17 + $0x28] sm:$0xff] }
 0x242   : >> { %v2760_v30 = vld [vmem:[%s8379_s6] sm:$0xff]  ;;  %v2761_v31 = vld [vmem:[%s8379_s6 + $0x8] sm:$0xff]  ;;  %v2762_v46 = vld [vmem:[%s8379_s6 + $0x10] sm:$0xff]  ;;  %v2758_v4 = vmul.f32 %v6779_v48, %v2754_v60 }
 0x243   : >> { %v2763_v9 = vld [vmem:[%s8379_s6 + $0x18] sm:$0xff]  ;;  %v2764_v54 = vadd.f32 %v2760_v30, %v2755_v37  ;;  %v2765_v22 = vadd.f32 %v2761_v31, %v2756_v1  ;;  %v5543_v44 = vld [vmem:[%s8379_s6 + $0x20] sm:$0xff]  ;;  %v2766_v5 = vadd.f32 %v2762_v46, %v2757_v25  ;;  %v5544_v45 = vld [vmem:[%s8379_s6 + $0x28] sm:$0xff] }
 0x244   : >> { %v5539_v3 = vld [vmem:[%s8376_s17 + $0x30] sm:$0xff]  ;;  %v5540_v28 = vld [vmem:[%s8376_s17 + $0x38] sm:$0xff]  ;;  %v2767_v42 = vadd.f32 %v2763_v9, %v2758_v4  ;;  %v5553_v38 = vld [vmem:[%s8376_s17 + $0x40] sm:$0xff] }
 0x245   : >> { %2768 = vst.msk [vmem:[%s8379_s6] sm:$0xff] %vm1033_vm3, %v2764_v54  ;;  %v2779_v55 = vmul.f32 %v5537_v61, %v2764_v54  ;;  %v2780_v27 = vmul.f32 %v5538_v53, %v2765_v22  ;;  %v5545_v24 = vld [vmem:[%s8379_s6 + $0x30] sm:$0xff]  ;;  %v2781_v40 = vmul.f32 %v5539_v3, %v2766_v5  ;;  %v5546_v56 = vld [vmem:[%s8379_s6 + $0x38] sm:$0xff]  ;;  %v5554_v32 = vld [vmem:[%s8376_s17 + $0x48] sm:$0xff] }
 0x246   : >> { %2769 = vst.msk [vmem:[%s8379_s6 + $0x8] sm:$0xff] %vm1033_vm3, %v2765_v22  ;;  %v2782_v36 = vmul.f32 %v5540_v28, %v2767_v42  ;;  %v5555_v43 = vld [vmem:[%s8376_s17 + $0x50] sm:$0xff]  ;;  %v5559_v19 = vld [vmem:[%s8379_s6 + $0x40] sm:$0xff]  ;;  %v5560_v47 = vld [vmem:[%s8379_s6 + $0x48] sm:$0xff] }
 0x247   : >> { %2770 = vst.msk [vmem:[%s8379_s6 + $0x10] sm:$0xff] %vm1033_vm3, %v2766_v5  ;;  %v2788_v20 = vadd.f32 %v5543_v44, %v2779_v55  ;;  %v2789_v41 = vadd.f32 %v5544_v45, %v2780_v27  ;;  %v2790_v58 = vadd.f32 %v5545_v24, %v2781_v40  ;;  %v5556_v13 = vld [vmem:[%s8376_s17 + $0x58] sm:$0xff]  ;;  %v5561_v26 = vld [vmem:[%s8379_s6 + $0x50] sm:$0xff]  ;;  %v5569_v59 = vld [vmem:[%s8376_s17 + $0x60] sm:$0xff] }
 0x248   : >> { %2771 = vst.msk [vmem:[%s8379_s6 + $0x18] sm:$0xff] %vm1033_vm3, %v2767_v42  ;;  %v2791_v62 = vadd.f32 %v5546_v56, %v2782_v36  ;;  %v5562_v52 = vld [vmem:[%s8379_s6 + $0x58] sm:$0xff]  ;;  %v5570_v7 = vld [vmem:[%s8376_s17 + $0x68] sm:$0xff]  ;;  %v5571_v35 = vld [vmem:[%s8376_s17 + $0x70] sm:$0xff] }
 0x249   : >> { %5547 = vst.msk [vmem:[%s8379_s6 + $0x20] sm:$0xff] %vm1033_vm3, %v2788_v20  ;;  %v2803_v21 = vmul.f32 %v5553_v38, %v2788_v20  ;;  %v2804_v2 = vmul.f32 %v5554_v32, %v2789_v41  ;;  %v2805_v50 = vmul.f32 %v5555_v43, %v2790_v58  ;;  %v5575_v1 = vld [vmem:[%s8379_s6 + $0x60] sm:$0xff]  ;;  %v5576_v31 = vld [vmem:[%s8379_s6 + $0x68] sm:$0xff]  ;;  %v5572_v33 = vld [vmem:[%s8376_s17 + $0x78] sm:$0xff] }
 0x24a   : >> { %5548 = vst.msk [vmem:[%s8379_s6 + $0x28] sm:$0xff] %vm1033_vm3, %v2789_v41  ;;  %v2806_v30 = vmul.f32 %v5556_v13, %v2791_v62  ;;  %v5577_v9 = vld [vmem:[%s8379_s6 + $0x70] sm:$0xff]  ;;  %v5578_v54 = vld [vmem:[%s8379_s6 + $0x78] sm:$0xff]  ;;  %v5585_v22 = vld [vmem:[%s8376_s17 + $0x80] sm:$0xff] }
 0x24b   : >> { %5549 = vst.msk [vmem:[%s8379_s6 + $0x30] sm:$0xff] %vm1033_vm3, %v2790_v58  ;;  %v2812_v48 = vadd.f32 %v5559_v19, %v2803_v21  ;;  %v2813_v0 = vadd.f32 %v5560_v47, %v2804_v2  ;;  %v2814_v37 = vadd.f32 %v5561_v26, %v2805_v50  ;;  %v5586_v4 = vld [vmem:[%s8376_s17 + $0x88] sm:$0xff]  ;;  %v5587_v45 = vld [vmem:[%s8376_s17 + $0x90] sm:$0xff]  ;;  %v5591_v28 = vld [vmem:[%s8379_s6 + $0x80] sm:$0xff] }
 0x24c   : >> { %5550 = vst.msk [vmem:[%s8379_s6 + $0x38] sm:$0xff] %vm1033_vm3, %v2791_v62  ;;  %v2815_v46 = vadd.f32 %v5562_v52, %v2806_v30  ;;  %v5592_v42 = vld [vmem:[%s8379_s6 + $0x88] sm:$0xff]  ;;  %v5588_v55 = vld [vmem:[%s8376_s17 + $0x98] sm:$0xff]  ;;  %v5593_v56 = vld [vmem:[%s8379_s6 + $0x90] sm:$0xff] }
 0x24d   : >> { %5563 = vst.msk [vmem:[%s8379_s6 + $0x40] sm:$0xff] %vm1033_vm3, %v2812_v48  ;;  %v2827_v25 = vmul.f32 %v5569_v59, %v2812_v48  ;;  %v2828_v60 = vmul.f32 %v5570_v7, %v2813_v0  ;;  %v2829_v61 = vmul.f32 %v5571_v35, %v2814_v37  ;;  %v5594_v32 = vld [vmem:[%s8379_s6 + $0x98] sm:$0xff]  ;;  %v5601_v20 = vld [vmem:[%s8376_s17 + $0xa0] sm:$0xff]  ;;  %v5602_v41 = vld [vmem:[%s8376_s17 + $0xa8] sm:$0xff] }
 0x24e   : >> { %5564 = vst.msk [vmem:[%s8379_s6 + $0x48] sm:$0xff] %vm1033_vm3, %v2813_v0  ;;  %v2830_v5 = vmul.f32 %v5572_v33, %v2815_v46  ;;  %v5603_v19 = vld [vmem:[%s8376_s17 + $0xb0] sm:$0xff]  ;;  %v5607_v13 = vld [vmem:[%s8379_s6 + $0xa0] sm:$0xff]  ;;  %v5608_v62 = vld [vmem:[%s8379_s6 + $0xa8] sm:$0xff] }
 0x24f   : >> { %5565 = vst.msk [vmem:[%s8379_s6 + $0x50] sm:$0xff] %vm1033_vm3, %v2814_v37  ;;  %v2836_v44 = vadd.f32 %v5575_v1, %v2827_v25  ;;  %v2837_v53 = vadd.f32 %v5576_v31, %v2828_v60  ;;  %v2838_v3 = vadd.f32 %v5577_v9, %v2829_v61  ;;  %v5604_v21 = vld [vmem:[%s8376_s17 + $0xb8] sm:$0xff]  ;;  %v5609_v52 = vld [vmem:[%s8379_s6 + $0xb0] sm:$0xff]  ;;  %v5617_v48 = vld [vmem:[%s8376_s17 + $0xc0] sm:$0xff] }
 0x250   : >> { %5566 = vst.msk [vmem:[%s8379_s6 + $0x58] sm:$0xff] %vm1033_vm3, %v2815_v46  ;;  %v2839_v27 = vadd.f32 %v5578_v54, %v2830_v5  ;;  %v5610_v7 = vld [vmem:[%s8379_s6 + $0xb8] sm:$0xff]  ;;  %v5618_v0 = vld [vmem:[%s8376_s17 + $0xc8] sm:$0xff]  ;;  %v5619_v1 = vld [vmem:[%s8376_s17 + $0xd0] sm:$0xff] }
 0x251   : >> { %5579 = vst.msk [vmem:[%s8379_s6 + $0x60] sm:$0xff] %vm1033_vm3, %v2836_v44  ;;  %v2851_v24 = vmul.f32 %v5585_v22, %v2836_v44  ;;  %v2852_v40 = vmul.f32 %v5586_v4, %v2837_v53  ;;  %v2853_v38 = vmul.f32 %v5587_v45, %v2838_v3  ;;  %v5623_v33 = vld [vmem:[%s8379_s6 + $0xc0] sm:$0xff]  ;;  %v5624_v46 = vld [vmem:[%s8379_s6 + $0xc8] sm:$0xff]  ;;  %v5620_v25 = vld [vmem:[%s8376_s17 + $0xd8] sm:$0xff] }
 0x252   : >> { %5580 = vst.msk [vmem:[%s8379_s6 + $0x68] sm:$0xff] %vm1033_vm3, %v2837_v53  ;;  %v2854_v58 = vmul.f32 %v5588_v55, %v2839_v27  ;;  %v5625_v54 = vld [vmem:[%s8379_s6 + $0xd0] sm:$0xff]  ;;  %v5626_v4 = vld [vmem:[%s8379_s6 + $0xd8] sm:$0xff]  ;;  %v5633_v44 = vld [vmem:[%s8376_s17 + $0xe0] sm:$0xff] }
 0x253   : >> { %5581 = vst.msk [vmem:[%s8379_s6 + $0x70] sm:$0xff] %vm1033_vm3, %v2838_v3  ;;  %v2860_v36 = vadd.f32 %v5591_v28, %v2851_v24  ;;  %v2861_v43 = vadd.f32 %v5592_v42, %v2852_v40  ;;  %v2862_v47 = vadd.f32 %v5593_v56, %v2853_v38  ;;  %v5634_v53 = vld [vmem:[%s8376_s17 + $0xe8] sm:$0xff]  ;;  %v5635_v28 = vld [vmem:[%s8376_s17 + $0xf0] sm:$0xff]  ;;  %v5639_v55 = vld [vmem:[%s8379_s6 + $0xe0] sm:$0xff] }
 0x254   : >> { %5582 = vst.msk [vmem:[%s8379_s6 + $0x78] sm:$0xff] %vm1033_vm3, %v2839_v27  ;;  %v2863_v2 = vadd.f32 %v5594_v32, %v2854_v58  ;;  %v5640_v27 = vld [vmem:[%s8379_s6 + $0xe8] sm:$0xff]  ;;  %v5636_v24 = vld [vmem:[%s8376_s17 + $0xf8] sm:$0xff]  ;;  %v5641_v32 = vld [vmem:[%s8379_s6 + $0xf0] sm:$0xff] }
 0x255   : >> { %5595 = vst.msk [vmem:[%s8379_s6 + $0x80] sm:$0xff] %vm1033_vm3, %v2860_v36  ;;  %v2875_v26 = vmul.f32 %v5601_v20, %v2860_v36  ;;  %v2876_v50 = vmul.f32 %v5602_v41, %v2861_v43  ;;  %v2877_v59 = vmul.f32 %v5603_v19, %v2862_v47  ;;  %v5642_v41 = vld [vmem:[%s8379_s6 + $0xf8] sm:$0xff] }
 0x256   : >> { %5596 = vst.msk [vmem:[%s8379_s6 + $0x88] sm:$0xff] %vm1033_vm3, %v2861_v43  ;;  %v2878_v37 = vmul.f32 %v5604_v21, %v2863_v2 }
 0x257   : >> { %5597 = vst.msk [vmem:[%s8379_s6 + $0x90] sm:$0xff] %vm1033_vm3, %v2862_v47  ;;  %v2884_v30 = vadd.f32 %v5607_v13, %v2875_v26  ;;  %v2885_v35 = vadd.f32 %v5608_v62, %v2876_v50  ;;  %v2886_v31 = vadd.f32 %v5609_v52, %v2877_v59 }
 0x258   : >> { %5598 = vst.msk [vmem:[%s8379_s6 + $0x98] sm:$0xff] %vm1033_vm3, %v2863_v2  ;;  %v2887_v60 = vadd.f32 %v5610_v7, %v2878_v37 }
 0x259   : >> { %5611 = vst.msk [vmem:[%s8379_s6 + $0xa0] sm:$0xff] %vm1033_vm3, %v2884_v30  ;;  %v2899_v9 = vmul.f32 %v5617_v48, %v2884_v30  ;;  %v2900_v61 = vmul.f32 %v5618_v0, %v2885_v35  ;;  %v2901_v22 = vmul.f32 %v5619_v1, %v2886_v31 }
 0x25a   : >> { %5612 = vst.msk [vmem:[%s8379_s6 + $0xa8] sm:$0xff] %vm1033_vm3, %v2885_v35  ;;  %v2902_v3 = vmul.f32 %v5620_v25, %v2887_v60 }
 0x25b   : >> { %5613 = vst.msk [vmem:[%s8379_s6 + $0xb0] sm:$0xff] %vm1033_vm3, %v2886_v31  ;;  %v2908_v5 = vadd.f32 %v5623_v33, %v2899_v9  ;;  %v2909_v45 = vadd.f32 %v5624_v46, %v2900_v61  ;;  %v2910_v42 = vadd.f32 %v5625_v54, %v2901_v22 }
 0x25c   : >> { %5614 = vst.msk [vmem:[%s8379_s6 + $0xb8] sm:$0xff] %vm1033_vm3, %v2887_v60  ;;  %v2911_v40 = vadd.f32 %v5626_v4, %v2902_v3 }
 0x25d   : >> { %5627 = vst.msk [vmem:[%s8379_s6 + $0xc0] sm:$0xff] %vm1033_vm3, %v2908_v5  ;;  %v2923_v56 = vmul.f32 %v5633_v44, %v2908_v5  ;;  %v2924_v38 = vmul.f32 %v5634_v53, %v2909_v45  ;;  %v2925_v20 = vmul.f32 %v5635_v28, %v2910_v42 }
 0x25e   : >> { %5628 = vst.msk [vmem:[%s8379_s6 + $0xc8] sm:$0xff] %vm1033_vm3, %v2909_v45  ;;  %v2926_v58 = vmul.f32 %v5636_v24, %v2911_v40 }
 0x25f   : >> { %5629 = vst.msk [vmem:[%s8379_s6 + $0xd0] sm:$0xff] %vm1033_vm3, %v2910_v42  ;;  %v2932_v36 = vadd.f32 %v5639_v55, %v2923_v56   ;;  %v2933_v43 = vadd.f32 %v5640_v27, %v2924_v38   ;;  %v2934_v19 = vadd.f32 %v5641_v32, %v2925_v20  }
 0x260   : >> { %5630 = vst.msk [vmem:[%s8379_s6 + $0xd8] sm:$0xff] %vm1033_vm3, %v2911_v40  ;;  %v2935_v47 = vadd.f32 %v5642_v41, %v2926_v58   ;;  %2742 = sbr.rel (!%p2740_p8) target bundleno = 574 (0x23e), region = 271 }
 0x261   : >> { %5643 = vst.msk [vmem:[%s8379_s6 + $0xe0] sm:$0xff] %vm1033_vm3, %v2932_v36  ;;  %v9494_v7 = vmov %v2934_v19  ;;  %v9495_v59 = vmov %v2933_v43  ;;  %v9496_v52 = vmov %v2932_v36 }
 0x262   : >> { %5644 = vst.msk [vmem:[%s8379_s6 + $0xe8] sm:$0xff] %vm1033_vm3, %v2933_v43  ;;  %v9493_v48 = vmov %v2935_v47 }
 0x263   : >> { %5645 = vst.msk [vmem:[%s8379_s6 + $0xf0] sm:$0xff] %vm1033_vm3, %v2934_v19 }
 0x264   : >> { %5646 = vst.msk [vmem:[%s8379_s6 + $0xf8] sm:$0xff] %vm1033_vm3, %v2935_v47 }
 0x265   : > { %2940 = vst.msk [vmem:[#allocation2] sm:$0xff] %vm1033_vm3, %v2932_v36 }
 0x266   : > { %2941 = vst.msk [vmem:[#allocation2 + $0x8] sm:$0xff] %vm1033_vm3, %v2933_v43 }
 0x267   : > { %2942 = vst.msk [vmem:[#allocation2 + $0x10] sm:$0xff] %vm1033_vm3, %v2934_v19 }
 0x268   : > { %2943 = vst.msk [vmem:[#allocation2 + $0x18] sm:$0xff] %vm1033_vm3, %v2935_v47 }
 0x269 PF: > { %p5647_p9 = scmp.lt.s32.totalorder %s6763_s23, 2 }
 0x26a   : > { %s8534_s7 = smov (!%p5647_p9), 0  }
 0x26b   : > { %2947 = sbr.rel (%p5647_p9) target bundleno = 672 (0x2a0), region = 141 }
 0x270   : > { %v2948_v13 = vld [vmem:[#allocation2] sm:$0xff]   ;;  %v2949_v62 = vld [vmem:[#allocation2 + $0x8] sm:$0xff]   ;;  %v2950_v21 = vld [vmem:[#allocation2 + $0x10] sm:$0xff]  }
 0x271   : > { %v2951_v2 = vld [vmem:[#allocation2 + $0x18] sm:$0xff]  }
 0x272 LB: >> { %s5774_s8 = sshll.u32 %s6815_s7, 3  ;;  %s2957_s7 = sadd.s32 1, %s6815_s7   ;;  %s6815_s7 = sphi %s8534_s7, %s2957_s7   ;;  %v6811_v13 = vphi %v2948_v13, %v9500_v13   ;;  %v6807_v62 = vphi %v2949_v62, %v9499_v62   ;;  %v6803_v21 = vphi %v2950_v21, %v9498_v21   ;;  %v6799_v2 = vphi %v2951_v2, %v9497_v2  }
 0x273   : >> { %s5775_s11 = sadd.s32 8, %s5774_s8  ;;  %p2954_p10 = scmp.ge.s32.totalorder %s2957_s7, 4  }
 0x274   : >> { %s2964_s30 = ssub.s32 32, %s5775_s11 }
 0x275   : >> { %s5649_s12 = sshll.u32 %s2964_s30, 5 }
 0x276   : >> { %s8544_s29 = scalar_lea.vmem [#allocation3], %s5649_s12  ;;  %s8547_s18 = scalar_lea.vmem [#allocation4], %s5649_s12 }
 0x277   : >> { %v5650_v26 = vld [vmem:[%s8544_s29 + $0xe0] sm:$0xff]  ;;  %v5651_v52 = vld [vmem:[%s8544_s29 + $0xe8] sm:$0xff]  ;;  %v5652_v0 = vld [vmem:[%s8544_s29 + $0xf0] sm:$0xff] }
 0x278   : >> { %v5655_v50 = vld [vmem:[%s8547_s18 + $0xe0] sm:$0xff]  ;;  %v2972_v59 = vmul.f32 %v6811_v13, %v5650_v26  ;;  %v2973_v7 = vmul.f32 %v6807_v62, %v5651_v52  ;;  %v5656_v48 = vld [vmem:[%s8547_s18 + $0xe8] sm:$0xff]  ;;  %v5657_v30 = vld [vmem:[%s8547_s18 + $0xf0] sm:$0xff]  ;;  %v2974_v35 = vmul.f32 %v6803_v21, %v5652_v0 }
 0x279   : >> { %v5653_v37 = vld [vmem:[%s8544_s29 + $0xf8] sm:$0xff]  ;;  %v5664_v31 = vld [vmem:[%s8544_s29 + $0xc0] sm:$0xff]  ;;  %v5665_v9 = vld [vmem:[%s8544_s29 + $0xc8] sm:$0xff] }
 0x27a   : >> { %v5658_v1 = vld [vmem:[%s8547_s18 + $0xf8] sm:$0xff]  ;;  %v2981_v33 = vadd.f32 %v5655_v50, %v2972_v59  ;;  %v2982_v46 = vadd.f32 %v5656_v48, %v2973_v7  ;;  %v2975_v25 = vmul.f32 %v6799_v2, %v5653_v37  ;;  %v5669_v60 = vld [vmem:[%s8547_s18 + $0xc0] sm:$0xff]  ;;  %v2983_v61 = vadd.f32 %v5657_v30, %v2974_v35  ;;  %v5670_v54 = vld [vmem:[%s8547_s18 + $0xc8] sm:$0xff] }
 0x27b   : >> { %v5666_v22 = vld [vmem:[%s8544_s29 + $0xd0] sm:$0xff]  ;;  %v5667_v4 = vld [vmem:[%s8544_s29 + $0xd8] sm:$0xff]  ;;  %v5678_v42 = vld [vmem:[%s8544_s29 + $0xa0] sm:$0xff] }
 0x27c   : >> { %5659 = vst.msk [vmem:[%s8547_s18 + $0xe0] sm:$0xff] %vm1033_vm3, %v2981_v33  ;;  %v2984_v44 = vadd.f32 %v5658_v1, %v2975_v25  ;;  %v2996_v53 = vmul.f32 %v5664_v31, %v2981_v33  ;;  %v2997_v5 = vmul.f32 %v5665_v9, %v2982_v46  ;;  %v5671_v45 = vld [vmem:[%s8547_s18 + $0xd0] sm:$0xff]  ;;  %v2998_v3 = vmul.f32 %v5666_v22, %v2983_v61  ;;  %v5672_v28 = vld [vmem:[%s8547_s18 + $0xd8] sm:$0xff]  ;;  %v5679_v55 = vld [vmem:[%s8544_s29 + $0xa8] sm:$0xff] }
 0x27d   : >> { %5660 = vst.msk [vmem:[%s8547_s18 + $0xe8] sm:$0xff] %vm1033_vm3, %v2982_v46  ;;  %v5680_v56 = vld [vmem:[%s8544_s29 + $0xb0] sm:$0xff]  ;;  %v5683_v32 = vld [vmem:[%s8547_s18 + $0xa0] sm:$0xff]  ;;  %v5684_v20 = vld [vmem:[%s8547_s18 + $0xa8] sm:$0xff] }
 0x27e   : >> { %5661 = vst.msk [vmem:[%s8547_s18 + $0xf0] sm:$0xff] %vm1033_vm3, %v2983_v61  ;;  %v3005_v27 = vadd.f32 %v5669_v60, %v2996_v53  ;;  %v3006_v24 = vadd.f32 %v5670_v54, %v2997_v5  ;;  %v2999_v40 = vmul.f32 %v5667_v4, %v2984_v44  ;;  %v3007_v38 = vadd.f32 %v5671_v45, %v2998_v3  ;;  %v5681_v41 = vld [vmem:[%s8544_s29 + $0xb8] sm:$0xff]  ;;  %v5685_v19 = vld [vmem:[%s8547_s18 + $0xb0] sm:$0xff]  ;;  %v5692_v62 = vld [vmem:[%s8544_s29 + $0x80] sm:$0xff] }
 0x27f   : >> { %5662 = vst.msk [vmem:[%s8547_s18 + $0xf8] sm:$0xff] %vm1033_vm3, %v2984_v44  ;;  %v5686_v13 = vld [vmem:[%s8547_s18 + $0xb8] sm:$0xff]  ;;  %v5693_v21 = vld [vmem:[%s8544_s29 + $0x88] sm:$0xff]  ;;  %v5694_v52 = vld [vmem:[%s8544_s29 + $0x90] sm:$0xff] }
 0x280   : >> { %5673 = vst.msk [vmem:[%s8547_s18 + $0xc0] sm:$0xff] %vm1033_vm3, %v3005_v27  ;;  %v3008_v36 = vadd.f32 %v5672_v28, %v2999_v40  ;;  %v3020_v43 = vmul.f32 %v5678_v42, %v3005_v27  ;;  %v3021_v58 = vmul.f32 %v5679_v55, %v3006_v24  ;;  %v3022_v47 = vmul.f32 %v5680_v56, %v3007_v38  ;;  %v5697_v7 = vld [vmem:[%s8547_s18 + $0x80] sm:$0xff]  ;;  %v5698_v48 = vld [vmem:[%s8547_s18 + $0x88] sm:$0xff]  ;;  %v5695_v0 = vld [vmem:[%s8544_s29 + $0x98] sm:$0xff] }
 0x281   : >> { %5674 = vst.msk [vmem:[%s8547_s18 + $0xc8] sm:$0xff] %vm1033_vm3, %v3006_v24  ;;  %v5699_v1 = vld [vmem:[%s8547_s18 + $0x90] sm:$0xff]  ;;  %v5700_v33 = vld [vmem:[%s8547_s18 + $0x98] sm:$0xff]  ;;  %v5706_v46 = vld [vmem:[%s8544_s29 + $0x60] sm:$0xff] }
 0x282   : >> { %5675 = vst.msk [vmem:[%s8547_s18 + $0xd0] sm:$0xff] %vm1033_vm3, %v3007_v38  ;;  %v3029_v2 = vadd.f32 %v5683_v32, %v3020_v43  ;;  %v3030_v26 = vadd.f32 %v5684_v20, %v3021_v58  ;;  %v3023_v50 = vmul.f32 %v5681_v41, %v3008_v36  ;;  %v3031_v59 = vadd.f32 %v5685_v19, %v3022_v47  ;;  %v5707_v25 = vld [vmem:[%s8544_s29 + $0x68] sm:$0xff]  ;;  %v5708_v54 = vld [vmem:[%s8544_s29 + $0x70] sm:$0xff]  ;;  %v5711_v4 = vld [vmem:[%s8547_s18 + $0x60] sm:$0xff] }
 0x283   : >> { %5676 = vst.msk [vmem:[%s8547_s18 + $0xd8] sm:$0xff] %vm1033_vm3, %v3008_v36  ;;  %v5712_v44 = vld [vmem:[%s8547_s18 + $0x68] sm:$0xff]  ;;  %v5709_v53 = vld [vmem:[%s8544_s29 + $0x78] sm:$0xff]  ;;  %v5713_v28 = vld [vmem:[%s8547_s18 + $0x70] sm:$0xff] }
 0x284   : >> { %5687 = vst.msk [vmem:[%s8547_s18 + $0xa0] sm:$0xff] %vm1033_vm3, %v3029_v2  ;;  %v3032_v30 = vadd.f32 %v5686_v13, %v3023_v50  ;;  %v3044_v35 = vmul.f32 %v5692_v62, %v3029_v2  ;;  %v3045_v37 = vmul.f32 %v5693_v21, %v3030_v26  ;;  %v3046_v31 = vmul.f32 %v5694_v52, %v3031_v59  ;;  %v5714_v55 = vld [vmem:[%s8547_s18 + $0x78] sm:$0xff]  ;;  %v5720_v27 = vld [vmem:[%s8544_s29 + $0x40] sm:$0xff]  ;;  %v5721_v24 = vld [vmem:[%s8544_s29 + $0x48] sm:$0xff] }
 0x285   : >> { %5688 = vst.msk [vmem:[%s8547_s18 + $0xa8] sm:$0xff] %vm1033_vm3, %v3030_v26  ;;  %v5722_v32 = vld [vmem:[%s8544_s29 + $0x50] sm:$0xff]  ;;  %v5725_v41 = vld [vmem:[%s8547_s18 + $0x40] sm:$0xff]  ;;  %v5726_v36 = vld [vmem:[%s8547_s18 + $0x48] sm:$0xff] }
 0x286   : >> { %5689 = vst.msk [vmem:[%s8547_s18 + $0xb0] sm:$0xff] %vm1033_vm3, %v3031_v59  ;;  %v3053_v60 = vadd.f32 %v5697_v7, %v3044_v35  ;;  %v3054_v9 = vadd.f32 %v5698_v48, %v3045_v37  ;;  %v3047_v61 = vmul.f32 %v5695_v0, %v3032_v30  ;;  %v3055_v22 = vadd.f32 %v5699_v1, %v3046_v31  ;;  %v5723_v43 = vld [vmem:[%s8544_s29 + $0x58] sm:$0xff]  ;;  %v5727_v13 = vld [vmem:[%s8547_s18 + $0x50] sm:$0xff]  ;;  %v5734_v2 = vld [vmem:[%s8544_s29 + $0x20] sm:$0xff] }
 0x287   : >> { %5690 = vst.msk [vmem:[%s8547_s18 + $0xb8] sm:$0xff] %vm1033_vm3, %v3032_v30  ;;  %v5728_v21 = vld [vmem:[%s8547_s18 + $0x58] sm:$0xff]  ;;  %v5735_v26 = vld [vmem:[%s8544_s29 + $0x28] sm:$0xff]  ;;  %v5736_v7 = vld [vmem:[%s8544_s29 + $0x30] sm:$0xff] }
 0x288   : >> { %5701 = vst.msk [vmem:[%s8547_s18 + $0x80] sm:$0xff] %vm1033_vm3, %v3053_v60  ;;  %v3056_v5 = vadd.f32 %v5700_v33, %v3047_v61  ;;  %v3068_v45 = vmul.f32 %v5706_v46, %v3053_v60  ;;  %v3069_v3 = vmul.f32 %v5707_v25, %v3054_v9  ;;  %v3070_v42 = vmul.f32 %v5708_v54, %v3055_v22  ;;  %v5739_v0 = vld [vmem:[%s8547_s18 + $0x20] sm:$0xff]  ;;  %v5740_v30 = vld [vmem:[%s8547_s18 + $0x28] sm:$0xff]  ;;  %v5737_v35 = vld [vmem:[%s8544_s29 + $0x38] sm:$0xff] }
 0x289   : >> { %5702 = vst.msk [vmem:[%s8547_s18 + $0x88] sm:$0xff] %vm1033_vm3, %v3054_v9  ;;  %v5741_v33 = vld [vmem:[%s8547_s18 + $0x30] sm:$0xff]  ;;  %v5742_v25 = vld [vmem:[%s8547_s18 + $0x38] sm:$0xff]  ;;  %v3135_v60 = vld [vmem:[%s8544_s29] sm:$0xff] }
 0x28a   : >> { %5703 = vst.msk [vmem:[%s8547_s18 + $0x90] sm:$0xff] %vm1033_vm3, %v3055_v22  ;;  %v3077_v40 = vadd.f32 %v5711_v4, %v3068_v45  ;;  %v3078_v56 = vadd.f32 %v5712_v44, %v3069_v3  ;;  %v3071_v38 = vmul.f32 %v5709_v53, %v3056_v5  ;;  %v3079_v20 = vadd.f32 %v5713_v28, %v3070_v42  ;;  %v3136_v9 = vld [vmem:[%s8544_s29 + $0x8] sm:$0xff]  ;;  %v3137_v4 = vld [vmem:[%s8544_s29 + $0x10] sm:$0xff]  ;;  %v3144_v53 = vld [vmem:[%s8547_s18] sm:$0xff] }
 0x28b   : >> { %5704 = vst.msk [vmem:[%s8547_s18 + $0x98] sm:$0xff] %vm1033_vm3, %v3056_v5  ;;  %v3145_v5 = vld [vmem:[%s8547_s18 + $0x8] sm:$0xff]  ;;  %v3138_v45 = vld [vmem:[%s8544_s29 + $0x18] sm:$0xff] }
 0x28c   : >> { %5715 = vst.msk [vmem:[%s8547_s18 + $0x60] sm:$0xff] %vm1033_vm3, %v3077_v40  ;;  %v3080_v58 = vadd.f32 %v5714_v55, %v3071_v38  ;;  %v3092_v19 = vmul.f32 %v5720_v27, %v3077_v40  ;;  %v3093_v47 = vmul.f32 %v5721_v24, %v3078_v56  ;;  %v3094_v62 = vmul.f32 %v5722_v32, %v3079_v20  ;;  %v3146_v55 = vld [vmem:[%s8547_s18 + $0x10] sm:$0xff]  ;;  %v3147_v24 = vld [vmem:[%s8547_s18 + $0x18] sm:$0xff] }
 0x28d   : >> { %5716 = vst.msk [vmem:[%s8547_s18 + $0x68] sm:$0xff] %vm1033_vm3, %v3078_v56 }
 0x28e   : >> { %5717 = vst.msk [vmem:[%s8547_s18 + $0x70] sm:$0xff] %vm1033_vm3, %v3079_v20  ;;  %v3101_v50 = vadd.f32 %v5725_v41, %v3092_v19  ;;  %v3102_v52 = vadd.f32 %v5726_v36, %v3093_v47  ;;  %v3095_v59 = vmul.f32 %v5723_v43, %v3080_v58  ;;  %v3103_v48 = vadd.f32 %v5727_v13, %v3094_v62 }
 0x28f   : >> { %5718 = vst.msk [vmem:[%s8547_s18 + $0x78] sm:$0xff] %vm1033_vm3, %v3080_v58 }
 0x290   : >> { %5729 = vst.msk [vmem:[%s8547_s18 + $0x40] sm:$0xff] %vm1033_vm3, %v3101_v50  ;;  %v3104_v37 = vadd.f32 %v5728_v21, %v3095_v59  ;;  %v3116_v1 = vmul.f32 %v5734_v2, %v3101_v50  ;;  %v3117_v31 = vmul.f32 %v5735_v26, %v3102_v52  ;;  %v3118_v46 = vmul.f32 %v5736_v7, %v3103_v48 }
 0x291   : >> { %5730 = vst.msk [vmem:[%s8547_s18 + $0x48] sm:$0xff] %vm1033_vm3, %v3102_v52 }
 0x292   : >> { %5731 = vst.msk [vmem:[%s8547_s18 + $0x50] sm:$0xff] %vm1033_vm3, %v3103_v48  ;;  %v3125_v61 = vadd.f32 %v5739_v0, %v3116_v1  ;;  %v3126_v54 = vadd.f32 %v5740_v30, %v3117_v31  ;;  %v3119_v22 = vmul.f32 %v5737_v35, %v3104_v37  ;;  %v3127_v44 = vadd.f32 %v5741_v33, %v3118_v46 }
 0x293   : >> { %5732 = vst.msk [vmem:[%s8547_s18 + $0x58] sm:$0xff] %vm1033_vm3, %v3104_v37 }
 0x294   : >> { %5743 = vst.msk [vmem:[%s8547_s18 + $0x20] sm:$0xff] %vm1033_vm3, %v3125_v61  ;;  %v3128_v3 = vadd.f32 %v5742_v25, %v3119_v22  ;;  %v3139_v28 = vmul.f32 %v3135_v60, %v3125_v61  ;;  %v3140_v42 = vmul.f32 %v3136_v9, %v3126_v54  ;;  %v3141_v27 = vmul.f32 %v3137_v4, %v3127_v44 }
 0x295   : >> { %5744 = vst.msk [vmem:[%s8547_s18 + $0x28] sm:$0xff] %vm1033_vm3, %v3126_v54 }
 0x296   : >> { %5745 = vst.msk [vmem:[%s8547_s18 + $0x30] sm:$0xff] %vm1033_vm3, %v3127_v44  ;;  %v3148_v40 = vadd.f32 %v3144_v53, %v3139_v28   ;;  %v3149_v56 = vadd.f32 %v3145_v5, %v3140_v42   ;;  %v3142_v38 = vmul.f32 %v3138_v45, %v3128_v3  ;;  %v3150_v32 = vadd.f32 %v3146_v55, %v3141_v27  }
 0x297   : >> { %5746 = vst.msk [vmem:[%s8547_s18 + $0x38] sm:$0xff] %vm1033_vm3, %v3128_v3  ;;  %2956 = sbr.rel (!%p2954_p10) target bundleno = 626 (0x272), region = 282 }
 0x298   : >> { %3152 = vst.msk [vmem:[%s8547_s18] sm:$0xff] %vm1033_vm3, %v3148_v40  ;;  %v3151_v20 = vadd.f32 %v3147_v24, %v3142_v38   ;;  %v9498_v21 = vmov %v3150_v32  ;;  %v9499_v62 = vmov %v3149_v56  ;;  %v9500_v13 = vmov %v3148_v40 }
 0x299   : >> { %3153 = vst.msk [vmem:[%s8547_s18 + $0x8] sm:$0xff] %vm1033_vm3, %v3149_v56 }
 0x29a   : >> { %3154 = vst.msk [vmem:[%s8547_s18 + $0x10] sm:$0xff] %vm1033_vm3, %v3150_v32  ;;  %v9497_v2 = vmov %v3151_v20 }
 0x29b   : >> { %3155 = vst.msk [vmem:[%s8547_s18 + $0x18] sm:$0xff] %vm1033_vm3, %v3151_v20 }
 0x29c   : > { %3156 = vst.msk [vmem:[#allocation2] sm:$0xff] %vm1033_vm3, %v3148_v40 }
 0x29d   : > { %3157 = vst.msk [vmem:[#allocation2 + $0x8] sm:$0xff] %vm1033_vm3, %v3149_v56 }
 0x29e   : > { %3158 = vst.msk [vmem:[#allocation2 + $0x10] sm:$0xff] %vm1033_vm3, %v3150_v32 }
 0x29f   : > { %3159 = vst.msk [vmem:[#allocation2 + $0x18] sm:$0xff] %vm1033_vm3, %v3151_v20 }
 0x2a0 PF: > { %v8692_v41 = vadd.s32 48, %v6989_v11  ;;  %v8701_v36 = vadd.s32 56, %v6989_v11  ;;  %v9501_v11 = vld [vmem:[#allocation10_spill] sm:$0xff]  ;;  %v9505_v43 = vld [vmem:[#allocation36_spill] sm:$0xff]  ;;  %v9510_v47 = vld [vmem:[#allocation13_spill] sm:$0xff]  ;;  %vm4096_vm2 = vcmask 1041409  }
 0x2a1   : > { %v9506_v58 = vld [vmem:[#allocation14_spill] sm:$0xff]  ;;  %v9511_v13 = vld [vmem:[#allocation44_spill] sm:$0xff]  ;;  %v9512_v62 = vld [vmem:[#allocation15_spill] sm:$0xff]  ;;  %vm4099_vm4 = vcmask 1042434   ;;  %vm4102_vm5 = vcmask 1043459   ;;  %vm4105_vm6 = vcmask 1044484  }
 0x2a2   : > { %6613 = vset.pattern.permute.xlu2 %v8692_v41  ;;  %6611 = vset.pattern.permute.xlu1 %v8692_v41  ;;  %v9507_v19 = vld [vmem:[#allocation50_spill] sm:$0xff]  ;;  %v9513_v2 = vld [vmem:[#allocation16_spill] sm:$0xff]  ;;  %v9514_v50 = vld [vmem:[#allocation17_spill] sm:$0xff]  ;;  %vm4108_vm7 = vcmask 1045509   ;;  %vm4111_vm8 = vcmask 1046534   ;;  %vm4114_vm9 = vcmask 1047559  }
 0x2a3   : > { %6610 = vset.pattern.permute.xlu0 %v8692_v41  ;;  %v9516_v59 = vld [vmem:[#allocation21_spill] sm:$0xff]  ;;  %v9517_v0 = vld [vmem:[#allocation27_spill] sm:$0xff]  ;;  %v9520_v25 = vld [vmem:[#allocation22_spill] sm:$0xff]  ;;  %s5171_s20 = ssub.s32 (%p6938_p0), 1, %s6759_s22  ;;  %s5754_s28 = sshll.u32 (%p6938_p0), %s6763_s23, 4 }
 0x2a4   : > { %v9518_v1 = vld [vmem:[#allocation19_spill] sm:$0xff]  ;;  %v9521_v60 = vld [vmem:[#allocation41_spill] sm:$0xff]  ;;  %v9523_v5 = vld [vmem:[#allocation20_spill] sm:$0xff] }
 0x2a5   : > { %v9522_v22 = vld [vmem:[#allocation47_spill] sm:$0xff]  ;;  %v9524_v45 = vld [vmem:[#allocation52_spill] sm:$0xff]  ;;  %v3164_v3 = vld [vmem:[#allocation4 + $0x40] sm:$0xff] }
 0x2a6   : > { %v3165_v28 = vld [vmem:[#allocation4 + $0x48] sm:$0xff]  ;;  %v3162_v56 = vld [vmem:[#allocation4 + $0x20] sm:$0xff] }
 0x2a7   : > { %v3163_v24 = vld [vmem:[#allocation4 + $0x28] sm:$0xff] }
 0x2aa   : > { %3252 = vperm.xlu2 %6613, %v6998_v14   ;;  %3240 = vperm.xlu1 %6611, %v7177_v63  }
 0x2ab   : > { %3228 = vperm.xlu0 %6610, %v7174_v57  }
 0x2b2   : > { %6614 = vset.pattern.permute.xlu2 %v8701_v36  ;;  %6612 = vset.pattern.permute.xlu1 %v8701_v36 }
 0x2b3   : > { %3276 = vperm.xlu0 %6610, %v7005_v16  }
 0x2ba   : > { %3258 = vperm.xlu2 %6614, %v6998_v14   ;;  %3246 = vperm.xlu1 %6612, %v7177_v63   ;;  %v9502_v14 = vld [vmem:[#allocation30_spill] sm:$0xff]  ;;  %v9503_v63 = vld [vmem:[#allocation37_spill] sm:$0xff] }
 0x2bb   : > { %3336 = vperm.xlu0 %6610, %v7045_v29  }
 0x2c2   : > { %3270 = vperm.xlu2 %6614, %v7001_v15   ;;  %6615 = vset.pattern.permute.xlu1 %v8692_v41 }
 0x2c3   : > { %3396 = vperm.xlu0 %6610, %v7070_v39  }
 0x2ca   : > { %6617 = vset.pattern.permute.xlu2 %v8692_v41  ;;  %3264 = vperm.xlu1 %6615, %v7001_v15   ;;  %v9504_v15 = vld [vmem:[#allocation11_spill] sm:$0xff] }
 0x2cb   : > { %3456 = vperm.xlu0 %6610, %v7122_v18  }
 0x2d2   : > { %3288 = vperm.xlu2 %6617, %v7008_v17   ;;  %6616 = vset.pattern.permute.xlu1 %v8701_v36 }
 0x2d3   : > { %3516 = vperm.xlu0 %6610, %v7213_v8  }
 0x2da   : > { %3300 = vperm.xlu2 %6617, %v9501_v11   ;;  %3282 = vperm.xlu1 %6616, %v7005_v16   ;;  %v9508_v16 = vld [vmem:[#allocation40_spill] sm:$0xff] }
 0x2db   : > { %3576 = vperm.xlu0 %6610, %v9502_v14  }
 0x2e2   : > { %6619 = vset.pattern.permute.xlu2 %v8701_v36  ;;  %3294 = vperm.xlu1 %6616, %v7008_v17   ;;  %v9509_v17 = vld [vmem:[#allocation12_spill] sm:$0xff] }
 0x2e3   : > { %4258 = vperm.xlu0 %6610, %v9503_v63  }
 0x2ea   : > { %3318 = vperm.xlu2 %6619, %v9504_v15   ;;  %6618 = vset.pattern.permute.xlu1 %v8692_v41 }
 0x2eb   : > { %4318 = vperm.xlu0 %6610, %v9505_v43  }
 0x2f2   : > { %3330 = vperm.xlu2 %6619, %v9506_v58   ;;  %3312 = vperm.xlu1 %6618, %v9504_v15   ;;  %v9526_v15 = vld [vmem:[#allocation57_spill] sm:$0xff] }
 0x2f3   : > { %4378 = vperm.xlu0 %6610, %v9507_v19  }
 0x2fa   : > { %6621 = vset.pattern.permute.xlu2 %v8692_v41  ;;  %3324 = vperm.xlu1 %6618, %v9506_v58  }
 0x2fb   : > { %4438 = vperm.xlu0 %6610, %v9508_v16  }
 0x302   : > { %3348 = vperm.xlu2 %6621, %v9509_v17   ;;  %6620 = vset.pattern.permute.xlu1 %v8701_v36 }
 0x303   : > { %4498 = vperm.xlu0 %6610, %v7794_v23  }
 0x304   : > { %v3253_v48 = vpop.permute.xlu2 %3252 }
 0x305   : > { %v3612_v55 = vmul.f32 %v3253_v48, %v3164_v3  ;;  %v3168_v48 = vld [vmem:[#allocation4 + $0x80] sm:$0xff] }
 0x307   : > { %v3690_v20 = vsel %vm1033_vm3, %v3612_v55, 0.0 }
 0x30a   : > { %3360 = vperm.xlu2 %6621, %v9510_v47   ;;  %3342 = vperm.xlu1 %6620, %v7045_v29  }
 0x30b   : > { %4558 = vperm.xlu0 %6610, %v9511_v13   ;;  %v3176_v13 = vld [vmem:[#allocation4 + $0x100] sm:$0xff] }
 0x312   : > { %6623 = vset.pattern.permute.xlu2 %v8701_v36  ;;  %3354 = vperm.xlu1 %6620, %v9509_v17   ;;  %v3166_v17 = vld [vmem:[#allocation4 + $0x60] sm:$0xff] }
 0x313   : > { %6660 = vset.pattern.permute.xlu0 %v8701_v36 }
 0x314   : > { %v3259_v37 = vpop.permute.xlu2 %3258 }
 0x315   : > { %v3613_v27 = vmul.f32 %v3259_v37, %v3165_v28  ;;  %v3169_v37 = vld [vmem:[#allocation4 + $0x88] sm:$0xff]  ;;  %v9528_v28 = vld [vmem:[#allocation62_spill] sm:$0xff] }
 0x31a   : > { %3378 = vperm.xlu2 %6623, %v9512_v62   ;;  %6622 = vset.pattern.permute.xlu1 %v8692_v41 }
 0x31b   : > { %3234 = vperm.xlu0 %6660, %v7174_v57   ;;  %v9515_v57 = vld [vmem:[#allocation18_spill] sm:$0xff] }
 0x31c   : > { %v3241_v35 = vpop.permute.xlu1 %3240  ;;  %v3271_v46 = vpop.permute.xlu2 %3270 }
 0x31d   : > { %v8745_v21 = vpop.permute.xlu0 %3228  ;;  %v3610_v58 = vmul.f32 %v3241_v35, %v3162_v56 }
 0x322   : > { %3390 = vperm.xlu2 %6623, %v9513_v2   ;;  %3372 = vperm.xlu1 %6622, %v9512_v62  }
 0x323   : > { %3306 = vperm.xlu0 %6660, %v9501_v11   ;;  %v3691_v11 = vsel %vm1033_vm3, %v3613_v27, 0.0 }
 0x325   : > { %v8750_v29 = vpop.permute.xlu0 %3276 }
 0x326   : > { %v3616_v35 = vmul.f32 %v8750_v29, %v3168_v48  ;;  %v3175_v48 = vld [vmem:[#allocation4 + $0xe8] sm:$0xff] }
 0x32a   : > { %6625 = vset.pattern.permute.xlu2 %v8692_v41  ;;  %3384 = vperm.xlu1 %6622, %v9513_v2   ;;  %v3167_v2 = vld [vmem:[#allocation4 + $0x68] sm:$0xff] }
 0x32b   : > { %3366 = vperm.xlu0 %6660, %v9510_v47   ;;  %v3692_v47 = vadd.f32 %v3691_v11, %v3690_v20 }
 0x32c   : > { %v3247_v33 = vpop.permute.xlu1 %3246  ;;  %v8782_v54 = vpop.permute.xlu2 %3288 }
 0x32d   : > { %v8755_v26 = vpop.permute.xlu0 %3336  ;;  %v3611_v38 = vmul.f32 %v3247_v33, %v3163_v24  ;;  %v3693_v33 = vrot.slane %v3692_v47, 4 }
 0x32f   : > { %v3682_v62 = vsel %vm1033_vm3, %v3611_v38, 0.0  ;;  %v3708_v38 = vsel %vm1033_vm3, %v3616_v35, 0.0 }
 0x332   : > { %3408 = vperm.xlu2 %6625, %v9514_v50   ;;  %6624 = vset.pattern.permute.xlu1 %v8701_v36 }
 0x333   : > { %3426 = vperm.xlu0 %6660, %v9515_v57  }
 0x334   : > { %v8789_v53 = vpop.permute.xlu2 %3300 }
 0x335   : > { %v8760_v52 = vpop.permute.xlu0 %3396 }
 0x33a   : > { %3420 = vperm.xlu2 %6625, %v9515_v57   ;;  %3402 = vperm.xlu1 %6624, %v7070_v39   ;;  %v9519_v39 = vld [vmem:[#allocation32_spill] sm:$0xff]  ;;  %v3681_v57 = vsel %vm1033_vm3, %v3610_v58, 0.0 }
 0x33b   : > { %3486 = vperm.xlu0 %6660, %v9516_v59  }
 0x33c   : > { %v3265_v61 = vpop.permute.xlu1 %3264 }
 0x33d   : > { %v8765_v7 = vpop.permute.xlu0 %3456 }
 0x342   : > { %6627 = vset.pattern.permute.xlu2 %v8701_v36  ;;  %3414 = vperm.xlu1 %6624, %v9514_v50  }
 0x343   : > { %3546 = vperm.xlu0 %6660, %v9517_v0  }
 0x344   : > { %v3319_v32 = vpop.permute.xlu2 %3318 }
 0x345   : > { %v8770_v30 = vpop.permute.xlu0 %3516 }
 0x34a   : > { %3438 = vperm.xlu2 %6627, %v9518_v1   ;;  %6626 = vset.pattern.permute.xlu1 %v8692_v41 }
 0x34b   : > { %3606 = vperm.xlu0 %6660, %v9519_v39  }
 0x34c   : > { %v3283_v44 = vpop.permute.xlu1 %3282  ;;  %v8810_v27 = vpop.permute.xlu2 %3330 }
 0x34d   : > { %v8775_v31 = vpop.permute.xlu0 %3576  ;;  %v3617_v3 = vmul.f32 %v3283_v44, %v3169_v37 }
 0x34f   : > { %v3709_v20 = vsel %vm1033_vm3, %v3617_v3, 0.0 }
 0x350   : > { %v3710_v44 = vadd.f32 %v3709_v20, %v3708_v38 }
 0x352   : > { %3450 = vperm.xlu2 %6627, %v9520_v25   ;;  %3432 = vperm.xlu1 %6626, %v9518_v1   ;;  %v3683_v1 = vadd.f32 %v3682_v62, %v3681_v57  ;;  %v9530_v62 = vld [vmem:[#allocation24_spill] sm:$0xff]  ;;  %v3711_v3 = vrot.slane %v3710_v44, 4 }
 0x353   : > { %4288 = vperm.xlu0 %6660, %v9521_v60  }
 0x354   : > { %v3295_v40 = vpop.permute.xlu1 %3294  ;;  %v3684_v24 = vrot.slane %v3683_v1, 4 }
 0x355   : > { %v8780_v9 = vpop.permute.xlu0 %4258 }
 0x356   : > { %v3685_v11 = vadd.f32 %v3684_v24, %v3683_v1  ;;  %v3623_v24 = vmul.f32 %v3319_v32, %v3175_v48 }
 0x358   : > { %v3686_v1 = vrot.slane %v3685_v11, 2 }
 0x35a   : > { %6629 = vset.pattern.permute.xlu2 %v8692_v41  ;;  %3444 = vperm.xlu1 %6626, %v9520_v25   ;;  %v3615_v25 = vmul.f32 %v3271_v46, %v3167_v2  ;;  %v3170_v2 = vld [vmem:[#allocation4 + $0xa0] sm:$0xff]  ;;  %v3687_v20 = vadd.f32 %v3686_v1, %v3685_v11 }
 0x35b   : > { %4348 = vperm.xlu0 %6660, %v9522_v22   ;;  %v3618_v35 = vmul.f32 %v8782_v54, %v3170_v2 }
 0x35c   : > { %v3700_v56 = vsel %vm1033_vm3, %v3615_v25, 0.0  ;;  %v8822_v37 = vpop.permute.xlu2 %3348 }
 0x35d   : > { %v8787_v4 = vpop.permute.xlu0 %4318 }
 0x362   : > { %3468 = vperm.xlu2 %6629, %v9523_v5   ;;  %6628 = vset.pattern.permute.xlu1 %v8701_v36 }
 0x363   : > { %4408 = vperm.xlu0 %6660, %v9524_v45  }
 0x364   : > { %v8841_v48 = vpop.permute.xlu2 %3360 }
 0x365   : > { %v8794_v42 = vpop.permute.xlu0 %4378 }
 0x366   : > { %9525 = vst [vmem:[#allocation10_spill] sm:$0xff] %v8794_v42  ;;  %v3177_v42 = vld [vmem:[#allocation4 + $0x108] sm:$0xff] }
 0x36a   : > { %3480 = vperm.xlu2 %6629, %v9516_v59   ;;  %3462 = vperm.xlu1 %6628, %v7122_v18   ;;  %v3614_v59 = vmul.f32 %v3265_v61, %v3166_v17  ;;  %v3313_v18 = vpop.permute.xlu1 %3312  ;;  %v3694_v61 = vadd.f32 %v3693_v33, %v3692_v47  ;;  %v8825_v33 = vperm.slane %v8341_v49, 0  ;;  %v3712_v49 = vadd.f32 %v3711_v3, %v3710_v44 }
 0x36b   : > { %4468 = vperm.xlu0 %6660, %v9526_v15  }
 0x36c   : > { %v3699_v55 = vsel %vm1033_vm3, %v3614_v59, 0.0  ;;  %v3695_v29 = vrot.slane %v3694_v61, 2  ;;  %v3174_v59 = vld [vmem:[#allocation4 + $0xe0] sm:$0xff]  ;;  %v3713_v2 = vrot.slane %v3712_v49, 2 }
 0x36d   : > { %v8802_v50 = vpop.permute.xlu0 %4438  ;;  %v3701_v46 = vadd.f32 %v3700_v56, %v3699_v55  ;;  %v3622_v56 = vmul.f32 %v3313_v18, %v3174_v59  ;;  %v3736_v18 = vsel %vm1033_vm3, %v3623_v24, 0.0  ;;  %v3178_v24 = vld [vmem:[#allocation4 + $0x120] sm:$0xff] }
 0x36e   : > { %9527 = vst [vmem:[#allocation30_spill] sm:$0xff] %v8802_v50  ;;  %v3696_v25 = vadd.f32 %v3695_v29, %v3694_v61  ;;  %v9533_v61 = vld [vmem:[#allocation25_spill] sm:$0xff]  ;;  %v3688_v29 = vrot.slane %v3687_v20, 1 }
 0x36f   : > { %v3702_v47 = vrot.slane %v3701_v46, 4 }
 0x370   : > { %v3697_v10 = vrot.slane %v3696_v25, 1  ;;  %v3689_v3 = vadd.f32 %v3688_v29, %v3687_v20 }
 0x371   : > { %v3703_v55 = vadd.f32 %v3702_v47, %v3701_v46  ;;  %v3735_v46 = vsel %vm1033_vm3, %v3622_v56, 0.0  ;;  %v3160_v47 = vld [vmem:[#allocation4] sm:$0xff] }
 0x372   : > { %6631 = vset.pattern.permute.xlu2 %v8701_v36  ;;  %3474 = vperm.xlu1 %6628, %v9523_v5   ;;  %v3171_v5 = vld [vmem:[#allocation4 + $0xa8] sm:$0xff]  ;;  %v8817_v17 = vpop.permute.xlu1 %3324  ;;  %v3698_v59 = vadd.f32 %v3697_v10, %v3696_v25  ;;  %v3172_v56 = vld [vmem:[#allocation4 + $0xc0] sm:$0xff] }
 0x373   : > { %4528 = vperm.xlu0 %6660, %v9528_v28   ;;  %v3619_v57 = vmul.f32 %v3295_v40, %v3171_v5  ;;  %v9531_v40 = vld [vmem:[#allocation23_spill] sm:$0xff]  ;;  %v3704_v54 = vrot.slane %v3703_v55, 2 }
 0x374   : > { %v9532_v5 = vunpack.c.l.bf16 %v9531_v40  ;;  %v3179_v10 = vld [vmem:[#allocation4 + $0x128] sm:$0xff] }
 0x375   : > { %v8815_v58 = vpop.permute.xlu0 %4498  ;;  %v3718_v38 = vsel %vm1033_vm3, %v3619_v57, 0.0  ;;  %v3737_v57 = vadd.f32 %v3736_v18, %v3735_v46  ;;  %v3705_v1 = vadd.f32 %v3704_v54, %v3703_v55  ;;  %v3161_v25 = vld [vmem:[#allocation4 + $0x8] sm:$0xff]  ;;  %v3626_v55 = vmul.f32 %v8755_v26, %v3178_v24 }
 0x376   : > { %9529 = vst [vmem:[#allocation37_spill] sm:$0xff] %v8815_v58  ;;  %v8832_v12 = vmul.f32 %v9532_v5, %v8825_v33  ;;  %v3717_v58 = vsel %vm1033_vm3, %v3618_v35, 0.0  ;;  %v3181_v54 = vld [vmem:[#allocation4 + $0x148] sm:$0xff] }
 0x377   : > { %v3719_v32 = vadd.f32 %v3718_v38, %v3717_v58  ;;  %v3714_v38 = vadd.f32 %v3713_v2, %v3712_v49  ;;  %v3738_v5 = vrot.slane %v3737_v57, 4  ;;  %v3706_v46 = vrot.slane %v3705_v1, 1  ;;  %v3180_v2 = vld [vmem:[#allocation4 + $0x140] sm:$0xff] }
 0x378   : > { %v3972_v44 = vrot.slane %v8832_v12, 2  ;;  %v3971_v58 = vrot.slane %v8832_v12, 1  ;;  %v3973_v49 = vrot.slane %v8832_v12, 3 }
 0x379   : > { %v3720_v35 = vrot.slane %v3719_v32, 4  ;;  %v3707_v24 = vadd.f32 %v3706_v46, %v3705_v1  ;;  %v3625_v46 = vmul.f32 %v8810_v27, %v3177_v42 }
 0x37a   : > { %3498 = vperm.xlu2 %6631, %v9530_v62   ;;  %6630 = vset.pattern.permute.xlu1 %v8692_v41  ;;  %v8848_v18 = vadd.f32 %v3972_v44, %v3698_v59  ;;  %v8852_v29 = vadd.f32 %v3971_v58, %v3689_v3  ;;  %v3715_v44 = vrot.slane %v3714_v38, 1  ;;  %v3739_v59 = vadd.f32 %v3738_v5, %v3737_v57 }
 0x37b   : > { %4588 = vperm.xlu0 %6660, %v7949_v6   ;;  %v3753_v58 = vsel %vm1033_vm3, %v3626_v55, 0.0  ;;  %v3974_v3 = vrot.slane %v8832_v12, 4  ;;  %v3624_v5 = vmul.f32 %v8817_v17, %v3176_v13  ;;  %v3173_v13 = vld [vmem:[#allocation4 + $0xc8] sm:$0xff] }
 0x37c   : > { %v3343_v50 = vpop.permute.xlu1 %3342  ;;  %v3716_v1 = vadd.f32 %v3715_v44, %v3714_v38  ;;  %v3745_v38 = vsel %vm1033_vm3, %v3625_v46, 0.0 }
 0x37d   : > { %v8839_v11 = vpop.permute.xlu0 %4558  ;;  %v3744_v44 = vsel %vm1033_vm3, %v3624_v5, 0.0 }
 0x37e   : > { %9534 = vst [vmem:[#allocation11_spill] sm:$0xff] %v8839_v11  ;;  %v3721_v11 = vadd.f32 %v3720_v35, %v3719_v32  ;;  %v3627_v32 = vmul.f32 %v3343_v50, %v3179_v10  ;;  %v3379_v35 = vpop.permute.xlu2 %3378  ;;  %v3185_v10 = vld [vmem:[#allocation4 + $0x188] sm:$0xff] }
 0x37f   : > { %v3633_v27 = vmul.f32 %v3379_v35, %v3185_v10  ;;  %v3746_v35 = vadd.f32 %v3745_v38, %v3744_v44 }
 0x380   : > { %v3722_v51 = vrot.slane %v3721_v11, 2  ;;  %v3754_v55 = vsel %vm1033_vm3, %v3627_v32, 0.0  ;;  %v3182_v32 = vld [vmem:[#allocation4 + $0x160] sm:$0xff] }
 0x381   : > { %v3630_v10 = vmul.f32 %v8841_v48, %v3182_v32  ;;  %v3781_v5 = vsel %vm1033_vm3, %v3633_v27, 0.0  ;;  %v3186_v48 = vld [vmem:[#allocation4 + $0x1a0] sm:$0xff] }
 0x382   : > { %3510 = vperm.xlu2 %6631, %v9533_v61   ;;  %3492 = vperm.xlu1 %6630, %v9530_v62   ;;  %v3608_v62 = vmul.f32 %v8745_v21, %v3160_v47  ;;  %v3620_v47 = vmul.f32 %v8789_v53, %v3172_v56  ;;  %v3628_v53 = vmul.f32 %v8822_v37, %v3180_v2  ;;  %v3184_v37 = vld [vmem:[#allocation4 + $0x180] sm:$0xff] }
 0x383   : > { %v3723_v2 = vadd.f32 %v3722_v51, %v3721_v11  ;;  %v8875_v51 = vadd.f32 %v3974_v3, %v3716_v1 }
 0x384   : > { %v3355_v21 = vpop.permute.xlu1 %3354  ;;  %v3672_v20 = vsel %vm1033_vm3, %v3608_v62, 0.0  ;;  %v3726_v50 = vsel %vm1033_vm3, %v3620_v47, 0.0  ;;  %v3762_v42 = vsel %vm1033_vm3, %v3628_v53, 0.0 }
 0x385   : > { %v3629_v62 = vmul.f32 %v3355_v21, %v3181_v54  ;;  %v3740_v21 = vrot.slane %v3739_v59, 2  ;;  %v9535_v54 = vld [vmem:[#allocation26_spill] sm:$0xff]  ;;  %v3724_v23 = vrot.slane %v3723_v2, 1 }
 0x387   : > { %v3763_v47 = vsel %vm1033_vm3, %v3629_v62, 0.0  ;;  %v3741_v11 = vadd.f32 %v3740_v21, %v3739_v59 }
 0x388   : > { %v3764_v62 = vadd.f32 %v3763_v47, %v3762_v42  ;;  %v3725_v47 = vadd.f32 %v3724_v23, %v3723_v2  ;;  %v3747_v42 = vrot.slane %v3746_v35, 4 }
 0x38a   : > { %6633 = vset.pattern.permute.xlu2 %v8692_v41  ;;  %3504 = vperm.xlu1 %6630, %v9533_v61   ;;  %v3765_v46 = vrot.slane %v3764_v62, 4 }
 0x38d   : > { %v3235_v61 = vpop.permute.xlu0 %3234 }
 0x38e   : > { %v3609_v6 = vmul.f32 %v3235_v61, %v3161_v25 }
 0x390   : > { %v3673_v56 = vsel %vm1033_vm3, %v3609_v6, 0.0  ;;  %v8868_v6 = vadd.f32 %v3973_v49, %v3707_v24 }
 0x391   : > { %v3674_v25 = vadd.f32 %v3673_v56, %v3672_v20  ;;  %v3755_v56 = vadd.f32 %v3754_v55, %v3753_v58  ;;  %v3391_v58 = vpop.permute.xlu2 %3390 }
 0x392   : > { %3528 = vperm.xlu2 %6633, %v9535_v54   ;;  %6632 = vset.pattern.permute.xlu1 %v8701_v36  ;;  %v4101_v17 = vrot.slane %v8868_v6, 5  ;;  %v3742_v6 = vrot.slane %v3741_v11, 1 }
 0x393   : > { %v3675_v61 = vrot.slane %v3674_v25, 4  ;;  %v3756_v3 = vrot.slane %v3755_v56, 4 }
 0x394   : > { %v3373_v20 = vpop.permute.xlu1 %3372 }
 0x395   : > { %v3676_v26 = vadd.f32 %v3675_v61, %v3674_v25  ;;  %v3632_v49 = vmul.f32 %v3373_v20, %v3184_v37  ;;  %v3307_v24 = vpop.permute.xlu0 %3306  ;;  %v3187_v25 = vld [vmem:[#allocation4 + $0x1a8] sm:$0xff]  ;;  %v4104_v37 = vrot.slane %v8875_v51, 4  ;;  %v3757_v20 = vadd.f32 %v3756_v3, %v3755_v56 }
 0x396   : > { %v3621_v57 = vmul.f32 %v3307_v24, %v3173_v13  ;;  %v3635_v13 = vmul.f32 %v3391_v58, %v3187_v25  ;;  %v3766_v51 = vadd.f32 %v3765_v46, %v3764_v62  ;;  %v3976_v46 = vrot.slane %v8832_v12, 6 }
 0x397   : > { %v3677_v53 = vrot.slane %v3676_v26, 2  ;;  %v3780_v59 = vsel %vm1033_vm3, %v3632_v49, 0.0  ;;  %v3758_v25 = vrot.slane %v3757_v20, 2 }
 0x398   : > { %v3727_v55 = vsel %vm1033_vm3, %v3621_v57, 0.0  ;;  %v3183_v57 = vld [vmem:[#allocation4 + $0x168] sm:$0xff]  ;;  %v3790_v2 = vsel %vm1033_vm3, %v3635_v13, 0.0 }
 0x399   : > { %v3678_v1 = vadd.f32 %v3677_v53, %v3676_v26  ;;  %v3728_v21 = vadd.f32 %v3727_v55, %v3726_v50  ;;  %v3771_v26 = vsel %vm1033_vm3, %v3630_v10, 0.0  ;;  %v3782_v50 = vadd.f32 %v3781_v5, %v3780_v59 }
 0x39a   : > { %3540 = vperm.xlu2 %6633, %v9517_v0   ;;  %3522 = vperm.xlu1 %6632, %v7213_v8   ;;  %v3743_v0 = vadd.f32 %v3742_v6, %v3741_v11  ;;  %v9536_v55 = vrot.slane %v8852_v29, 7  ;;  %v3767_v59 = vrot.slane %v3766_v51, 2 }
 0x39b   : > { %v3679_v61 = vrot.slane %v3678_v1, 1  ;;  %v3729_v38 = vrot.slane %v3728_v21, 4  ;;  %v3783_v10 = vrot.slane %v3782_v50, 4 }
 0x39c   : > { %v3385_v27 = vpop.permute.xlu1 %3384 }
 0x39d   : > { %v3680_v44 = vadd.f32 %v3679_v61, %v3678_v1  ;;  %v3730_v32 = vadd.f32 %v3729_v38, %v3728_v21  ;;  %v3634_v49 = vmul.f32 %v3385_v27, %v3186_v48  ;;  %v3367_v24 = vpop.permute.xlu0 %3366  ;;  %v3748_v1 = vadd.f32 %v3747_v42, %v3746_v35 }
 0x39e   : > { %v3631_v8 = vmul.f32 %v3367_v24, %v3183_v57  ;;  %v9537_v21 = vrot.slane %v8848_v18, 6  ;;  %v9538_v38 = vrot.slane %v8832_v12, 5  ;;  %v3784_v35 = vadd.f32 %v3783_v10, %v3782_v50  ;;  %v3188_v18 = vld [vmem:[#allocation4 + $0x1c0] sm:$0xff] }
 0x39f   : > { %v4031_v23 = vadd.f32 %v8832_v12, %v3680_v44  ;;  %v3731_v53 = vrot.slane %v3730_v32, 2  ;;  %v3789_v58 = vsel %vm1033_vm3, %v3634_v49, 0.0  ;;  %v3749_v24 = vrot.slane %v3748_v1, 2 }
 0x3a0   : > { %v3791_v5 = vadd.f32 %v3790_v2, %v3789_v58  ;;  %v3772_v56 = vsel %vm1033_vm3, %v3631_v8, 0.0  ;;  %v4036_v57 = vadd.f32 %v9538_v38, %v3725_v47  ;;  %v3636_v2 = vmul.f32 %v8760_v52, %v3188_v18 }
 0x3a1   : > { %v4097_v11 = vsel %vm4096_vm2, %v9536_v55, %v4031_v23  ;;  %v3732_v62 = vadd.f32 %v3731_v53, %v3730_v32  ;;  %v3773_v3 = vadd.f32 %v3772_v56, %v3771_v26  ;;  %v3759_v26 = vadd.f32 %v3758_v25, %v3757_v20 }
 0x3a2   : > { %v4100_v6 = vsel %vm4099_vm4, %v9537_v21, %v4097_v11  ;;  %6635 = vset.pattern.permute.xlu2 %v8701_v36  ;;  %3534 = vperm.xlu1 %6632, %v9535_v54   ;;  %v3792_v29 = vrot.slane %v3791_v5, 4  ;;  %v9539_v32 = vrot.slane %v8832_v12, 7  ;;  %v3768_v54 = vadd.f32 %v3767_v59, %v3766_v51  ;;  %v9540_v51 = vld [vmem:[#allocation28_spill] sm:$0xff] }
 0x3a3   : > { %v4103_v48 = vsel %vm4102_vm5, %v4101_v17, %v4100_v6  ;;  %v3733_v61 = vrot.slane %v3732_v62, 1  ;;  %v3774_v13 = vrot.slane %v3773_v3, 4  ;;  %v4107_v53 = vrot.slane %v4036_v57, 3 }
 0x3a4   : > { %v4106_v42 = vsel %vm4105_vm6, %v4104_v37, %v4103_v48  ;;  %v4038_v49 = vadd.f32 %v9539_v32, %v3743_v0  ;;  %v3793_v8 = vadd.f32 %v3792_v29, %v3791_v5  ;;  %v3785_v47 = vrot.slane %v3784_v35, 2  ;;  %v3189_v5 = vld [vmem:[#allocation4 + $0x1c8] sm:$0xff] }
 0x3a5   : > { %v3734_v27 = vadd.f32 %v3733_v61, %v3732_v62  ;;  %v3775_v44 = vadd.f32 %v3774_v13, %v3773_v3  ;;  %v3760_v50 = vrot.slane %v3759_v26, 1  ;;  %v3750_v10 = vadd.f32 %v3749_v24, %v3748_v1  ;;  %v9542_v24 = vld [vmem:[#allocation29_spill] sm:$0xff] }
 0x3a6   : > { %v4113_v58 = vrot.slane %v4038_v49, 1  ;;  %v3769_v12 = vrot.slane %v3768_v54, 1  ;;  %v4109_v0 = vsel %vm4108_vm7, %v4107_v53, %v4106_v42  ;;  %v9541_v52 = vunpack.c.h.bf16 %v9531_v40  ;;  %v3190_v42 = vld [vmem:[#allocation4 + $0x1e0] sm:$0xff] }
 0x3a7   : > { %v4037_v17 = vadd.f32 %v3976_v46, %v3734_v27  ;;  %v3776_v23 = vrot.slane %v3775_v44, 2  ;;  %v3794_v55 = vrot.slane %v3793_v8, 2  ;;  %v3786_v62 = vadd.f32 %v3785_v47, %v3784_v35 }
 0x3a8   : > { %v8913_v56 = vmul.f32 %v9541_v52, %v8825_v33  ;;  %v3798_v59 = vsel %vm1033_vm3, %v3636_v2, 0.0  ;;  %v3761_v6 = vadd.f32 %v3760_v50, %v3759_v26  ;;  %v3751_v48 = vrot.slane %v3750_v10, 1  ;;  %v3409_v26 = vpop.permute.xlu2 %3408 }
 0x3a9   : > { %v4110_v37 = vrot.slane %v4037_v17, 2  ;;  %v3777_v20 = vadd.f32 %v3776_v23, %v3775_v44  ;;  %v3770_v61 = vadd.f32 %v3769_v12, %v3768_v54  ;;  %v3795_v29 = vadd.f32 %v3794_v55, %v3793_v8  ;;  %v3191_v17 = vld [vmem:[#allocation4 + $0x1e8] sm:$0xff] }
 0x3aa   : > { %3558 = vperm.xlu2 %6635, %v9540_v51   ;;  %6634 = vset.pattern.permute.xlu1 %v8692_v41  ;;  %v3978_v21 = vrot.slane %v8913_v56, 1  ;;  %v3979_v40 = vrot.slane %v8913_v56, 2  ;;  %v3980_v13 = vrot.slane %v8913_v56, 3  ;;  %v3787_v35 = vrot.slane %v3786_v62, 1 }
 0x3ab   : > { %v4112_v25 = vsel %vm4111_vm8, %v4110_v37, %v4109_v0  ;;  %v3778_v11 = vrot.slane %v3777_v20, 1  ;;  %v3752_v44 = vadd.f32 %v3751_v48, %v3750_v10  ;;  %v3796_v54 = vrot.slane %v3795_v29, 1 }
 0x3ac   : > { %v4115_v3 = vsel %vm4114_vm9, %v4113_v58, %v4112_v25  ;;  %v3403_v1 = vpop.permute.xlu1 %3402  ;;  %v4040_v27 = vadd.f32 %v3978_v21, %v3761_v6  ;;  %v4041_v32 = vadd.f32 %v3979_v40, %v3770_v61  ;;  %v3638_v23 = vmul.f32 %v3409_v26, %v3190_v42 }
 0x3ad   : > { %4162 = vst.msk [vmem:[%s6985_s1] sm:$0xff] %vm1033_vm3, %v4115_v3  ;;  %v3637_v46 = vmul.f32 %v3403_v1, %v3189_v5  ;;  %v3779_v38 = vadd.f32 %v3778_v11, %v3777_v20  ;;  %v3981_v2 = vrot.slane %v8913_v56, 4  ;;  %v3788_v53 = vadd.f32 %v3787_v35, %v3786_v62 }
 0x3ae   : > { %v4116_v37 = vrot.slane %v4040_v27, 7  ;;  %v4039_v58 = vadd.f32 %v8913_v56, %v3752_v44  ;;  %v4118_v10 = vrot.slane %v4041_v32, 6  ;;  %v3982_v12 = vrot.slane %v8913_v56, 5 }
 0x3af   : > { %v3799_v57 = vsel %vm1033_vm3, %v3637_v46, 0.0  ;;  %v4042_v8 = vadd.f32 %v3980_v13, %v3779_v38  ;;  %v3797_v5 = vadd.f32 %v3796_v54, %v3795_v29  ;;  %v4043_v55 = vadd.f32 %v3981_v2, %v3788_v53 }
 0x3b0   : > { %v3800_v18 = vadd.f32 %v3799_v57, %v3798_v59  ;;  %v4117_v62 = vsel %vm4096_vm2, %v4116_v37, %v4039_v58  ;;  %v3983_v59 = vrot.slane %v8913_v56, 6  ;;  %v3421_v42 = vpop.permute.xlu2 %3420  ;;  %v3984_v26 = vrot.slane %v8913_v56, 7  ;;  %v9544_v37 = vld [vmem:[#allocation33_spill] sm:$0xff]  ;;  %v3195_v58 = vld [vmem:[#allocation4 + $0x228] sm:$0xff] }
 0x3b1   : > { %v4120_v52 = vrot.slane %v4042_v8, 5  ;;  %v4119_v1 = vsel %vm4099_vm4, %v4118_v10, %v4117_v62  ;;  %v4044_v46 = vadd.f32 %v3982_v12, %v3797_v5  ;;  %v4122_v40 = vrot.slane %v4043_v55, 4  ;;  %v3194_v10 = vld [vmem:[#allocation4 + $0x220] sm:$0xff] }
 0x3b2   : > { %v3801_v49 = vrot.slane %v3800_v18, 4  ;;  %3570 = vperm.xlu2 %6635, %v9542_v24   ;;  %3552 = vperm.xlu1 %6634, %v9540_v51   ;;  %v3807_v51 = vsel %vm1033_vm3, %v3638_v23, 0.0  ;;  %v3192_v5 = vld [vmem:[#allocation4 + $0x200] sm:$0xff] }
 0x3b3   : > { %v4121_v48 = vsel %vm4102_vm5, %v4120_v52, %v4119_v1  ;;  %v4124_v35 = vrot.slane %v4044_v46, 3  ;;  %v3193_v52 = vld [vmem:[#allocation4 + $0x208] sm:$0xff]  ;;  %v3200_v62 = vld [vmem:[#allocation4 + $0x280] sm:$0xff] }
 0x3b4   : > { %v3802_v47 = vadd.f32 %v3801_v49, %v3800_v18  ;;  %v3415_v50 = vpop.permute.xlu1 %3414  ;;  %v4123_v13 = vsel %vm4105_vm6, %v4122_v40, %v4121_v48  ;;  %v9545_v46 = vld [vmem:[#allocation34_spill] sm:$0xff]  ;;  %v3201_v48 = vld [vmem:[#allocation4 + $0x288] sm:$0xff] }
 0x3b5   : > { %v3639_v20 = vmul.f32 %v3415_v50, %v3191_v17  ;;  %v4125_v44 = vsel %vm4108_vm7, %v4124_v35, %v4123_v13  ;;  %v3203_v35 = vld [vmem:[#allocation4 + $0x2a8] sm:$0xff] }
 0x3b6   : > { %v3803_v0 = vrot.slane %v3802_v47, 2 }
 0x3b7   : > { %v3808_v25 = vsel %vm1033_vm3, %v3639_v20, 0.0  ;;  %v3427_v20 = vpop.permute.xlu0 %3426 }
 0x3b8   : > { %v3804_v11 = vadd.f32 %v3803_v0, %v3802_v47  ;;  %v3809_v3 = vadd.f32 %v3808_v25, %v3807_v51  ;;  %v3439_v23 = vpop.permute.xlu2 %3438  ;;  %v3198_v0 = vld [vmem:[#allocation4 + $0x260] sm:$0xff]  ;;  %v3197_v25 = vld [vmem:[#allocation4 + $0x248] sm:$0xff] }
 0x3b9   : > { %v3643_v51 = vmul.f32 %v3439_v23, %v3195_v58 }
 0x3ba   : > { %v3805_v21 = vrot.slane %v3804_v11, 1  ;;  %v3810_v6 = vrot.slane %v3809_v3, 4  ;;  %6637 = vset.pattern.permute.xlu2 %v8692_v41  ;;  %3564 = vperm.xlu1 %6634, %v9542_v24   ;;  %v9543_v24 = vld [vmem:[#allocation31_spill] sm:$0xff] }
 0x3bb   : > { %v3826_v40 = vsel %vm1033_vm3, %v3643_v51, 0.0 }
 0x3bc   : > { %v3806_v61 = vadd.f32 %v3805_v21, %v3804_v11  ;;  %v3811_v29 = vadd.f32 %v3810_v6, %v3809_v3  ;;  %v3646_v3 = vmul.f32 %v8765_v7, %v3198_v0  ;;  %v3641_v21 = vmul.f32 %v3427_v20, %v3193_v52  ;;  %v3202_v7 = vld [vmem:[#allocation4 + $0x2a0] sm:$0xff]  ;;  %v3205_v52 = vld [vmem:[#allocation4 + $0x2c8] sm:$0xff] }
 0x3be   : > { %v4045_v38 = vadd.f32 %v3983_v59, %v3806_v61  ;;  %v3812_v57 = vrot.slane %v3811_v29, 2  ;;  %v3640_v59 = vmul.f32 %v3421_v42, %v3192_v5  ;;  %v3843_v42 = vsel %vm1033_vm3, %v3646_v3, 0.0 }
 0x3c0   : > { %v4126_v18 = vrot.slane %v4045_v38, 2  ;;  %v3813_v27 = vadd.f32 %v3812_v57, %v3811_v29  ;;  %v3451_v47 = vpop.permute.xlu2 %3450  ;;  %v3487_v29 = vpop.permute.xlu0 %3486 }
 0x3c1   : > { %v3645_v6 = vmul.f32 %v3451_v47, %v3197_v25 }
 0x3c2   : > { %v4127_v32 = vsel %vm4111_vm8, %v4126_v18, %v4125_v44  ;;  %v3814_v49 = vrot.slane %v3813_v27, 1  ;;  %3588 = vperm.xlu2 %6637, %v9543_v24   ;;  %6636 = vset.pattern.permute.xlu1 %v8701_v36 }
 0x3c4   : > { %v3815_v17 = vadd.f32 %v3814_v49, %v3813_v27  ;;  %v3433_v53 = vpop.permute.xlu1 %3432  ;;  %v3835_v49 = vsel %vm1033_vm3, %v3645_v6, 0.0 }
 0x3c5   : > { %v3642_v55 = vmul.f32 %v3433_v53, %v3194_v10 }
 0x3c6   : > { %v4046_v54 = vadd.f32 %v3984_v26, %v3815_v17  ;;  %v3817_v26 = vsel %vm1033_vm3, %v3641_v21, 0.0  ;;  %v3204_v21 = vld [vmem:[#allocation4 + $0x2c0] sm:$0xff] }
 0x3c7   : > { %v3825_v61 = vsel %vm1033_vm3, %v3642_v55, 0.0 }
 0x3c8   : > { %v4128_v8 = vrot.slane %v4046_v54, 1  ;;  %v3469_v50 = vpop.permute.xlu2 %3468 }
 0x3c9   : > { %v3648_v38 = vmul.f32 %v3469_v50, %v3200_v62 }
 0x3ca   : > { %v4129_v2 = vsel %vm4114_vm9, %v4128_v8, %v4127_v32  ;;  %3600 = vperm.xlu2 %6637, %v9519_v39   ;;  %3582 = vperm.xlu1 %6636, %v9502_v14   ;;  %v3196_v39 = vld [vmem:[#allocation4 + $0x240] sm:$0xff]  ;;  %v3199_v14 = vld [vmem:[#allocation4 + $0x268] sm:$0xff]  ;;  %v3816_v32 = vsel %vm1033_vm3, %v3640_v59, 0.0  ;;  %v3651_v8 = vmul.f32 %v3487_v29, %v3203_v35 }
 0x3cb   : > { %4163 = vst.msk [vmem:[%s6985_s1 + $0x8] sm:$0xff] %vm1033_vm3, %v4129_v2  ;;  %v3852_v2 = vsel %vm1033_vm3, %v3648_v38, 0.0  ;;  %v9546_v59 = vld [vmem:[#allocation38_spill] sm:$0xff] }
 0x3cc   : > { %v3445_v56 = vpop.permute.xlu1 %3444  ;;  %v3862_v58 = vsel %vm1033_vm3, %v3651_v8, 0.0  ;;  %v9547_v8 = vld [vmem:[#allocation45_spill] sm:$0xff] }
 0x3cd   : > { %v3644_v11 = vmul.f32 %v3445_v56, %v3196_v39  ;;  %v3818_v56 = vadd.f32 %v3817_v26, %v3816_v32 }
 0x3cf   : > { %v3834_v13 = vsel %vm1033_vm3, %v3644_v11, 0.0  ;;  %v3819_v39 = vrot.slane %v3818_v56, 4 }
 0x3d0   : > { %v3481_v57 = vpop.permute.xlu2 %3480  ;;  %v3836_v17 = vadd.f32 %v3835_v49, %v3834_v13 }
 0x3d1   : > { %v3650_v54 = vmul.f32 %v3481_v57, %v3202_v7  ;;  %v3820_v3 = vadd.f32 %v3819_v39, %v3818_v56 }
 0x3d2   : > { %6639 = vset.pattern.permute.xlu2 %v8701_v36  ;;  %3594 = vperm.xlu1 %6636, %v9543_v24   ;;  %v3827_v24 = vadd.f32 %v3826_v40, %v3825_v61 }
 0x3d3   : > { %v3861_v20 = vsel %vm1033_vm3, %v3650_v54, 0.0  ;;  %v3821_v13 = vrot.slane %v3820_v3, 2  ;;  %v3206_v54 = vld [vmem:[#allocation4 + $0x2e0] sm:$0xff] }
 0x3d4   : > { %v3828_v50 = vrot.slane %v3827_v24, 4 }
 0x3d5   : > { %v3822_v26 = vadd.f32 %v3821_v13, %v3820_v3 }
 0x3d6   : > { %v3829_v0 = vadd.f32 %v3828_v50, %v3827_v24 }
 0x3d8   : > { %v3499_v5 = vpop.permute.xlu2 %3498  ;;  %v3830_v62 = vrot.slane %v3829_v0, 2 }
 0x3d9   : > { %v3653_v11 = vmul.f32 %v3499_v5, %v3205_v52 }
 0x3da   : > { %4240 = vperm.xlu2 %6639, %v9544_v37   ;;  %6638 = vset.pattern.permute.xlu1 %v8692_v41  ;;  %v3831_v38 = vadd.f32 %v3830_v62, %v3829_v0 }
 0x3db   : > { %v3871_v61 = vsel %vm1033_vm3, %v3653_v11, 0.0 }
 0x3dc   : > { %v3463_v12 = vpop.permute.xlu1 %3462  ;;  %v3832_v49 = vrot.slane %v3831_v38, 1 }
 0x3dd   : > { %v3647_v1 = vmul.f32 %v3463_v12, %v3199_v14  ;;  %v3863_v14 = vadd.f32 %v3862_v58, %v3861_v20 }
 0x3de   : > { %v3833_v39 = vadd.f32 %v3832_v49, %v3831_v38 }
 0x3df   : > { %v3844_v27 = vsel %vm1033_vm3, %v3647_v1, 0.0  ;;  %v3864_v1 = vrot.slane %v3863_v14, 4 }
 0x3e0   : > { %v3845_v53 = vadd.f32 %v3844_v27, %v3843_v42  ;;  %v3511_v42 = vpop.permute.xlu2 %3510  ;;  %v3207_v27 = vld [vmem:[#allocation4 + $0x2e8] sm:$0xff] }
 0x3e1   : > { %v3865_v57 = vadd.f32 %v3864_v1, %v3863_v14 }
 0x3e2   : > { %4252 = vperm.xlu2 %6639, %v9545_v46   ;;  %4234 = vperm.xlu1 %6638, %v9544_v37   ;;  %v3837_v37 = vrot.slane %v3836_v17, 4  ;;  %v3846_v10 = vrot.slane %v3845_v53, 4 }
 0x3e3   : > { %v3866_v24 = vrot.slane %v3865_v57, 2 }
 0x3e4   : > { %v3475_v18 = vpop.permute.xlu1 %3474  ;;  %v3838_v51 = vadd.f32 %v3837_v37, %v3836_v17  ;;  %v3847_v25 = vadd.f32 %v3846_v10, %v3845_v53 }
 0x3e5   : > { %v3649_v44 = vmul.f32 %v3475_v18, %v3201_v48  ;;  %v3867_v0 = vadd.f32 %v3866_v24, %v3865_v57 }
 0x3e6   : > { %v3839_v6 = vrot.slane %v3838_v51, 2 }
 0x3e7   : > { %v3853_v23 = vsel %vm1033_vm3, %v3649_v44, 0.0 }
 0x3e8   : > { %v3854_v47 = vadd.f32 %v3853_v23, %v3852_v2  ;;  %v3840_v7 = vadd.f32 %v3839_v6, %v3838_v51  ;;  %v9548_v23 = vunpack.c.l.bf16 %v9547_v8  ;;  %v3868_v6 = vrot.slane %v3867_v0, 1 }
 0x3ea   : > { %6641 = vset.pattern.permute.xlu2 %v8692_v41  ;;  %4246 = vperm.xlu1 %6638, %v9545_v46   ;;  %v3855_v12 = vrot.slane %v3854_v47, 4  ;;  %v3848_v46 = vrot.slane %v3847_v25, 2  ;;  %v3965_v2 = vmul.f32 %v9548_v23, %v8825_v33  ;;  %v3841_v53 = vrot.slane %v3840_v7, 1 }
 0x3ec   : > { %v3856_v55 = vadd.f32 %v3855_v12, %v3854_v47  ;;  %v3849_v18 = vadd.f32 %v3848_v46, %v3847_v25  ;;  %v3655_v47 = vmul.f32 %v3511_v42, %v3207_v27  ;;  %v3985_v20 = vrot.slane %v3965_v2, 1  ;;  %v3529_v1 = vpop.permute.xlu2 %3528 }
 0x3ed   : > { %v3823_v12 = vrot.slane %v3822_v26, 1  ;;  %v3842_v5 = vadd.f32 %v3841_v53, %v3840_v7  ;;  %v3987_v51 = vrot.slane %v3965_v2, 3  ;;  %v3988_v3 = vrot.slane %v3965_v2, 4 }
 0x3ee   : > { %v3857_v40 = vrot.slane %v3856_v55, 2  ;;  %v3850_v56 = vrot.slane %v3849_v18, 1  ;;  %v3990_v57 = vrot.slane %v3965_v2, 6  ;;  %v3869_v42 = vadd.f32 %v3868_v6, %v3867_v0 }
 0x3ef   : > { %v3991_v53 = vrot.slane %v3965_v2, 7 }
 0x3f0   : > { %v3858_v32 = vadd.f32 %v3857_v40, %v3856_v55  ;;  %v3851_v25 = vadd.f32 %v3850_v56, %v3849_v18  ;;  %v3989_v18 = vrot.slane %v3965_v2, 5 }
 0x3f2   : > { %4270 = vperm.xlu2 %6641, %v9546_v59   ;;  %6640 = vset.pattern.permute.xlu1 %v8701_v36  ;;  %v3859_v58 = vrot.slane %v3858_v32, 1 }
 0x3f4   : > { %v3493_v48 = vpop.permute.xlu1 %3492  ;;  %v3860_v62 = vadd.f32 %v3859_v58, %v3858_v32 }
 0x3f5   : > { %v3652_v29 = vmul.f32 %v3493_v48, %v3204_v21  ;;  %v4048_v21 = vadd.f32 %v3985_v20, %v3833_v39 }
 0x3f6   : > { %v4051_v38 = vadd.f32 %v3988_v3, %v3860_v62  ;;  %v3212_v3 = vld [vmem:[#allocation4 + $0x340] sm:$0xff]  ;;  %v3547_v62 = vpop.permute.xlu0 %3546 }
 0x3f7   : > { %v3870_v35 = vsel %vm1033_vm3, %v3652_v29, 0.0  ;;  %v4050_v29 = vadd.f32 %v3987_v51, %v3851_v25 }
 0x3f8   : > { %v3872_v44 = vadd.f32 %v3871_v61, %v3870_v35  ;;  %v3824_v61 = vadd.f32 %v3823_v12, %v3822_v26  ;;  %v4130_v35 = vrot.slane %v4048_v21, 7  ;;  %v3213_v21 = vld [vmem:[#allocation4 + $0x348] sm:$0xff] }
 0x3f9   : > { %v4134_v49 = vrot.slane %v4050_v29, 5  ;;  %v3208_v29 = vld [vmem:[#allocation4 + $0x300] sm:$0xff] }
 0x3fa   : > { %v3873_v17 = vrot.slane %v3872_v44, 4  ;;  %4282 = vperm.xlu2 %6641, %v9521_v60   ;;  %4264 = vperm.xlu1 %6640, %v9503_v63   ;;  %v3986_v60 = vrot.slane %v3965_v2, 2  ;;  %v3880_v63 = vsel %vm1033_vm3, %v3655_v47, 0.0  ;;  %v4047_v32 = vadd.f32 %v3965_v2, %v3824_v61  ;;  %v9549_v47 = vld [vmem:[#allocation42_spill] sm:$0xff] }
 0x3fc   : > { %v3874_v50 = vadd.f32 %v3873_v17, %v3872_v44  ;;  %v3505_v37 = vpop.permute.xlu1 %3504  ;;  %v4049_v40 = vadd.f32 %v3986_v60, %v3842_v5  ;;  %v4136_v17 = vrot.slane %v4051_v38, 4  ;;  %v4131_v23 = vsel %vm4096_vm2, %v4130_v35, %v4047_v32 }
 0x3fd   : > { %v3654_v10 = vmul.f32 %v3505_v37, %v3206_v54  ;;  %v3661_v38 = vmul.f32 %v3547_v62, %v3213_v21 }
 0x3fe   : > { %v3875_v14 = vrot.slane %v3874_v50, 2  ;;  %v4132_v44 = vrot.slane %v4049_v40, 6  ;;  %v3214_v40 = vld [vmem:[#allocation4 + $0x360] sm:$0xff] }
 0x3ff   : > { %v3879_v52 = vsel %vm1033_vm3, %v3654_v10, 0.0 }
 0x400   : > { %v3876_v55 = vadd.f32 %v3875_v14, %v3874_v50  ;;  %v3881_v11 = vadd.f32 %v3880_v63, %v3879_v52  ;;  %v4133_v56 = vsel %vm4099_vm4, %v4132_v44, %v4131_v23  ;;  %v3541_v50 = vpop.permute.xlu2 %3540  ;;  %v9550_v63 = vld [vmem:[#allocation35_spill] sm:$0xff]  ;;  %v3656_v44 = vmul.f32 %v8770_v30, %v3208_v29 }
 0x401   : > { %v4135_v37 = vsel %vm4102_vm5, %v4134_v49, %v4133_v56 }
 0x402   : > { %v3877_v46 = vrot.slane %v3876_v55, 1  ;;  %v3882_v48 = vrot.slane %v3881_v11, 4  ;;  %6643 = vset.pattern.permute.xlu2 %v8701_v36  ;;  %4276 = vperm.xlu1 %6640, %v9546_v59   ;;  %v4052_v59 = vadd.f32 %v3989_v18, %v3869_v42  ;;  %v4137_v58 = vsel %vm4105_vm6, %v4136_v17, %v4135_v37 }
 0x403   : > { %v3888_v30 = vsel %vm1033_vm3, %v3656_v44, 0.0 }
 0x404   : > { %v3883_v13 = vadd.f32 %v3882_v48, %v3881_v11  ;;  %v3878_v7 = vadd.f32 %v3877_v46, %v3876_v55  ;;  %v4138_v12 = vrot.slane %v4052_v59, 3  ;;  %v3211_v55 = vld [vmem:[#allocation4 + $0x328] sm:$0xff]  ;;  %v3210_v11 = vld [vmem:[#allocation4 + $0x320] sm:$0xff] }
 0x405   : > { %v3215_v46 = vld [vmem:[#allocation4 + $0x368] sm:$0xff]  ;;  %v9551_v48 = vld [vmem:[#allocation46_spill] sm:$0xff]  ;;  %v3658_v61 = vmul.f32 %v3529_v1, %v3210_v11  ;;  %v3907_v1 = vsel %vm1033_vm3, %v3661_v38, 0.0 }
 0x406   : > { %v3884_v27 = vrot.slane %v3883_v13, 2  ;;  %v4053_v54 = vadd.f32 %v3990_v57, %v3878_v7  ;;  %v4139_v0 = vsel %vm4108_vm7, %v4138_v12, %v4137_v58  ;;  %v3209_v57 = vld [vmem:[#allocation4 + $0x308] sm:$0xff] }
 0x407   : > { %v3897_v32 = vsel %vm1033_vm3, %v3658_v61, 0.0 }
 0x408   : > { %v3885_v24 = vadd.f32 %v3884_v27, %v3883_v13  ;;  %v4140_v10 = vrot.slane %v4053_v54, 2  ;;  %v3559_v52 = vpop.permute.xlu2 %3558  ;;  %v3660_v13 = vmul.f32 %v3541_v50, %v3212_v3  ;;  %v3217_v54 = vld [vmem:[#allocation4 + $0x388] sm:$0xff] }
 0x409   : > { %v3663_v18 = vmul.f32 %v3559_v52, %v3215_v46 }
 0x40a   : > { %v3886_v26 = vrot.slane %v3885_v24, 1  ;;  %4300 = vperm.xlu2 %6643, %v9549_v47   ;;  %6642 = vset.pattern.permute.xlu1 %v8692_v41  ;;  %v4141_v14 = vsel %vm4111_vm8, %v4140_v10, %v4139_v0 }
 0x40b   : > { %v3916_v23 = vsel %vm1033_vm3, %v3663_v18, 0.0  ;;  %v9552_v18 = vld [vmem:[#allocation48_spill] sm:$0xff] }
 0x40c   : > { %v3887_v20 = vadd.f32 %v3886_v26, %v3885_v24  ;;  %v3523_v5 = vpop.permute.xlu1 %3522  ;;  %v3906_v24 = vsel %vm1033_vm3, %v3660_v13, 0.0 }
 0x40d   : > { %v3657_v49 = vmul.f32 %v3523_v5, %v3209_v57  ;;  %v3908_v26 = vadd.f32 %v3907_v1, %v3906_v24 }
 0x40e   : > { %v4054_v39 = vadd.f32 %v3991_v53, %v3887_v20  ;;  %v3216_v53 = vld [vmem:[#allocation4 + $0x380] sm:$0xff] }
 0x40f   : > { %v3909_v12 = vrot.slane %v3908_v26, 4 }
 0x410   : > { %v4142_v2 = vrot.slane %v4054_v39, 1  ;;  %v3571_v25 = vpop.permute.xlu2 %3570 }
 0x411   : > { %v3665_v56 = vmul.f32 %v3571_v25, %v3217_v54  ;;  %v3910_v11 = vadd.f32 %v3909_v12, %v3908_v26 }
 0x412   : > { %v4143_v60 = vsel %vm4114_vm9, %v4142_v2, %v4141_v14  ;;  %4312 = vperm.xlu2 %6643, %v9550_v63   ;;  %4294 = vperm.xlu1 %6642, %v9549_v47   ;;  %v3889_v47 = vsel %vm1033_vm3, %v3657_v49, 0.0  ;;  %v3222_v2 = vld [vmem:[#allocation4 + $0x3e0] sm:$0xff]  ;;  %v3223_v14 = vld [vmem:[#allocation4 + $0x3e8] sm:$0xff] }
 0x413   : > { %4164 = vst.msk [vmem:[%s6985_s1 + $0x10] sm:$0xff] %vm1033_vm3, %v4143_v60  ;;  %v3890_v10 = vadd.f32 %v3889_v47, %v3888_v30  ;;  %v3925_v39 = vsel %vm1033_vm3, %v3665_v56, 0.0  ;;  %v3911_v29 = vrot.slane %v3910_v11, 2 }
 0x414   : > { %v3535_v51 = vpop.permute.xlu1 %3534 }
 0x415   : > { %v3659_v6 = vmul.f32 %v3535_v51, %v3211_v55  ;;  %v3891_v52 = vrot.slane %v3890_v10, 4  ;;  %v3912_v44 = vadd.f32 %v3911_v29, %v3910_v11 }
 0x417   : > { %v3898_v35 = vsel %vm1033_vm3, %v3659_v6, 0.0  ;;  %v3218_v6 = vld [vmem:[#allocation4 + $0x3a0] sm:$0xff]  ;;  %v3892_v46 = vadd.f32 %v3891_v52, %v3890_v10  ;;  %v3913_v30 = vrot.slane %v3912_v44, 1 }
 0x418   : > { %v3899_v17 = vadd.f32 %v3898_v35, %v3897_v32  ;;  %v3666_v57 = vmul.f32 %v8775_v31, %v3218_v6  ;;  %v9553_v31 = vunpack.c.h.bf16 %v9547_v8  ;;  %v3221_v8 = vld [vmem:[#allocation4 + $0x3c8] sm:$0xff] }
 0x41a   : > { %6645 = vset.pattern.permute.xlu2 %v8692_v41  ;;  %4306 = vperm.xlu1 %6642, %v9550_v63   ;;  %v3900_v50 = vrot.slane %v3899_v17, 4  ;;  %v3933_v1 = vsel %vm1033_vm3, %v3666_v57, 0.0 }
 0x41c   : > { %v9000_v27 = vpop.permute.xlu2 %3588  ;;  %v3901_v60 = vadd.f32 %v3900_v50, %v3899_v17 }
 0x41e   : > { %v3902_v3 = vrot.slane %v3901_v60, 2 }
 0x420   : > { %v3903_v13 = vadd.f32 %v3902_v3, %v3901_v60 }
 0x422   : > { %4330 = vperm.xlu2 %6645, %v9551_v48   ;;  %6644 = vset.pattern.permute.xlu1 %v8701_v36  ;;  %v3904_v32 = vrot.slane %v3903_v13, 1 }
 0x424   : > { %v3553_v7 = vpop.permute.xlu1 %3552  ;;  %v3905_v56 = vadd.f32 %v3904_v32, %v3903_v13 }
 0x425   : > { %v3662_v42 = vmul.f32 %v3553_v7, %v3214_v40 }
 0x427   : > { %v3915_v59 = vsel %vm1033_vm3, %v3662_v42, 0.0  ;;  %v3219_v42 = vld [vmem:[#allocation4 + $0x3a8] sm:$0xff] }
 0x428   : > { %v3917_v37 = vadd.f32 %v3916_v23, %v3915_v59  ;;  %v9025_v59 = vmul.f32 %v9553_v31, %v8825_v33 }
 0x42a   : > { %4342 = vperm.xlu2 %6645, %v9522_v22   ;;  %4324 = vperm.xlu1 %6644, %v9505_v43   ;;  %v3601_v22 = vpop.permute.xlu2 %3600  ;;  %v3607_v43 = vpop.permute.xlu0 %3606  ;;  %v3918_v5 = vrot.slane %v3917_v37, 4  ;;  %v3992_v47 = vrot.slane %v9025_v59, 1  ;;  %v3994_v60 = vrot.slane %v9025_v59, 3 }
 0x42b   : > { %v3670_v25 = vmul.f32 %v3601_v22, %v3222_v2  ;;  %v3671_v55 = vmul.f32 %v3607_v43, %v3223_v14  ;;  %v3993_v22 = vrot.slane %v9025_v59, 2  ;;  %v3914_v2 = vadd.f32 %v3913_v30, %v3912_v44 }
 0x42c   : > { %v3565_v20 = vpop.permute.xlu1 %3564  ;;  %v3919_v62 = vadd.f32 %v3918_v5, %v3917_v37  ;;  %v3220_v37 = vld [vmem:[#allocation4 + $0x3c0] sm:$0xff]  ;;  %v4056_v14 = vadd.f32 %v3992_v47, %v3905_v56  ;;  %v3998_v47 = vrot.slane %v9025_v59, 7 }
 0x42d   : > { %v3664_v58 = vmul.f32 %v3565_v20, %v3216_v53  ;;  %v3951_v40 = vsel %vm1033_vm3, %v3670_v25, 0.0  ;;  %v3952_v61 = vsel %vm1033_vm3, %v3671_v55, 0.0  ;;  %v3668_v43 = vmul.f32 %v9000_v27, %v3220_v37 }
 0x42e   : > { %v3920_v38 = vrot.slane %v3919_v62, 2  ;;  %v3953_v35 = vadd.f32 %v3952_v61, %v3951_v40  ;;  %v4057_v29 = vadd.f32 %v3993_v22, %v3914_v2  ;;  %v3997_v37 = vrot.slane %v9025_v59, 6 }
 0x42f   : > { %v3924_v0 = vsel %vm1033_vm3, %v3664_v58, 0.0 }
 0x430   : > { %v3926_v63 = vadd.f32 %v3925_v39, %v3924_v0  ;;  %v3921_v49 = vadd.f32 %v3920_v38, %v3919_v62  ;;  %v3954_v54 = vrot.slane %v3953_v35, 4  ;;  %v9554_v0 = vld [vmem:[#allocation49_spill] sm:$0xff] }
 0x432   : > { %v3927_v51 = vrot.slane %v3926_v63, 4  ;;  %6647 = vset.pattern.permute.xlu2 %v8701_v36  ;;  %4336 = vperm.xlu1 %6644, %v9551_v48   ;;  %v3893_v48 = vrot.slane %v3892_v46, 2  ;;  %v3922_v50 = vrot.slane %v3921_v49, 1  ;;  %v3955_v10 = vadd.f32 %v3954_v54, %v3953_v35 }
 0x434   : > { %v3928_v21 = vadd.f32 %v3927_v51, %v3926_v63  ;;  %v3894_v53 = vadd.f32 %v3893_v48, %v3892_v46  ;;  %v3923_v5 = vadd.f32 %v3922_v50, %v3921_v49  ;;  %v3995_v51 = vrot.slane %v9025_v59, 4  ;;  %v4241_v2 = vpop.permute.xlu2 %4240 }
 0x435   : > { %v3956_v55 = vrot.slane %v3955_v10, 2  ;;  %v4144_v46 = vrot.slane %v4056_v14, 7  ;;  %v4146_v49 = vrot.slane %v4057_v29, 6 }
 0x436   : > { %v3929_v7 = vrot.slane %v3928_v21, 2  ;;  %v3895_v12 = vrot.slane %v3894_v53, 1  ;;  %v4058_v40 = vadd.f32 %v3994_v60, %v3923_v5  ;;  %v9556_v5 = vld [vmem:[#allocation53_spill] sm:$0xff] }
 0x437   : > { %v3957_v38 = vadd.f32 %v3956_v55, %v3955_v10  ;;  %v4170_v55 = vld [vmem:[#allocation4 + $0x50] sm:$0xff] }
 0x438   : > { %v3930_v17 = vadd.f32 %v3929_v7, %v3928_v21  ;;  %v3896_v3 = vadd.f32 %v3895_v12, %v3894_v53  ;;  %v3942_v21 = vsel %vm1033_vm3, %v3668_v43, 0.0  ;;  %v3996_v7 = vrot.slane %v9025_v59, 5 }
 0x43a   : > { %4360 = vperm.xlu2 %6647, %v9552_v18   ;;  %6646 = vset.pattern.permute.xlu1 %v8692_v41  ;;  %v3931_v58 = vrot.slane %v3930_v17, 1  ;;  %v4055_v57 = vadd.f32 %v9025_v59, %v3896_v3  ;;  %v4169_v3 = vld [vmem:[#allocation4 + $0x38] sm:$0xff] }
 0x43c   : > { %v3583_v24 = vpop.permute.xlu1 %3582  ;;  %v3932_v25 = vadd.f32 %v3931_v58, %v3930_v17  ;;  %v9555_v58 = vld [vmem:[#allocation51_spill] sm:$0xff]  ;;  %v4253_v14 = vpop.permute.xlu2 %4252 }
 0x43d   : > { %v3667_v23 = vmul.f32 %v3583_v24, %v3219_v42  ;;  %v4148_v42 = vrot.slane %v4058_v40, 5  ;;  %v4172_v40 = vld [vmem:[#allocation4 + $0x70] sm:$0xff]  ;;  %v4617_v29 = vmul.f32 %v4253_v14, %v4169_v3 }
 0x43e   : > { %v4059_v13 = vadd.f32 %v3995_v51, %v3932_v25  ;;  %v4168_v51 = vld [vmem:[#allocation4 + $0x30] sm:$0xff] }
 0x43f   : > { %v3934_v26 = vsel %vm1033_vm3, %v3667_v23, 0.0 }
 0x440   : > { %v3935_v20 = vadd.f32 %v3934_v26, %v3933_v1  ;;  %v4150_v24 = vrot.slane %v4059_v13, 4  ;;  %v3958_v1 = vrot.slane %v3957_v38, 1  ;;  %v4166_v13 = vld [vmem:[#allocation4 + $0x10] sm:$0xff] }
 0x442   : > { %v3936_v39 = vrot.slane %v3935_v20, 4  ;;  %4372 = vperm.xlu2 %6647, %v9554_v0   ;;  %4354 = vperm.xlu1 %6646, %v9552_v18   ;;  %v4145_v18 = vsel %vm4096_vm2, %v4144_v46, %v4055_v57  ;;  %v3959_v56 = vadd.f32 %v3958_v1, %v3957_v38  ;;  %v4618_v46 = vmul.f32 %v8780_v9, %v4170_v55  ;;  %v4177_v57 = vld [vmem:[#allocation4 + $0xb8] sm:$0xff] }
 0x443   : > { %v4147_v23 = vsel %vm4099_vm4, %v4146_v49, %v4145_v18 }
 0x444   : > { %v3937_v63 = vadd.f32 %v3936_v39, %v3935_v20  ;;  %v3595_v52 = vpop.permute.xlu1 %3594  ;;  %v4149_v31 = vsel %vm4102_vm5, %v4148_v42, %v4147_v23  ;;  %v4062_v12 = vadd.f32 %v3998_v47, %v3959_v56  ;;  %v4174_v42 = vld [vmem:[#allocation4 + $0x90] sm:$0xff]  ;;  %v4696_v9 = vsel %vm1033_vm3, %v4618_v46, 0.0 }
 0x445   : > { %v3669_v11 = vmul.f32 %v3595_v52, %v3221_v8  ;;  %v4151_v26 = vsel %vm4105_vm6, %v4150_v24, %v4149_v31 }
 0x446   : > { %v3938_v62 = vrot.slane %v3937_v63, 2  ;;  %v4156_v8 = vrot.slane %v4062_v12, 1 }
 0x447   : > { %v3943_v6 = vsel %vm1033_vm3, %v3669_v11, 0.0  ;;  %v4171_v11 = vld [vmem:[#allocation4 + $0x58] sm:$0xff] }
 0x448   : > { %v3939_v27 = vadd.f32 %v3938_v62, %v3937_v63  ;;  %v3944_v61 = vadd.f32 %v3943_v6, %v3942_v21  ;;  %v4173_v62 = vld [vmem:[#allocation4 + $0x78] sm:$0xff] }
 0x44a   : > { %v3940_v35 = vrot.slane %v3939_v27, 1  ;;  %v3945_v48 = vrot.slane %v3944_v61, 4  ;;  %6649 = vset.pattern.permute.xlu2 %v8692_v41  ;;  %4366 = vperm.xlu1 %6646, %v9554_v0  }
 0x44c   : > { %v3941_v44 = vadd.f32 %v3940_v35, %v3939_v27  ;;  %v3946_v32 = vadd.f32 %v3945_v48, %v3944_v61  ;;  %v4271_v63 = vpop.permute.xlu2 %4270  ;;  %v4167_v61 = vld [vmem:[#allocation4 + $0x18] sm:$0xff]  ;;  %v4176_v35 = vld [vmem:[#allocation4 + $0xb0] sm:$0xff] }
 0x44d   : > { %v4620_v18 = vmul.f32 %v4271_v63, %v4172_v40  ;;  %v4615_v49 = vmul.f32 %v4241_v2, %v4167_v61 }
 0x44e   : > { %v4060_v17 = vadd.f32 %v3996_v7, %v3941_v44  ;;  %v3947_v54 = vrot.slane %v3946_v32, 2  ;;  %v9558_v7 = vld [vmem:[#allocation56_spill] sm:$0xff]  ;;  %v4175_v44 = vld [vmem:[#allocation4 + $0x98] sm:$0xff] }
 0x44f   : > { %v4705_v56 = vsel %vm1033_vm3, %v4620_v18, 0.0 }
 0x450   : > { %v4152_v53 = vrot.slane %v4060_v17, 3  ;;  %v3948_v30 = vadd.f32 %v3947_v54, %v3946_v32  ;;  %v4289_v32 = vpop.permute.xlu0 %4288  ;;  %v4688_v54 = vsel %vm1033_vm3, %v4617_v29, 0.0 }
 0x451   : > { %v4623_v47 = vmul.f32 %v4289_v32, %v4175_v44 }
 0x452   : > { %v4153_v50 = vsel %vm4108_vm7, %v4152_v53, %v4151_v26  ;;  %v3949_v20 = vrot.slane %v3948_v30, 1  ;;  %4390 = vperm.xlu2 %6649, %v9555_v58   ;;  %6648 = vset.pattern.permute.xlu1 %v8701_v36 }
 0x453   : > { %v4715_v2 = vsel %vm1033_vm3, %v4623_v47, 0.0 }
 0x454   : > { %v3950_v10 = vadd.f32 %v3949_v20, %v3948_v30  ;;  %v4235_v59 = vpop.permute.xlu1 %4234 }
 0x455   : > { %v4614_v24 = vmul.f32 %v4235_v59, %v4166_v13 }
 0x456   : > { %v4061_v39 = vadd.f32 %v3997_v37, %v3950_v10  ;;  %v4679_v37 = vsel %vm1033_vm3, %v4615_v49, 0.0  ;;  %v4179_v10 = vld [vmem:[#allocation4 + $0xd8] sm:$0xff] }
 0x457   : > { %v4678_v20 = vsel %vm1033_vm3, %v4614_v24, 0.0 }
 0x458   : > { %v4154_v0 = vrot.slane %v4061_v39, 2  ;;  %v4680_v59 = vadd.f32 %v4679_v37, %v4678_v20 }
 0x45a   : > { %v4155_v22 = vsel %vm4111_vm8, %v4154_v0, %v4153_v50  ;;  %4402 = vperm.xlu2 %6649, %v9524_v45   ;;  %4384 = vperm.xlu1 %6648, %v9507_v19   ;;  %v9557_v45 = vld [vmem:[#allocation39_spill] sm:$0xff]  ;;  %v4283_v19 = vpop.permute.xlu2 %4282 }
 0x45b   : > { %v4157_v43 = vsel %vm4114_vm9, %v4156_v8, %v4155_v22  ;;  %v4622_v26 = vmul.f32 %v4283_v19, %v4174_v42 }
 0x45c   : > { %4165 = vst.msk [vmem:[%s6985_s1 + $0x18] sm:$0xff] %vm1033_vm3, %v4157_v43  ;;  %v4247_v60 = vpop.permute.xlu1 %4246  ;;  %v4178_v43 = vld [vmem:[#allocation4 + $0xd0] sm:$0xff] }
 0x45d   : > { %v4616_v6 = vmul.f32 %v4247_v60, %v4168_v51  ;;  %v4714_v22 = vsel %vm1033_vm3, %v4622_v26, 0.0 }
 0x45f   : > { %v4687_v48 = vsel %vm1033_vm3, %v4616_v6, 0.0 }
 0x460   : > { %v4689_v30 = vadd.f32 %v4688_v54, %v4687_v48 }
 0x462   : > { %6651 = vset.pattern.permute.xlu2 %v8701_v36  ;;  %4396 = vperm.xlu1 %6648, %v9555_v58   ;;  %v4690_v8 = vrot.slane %v4689_v30, 4 }
 0x464   : > { %v4301_v21 = vpop.permute.xlu2 %4300  ;;  %v4691_v51 = vadd.f32 %v4690_v8, %v4689_v30 }
 0x465   : > { %v4625_v31 = vmul.f32 %v4301_v21, %v4177_v57  ;;  %v4180_v57 = vld [vmem:[#allocation4 + $0xf0] sm:$0xff] }
 0x466   : > { %v4692_v6 = vrot.slane %v4691_v51, 2  ;;  %v4628_v32 = vmul.f32 %v8787_v4, %v4180_v57 }
 0x467   : > { %v4724_v39 = vsel %vm1033_vm3, %v4625_v31, 0.0 }
 0x468   : > { %v4741_v47 = vsel %vm1033_vm3, %v4628_v32, 0.0 }
 0x46a   : > { %4420 = vperm.xlu2 %6651, %v9556_v5   ;;  %6650 = vset.pattern.permute.xlu1 %v8692_v41 }
 0x46c   : > { %v4265_v52 = vpop.permute.xlu1 %4264  ;;  %v4313_v12 = vpop.permute.xlu2 %4312 }
 0x46d   : > { %v4619_v27 = vmul.f32 %v4265_v52, %v4171_v11  ;;  %v4627_v60 = vmul.f32 %v4313_v12, %v4179_v10 }
 0x46f   : > { %v4697_v1 = vsel %vm1033_vm3, %v4619_v27, 0.0  ;;  %v4733_v11 = vsel %vm1033_vm3, %v4627_v60, 0.0 }
 0x470   : > { %v4698_v50 = vadd.f32 %v4697_v1, %v4696_v9  ;;  %v9559_v1 = vld [vmem:[#allocation54_spill] sm:$0xff] }
 0x472   : > { %4432 = vperm.xlu2 %6651, %v9557_v45   ;;  %4414 = vperm.xlu1 %6650, %v9556_v5   ;;  %v4699_v14 = vrot.slane %v4698_v50, 4 }
 0x474   : > { %v4277_v25 = vpop.permute.xlu1 %4276  ;;  %v4700_v55 = vadd.f32 %v4699_v14, %v4698_v50 }
 0x475   : > { %v4621_v38 = vmul.f32 %v4277_v25, %v4173_v62  ;;  %v4681_v25 = vrot.slane %v4680_v59, 4 }
 0x476   : > { %v4701_v27 = vrot.slane %v4700_v55, 2 }
 0x477   : > { %v4706_v23 = vsel %vm1033_vm3, %v4621_v38, 0.0  ;;  %v4682_v40 = vadd.f32 %v4681_v25, %v4680_v59 }
 0x478   : > { %v4707_v58 = vadd.f32 %v4706_v23, %v4705_v56  ;;  %v4702_v18 = vadd.f32 %v4701_v27, %v4700_v55  ;;  %v9560_v23 = vunpack.c.l.bf16 %v7801_v34 }
 0x479   : > { %v4683_v48 = vrot.slane %v4682_v40, 2 }
 0x47a   : > { %6653 = vset.pattern.permute.xlu2 %v8692_v41  ;;  %4426 = vperm.xlu1 %6650, %v9557_v45   ;;  %v4708_v5 = vrot.slane %v4707_v58, 4  ;;  %v4716_v45 = vadd.f32 %v4715_v2, %v4714_v22  ;;  %v4703_v54 = vrot.slane %v4702_v18, 1  ;;  %v4966_v31 = vmul.f32 %v9560_v23, %v8825_v33 }
 0x47c   : > { %v4709_v62 = vadd.f32 %v4708_v5, %v4707_v58  ;;  %v4974_v37 = vrot.slane %v4966_v31, 1  ;;  %v4975_v10 = vrot.slane %v4966_v31, 2  ;;  %v4704_v12 = vadd.f32 %v4703_v54, %v4702_v18 }
 0x47d   : > { %v4976_v8 = vrot.slane %v4966_v31, 3 }
 0x47e   : > { %v4710_v61 = vrot.slane %v4709_v62, 2 }
 0x480   : > { %v4711_v42 = vadd.f32 %v4710_v61, %v4709_v62  ;;  %v4979_v62 = vrot.slane %v4966_v31, 6 }
 0x482   : > { %4450 = vperm.xlu2 %6653, %v9558_v7   ;;  %6652 = vset.pattern.permute.xlu1 %v8701_v36 }
 0x484   : > { %v4295_v17 = vpop.permute.xlu1 %4294 }
 0x485   : > { %v4624_v53 = vmul.f32 %v4295_v17, %v4176_v35  ;;  %v4693_v35 = vadd.f32 %v4692_v6, %v4691_v51  ;;  %v4684_v17 = vadd.f32 %v4683_v48, %v4682_v40  ;;  %v4978_v51 = vrot.slane %v4966_v31, 5 }
 0x487   : > { %v4723_v0 = vsel %vm1033_vm3, %v4624_v53, 0.0  ;;  %v4694_v24 = vrot.slane %v4693_v35, 1  ;;  %v4712_v53 = vrot.slane %v4711_v42, 1  ;;  %v4685_v58 = vrot.slane %v4684_v17, 1 }
 0x488   : > { %v4725_v63 = vadd.f32 %v4724_v39, %v4723_v0  ;;  %v9092_v39 = vpop.permute.xlu2 %4330 }
 0x489   : > { %v4695_v20 = vadd.f32 %v4694_v24, %v4693_v35  ;;  %v4713_v22 = vadd.f32 %v4712_v53, %v4711_v42  ;;  %v4980_v35 = vrot.slane %v4966_v31, 7 }
 0x48a   : > { %4462 = vperm.xlu2 %6653, %v9526_v15   ;;  %4444 = vperm.xlu1 %6652, %v9508_v16   ;;  %v4726_v15 = vrot.slane %v4725_v63, 4  ;;  %v4717_v16 = vrot.slane %v4716_v45, 4 }
 0x48b   : > { %v5035_v60 = vadd.f32 %v4974_v37, %v4695_v20  ;;  %v4185_v37 = vld [vmem:[#allocation4 + $0x138] sm:$0xff]  ;;  %v4349_v20 = vpop.permute.xlu0 %4348 }
 0x48c   : > { %v4307_v52 = vpop.permute.xlu1 %4306  ;;  %v4727_v29 = vadd.f32 %v4726_v15, %v4725_v63  ;;  %v4718_v13 = vadd.f32 %v4717_v16, %v4716_v45  ;;  %v9561_v63 = vld [vmem:[#allocation55_spill] sm:$0xff]  ;;  %v5036_v45 = vadd.f32 %v4975_v10, %v4704_v12  ;;  %v4186_v10 = vld [vmem:[#allocation4 + $0x150] sm:$0xff] }
 0x48d   : > { %v4626_v19 = vmul.f32 %v4307_v52, %v4178_v43  ;;  %v4686_v52 = vadd.f32 %v4685_v58, %v4684_v17  ;;  %v4187_v58 = vld [vmem:[#allocation4 + $0x158] sm:$0xff]  ;;  %v4184_v12 = vld [vmem:[#allocation4 + $0x130] sm:$0xff] }
 0x48e   : > { %v4728_v44 = vrot.slane %v4727_v29, 2  ;;  %v4719_v9 = vrot.slane %v4718_v13, 2  ;;  %v5100_v6 = vrot.slane %v5036_v45, 6  ;;  %v9565_v45 = vld [vmem:[#allocation63_spill] sm:$0xff] }
 0x48f   : > { %v4732_v3 = vsel %vm1033_vm3, %v4626_v19, 0.0  ;;  %v5037_v19 = vadd.f32 %v4976_v8, %v4713_v22  ;;  %v4190_v8 = vld [vmem:[#allocation4 + $0x190] sm:$0xff]  ;;  %v4633_v22 = vmul.f32 %v4349_v20, %v4185_v37 }
 0x490   : > { %v4734_v21 = vadd.f32 %v4733_v11, %v4732_v3  ;;  %v4729_v30 = vadd.f32 %v4728_v44, %v4727_v29  ;;  %v4720_v4 = vadd.f32 %v4719_v9, %v4718_v13  ;;  %v4977_v11 = vrot.slane %v4966_v31, 4 }
 0x491   : > { %v5102_v40 = vrot.slane %v5037_v19, 5  ;;  %v4191_v19 = vld [vmem:[#allocation4 + $0x198] sm:$0xff] }
 0x492   : > { %v4735_v46 = vrot.slane %v4734_v21, 4  ;;  %6655 = vset.pattern.permute.xlu2 %v8701_v36  ;;  %4456 = vperm.xlu1 %6652, %v9558_v7   ;;  %v4181_v7 = vld [vmem:[#allocation4 + $0xf8] sm:$0xff]  ;;  %v4730_v2 = vrot.slane %v4729_v30, 1  ;;  %v4721_v59 = vrot.slane %v4720_v4, 1 }
 0x494   : > { %v4736_v38 = vadd.f32 %v4735_v46, %v4734_v21  ;;  %v4731_v25 = vadd.f32 %v4730_v2, %v4729_v30  ;;  %v4722_v3 = vadd.f32 %v4721_v59, %v4720_v4  ;;  %v5098_v21 = vrot.slane %v5035_v60, 7  ;;  %v9562_v30 = vld [vmem:[#allocation61_spill] sm:$0xff] }
 0x495   : > { %v5034_v46 = vadd.f32 %v4966_v31, %v4686_v52  ;;  %v4183_v2 = vld [vmem:[#allocation4 + $0x118] sm:$0xff]  ;;  %v4182_v52 = vld [vmem:[#allocation4 + $0x110] sm:$0xff] }
 0x496   : > { %v4737_v49 = vrot.slane %v4736_v38, 2  ;;  %v5039_v27 = vadd.f32 %v4978_v51, %v4731_v25  ;;  %v5038_v29 = vadd.f32 %v4977_v11, %v4722_v3 }
 0x497   : > { %v5099_v57 = vsel %vm4096_vm2, %v5098_v21, %v5034_v46 }
 0x498   : > { %v4738_v56 = vadd.f32 %v4737_v49, %v4736_v38  ;;  %v4343_v38 = vpop.permute.xlu2 %4342  ;;  %v5101_v18 = vsel %vm4099_vm4, %v5100_v6, %v5099_v57  ;;  %v5106_v44 = vrot.slane %v5039_v27, 3  ;;  %v5104_v9 = vrot.slane %v5038_v29, 4  ;;  %v4194_v6 = vld [vmem:[#allocation4 + $0x1d0] sm:$0xff]  ;;  %v4409_v27 = vpop.permute.xlu0 %4408 }
 0x499   : > { %v5103_v42 = vsel %vm4102_vm5, %v5102_v40, %v5101_v18  ;;  %v4195_v40 = vld [vmem:[#allocation4 + $0x1d8] sm:$0xff]  ;;  %v4192_v18 = vld [vmem:[#allocation4 + $0x1b0] sm:$0xff] }
 0x49a   : > { %4480 = vperm.xlu2 %6655, %v9559_v1   ;;  %6654 = vset.pattern.permute.xlu1 %v8692_v41  ;;  %v4739_v14 = vrot.slane %v4738_v56, 1 }
 0x49c   : > { %v4325_v26 = vpop.permute.xlu1 %4324  ;;  %v4740_v15 = vadd.f32 %v4739_v14, %v4738_v56  ;;  %v4632_v14 = vmul.f32 %v4343_v38, %v4184_v12 }
 0x49d   : > { %v4629_v50 = vmul.f32 %v4325_v26, %v4181_v7 }
 0x49e   : > { %v5040_v13 = vadd.f32 %v4979_v62, %v4740_v15  ;;  %v4630_v15 = vmul.f32 %v9092_v39, %v4182_v52  ;;  %v4759_v21 = vsel %vm1033_vm3, %v4632_v14, 0.0  ;;  %v4197_v52 = vld [vmem:[#allocation4 + $0x1f8] sm:$0xff] }
 0x49f   : > { %v4742_v0 = vsel %vm1033_vm3, %v4629_v50, 0.0 }
 0x4a0   : > { %v4743_v43 = vadd.f32 %v4742_v0, %v4741_v47  ;;  %v5108_v49 = vrot.slane %v5040_v13, 2  ;;  %v4361_v23 = vpop.permute.xlu2 %4360  ;;  %v9563_v47 = vld [vmem:[#allocation60_spill] sm:$0xff] }
 0x4a1   : > { %v4188_v0 = vld [vmem:[#allocation4 + $0x170] sm:$0xff] }
 0x4a2   : > { %v4744_v5 = vrot.slane %v4743_v43, 4  ;;  %4492 = vperm.xlu2 %6655, %v9561_v63   ;;  %4474 = vperm.xlu1 %6654, %v9559_v1   ;;  %v5105_v1 = vsel %vm4105_vm6, %v5104_v9, %v5103_v42 }
 0x4a3   : > { %v5107_v7 = vsel %vm4108_vm7, %v5106_v44, %v5105_v1  ;;  %v4643_v44 = vmul.f32 %v4409_v27, %v4195_v40  ;;  %v4193_v1 = vld [vmem:[#allocation4 + $0x1b8] sm:$0xff] }
 0x4a4   : > { %v4745_v55 = vadd.f32 %v4744_v5, %v4743_v43  ;;  %v5109_v54 = vsel %vm4111_vm8, %v5108_v49, %v5107_v7  ;;  %v4337_v53 = vpop.permute.xlu1 %4336  ;;  %v4635_v43 = vmul.f32 %v4361_v23, %v4187_v58  ;;  %v9564_v5 = vld [vmem:[#allocation10_spill] sm:$0xff] }
 0x4a5   : > { %v4631_v51 = vmul.f32 %v4337_v53, %v4183_v2  ;;  %v4805_v53 = vsel %vm1033_vm3, %v4643_v44, 0.0 }
 0x4a6   : > { %v4746_v16 = vrot.slane %v4745_v55, 2  ;;  %v4769_v11 = vsel %vm1033_vm3, %v4635_v43, 0.0 }
 0x4a7   : > { %v4751_v13 = vsel %vm1033_vm3, %v4631_v51, 0.0 }
 0x4a8   : > { %v4747_v61 = vadd.f32 %v4746_v16, %v4745_v55  ;;  %v4373_v4 = vpop.permute.xlu2 %4372  ;;  %v4760_v55 = vsel %vm1033_vm3, %v4633_v22, 0.0 }
 0x4aa   : > { %v4748_v48 = vrot.slane %v4747_v61, 1  ;;  %6657 = vset.pattern.permute.xlu2 %v8692_v41  ;;  %4486 = vperm.xlu1 %6654, %v9561_v63   ;;  %v4638_v63 = vmul.f32 %v9564_v5, %v4190_v8 }
 0x4ac   : > { %v4749_v32 = vadd.f32 %v4748_v48, %v4747_v61  ;;  %v4786_v29 = vsel %vm1033_vm3, %v4638_v63, 0.0  ;;  %v4761_v48 = vadd.f32 %v4760_v55, %v4759_v21 }
 0x4ae   : > { %v5041_v24 = vadd.f32 %v4980_v35, %v4749_v32  ;;  %v4750_v32 = vsel %vm1033_vm3, %v4630_v15, 0.0 }
 0x4af   : > { %v4752_v49 = vadd.f32 %v4751_v13, %v4750_v32 }
 0x4b0   : > { %v5110_v17 = vrot.slane %v5041_v24, 1  ;;  %v4391_v56 = vpop.permute.xlu2 %4390  ;;  %v9566_v24 = vld [vmem:[#allocation43_spill] sm:$0xff] }
 0x4b2   : > { %v5111_v31 = vsel %vm4114_vm9, %v5110_v17, %v5109_v54  ;;  %4510 = vperm.xlu2 %6657, %v9562_v30   ;;  %6656 = vset.pattern.permute.xlu1 %v8701_v36  ;;  %v4640_v17 = vmul.f32 %v4391_v56, %v4192_v18  ;;  %v4762_v54 = vrot.slane %v4761_v48, 4 }
 0x4b3   : > { %5748 = vst.msk [vmem:[%s6985_s1 + $0x20] sm:$0xff] %vm1033_vm3, %v5111_v31 }
 0x4b4   : > { %v4355_v26 = vpop.permute.xlu1 %4354  ;;  %v4795_v37 = vsel %vm1033_vm3, %v4640_v17, 0.0 }
 0x4b5   : > { %v4634_v59 = vmul.f32 %v4355_v26, %v4186_v10  ;;  %v4763_v10 = vadd.f32 %v4762_v54, %v4761_v48 }
 0x4b7   : > { %v4768_v3 = vsel %vm1033_vm3, %v4634_v59, 0.0 }
 0x4b8   : > { %v4403_v46 = vpop.permute.xlu2 %4402  ;;  %v4770_v57 = vadd.f32 %v4769_v11, %v4768_v3 }
 0x4b9   : > { %v4642_v42 = vmul.f32 %v4403_v46, %v4194_v6  ;;  %v9568_v6 = vld [vmem:[#allocation64_spill] sm:$0xff] }
 0x4ba   : > { %4522 = vperm.xlu2 %6657, %v9528_v28   ;;  %4504 = vperm.xlu1 %6656, %v9563_v47   ;;  %v4189_v28 = vld [vmem:[#allocation4 + $0x178] sm:$0xff]  ;;  %v4771_v7 = vrot.slane %v4770_v57, 4  ;;  %v4196_v46 = vld [vmem:[#allocation4 + $0x1f0] sm:$0xff] }
 0x4bb   : > { %v4637_v25 = vmul.f32 %v4373_v4, %v4189_v28  ;;  %v4804_v31 = vsel %vm1033_vm3, %v4642_v42, 0.0  ;;  %v4753_v4 = vrot.slane %v4752_v49, 4  ;;  %v4764_v28 = vrot.slane %v4763_v10, 2 }
 0x4bc   : > { %v4367_v50 = vpop.permute.xlu1 %4366  ;;  %v4806_v20 = vadd.f32 %v4805_v53, %v4804_v31 }
 0x4bd   : > { %v4636_v60 = vmul.f32 %v4367_v50, %v4188_v0  ;;  %v4778_v38 = vsel %vm1033_vm3, %v4637_v25, 0.0  ;;  %v4772_v50 = vadd.f32 %v4771_v7, %v4770_v57  ;;  %v4754_v8 = vadd.f32 %v4753_v4, %v4752_v49 }
 0x4be   : > { %v4807_v43 = vrot.slane %v4806_v20, 4  ;;  %v4765_v51 = vadd.f32 %v4764_v28, %v4763_v10 }
 0x4bf   : > { %v4777_v16 = vsel %vm1033_vm3, %v4636_v60, 0.0  ;;  %v4773_v2 = vrot.slane %v4772_v50, 2  ;;  %v4755_v5 = vrot.slane %v4754_v8, 2 }
 0x4c0   : > { %v4779_v39 = vadd.f32 %v4778_v38, %v4777_v16 }
 0x4c1   : > { %v4756_v21 = vadd.f32 %v4755_v5, %v4754_v8 }
 0x4c2   : > { %6659 = vset.pattern.permute.xlu2 %v8701_v36  ;;  %4516 = vperm.xlu1 %6656, %v9562_v30   ;;  %v4780_v23 = vrot.slane %v4779_v39, 4 }
 0x4c3   : > { %v4757_v48 = vrot.slane %v4756_v21, 1 }
 0x4c4   : > { %v4781_v12 = vadd.f32 %v4780_v23, %v4779_v39  ;;  %v4421_v55 = vpop.permute.xlu2 %4420 }
 0x4c5   : > { %v4645_v3 = vmul.f32 %v4421_v55, %v4197_v52  ;;  %v4758_v54 = vadd.f32 %v4757_v48, %v4756_v21  ;;  %v4204_v48 = vld [vmem:[#allocation4 + $0x270] sm:$0xff] }
 0x4c6   : > { %v4782_v59 = vrot.slane %v4781_v12, 2 }
 0x4c7   : > { %v4814_v57 = vsel %vm1033_vm3, %v4645_v3, 0.0 }
 0x4c8   : > { %v4783_v25 = vadd.f32 %v4782_v59, %v4781_v12 }
 0x4ca   : > { %4540 = vperm.xlu2 %6659, %v9565_v45   ;;  %6658 = vset.pattern.permute.xlu1 %v8692_v41 }
 0x4cc   : > { %v4385_v62 = vpop.permute.xlu1 %4384  ;;  %v4433_v5 = vpop.permute.xlu2 %4432 }
 0x4cd   : > { %v4639_v61 = vmul.f32 %v4385_v62, %v4191_v19  ;;  %v4808_v19 = vadd.f32 %v4807_v43, %v4806_v20  ;;  %v9567_v62 = vunpack.c.h.bf16 %v7801_v34 }
 0x4cf   : > { %v4787_v35 = vsel %vm1033_vm3, %v4639_v61, 0.0  ;;  %v9139_v15 = vmul.f32 %v9567_v62, %v8825_v33  ;;  %v4809_v27 = vrot.slane %v4808_v19, 2  ;;  %v4766_v61 = vrot.slane %v4765_v51, 1 }
 0x4d0   : > { %v4788_v9 = vadd.f32 %v4787_v35, %v4786_v29  ;;  %v4784_v29 = vrot.slane %v4783_v25, 1 }
 0x4d1   : > { %v4981_v34 = vrot.slane %v9139_v15, 1  ;;  %v4982_v18 = vrot.slane %v9139_v15, 2  ;;  %v4810_v44 = vadd.f32 %v4809_v27, %v4808_v19  ;;  %v4983_v49 = vrot.slane %v9139_v15, 3  ;;  %v9572_v27 = vld [vmem:[#allocation59_spill] sm:$0xff] }
 0x4d2   : > { %4552 = vperm.xlu2 %6659, %v9566_v24   ;;  %4534 = vperm.xlu1 %6658, %v9565_v45   ;;  %v4789_v26 = vrot.slane %v4788_v9, 4  ;;  %v4774_v45 = vadd.f32 %v4773_v2, %v4772_v50  ;;  %v4984_v7 = vrot.slane %v9139_v15, 4  ;;  %v4985_v23 = vrot.slane %v9139_v15, 5 }
 0x4d3   : > { %v4811_v4 = vrot.slane %v4810_v44, 1  ;;  %v5042_v10 = vadd.f32 %v9139_v15, %v4758_v54  ;;  %v4986_v8 = vrot.slane %v9139_v15, 6 }
 0x4d4   : > { %v4397_v30 = vpop.permute.xlu1 %4396  ;;  %v4790_v56 = vadd.f32 %v4789_v26, %v4788_v9  ;;  %v4775_v40 = vrot.slane %v4774_v45, 1  ;;  %v4767_v9 = vadd.f32 %v4766_v61, %v4765_v51  ;;  %v9570_v26 = vld [vmem:[#allocation44_spill] sm:$0xff] }
 0x4d5   : > { %v4641_v47 = vmul.f32 %v4397_v30, %v4193_v1  ;;  %v9569_v30 = vld [vmem:[#allocation65_spill] sm:$0xff] }
 0x4d6   : > { %v4791_v60 = vrot.slane %v4790_v56, 2  ;;  %v4776_v42 = vadd.f32 %v4775_v40, %v4774_v45  ;;  %v5043_v50 = vadd.f32 %v4981_v34, %v4767_v9  ;;  %v4207_v9 = vld [vmem:[#allocation4 + $0x298] sm:$0xff] }
 0x4d7   : > { %v4796_v58 = vsel %vm1033_vm3, %v4641_v47, 0.0 }
 0x4d8   : > { %v4797_v0 = vadd.f32 %v4796_v58, %v4795_v37  ;;  %v4792_v11 = vadd.f32 %v4791_v60, %v4790_v56  ;;  %v5044_v47 = vadd.f32 %v4982_v18, %v4776_v42  ;;  %v5112_v2 = vrot.slane %v5043_v50, 7  ;;  %v4469_v18 = vpop.permute.xlu0 %4468 }
 0x4da   : > { %v4798_v22 = vrot.slane %v4797_v0, 4  ;;  %6662 = vset.pattern.permute.xlu2 %v8692_v41  ;;  %4546 = vperm.xlu1 %6658, %v9566_v24   ;;  %v4793_v38 = vrot.slane %v4792_v11, 1  ;;  %v4785_v24 = vadd.f32 %v4784_v29, %v4783_v25  ;;  %v5114_v56 = vrot.slane %v5044_v47, 6 }
 0x4dc   : > { %v4799_v14 = vadd.f32 %v4798_v22, %v4797_v0  ;;  %v4794_v17 = vadd.f32 %v4793_v38, %v4792_v11  ;;  %v5045_v37 = vadd.f32 %v4983_v49, %v4785_v24  ;;  %v4812_v22 = vadd.f32 %v4811_v4, %v4810_v44  ;;  %v4203_v38 = vld [vmem:[#allocation4 + $0x258] sm:$0xff]  ;;  %v9573_v44 = vld [vmem:[#allocation30_spill] sm:$0xff]  ;;  %v4206_v49 = vld [vmem:[#allocation4 + $0x290] sm:$0xff] }
 0x4de   : > { %v4800_v63 = vrot.slane %v4799_v14, 2  ;;  %v5046_v58 = vadd.f32 %v4984_v7, %v4794_v17  ;;  %v5116_v43 = vrot.slane %v5045_v37, 5  ;;  %v5048_v19 = vadd.f32 %v4986_v8, %v4812_v22 }
 0x4e0   : > { %v4801_v16 = vadd.f32 %v4800_v63, %v4799_v14  ;;  %v5118_v59 = vrot.slane %v5046_v58, 4  ;;  %v5113_v14 = vsel %vm4096_vm2, %v5112_v2, %v5042_v10  ;;  %v4987_v63 = vrot.slane %v9139_v15, 7 }
 0x4e1   : > { %v5115_v45 = vsel %vm4099_vm4, %v5114_v56, %v5113_v14  ;;  %v5122_v62 = vrot.slane %v5048_v19, 2 }
 0x4e2   : > { %4570 = vperm.xlu2 %6662, %v9568_v6   ;;  %6661 = vset.pattern.permute.xlu1 %v8701_v36  ;;  %v4802_v39 = vrot.slane %v4801_v16, 1  ;;  %v5117_v51 = vsel %vm4102_vm5, %v5116_v43, %v5115_v45  ;;  %v4208_v43 = vld [vmem:[#allocation4 + $0x2b0] sm:$0xff] }
 0x4e3   : > { %v5119_v55 = vsel %vm4105_vm6, %v5118_v59, %v5117_v51 }
 0x4e4   : > { %v4415_v13 = vpop.permute.xlu1 %4414  ;;  %v4803_v31 = vadd.f32 %v4802_v39, %v4801_v16  ;;  %v4205_v39 = vld [vmem:[#allocation4 + $0x278] sm:$0xff] }
 0x4e5   : > { %v4644_v35 = vmul.f32 %v4415_v13, %v4196_v46  ;;  %v4451_v46 = vpop.permute.xlu2 %4450  ;;  %v4201_v13 = vld [vmem:[#allocation4 + $0x238] sm:$0xff]  ;;  %v4653_v17 = vmul.f32 %v4469_v18, %v4205_v39 }
 0x4e6   : > { %v5047_v12 = vadd.f32 %v4985_v23, %v4803_v31  ;;  %v4199_v31 = vld [vmem:[#allocation4 + $0x218] sm:$0xff] }
 0x4e7   : > { %v4813_v32 = vsel %vm1033_vm3, %v4644_v35, 0.0  ;;  %v4202_v35 = vld [vmem:[#allocation4 + $0x250] sm:$0xff]  ;;  %v4850_v10 = vsel %vm1033_vm3, %v4653_v17, 0.0  ;;  %v4211_v18 = vld [vmem:[#allocation4 + $0x2d8] sm:$0xff] }
 0x4e8   : > { %v4815_v1 = vadd.f32 %v4814_v57, %v4813_v32  ;;  %v5120_v60 = vrot.slane %v5047_v12, 3  ;;  %v4200_v57 = vld [vmem:[#allocation4 + $0x230] sm:$0xff]  ;;  %v4650_v24 = vmul.f32 %v4451_v46, %v4202_v35  ;;  %v4209_v12 = vld [vmem:[#allocation4 + $0x2b8] sm:$0xff] }
 0x4e9   : > { %v4648_v32 = vmul.f32 %v9573_v44, %v4200_v57 }
 0x4ea   : > { %v4816_v53 = vrot.slane %v4815_v1, 4  ;;  %4582 = vperm.xlu2 %6662, %v9569_v30   ;;  %4564 = vperm.xlu1 %6661, %v9570_v26   ;;  %v5121_v11 = vsel %vm4108_vm7, %v5120_v60, %v5119_v55  ;;  %v4840_v50 = vsel %vm1033_vm3, %v4650_v24, 0.0  ;;  %v9575_v24 = vld [vmem:[#allocation66_spill] sm:$0xff] }
 0x4eb   : > { %v5123_v15 = vsel %vm4111_vm8, %v5122_v62, %v5121_v11  ;;  %v4831_v47 = vsel %vm1033_vm3, %v4648_v32, 0.0 }
 0x4ec   : > { %v4817_v20 = vadd.f32 %v4816_v53, %v4815_v1  ;;  %v4198_v1 = vld [vmem:[#allocation4 + $0x210] sm:$0xff] }
 0x4ed   : > { %v4463_v61 = vpop.permute.xlu2 %4462 }
 0x4ee   : > { %v4818_v0 = vrot.slane %v4817_v20, 2  ;;  %v4652_v7 = vmul.f32 %v4463_v61, %v4204_v48  ;;  %v9574_v48 = vld [vmem:[#allocation37_spill] sm:$0xff] }
 0x4f0   : > { %v4819_v28 = vadd.f32 %v4818_v0, %v4817_v20  ;;  %v4647_v20 = vmul.f32 %v4433_v5, %v4199_v31  ;;  %v4849_v58 = vsel %vm1033_vm3, %v4652_v7, 0.0 }
 0x4f2   : > { %v4820_v52 = vrot.slane %v4819_v28, 1  ;;  %4576 = vperm.xlu1 %6661, %v9568_v6   ;;  %6664 = vset.pattern.permute.xlu2 %v8701_v36  ;;  %v4427_v6 = vpop.permute.xlu1 %4426  ;;  %v9571_v36 = vld [vmem:[#allocation58_spill] sm:$0xff]  ;;  %v4823_v60 = vsel %vm1033_vm3, %v4647_v20, 0.0 }
 0x4f3   : > { %v4646_v4 = vmul.f32 %v4427_v6, %v4198_v1  ;;  %v9576_v1 = vunpack.c.l.bf16 %v9575_v24 }
 0x4f4   : > { %v4821_v25 = vadd.f32 %v4820_v52, %v4819_v28  ;;  %v4851_v28 = vadd.f32 %v4850_v10, %v4849_v58 }
 0x4f5   : > { %v4481_v34 = vpop.permute.xlu2 %4480  ;;  %v4822_v22 = vsel %vm1033_vm3, %v4646_v4, 0.0  ;;  %v9188_v7 = vmul.f32 %v9576_v1, %v8825_v33 }
 0x4f6   : > { %v5049_v3 = vadd.f32 %v4987_v63, %v4821_v25  ;;  %v4655_v53 = vmul.f32 %v4481_v34, %v4207_v9  ;;  %v4824_v45 = vadd.f32 %v4823_v60, %v4822_v22  ;;  %v4852_v51 = vrot.slane %v4851_v28, 4 }
 0x4f7   : > { %v4989_v4 = vrot.slane %v9188_v7, 2  ;;  %v4990_v22 = vrot.slane %v9188_v7, 3 }
 0x4f8   : > { %v5124_v21 = vrot.slane %v5049_v3, 1  ;;  %v4859_v56 = vsel %vm1033_vm3, %v4655_v53, 0.0  ;;  %v4853_v6 = vadd.f32 %v4852_v51, %v4851_v28 }
 0x4fa   : > { %v5125_v16 = vsel %vm4114_vm9, %v5124_v21, %v5123_v15  ;;  %6663 = vset.pattern.permute.xlu1 %v8692_v41  ;;  %4600 = vperm.xlu2 %6664, %v9571_v36   ;;  %v4825_v15 = vrot.slane %v4824_v45, 4 }
 0x4fb   : > { %5749 = vst.msk [vmem:[%s6985_s1 + $0x28] sm:$0xff] %vm1033_vm3, %v5125_v16 }
 0x4fc   : > { %v4445_v40 = vpop.permute.xlu1 %4444 }
 0x4fd   : > { %v4649_v41 = vmul.f32 %v4445_v40, %v4201_v13  ;;  %v4493_v2 = vpop.permute.xlu2 %4492  ;;  %v4854_v13 = vrot.slane %v4853_v6, 2 }
 0x4fe   : > { %v4657_v14 = vmul.f32 %v4493_v2, %v4209_v12 }
 0x4ff   : > { %v4832_v54 = vsel %vm1033_vm3, %v4649_v41, 0.0 }
 0x500   : > { %v4833_v37 = vadd.f32 %v4832_v54, %v4831_v47  ;;  %v4868_v55 = vsel %vm1033_vm3, %v4657_v14, 0.0  ;;  %v4991_v14 = vrot.slane %v9188_v7, 4 }
 0x502   : > { %4594 = vperm.xlu1 %6663, %v9571_v36   ;;  %4612 = vperm.xlu2 %6664, %v9572_v27   ;;  %v4834_v59 = vrot.slane %v4833_v37, 4 }
 0x504   : > { %v4457_v29 = vpop.permute.xlu1 %4456  ;;  %v4835_v25 = vadd.f32 %v4834_v59, %v4833_v37  ;;  %v4212_v37 = vld [vmem:[#allocation4 + $0x2f0] sm:$0xff] }
 0x505   : > { %v4651_v42 = vmul.f32 %v4457_v29, %v4203_v38  ;;  %v4210_v29 = vld [vmem:[#allocation4 + $0x2d0] sm:$0xff] }
 0x506   : > { %v4836_v36 = vrot.slane %v4835_v25, 2  ;;  %v4658_v39 = vmul.f32 %v9574_v48, %v4210_v29 }
 0x507   : > { %v4841_v30 = vsel %vm1033_vm3, %v4651_v42, 0.0  ;;  %v4855_v42 = vadd.f32 %v4854_v13, %v4853_v6 }
 0x508   : > { %v4842_v0 = vadd.f32 %v4841_v30, %v4840_v50  ;;  %v4837_v38 = vadd.f32 %v4836_v36, %v4835_v25  ;;  %v4876_v31 = vsel %vm1033_vm3, %v4658_v39, 0.0  ;;  %v4988_v30 = vrot.slane %v9188_v7, 1 }
 0x509   : > { %v4856_v53 = vrot.slane %v4855_v42, 1 }
 0x50a   : > { %4606 = vperm.xlu1 %6663, %v9572_v27   ;;  %v4843_v5 = vrot.slane %v4842_v0, 4  ;;  %v4826_v27 = vadd.f32 %v4825_v15, %v4824_v45  ;;  %v4838_v44 = vrot.slane %v4837_v38, 1  ;;  %v4992_v45 = vrot.slane %v9188_v7, 5 }
 0x50b   : > { %v4857_v2 = vadd.f32 %v4856_v53, %v4855_v42 }
 0x50c   : > { %v4844_v3 = vadd.f32 %v4843_v5, %v4842_v0  ;;  %v4827_v34 = vrot.slane %v4826_v27, 2  ;;  %v4511_v0 = vpop.permute.xlu2 %4510 }
 0x50d   : > { %v4660_v28 = vmul.f32 %v4511_v0, %v4212_v37  ;;  %v5053_v36 = vadd.f32 %v4990_v22, %v4857_v2  ;;  %v4218_v0 = vld [vmem:[#allocation4 + $0x350] sm:$0xff]  ;;  %v4219_v2 = vld [vmem:[#allocation4 + $0x358] sm:$0xff] }
 0x50e   : > { %v4845_v46 = vrot.slane %v4844_v3, 2  ;;  %v4828_v17 = vadd.f32 %v4827_v34, %v4826_v27 }
 0x50f   : > { %v5130_v34 = vrot.slane %v5053_v36, 5 }
 0x510   : > { %v4846_v57 = vadd.f32 %v4845_v46, %v4844_v3  ;;  %v4829_v10 = vrot.slane %v4828_v17, 1 }
 0x512   : > { %v4847_v32 = vrot.slane %v4846_v57, 1 }
 0x514   : > { %v4475_v23 = vpop.permute.xlu1 %4474  ;;  %v4848_v50 = vadd.f32 %v4847_v32, %v4846_v57  ;;  %v4523_v48 = vpop.permute.xlu2 %4522 }
 0x515   : > { %v4654_v26 = vmul.f32 %v4475_v23, %v4206_v49 }
 0x516   : > { %v5052_v59 = vadd.f32 %v4989_v4, %v4848_v50 }
 0x517   : > { %v4858_v8 = vsel %vm1033_vm3, %v4654_v26, 0.0  ;;  %v4839_v26 = vadd.f32 %v4838_v44, %v4837_v38 }
 0x518   : > { %v4860_v63 = vadd.f32 %v4859_v56, %v4858_v8  ;;  %v4213_v8 = vld [vmem:[#allocation4 + $0x2f8] sm:$0xff] }
 0x51a   : > { %v4861_v62 = vrot.slane %v4860_v63, 4 }
 0x51c   : > { %v4487_v52 = vpop.permute.xlu1 %4486  ;;  %v4862_v40 = vadd.f32 %v4861_v62, %v4860_v63  ;;  %v5128_v62 = vrot.slane %v5052_v59, 6 }
 0x51d   : > { %v4656_v19 = vmul.f32 %v4487_v52, %v4208_v43  ;;  %v5051_v43 = vadd.f32 %v4988_v30, %v4839_v26  ;;  %v4830_v52 = vadd.f32 %v4829_v10, %v4828_v17  ;;  %v4994_v17 = vrot.slane %v9188_v7, 7  ;;  %v4216_v10 = vld [vmem:[#allocation4 + $0x330] sm:$0xff] }
 0x51e   : > { %v4863_v35 = vrot.slane %v4862_v40, 2 }
 0x51f   : > { %v4867_v11 = vsel %vm1033_vm3, %v4656_v19, 0.0  ;;  %v5050_v6 = vadd.f32 %v9188_v7, %v4830_v52 }
 0x520   : > { %v4869_v21 = vadd.f32 %v4868_v55, %v4867_v11  ;;  %v4864_v9 = vadd.f32 %v4863_v35, %v4862_v40  ;;  %v5126_v55 = vrot.slane %v5051_v43, 7  ;;  %v4885_v11 = vsel %vm1033_vm3, %v4660_v28, 0.0  ;;  %v4220_v28 = vld [vmem:[#allocation4 + $0x370] sm:$0xff] }
 0x521   : > { %v4993_v40 = vrot.slane %v9188_v7, 6  ;;  %v4215_v7 = vld [vmem:[#allocation4 + $0x318] sm:$0xff] }
 0x522   : > { %v4870_v16 = vrot.slane %v4869_v21, 4  ;;  %v4865_v20 = vrot.slane %v4864_v9, 1  ;;  %v5127_v29 = vsel %vm4096_vm2, %v5126_v55, %v5050_v6 }
 0x523   : > { %v5129_v13 = vsel %vm4099_vm4, %v5128_v62, %v5127_v29 }
 0x524   : > { %v4871_v61 = vadd.f32 %v4870_v16, %v4869_v21  ;;  %v4866_v60 = vadd.f32 %v4865_v20, %v4864_v9  ;;  %v5131_v42 = vsel %vm4102_vm5, %v5130_v34, %v5129_v13  ;;  %v4529_v20 = vpop.permute.xlu0 %4528 }
 0x526   : > { %v4872_v41 = vrot.slane %v4871_v61, 2  ;;  %v5054_v21 = vadd.f32 %v4991_v14, %v4866_v60  ;;  %v4222_v14 = vld [vmem:[#allocation4 + $0x390] sm:$0xff] }
 0x528   : > { %v4873_v54 = vadd.f32 %v4872_v41, %v4871_v61  ;;  %v5132_v38 = vrot.slane %v5054_v21, 4 }
 0x52a   : > { %v4874_v12 = vrot.slane %v4873_v54, 1  ;;  %v5133_v44 = vsel %vm4105_vm6, %v5132_v38, %v5131_v42 }
 0x52c   : > { %v4505_v49 = vpop.permute.xlu1 %4504  ;;  %v4875_v19 = vadd.f32 %v4874_v12, %v4873_v54 }
 0x52d   : > { %v4659_v23 = vmul.f32 %v4505_v49, %v4211_v18 }
 0x52e   : > { %v5055_v46 = vadd.f32 %v4992_v45, %v4875_v19  ;;  %v4223_v45 = vld [vmem:[#allocation4 + $0x398] sm:$0xff]  ;;  %v9577_v19 = vld [vmem:[#allocation11_spill] sm:$0xff] }
 0x52f   : > { %v4877_v47 = vsel %vm1033_vm3, %v4659_v23, 0.0 }
 0x530   : > { %v4878_v58 = vadd.f32 %v4877_v47, %v4876_v31  ;;  %v5134_v41 = vrot.slane %v5055_v46, 3  ;;  %v4541_v31 = vpop.permute.xlu2 %4540 }
 0x532   : > { %v4879_v56 = vrot.slane %v4878_v58, 4  ;;  %v5135_v49 = vsel %vm4108_vm7, %v5134_v41, %v5133_v44 }
 0x534   : > { %v4880_v5 = vadd.f32 %v4879_v56, %v4878_v58  ;;  %v4517_v63 = vpop.permute.xlu1 %4516  ;;  %v4217_v58 = vld [vmem:[#allocation4 + $0x338] sm:$0xff] }
 0x535   : > { %v4661_v51 = vmul.f32 %v4517_v63, %v4213_v8  ;;  %v4221_v56 = vld [vmem:[#allocation4 + $0x378] sm:$0xff]  ;;  %v4214_v8 = vld [vmem:[#allocation4 + $0x310] sm:$0xff]  ;;  %v4665_v22 = vmul.f32 %v4541_v31, %v4217_v58 }
 0x536   : > { %v4881_v25 = vrot.slane %v4880_v5, 2  ;;  %v4662_v63 = vmul.f32 %v4523_v48, %v4214_v8  ;;  %v4227_v31 = vld [vmem:[#allocation4 + $0x3d8] sm:$0xff]  ;;  %v4226_v58 = vld [vmem:[#allocation4 + $0x3d0] sm:$0xff] }
 0x537   : > { %v4886_v3 = vsel %vm1033_vm3, %v4661_v51, 0.0  ;;  %v4668_v51 = vmul.f32 %v9577_v19, %v4220_v28 }
 0x538   : > { %v4882_v15 = vadd.f32 %v4881_v25, %v4880_v5  ;;  %v4887_v16 = vadd.f32 %v4886_v3, %v4885_v11  ;;  %v4553_v4 = vpop.permute.xlu2 %4552  ;;  %v4663_v5 = vmul.f32 %v4529_v20, %v4215_v7  ;;  %v4904_v25 = vsel %vm1033_vm3, %v4665_v22, 0.0  ;;  %v4224_v3 = vld [vmem:[#allocation4 + $0x3b0] sm:$0xff] }
 0x539   : > { %v4667_v52 = vmul.f32 %v4553_v4, %v4219_v2  ;;  %v4894_v46 = vsel %vm1033_vm3, %v4662_v63, 0.0  ;;  %v4921_v13 = vsel %vm1033_vm3, %v4668_v51, 0.0 }
 0x53a   : > { %v4883_v27 = vrot.slane %v4882_v15, 1  ;;  %v4888_v61 = vrot.slane %v4887_v16, 4  ;;  %v4895_v36 = vsel %vm1033_vm3, %v4663_v5, 0.0 }
 0x53b   : > { %v4896_v48 = vadd.f32 %v4895_v36, %v4894_v46 }
 0x53c   : > { %v4884_v57 = vadd.f32 %v4883_v27, %v4882_v15  ;;  %v4889_v35 = vadd.f32 %v4888_v61, %v4887_v16  ;;  %v4589_v27 = vpop.permute.xlu0 %4588  ;;  %v4913_v61 = vsel %vm1033_vm3, %v4667_v52, 0.0 }
 0x53e   : > { %v5056_v39 = vadd.f32 %v4993_v40, %v4884_v57  ;;  %v4890_v18 = vrot.slane %v4889_v35, 2  ;;  %v4225_v40 = vld [vmem:[#allocation4 + $0x3b8] sm:$0xff] }
 0x540   : > { %v5136_v32 = vrot.slane %v5056_v39, 2  ;;  %v4891_v9 = vadd.f32 %v4890_v18, %v4889_v35  ;;  %v4571_v37 = vpop.permute.xlu2 %4570  ;;  %v4673_v39 = vmul.f32 %v4589_v27, %v4225_v40 }
 0x541   : > { %v4670_v11 = vmul.f32 %v4571_v37, %v4222_v14 }
 0x542   : > { %v5137_v1 = vsel %vm4111_vm8, %v5136_v32, %v5135_v49  ;;  %v4892_v54 = vrot.slane %v4891_v9, 1  ;;  %v4897_v49 = vrot.slane %v4896_v48, 4 }
 0x543   : > { %v4930_v34 = vsel %vm1033_vm3, %v4670_v11, 0.0 }
 0x544   : > { %v4893_v23 = vadd.f32 %v4892_v54, %v4891_v9  ;;  %v4535_v47 = vpop.permute.xlu1 %4534 }
 0x545   : > { %v4664_v43 = vmul.f32 %v4535_v47, %v4216_v10  ;;  %v4898_v47 = vadd.f32 %v4897_v49, %v4896_v48 }
 0x546   : > { %v5057_v53 = vadd.f32 %v4994_v17, %v4893_v23 }
 0x547   : > { %v4903_v55 = vsel %vm1033_vm3, %v4664_v43, 0.0 }
 0x548   : > { %v5138_v30 = vrot.slane %v5057_v53, 1  ;;  %v4583_v62 = vpop.permute.xlu2 %4582  ;;  %v4905_v29 = vadd.f32 %v4904_v25, %v4903_v55  ;;  %v4228_v55 = vld [vmem:[#allocation4 + $0x3f0] sm:$0xff] }
 0x549   : > { %v4672_v38 = vmul.f32 %v4583_v62, %v4224_v3  ;;  %v9578_v62 = vunpack.c.h.bf16 %v9575_v24 }
 0x54a   : > { %v5139_v26 = vsel %vm4114_vm9, %v5138_v30, %v5137_v1  ;;  %v4906_v42 = vrot.slane %v4905_v29, 4  ;;  %v4940_v1 = vsel %vm1033_vm3, %v4673_v39, 0.0 }
 0x54b   : > { %5750 = vst.msk [vmem:[%s6985_s1 + $0x30] sm:$0xff] %vm1033_vm3, %v5139_v26  ;;  %v4939_v44 = vsel %vm1033_vm3, %v4672_v38, 0.0 }
 0x54c   : > { %v4547_v50 = vpop.permute.xlu1 %4546  ;;  %v4941_v54 = vadd.f32 %v4940_v1, %v4939_v44  ;;  %v4907_v23 = vadd.f32 %v4906_v42, %v4905_v29 }
 0x54d   : > { %v4666_v59 = vmul.f32 %v4547_v50, %v4218_v0 }
 0x54e   : > { %v4942_v37 = vrot.slane %v4941_v54, 4  ;;  %v4908_v20 = vrot.slane %v4907_v23, 2 }
 0x54f   : > { %v4912_v21 = vsel %vm1033_vm3, %v4666_v59, 0.0 }
 0x550   : > { %v4914_v57 = vadd.f32 %v4913_v61, %v4912_v21  ;;  %v4943_v2 = vadd.f32 %v4942_v37, %v4941_v54  ;;  %v4909_v43 = vadd.f32 %v4908_v20, %v4907_v23  ;;  %v4969_v21 = vmul.f32 %v9578_v62, %v8825_v33 }
 0x552   : > { %v4915_v32 = vrot.slane %v4914_v57, 4  ;;  %v4944_v19 = vrot.slane %v4943_v2, 2  ;;  %v4910_v51 = vrot.slane %v4909_v43, 1  ;;  %v4995_v61 = vrot.slane %v4969_v21, 1  ;;  %v5232_v62 = vld [vmem:[%s6985_s1 + $0x30] sm:$0xff] (%p6938_p0) }
 0x553   : > { %v4996_v38 = vrot.slane %v4969_v21, 2  ;;  %v4998_v39 = vrot.slane %v4969_v21, 4 }
 0x554   : > { %v4601_v53 = vpop.permute.xlu2 %4600  ;;  %v4916_v30 = vadd.f32 %v4915_v32, %v4914_v57  ;;  %v4945_v27 = vadd.f32 %v4944_v19, %v4943_v2  ;;  %v4911_v29 = vadd.f32 %v4910_v51, %v4909_v43  ;;  %v5220_v19 = vld [vmem:[%s6985_s1] sm:$0xff] (%p6938_p0)  ;;  %v5222_v51 = vld [vmem:[%s6985_s1 + $0x8] sm:$0xff] (%p6938_p0) }
 0x555   : > { %v4675_v50 = vmul.f32 %v4601_v53, %v4227_v31  ;;  %v5000_v31 = vrot.slane %v4969_v21, 6 }
 0x556   : > { %v4917_v10 = vrot.slane %v4916_v30, 2  ;;  %v4946_v42 = vrot.slane %v4945_v27, 1  ;;  %v5059_v44 = vadd.f32 %v4995_v61, %v4911_v29 }
 0x557   : > { %v4949_v8 = vsel %vm1033_vm3, %v4675_v50, 0.0 }
 0x558   : > { %v4918_v28 = vadd.f32 %v4917_v10, %v4916_v30  ;;  %v4999_v30 = vrot.slane %v4969_v21, 5 }
 0x55a   : > { %v4919_v11 = vrot.slane %v4918_v28, 1 }
 0x55c   : > { %v4565_v12 = vpop.permute.xlu1 %4564  ;;  %v4613_v5 = vpop.permute.xlu2 %4612  ;;  %v4920_v57 = vadd.f32 %v4919_v11, %v4918_v28  ;;  %v5228_v11 = vld [vmem:[%s6985_s1 + $0x20] sm:$0xff] (%p6938_p0) }
 0x55d   : > { %v4669_v60 = vmul.f32 %v4565_v12, %v4221_v56  ;;  %v4899_v56 = vrot.slane %v4898_v47, 2 }
 0x55e   : > { %v5060_v49 = vadd.f32 %v4996_v38, %v4920_v57 }
 0x55f   : > { %v4922_v16 = vsel %vm1033_vm3, %v4669_v60, 0.0  ;;  %v4229_v60 = vld [vmem:[#allocation4 + $0x3f8] sm:$0xff]  ;;  %v4900_v52 = vadd.f32 %v4899_v56, %v4898_v47  ;;  %v5140_v47 = vrot.slane %v5059_v44, 7 }
 0x560   : > { %v4923_v41 = vadd.f32 %v4922_v16, %v4921_v13  ;;  %v4677_v3 = vmul.f32 %v4613_v5, %v4229_v60  ;;  %v5142_v50 = vrot.slane %v5060_v49, 6 }
 0x561   : > { %v4901_v36 = vrot.slane %v4900_v52, 1 }
 0x562   : > { %v4924_v9 = vrot.slane %v4923_v41, 4 }
 0x563   : > { %v4902_v1 = vadd.f32 %v4901_v36, %v4900_v52 }
 0x564   : > { %v4577_v15 = vpop.permute.xlu1 %4576  ;;  %v4925_v26 = vadd.f32 %v4924_v9, %v4923_v41  ;;  %v4997_v41 = vrot.slane %v4969_v21, 3 }
 0x565   : > { %v4671_v6 = vmul.f32 %v4577_v15, %v4223_v45  ;;  %v5058_v37 = vadd.f32 %v4969_v21, %v4902_v1 }
 0x566   : > { %v4926_v12 = vrot.slane %v4925_v26, 2 }
 0x567   : > { %v4931_v35 = vsel %vm1033_vm3, %v4671_v6, 0.0  ;;  %v5141_v56 = vsel %vm4096_vm2, %v5140_v47, %v5058_v37 }
 0x568   : > { %v4932_v18 = vadd.f32 %v4931_v35, %v4930_v34  ;;  %v4927_v14 = vadd.f32 %v4926_v12, %v4925_v26  ;;  %v4958_v35 = vsel %vm1033_vm3, %v4677_v3, 0.0  ;;  %v4947_v26 = vadd.f32 %v4946_v42, %v4945_v27  ;;  %v5230_v3 = vld [vmem:[%s6985_s1 + $0x28] sm:$0xff] (%p6938_p0) }
 0x56a   : > { %v4933_v17 = vrot.slane %v4932_v18, 4  ;;  %v4928_v15 = vrot.slane %v4927_v14, 1 }
 0x56c   : > { %v4934_v4 = vadd.f32 %v4933_v17, %v4932_v18  ;;  %v4929_v48 = vadd.f32 %v4928_v15, %v4927_v14 }
 0x56e   : > { %v4935_v7 = vrot.slane %v4934_v4, 2  ;;  %v5061_v17 = vadd.f32 %v4997_v41, %v4929_v48 }
 0x570   : > { %v4936_v45 = vadd.f32 %v4935_v7, %v4934_v4  ;;  %v5144_v20 = vrot.slane %v5061_v17, 5  ;;  %v5001_v7 = vrot.slane %v4969_v21, 7 }
 0x572   : > { %v4937_v46 = vrot.slane %v4936_v45, 1 }
 0x574   : > { %v4595_v0 = vpop.permute.xlu1 %4594  ;;  %v4938_v18 = vadd.f32 %v4937_v46, %v4936_v45 }
 0x575   : > { %v4674_v22 = vmul.f32 %v4595_v0, %v4226_v58  ;;  %v5063_v0 = vadd.f32 %v4999_v30, %v4947_v26 }
 0x576   : > { %v5062_v23 = vadd.f32 %v4998_v39, %v4938_v18 }
 0x577   : > { %v4948_v59 = vsel %vm1033_vm3, %v4674_v22, 0.0  ;;  %v5143_v22 = vsel %vm4099_vm4, %v5142_v50, %v5141_v56  ;;  %v5148_v14 = vrot.slane %v5063_v0, 3 }
 0x578   : > { %v4950_v63 = vadd.f32 %v4949_v8, %v4948_v59  ;;  %v5146_v10 = vrot.slane %v5062_v23, 4  ;;  %v5145_v2 = vsel %vm4102_vm5, %v5144_v20, %v5143_v22 }
 0x57a   : > { %v4951_v25 = vrot.slane %v4950_v63, 4  ;;  %v5147_v28 = vsel %vm4105_vm6, %v5146_v10, %v5145_v2 }
 0x57b   : > { %v5149_v5 = vsel %vm4108_vm7, %v5148_v14, %v5147_v28 }
 0x57c   : > { %v4952_v16 = vadd.f32 %v4951_v25, %v4950_v63  ;;  %v4607_v6 = vpop.permute.xlu1 %4606  ;;  %v5224_v25 = vld [vmem:[%s6985_s1 + $0x10] sm:$0xff] (%p6938_p0) }
 0x57d   : > { %v4676_v40 = vmul.f32 %v4607_v6, %v4228_v55  ;;  %v5226_v55 = vld [vmem:[%s6985_s1 + $0x18] sm:$0xff] (%p6938_p0) }
 0x57e   : > { %v4953_v13 = vrot.slane %v4952_v16, 2 }
 0x57f   : > { %v4957_v34 = vsel %vm1033_vm3, %v4676_v40, 0.0 }
 0x580   : > { %v4954_v24 = vadd.f32 %v4953_v13, %v4952_v16  ;;  %v4959_v33 = vadd.f32 %v4958_v35, %v4957_v34 }
 0x582   : > { %v4955_v32 = vrot.slane %v4954_v24, 1  ;;  %v4960_v9 = vrot.slane %v4959_v33, 4 }
 0x584   : > { %v4961_v54 = vadd.f32 %v4960_v9, %v4959_v33  ;;  %v4956_v53 = vadd.f32 %v4955_v32, %v4954_v24 }
 0x586   : > { %v4962_v4 = vrot.slane %v4961_v54, 2  ;;  %v5064_v12 = vadd.f32 %v5000_v31, %v4956_v53 }
 0x588   : > { %v4963_v58 = vadd.f32 %v4962_v4, %v4961_v54  ;;  %v5150_v59 = vrot.slane %v5064_v12, 2 }
 0x58a   : > { %v4964_v8 = vrot.slane %v4963_v58, 1  ;;  %v5151_v52 = vsel %vm4111_vm8, %v5150_v59, %v5149_v5 }
 0x58c   : > { %v4965_v43 = vadd.f32 %v4964_v8, %v4963_v58 }
 0x58e   : > { %v5065_v60 = vadd.f32 %v5001_v7, %v4965_v43 }
 0x58f   : > { %5169 = sbr.rel (!%p6938_p0) target bundleno = 1441 (0x5a1), region = 152 }
 0x590   : > { %v5152_v63 = vrot.slane %v5065_v60, 1 }
 0x592   : > { %v5153_v45 = vsel %vm4114_vm9, %v5152_v63, %v5151_v52 }
 0x593   : > { %5751 = vst.msk [vmem:[%s6985_s1 + $0x38] sm:$0xff] %vm1033_vm3, %v5153_v45 }
 0x594   : > { %s9600_s22 = smov (!%p5647_p9, %s6759_s22), %s5171_s20 }
 0x595   : > { %s5753_s9 = sshll.u32 %s9600_s22, 2 }
 0x596   : > { %s5175_s0 = sadd.s32 %s5754_s28, %s5753_s9 }
 0x597   : > { %s5755_s13 = sshll.u32 %s5175_s0, 3 }
 0x598   : > { %s5177_s15 = scalar_lea.vmem %s9290_s5, %s5755_s13 }
 0x599   : > { %5221 = vst [vmem:[%s5177_s15] sm:$0xff] %v5220_v19 }
 0x59a   : > { %5223 = vst [vmem:[%s5177_s15 + $0x8] sm:$0xff] %v5222_v51  ;;  %v5234_v21 = vld [vmem:[%s6985_s1 + $0x38] sm:$0xff] }
 0x59b   : > { %5225 = vst [vmem:[%s5177_s15 + $0x10] sm:$0xff] %v5224_v25 }
 0x59c   : > { %5227 = vst [vmem:[%s5177_s15 + $0x18] sm:$0xff] %v5226_v55 }
 0x59d   : > { %5229 = vst [vmem:[%s5177_s15 + $0x40] sm:$0xff] %v5228_v11 }
 0x59e   : > { %5231 = vst [vmem:[%s5177_s15 + $0x48] sm:$0xff] %v5230_v3 }
 0x59f   : > { %5233 = vst [vmem:[%s5177_s15 + $0x50] sm:$0xff] %v5232_v62 }
 0x5a0   : > { %5235 = vst [vmem:[%s5177_s15 + $0x58] sm:$0xff] %v5234_v21 }
 0x5a1 PF: > { %s15_s26 = sadd.s32 1, %s6775_s26   ;;  %s9579_s17 = sld [smem:[#allocation8_spill]] }
 0x5a2   : > { %p12_p11 = scmp.ge.s32.totalorder %s15_s26, 10   ;;  %s9580_s6 = sld [smem:[#allocation9_spill]] }
 0x5a3   : > { %s9581_s18 = smov %s6747_s19  ;;  %s9582_s19 = smov %s6930_s14 }
 0x5a4   : > { %s9583_s20 = smov %s6755_s21  ;;  %s9584_s21 = smov %s6927_s27 }
 0x5a5   : > { %s9585_s22 = smov %s6767_s24  ;;  %s9586_s23 = smov %s6771_s25 }
 0x5a6   :  { %14 = sbr.rel (!%p12_p11) target bundleno = 8 (0x8), region = 293 }
 0x5a7   : > { %s9587_s24 = smov %s9579_s17 }
 0x5a8   : > { %s9588_s25 = smov %s9580_s6 }

</bundles_post_ra>
